<compile_context>
chip_gen: v6e
topology: v6e:2x2x1
jax: 0.10.0
libtpu: 0.0.40
codegen_flags: <defaults>
</compile_context>

<pallas_src>
import math

import jax
import jax.numpy as jnp
from jax import lax
from jax.experimental import pallas as pl
from jax.experimental.pallas import tpu as pltpu


def _round_up(x, m):
    return ((x + m - 1) // m) * m


# ----------------------------------------------------------------------------
# Parameter packing: one 2-D (rows_max, total_cols) f32 slab per SingleConv.
# Vectors are stored as single columns, matrices as column blocks; the kernel
# slices with the same static (rows, col, width) layout dict.
# ----------------------------------------------------------------------------
def param_layout(c_in, c_out, has_skip):
    rows_max = max(2 * c_in, c_out)
    layout = {}
    col = 0

    def add(name, rows, width):
        nonlocal col
        layout[name] = (rows, col, width)
        col += width

    add("dw_b", c_in, 1)
    add("ln_w", c_in, 1)
    add("ln_b", c_in, 1)
    add("b1", 2 * c_in, 1)
    add("b2", c_out, 1)
    add("gamma", c_out, 1)
    if has_skip:
        add("skip_b", c_out, 1)
    add("dw_w", c_in, 27)
    add("w1", 2 * c_in, c_in)
    add("w2", c_out, 2 * c_in)
    if has_skip:
        add("skip_w", c_out, c_in)
    return rows_max, col, layout


def pack_conv_params(p, c_in, c_out):
    has_skip = "skip_w" in p
    rows_max, total, layout = param_layout(c_in, c_out, has_skip)
    buf = jnp.zeros((rows_max, total), jnp.float32)
    for name, (rows, col, width) in layout.items():
        arr = jnp.asarray(p[name], jnp.float32).reshape(rows, width)
        buf = buf.at[0:rows, col:col + width].set(arr)
    return buf, layout


# ----------------------------------------------------------------------------
# Kernel
# ----------------------------------------------------------------------------
def make_block_kernel(D, H, W, Cin, Cout, pad, layouts, approx_gelu):
    """Fused conv1->conv2->conv3->(+res)->ELU for one batch element, layout (C, M)."""
    M = D * H * W
    HW = H * W
    Cmax = max(Cin, Cout)
    inv_sqrt2 = 1.0 / math.sqrt(2.0)
    gelu_c = math.sqrt(2.0 / math.pi)

    def single_conv(act, pk, c_in, c_out, layout, mask_rows, xpad_ref):
        def get(name):
            rows, col, width = layout[name]
            return pk[0:rows, col:col + width]

        use_mxu = c_in >= 16          # MXU for real channel counts; VPU FMAs for tiny K
        has_skip = "skip_w" in layout

        # stage the activation into the zero-padded scratch: lanes [pad, pad+M)
        xpad_ref[0:c_in, pad:pad + M] = act

        # --- depthwise 3x3x3 (padding=1, groups=c_in), (kh,kw)-grouped taps ----------
        dww = get("dw_w")                                         # (c_in, 27)
        acc = jnp.zeros((c_in, M), jnp.float32) + get("dw_b")
        for kh in range(3):
            for kw in range(3):
                t = None
                for kd in range(3):
                    k = kd * 9 + kh * 3 + kw
                    toff = (kd - 1) * HW + (kh - 1) * W + (kw - 1)
                    xs = xpad_ref[0:c_in, pad + toff:pad + toff + M]
                    term = xs * dww[:, k:k + 1]
                    t = term if t is None else t + term
                m = mask_rows[kh * 3 + kw]                        # None for the center
                acc = acc + (t if m is None else t * m)

        # --- LayerNorm over channels (sublane axis), eps=1e-6 ------------------------
        mean = jnp.mean(acc, axis=0, keepdims=True)
        var = jnp.mean((acc - mean) ** 2, axis=0, keepdims=True)
        xn = (acc - mean) * lax.rsqrt(var + 1e-6)
        xn = xn * get("ln_w") + get("ln_b")

        # --- pwconv1 (c_in -> 2*c_in) + GELU ------------------------------------------
        w1 = get("w1")                                            # (2*c_in, c_in)
        if use_mxu:
            h = jnp.dot(w1, xn, preferred_element_type=jnp.float32) + get("b1")
        else:
            h = jnp.zeros((2 * c_in, M), jnp.float32) + get("b1")
            for c in range(c_in):
                h = h + xn[c:c + 1, :] * w1[:, c:c + 1]
        if approx_gelu:
            # tanh-approx GELU: runs on the EUP instead of an erf VALU polynomial
            h = 0.5 * h * (1.0 + jnp.tanh(gelu_c * (h + 0.044715 * h * h * h)))
        else:
            h = 0.5 * h * (1.0 + lax.erf(h * inv_sqrt2))

        # --- pwconv2 (2*c_in -> c_out) + layer scale gamma ----------------------------
        w2 = get("w2")                                            # (c_out, 2*c_in)
        if use_mxu:
            y = jnp.dot(w2, h, preferred_element_type=jnp.float32) + get("b2")
        else:
            y = jnp.zeros((c_out, M), jnp.float32) + get("b2")
            for j in range(2 * c_in):
                y = y + h[j:j + 1, :] * w2[:, j:j + 1]
        y = y * get("gamma")

        # --- skip connection -----------------------------------------------------------
        if has_skip:
            sw = get("skip_w")                                    # (c_out, c_in)
            if use_mxu:
                s = jnp.dot(sw, act, preferred_element_type=jnp.float32) + get("skip_b")
            else:
                s = jnp.zeros((c_out, M), jnp.float32) + get("skip_b")
                for c in range(c_in):
                    s = s + act[c:c + 1, :] * sw[:, c:c + 1]
        else:
            s = act
        return y + s

    def kernel(x_ref, mb_ref, pk1_ref, pk2_ref, pk3_ref, out_ref, xpad_ref):
        # Zero ONLY the two halo bands (the interior [pad, pad+M) is fully overwritten
        # by every staging store).  Re-done each grid step so megacore sharding of the
        # batch axis can never observe uninitialized bands.
        zband = jnp.zeros((Cmax, pad), jnp.float32)
        xpad_ref[:, 0:pad] = zband
        xpad_ref[:, pad + M:M + 2 * pad] = zband

        # Rebuild the 8 used (kh,kw) boundary masks from the factorized (4, M) basis.
        mb = mb_ref[...]
        mh = {0: mb[0:1, :], 1: None, 2: mb[1:2, :]}
        mw = {0: mb[2:3, :], 1: None, 2: mb[3:4, :]}
        mask_rows = []
        for kh in range(3):
            for kw in range(3):
                a, b = mh[kh], mw[kw]
                if a is None:
                    mask_rows.append(b)       # None when both are None (center tap)
                elif b is None:
                    mask_rows.append(a)
                else:
                    mask_rows.append(a * b)

        x = x_ref[0]                                              # (Cin, M)
        a1 = single_conv(x, pk1_ref[...], Cin, Cout, layouts[0], mask_rows, xpad_ref)
        a2 = single_conv(a1, pk2_ref[...], Cout, Cout, layouts[1], mask_rows, xpad_ref)
        a3 = single_conv(a2, pk3_ref[...], Cout, Cout, layouts[2], mask_rows, xpad_ref)

        # fused residual add + ELU(alpha=1); exp(min(s,0)) keeps the dead branch finite
        s = a3 + a1
        out = jnp.where(s > 0, s, jnp.exp(jnp.minimum(s, 0.0)) - 1.0)
        out_ref[0] = out.astype(out_ref.dtype)

    return kernel


# ----------------------------------------------------------------------------
# Wrapper
# ----------------------------------------------------------------------------
def _hw_mask_basis(D, H, W):
    """(4, D*H*W) f32 basis: [h-1 valid, h+1 valid, w-1 valid, w+1 valid]."""
    hh = jnp.broadcast_to(jnp.arange(H, dtype=jnp.int32)[None, :, None], (D, H, W)).reshape(1, -1)
    ww = jnp.broadcast_to(jnp.arange(W, dtype=jnp.int32)[None, None, :], (D, H, W)).reshape(1, -1)
    rows = [(hh >= 1), (hh <= H - 2), (ww >= 1), (ww <= W - 2)]
    return jnp.concatenate([r.astype(jnp.float32) for r in rows], axis=0)


def ext_resnet_block_lightweight(x_ncdhw, params, approx_gelu=True):
    """PyTorch-compatible forward: (N, Cin, D, H, W) -> (N, Cout, D, H, W)."""
    N, Cin, D, H, W = x_ncdhw.shape
    Cout = params["conv1"]["w2"].shape[0]
    Cmax = max(Cin, Cout)
    M = D * H * W
    pad = _round_up(H * W + W + 1, 128)      # covers max |tap offset| and the d halo

    # Zero-cost reshape: NCDHW -> (N, C, M); the spatial axis becomes the lane axis.
    x = x_ncdhw.reshape(N, Cin, M).astype(jnp.float32)
    mask_basis = _hw_mask_basis(D, H, W)

    pk1, l1 = pack_conv_params(params["conv1"], Cin, Cout)
    pk2, l2 = pack_conv_params(params["conv2"], Cout, Cout)
    pk3, l3 = pack_conv_params(params["conv3"], Cout, Cout)

    def full_spec(arr):
        nd = arr.ndim
        return pl.BlockSpec(arr.shape, lambda n, _nd=nd: (0,) * _nd)

    in_specs = ([pl.BlockSpec((1, Cin, M), lambda n: (n, 0, 0)),
                 full_spec(mask_basis), full_spec(pk1), full_spec(pk2), full_spec(pk3)])
    out_spec = pl.BlockSpec((1, Cout, M), lambda n: (n, 0, 0))

    kernel = make_block_kernel(D, H, W, Cin, Cout, pad, (l1, l2, l3), approx_gelu)

    # Explicit VMEM budget: estimate usage, clamp to [32 MiB, 64 MiB] so it is a valid
    # request on all of v5e / v6e / v7x.  (Slab tiling TODO above re-derives this.)
    est = 4 * (2 * Cin * M + 2 * Cout * M + Cmax * (M + 2 * pad) + 4 * M
               + int(pk1.size + pk2.size + pk3.size) + 8 * Cmax * M)
    vmem_limit = int(min(64 * 1024 * 1024, max(32 * 1024 * 1024, 2 * est)))

    out = pl.pallas_call(
        kernel,
        out_shape=jax.ShapeDtypeStruct((N, Cout, M), jnp.float32),
        grid=(N,),
        in_specs=in_specs,
        out_specs=out_spec,
        scratch_shapes=[pltpu.VMEM((Cmax, M + 2 * pad), jnp.float32)],
        compiler_params=pltpu.CompilerParams(
            dimension_semantics=("parallel",),
            vmem_limit_bytes=vmem_limit),
    )(x, mask_basis, pk1, pk2, pk3)

    return out.reshape(N, Cout, D, H, W)


# ----------------------------------------------------------------------------
# Deterministic synthetic parameters (PyTorch-oriented: Linear weights are (out, in))
# ----------------------------------------------------------------------------
def init_single_conv_params(key, cin, cout, layer_scale_init_value=1e-6):
    ks = jax.random.split(key, 8)
    p = {
        "dw_w": 0.1 * jax.random.normal(ks[0], (cin, 27), jnp.float32),   # (C, kd*kh*kw)
        "dw_b": 0.1 * jax.random.normal(ks[1], (cin, 1), jnp.float32),
        "ln_w": jnp.ones((cin, 1), jnp.float32),
        "ln_b": jnp.zeros((cin, 1), jnp.float32),
        "w1": 0.1 * jax.random.normal(ks[2], (2 * cin, cin), jnp.float32),
        "b1": 0.1 * jax.random.normal(ks[3], (2 * cin, 1), jnp.float32),
        "w2": 0.1 * jax.random.normal(ks[4], (cout, 2 * cin), jnp.float32),
        "b2": 0.1 * jax.random.normal(ks[5], (cout, 1), jnp.float32),
        "gamma": layer_scale_init_value * jnp.ones((cout, 1), jnp.float32),
    }
    if cin != cout:
        p["skip_w"] = 0.1 * jax.random.normal(ks[6], (cout, cin), jnp.float32)
        p["skip_b"] = 0.1 * jax.random.normal(ks[7], (cout, 1), jnp.float32)
    return p


def init_block_params(key, cin, cout, layer_scale_init_value=1e-6):
    k1, k2, k3 = jax.random.split(key, 3)
    return {
        "conv1": init_single_conv_params(k1, cin, cout, layer_scale_init_value),
        "conv2": init_single_conv_params(k2, cout, cout, layer_scale_init_value),
        "conv3": init_single_conv_params(k3, cout, cout, layer_scale_init_value),
    }


# ----------------------------------------------------------------------------
# Pure-JAX reference (mirrors the PyTorch math: exact erf GELU), NCDHW layout
# ----------------------------------------------------------------------------
def single_conv_ref(x, p):
    N, C, D, H, W = x.shape
    Cout = p["w2"].shape[0]
    xp = jnp.pad(x, ((0, 0), (0, 0), (1, 1), (1, 1), (1, 1)))
    acc = jnp.zeros((N, C, D, H, W), jnp.float32)
    k = 0
    for kd in range(3):
        for kh in range(3):
            for kw in range(3):
                wk = p["dw_w"][:, k].reshape(1, C, 1, 1, 1)
                acc = acc + xp[:, :, kd:kd + D, kh:kh + H, kw:kw + W] * wk
                k += 1
    acc = acc + p["dw_b"].reshape(1, C, 1, 1, 1)
    mean = jnp.mean(acc, axis=1, keepdims=True)
    var = jnp.mean((acc - mean) ** 2, axis=1, keepdims=True)
    xn = (acc - mean) / jnp.sqrt(var + 1e-6)
    xn = xn * p["ln_w"].reshape(1, C, 1, 1, 1) + p["ln_b"].reshape(1, C, 1, 1, 1)
    h = jnp.einsum("jc,ncdhw->njdhw", p["w1"], xn) + p["b1"].reshape(1, 2 * C, 1, 1, 1)
    h = 0.5 * h * (1.0 + lax.erf(h / math.sqrt(2.0)))
    y = jnp.einsum("oj,njdhw->nodhw", p["w2"], h) + p["b2"].reshape(1, Cout, 1, 1, 1)
    y = y * p["gamma"].reshape(1, Cout, 1, 1, 1)
    if "skip_w" in p:
        s = jnp.einsum("oc,ncdhw->nodhw", p["skip_w"], x) + p["skip_b"].reshape(1, Cout, 1, 1, 1)
    else:
        s = x
    return y + s


def block_ref(x, params):
    out = single_conv_ref(x, params["conv1"])
    residual = out
    out = single_conv_ref(out, params["conv2"])
    out = single_conv_ref(out, params["conv3"])
    out = out + residual
    return jnp.where(out > 0, out, jnp.exp(jnp.minimum(out, 0.0)) - 1.0)


# ----------------------------------------------------------------------------
if __name__ == "__main__":
    key = jax.random.PRNGKey(0)
    kx1, kp1, kx2, kp2 = jax.random.split(key, 4)

    # ---- Case 1: Cin != Cout (1x1 skip conv), tiny channels -> VPU pointwise path ----
    N, Cin, Cout, D, H, W = 2, 4, 8, 8, 8, 8
    x1 = jax.random.normal(kx1, (N, Cin, D, H, W), jnp.float32)   # NCDHW like PyTorch
    # layer_scale_init_value=0.5 so the pointwise/GELU path meaningfully contributes
    # to the output and is actually verified (module default 1e-6 would hide it).
    params1 = init_block_params(kp1, Cin, Cout, layer_scale_init_value=0.5)
    ref1 = block_ref(x1, params1)

    out_exact = jax.block_until_ready(
        ext_resnet_block_lightweight(x1, params1, approx_gelu=False))
    assert out_exact.shape == (N, Cout, D, H, W)
    assert bool(jnp.all(jnp.isfinite(out_exact)))
    err = float(jnp.max(jnp.abs(out_exact - ref1)))
    assert jnp.allclose(out_exact, ref1, atol=2e-3, rtol=2e-3), err

    # Default fast path: tanh-approx GELU (EUP); slightly looser tolerance vs erf ref.
    out_approx = jax.block_until_ready(
        ext_resnet_block_lightweight(x1, params1, approx_gelu=True))
    err = float(jnp.max(jnp.abs(out_approx - ref1)))
    assert jnp.allclose(out_approx, ref1, atol=5e-3, rtol=5e-3), err

    # ---- Case 2: Cin == Cout == 32 -> identity skip, MXU pointwise path --------------
    N2, C2 = 1, 32
    x2 = jax.random.normal(kx2, (N2, C2, D, H, W), jnp.float32)
    params2 = init_block_params(kp2, C2, C2, layer_scale_init_value=0.5)
    ref2 = block_ref(x2, params2)
    out2 = jax.block_until_ready(ext_resnet_block_lightweight(x2, params2, approx_gelu=True))
    assert out2.shape == (N2, C2, D, H, W)
    assert bool(jnp.all(jnp.isfinite(out2)))
    err = float(jnp.max(jnp.abs(out2 - ref2)))
    assert jnp.allclose(out2, ref2, atol=5e-3, rtol=5e-3), err

    print("KERNEL_OK")
</pallas_src>

<mosaic_0001>
module attributes {stable_mosaic.version = 11 : i64} {
  func.func @kernel(%arg0: i32, %arg1: memref<1x4x512xf32, #tpu.memory_space<vmem>>, %arg2: memref<4x512xf32, #tpu.memory_space<vmem>>, %arg3: memref<8x50xf32, #tpu.memory_space<vmem>>, %arg4: memref<16x57xf32, #tpu.memory_space<vmem>>, %arg5: memref<16x57xf32, #tpu.memory_space<vmem>>, %arg6: memref<1x8x512xf32, #tpu.memory_space<vmem>>, %arg7: memref<8x768xf32, #tpu.memory_space<vmem>>) attributes {dimension_semantics = [#tpu.dimension_semantics<parallel>], iteration_bounds = array<i64: 2>, scalar_prefetch = 0 : i64, scratch_operands = 1 : i64, tpu.core_type = #tpu.core_type<tc>, window_params = [{transform_indices = @transform_0, window_bounds = array<i64: 1, 4, 512>}, {pipeline_mode = #tpu.pipeline_mode<synchronous>, transform_indices = @transform_1, window_bounds = array<i64: 4, 512>}, {pipeline_mode = #tpu.pipeline_mode<synchronous>, transform_indices = @transform_2, window_bounds = array<i64: 8, 50>}, {pipeline_mode = #tpu.pipeline_mode<synchronous>, transform_indices = @transform_3, window_bounds = array<i64: 16, 57>}, {pipeline_mode = #tpu.pipeline_mode<synchronous>, transform_indices = @transform_4, window_bounds = array<i64: 16, 57>}, {transform_indices = @transform_5, window_bounds = array<i64: 1, 8, 512>}]} {
    %cst = arith.constant 0.000000e+00 : f32
    %0 = vector.broadcast %cst : f32 to vector<8x128xf32>
    %c0 = arith.constant 0 : index
    %c0_0 = arith.constant 0 : index
    %1 = vector.load %arg7[%c0, %c0_0] : memref<8x768xf32, #tpu.memory_space<vmem>>, vector<8x128xf32>
    tpu.vector_store %arg7[%c0, %c0_0], %0 {strides = array<i32>} : memref<8x768xf32, #tpu.memory_space<vmem>>, vector<8x128xf32>,
    %c0_1 = arith.constant 0 : index
    %c640 = arith.constant 640 : index
    %2 = vector.load %arg7[%c0_1, %c640] : memref<8x768xf32, #tpu.memory_space<vmem>>, vector<8x128xf32>
    tpu.vector_store %arg7[%c0_1, %c640], %0 {strides = array<i32>} : memref<8x768xf32, #tpu.memory_space<vmem>>, vector<8x128xf32>,
    %c0_2 = arith.constant 0 : index
    %c0_3 = arith.constant 0 : index
    %3 = vector.load %arg2[%c0_2, %c0_3] : memref<4x512xf32, #tpu.memory_space<vmem>>, vector<4x512xf32>
    %4 = vector.extract_strided_slice %3 {offsets = [0, 0], sizes = [1, 512], strides = [1, 1]} : vector<4x512xf32> to vector<1x512xf32>
    %5 = vector.extract_strided_slice %3 {offsets = [1, 0], sizes = [1, 512], strides = [1, 1]} : vector<4x512xf32> to vector<1x512xf32>
    %6 = vector.extract_strided_slice %3 {offsets = [2, 0], sizes = [1, 512], strides = [1, 1]} : vector<4x512xf32> to vector<1x512xf32>
    %7 = vector.extract_strided_slice %3 {offsets = [3, 0], sizes = [1, 512], strides = [1, 1]} : vector<4x512xf32> to vector<1x512xf32>
    %8 = arith.mulf %4, %6 : vector<1x512xf32>
    %9 = arith.mulf %4, %7 : vector<1x512xf32>
    %10 = arith.mulf %5, %6 : vector<1x512xf32>
    %11 = arith.mulf %5, %7 : vector<1x512xf32>
    %c0_4 = arith.constant 0 : index
    %c0_5 = arith.constant 0 : index
    %c0_6 = arith.constant 0 : index
    %12 = vector.load %arg1[%c0_4, %c0_5, %c0_6] : memref<1x4x512xf32, #tpu.memory_space<vmem>>, vector<1x4x512xf32>
    %13 = vector.shape_cast %12 : vector<1x4x512xf32> to vector<4x512xf32>
    %c0_7 = arith.constant 0 : index
    %c0_8 = arith.constant 0 : index
    %14 = vector.load %arg3[%c0_7, %c0_8] : memref<8x50xf32, #tpu.memory_space<vmem>>, vector<8x50xf32>
    %c0_9 = arith.constant 0 : index
    %c128 = arith.constant 128 : index
    %15 = vector.load %arg7[%c0_9, %c128] : memref<8x768xf32, #tpu.memory_space<vmem>>, vector<4x512xf32>
    tpu.vector_store %arg7[%c0_9, %c128], %13 {strides = array<i32>} : memref<8x768xf32, #tpu.memory_space<vmem>>, vector<4x512xf32>,
    %16 = vector.extract_strided_slice %14 {offsets = [0, 7], sizes = [4, 27], strides = [1, 1]} : vector<8x50xf32> to vector<4x27xf32>
    %cst_10 = arith.constant 0.000000e+00 : f32
    %17 = vector.broadcast %cst_10 : f32 to vector<4x512xf32>
    %18 = vector.extract_strided_slice %14 {offsets = [0, 0], sizes = [4, 1], strides = [1, 1]} : vector<8x50xf32> to vector<4x1xf32>
    %19 = vector.broadcast %18 : vector<4x1xf32> to vector<4x512xf32>
    %20 = arith.addf %17, %19 : vector<4x512xf32>
    %c0_11 = arith.constant 0 : index
    %c55 = arith.constant 55 : index
    %21 = vector.load %arg7[%c0_11, %c55] : memref<8x768xf32, #tpu.memory_space<vmem>>, vector<4x512xf32>
    %22 = vector.extract_strided_slice %16 {offsets = [0, 0], sizes = [4, 1], strides = [1, 1]} : vector<4x27xf32> to vector<4x1xf32>
    %23 = vector.broadcast %22 : vector<4x1xf32> to vector<4x512xf32>
    %24 = arith.mulf %21, %23 : vector<4x512xf32>
    %c0_12 = arith.constant 0 : index
    %c119 = arith.constant 119 : index
    %25 = vector.load %arg7[%c0_12, %c119] : memref<8x768xf32, #tpu.memory_space<vmem>>, vector<4x512xf32>
    %26 = vector.extract_strided_slice %16 {offsets = [0, 9], sizes = [4, 1], strides = [1, 1]} : vector<4x27xf32> to vector<4x1xf32>
    %27 = vector.broadcast %26 : vector<4x1xf32> to vector<4x512xf32>
    %28 = arith.mulf %25, %27 : vector<4x512xf32>
    %29 = arith.addf %24, %28 : vector<4x512xf32>
    %c0_13 = arith.constant 0 : index
    %c183 = arith.constant 183 : index
    %30 = vector.load %arg7[%c0_13, %c183] : memref<8x768xf32, #tpu.memory_space<vmem>>, vector<4x512xf32>
    %31 = vector.extract_strided_slice %16 {offsets = [0, 18], sizes = [4, 1], strides = [1, 1]} : vector<4x27xf32> to vector<4x1xf32>
    %32 = vector.broadcast %31 : vector<4x1xf32> to vector<4x512xf32>
    %33 = arith.mulf %30, %32 : vector<4x512xf32>
    %34 = arith.addf %29, %33 : vector<4x512xf32>
    %35 = vector.broadcast %8 : vector<1x512xf32> to vector<4x512xf32>
    %36 = arith.mulf %34, %35 : vector<4x512xf32>
    %37 = arith.addf %20, %36 : vector<4x512xf32>
    %c0_14 = arith.constant 0 : index
    %c56 = arith.constant 56 : index
    %38 = vector.load %arg7[%c0_14, %c56] : memref<8x768xf32, #tpu.memory_space<vmem>>, vector<4x512xf32>
    %39 = vector.extract_strided_slice %16 {offsets = [0, 1], sizes = [4, 1], strides = [1, 1]} : vector<4x27xf32> to vector<4x1xf32>
    %40 = vector.broadcast %39 : vector<4x1xf32> to vector<4x512xf32>
    %41 = arith.mulf %38, %40 : vector<4x512xf32>
    %c0_15 = arith.constant 0 : index
    %c120 = arith.constant 120 : index
    %42 = vector.load %arg7[%c0_15, %c120] : memref<8x768xf32, #tpu.memory_space<vmem>>, vector<4x512xf32>
    %43 = vector.extract_strided_slice %16 {offsets = [0, 10], sizes = [4, 1], strides = [1, 1]} : vector<4x27xf32> to vector<4x1xf32>
    %44 = vector.broadcast %43 : vector<4x1xf32> to vector<4x512xf32>
    %45 = arith.mulf %42, %44 : vector<4x512xf32>
    %46 = arith.addf %41, %45 : vector<4x512xf32>
    %c0_16 = arith.constant 0 : index
    %c184 = arith.constant 184 : index
    %47 = vector.load %arg7[%c0_16, %c184] : memref<8x768xf32, #tpu.memory_space<vmem>>, vector<4x512xf32>
    %48 = vector.extract_strided_slice %16 {offsets = [0, 19], sizes = [4, 1], strides = [1, 1]} : vector<4x27xf32> to vector<4x1xf32>
    %49 = vector.broadcast %48 : vector<4x1xf32> to vector<4x512xf32>
    %50 = arith.mulf %47, %49 : vector<4x512xf32>
    %51 = arith.addf %46, %50 : vector<4x512xf32>
    %52 = vector.broadcast %4 : vector<1x512xf32> to vector<4x512xf32>
    %53 = arith.mulf %51, %52 : vector<4x512xf32>
    %54 = arith.addf %37, %53 : vector<4x512xf32>
    %c0_17 = arith.constant 0 : index
    %c57 = arith.constant 57 : index
    %55 = vector.load %arg7[%c0_17, %c57] : memref<8x768xf32, #tpu.memory_space<vmem>>, vector<4x512xf32>
    %56 = vector.extract_strided_slice %16 {offsets = [0, 2], sizes = [4, 1], strides = [1, 1]} : vector<4x27xf32> to vector<4x1xf32>
    %57 = vector.broadcast %56 : vector<4x1xf32> to vector<4x512xf32>
    %58 = arith.mulf %55, %57 : vector<4x512xf32>
    %c0_18 = arith.constant 0 : index
    %c121 = arith.constant 121 : index
    %59 = vector.load %arg7[%c0_18, %c121] : memref<8x768xf32, #tpu.memory_space<vmem>>, vector<4x512xf32>
    %60 = vector.extract_strided_slice %16 {offsets = [0, 11], sizes = [4, 1], strides = [1, 1]} : vector<4x27xf32> to vector<4x1xf32>
    %61 = vector.broadcast %60 : vector<4x1xf32> to vector<4x512xf32>
    %62 = arith.mulf %59, %61 : vector<4x512xf32>
    %63 = arith.addf %58, %62 : vector<4x512xf32>
    %c0_19 = arith.constant 0 : index
    %c185 = arith.constant 185 : index
    %64 = vector.load %arg7[%c0_19, %c185] : memref<8x768xf32, #tpu.memory_space<vmem>>, vector<4x512xf32>
    %65 = vector.extract_strided_slice %16 {offsets = [0, 20], sizes = [4, 1], strides = [1, 1]} : vector<4x27xf32> to vector<4x1xf32>
    %66 = vector.broadcast %65 : vector<4x1xf32> to vector<4x512xf32>
    %67 = arith.mulf %64, %66 : vector<4x512xf32>
    %68 = arith.addf %63, %67 : vector<4x512xf32>
    %69 = vector.broadcast %9 : vector<1x512xf32> to vector<4x512xf32>
    %70 = arith.mulf %68, %69 : vector<4x512xf32>
    %71 = arith.addf %54, %70 : vector<4x512xf32>
    %c0_20 = arith.constant 0 : index
    %c63 = arith.constant 63 : index
    %72 = vector.load %arg7[%c0_20, %c63] : memref<8x768xf32, #tpu.memory_space<vmem>>, vector<4x512xf32>
    %73 = vector.extract_strided_slice %16 {offsets = [0, 3], sizes = [4, 1], strides = [1, 1]} : vector<4x27xf32> to vector<4x1xf32>
    %74 = vector.broadcast %73 : vector<4x1xf32> to vector<4x512xf32>
    %75 = arith.mulf %72, %74 : vector<4x512xf32>
    %c0_21 = arith.constant 0 : index
    %c127 = arith.constant 127 : index
    %76 = vector.load %arg7[%c0_21, %c127] : memref<8x768xf32, #tpu.memory_space<vmem>>, vector<4x512xf32>
    %77 = vector.extract_strided_slice %16 {offsets = [0, 12], sizes = [4, 1], strides = [1, 1]} : vector<4x27xf32> to vector<4x1xf32>
    %78 = vector.broadcast %77 : vector<4x1xf32> to vector<4x512xf32>
    %79 = arith.mulf %76, %78 : vector<4x512xf32>
    %80 = arith.addf %75, %79 : vector<4x512xf32>
    %c0_22 = arith.constant 0 : index
    %c191 = arith.constant 191 : index
    %81 = vector.load %arg7[%c0_22, %c191] : memref<8x768xf32, #tpu.memory_space<vmem>>, vector<4x512xf32>
    %82 = vector.extract_strided_slice %16 {offsets = [0, 21], sizes = [4, 1], strides = [1, 1]} : vector<4x27xf32> to vector<4x1xf32>
    %83 = vector.broadcast %82 : vector<4x1xf32> to vector<4x512xf32>
    %84 = arith.mulf %81, %83 : vector<4x512xf32>
    %85 = arith.addf %80, %84 : vector<4x512xf32>
    %86 = vector.broadcast %6 : vector<1x512xf32> to vector<4x512xf32>
    %87 = arith.mulf %85, %86 : vector<4x512xf32>
    %88 = arith.addf %71, %87 : vector<4x512xf32>
    %c0_23 = arith.constant 0 : index
    %c64 = arith.constant 64 : index
    %89 = vector.load %arg7[%c0_23, %c64] : memref<8x768xf32, #tpu.memory_space<vmem>>, vector<4x512xf32>
    %90 = vector.extract_strided_slice %16 {offsets = [0, 4], sizes = [4, 1], strides = [1, 1]} : vector<4x27xf32> to vector<4x1xf32>
    %91 = vector.broadcast %90 : vector<4x1xf32> to vector<4x512xf32>
    %92 = arith.mulf %89, %91 : vector<4x512xf32>
    %c0_24 = arith.constant 0 : index
    %c128_25 = arith.constant 128 : index
    %93 = vector.load %arg7[%c0_24, %c128_25] : memref<8x768xf32, #tpu.memory_space<vmem>>, vector<4x512xf32>
    %94 = vector.extract_strided_slice %16 {offsets = [0, 13], sizes = [4, 1], strides = [1, 1]} : vector<4x27xf32> to vector<4x1xf32>
    %95 = vector.broadcast %94 : vector<4x1xf32> to vector<4x512xf32>
    %96 = arith.mulf %93, %95 : vector<4x512xf32>
    %97 = arith.addf %92, %96 : vector<4x512xf32>
    %c0_26 = arith.constant 0 : index
    %c192 = arith.constant 192 : index
    %98 = vector.load %arg7[%c0_26, %c192] : memref<8x768xf32, #tpu.memory_space<vmem>>, vector<4x512xf32>
    %99 = vector.extract_strided_slice %16 {offsets = [0, 22], sizes = [4, 1], strides = [1, 1]} : vector<4x27xf32> to vector<4x1xf32>
    %100 = vector.broadcast %99 : vector<4x1xf32> to vector<4x512xf32>
    %101 = arith.mulf %98, %100 : vector<4x512xf32>
    %102 = arith.addf %97, %101 : vector<4x512xf32>
    %103 = arith.addf %88, %102 : vector<4x512xf32>
    %c0_27 = arith.constant 0 : index
    %c65 = arith.constant 65 : index
    %104 = vector.load %arg7[%c0_27, %c65] : memref<8x768xf32, #tpu.memory_space<vmem>>, vector<4x512xf32>
    %105 = vector.extract_strided_slice %16 {offsets = [0, 5], sizes = [4, 1], strides = [1, 1]} : vector<4x27xf32> to vector<4x1xf32>
    %106 = vector.broadcast %105 : vector<4x1xf32> to vector<4x512xf32>
    %107 = arith.mulf %104, %106 : vector<4x512xf32>
    %c0_28 = arith.constant 0 : index
    %c129 = arith.constant 129 : index
    %108 = vector.load %arg7[%c0_28, %c129] : memref<8x768xf32, #tpu.memory_space<vmem>>, vector<4x512xf32>
    %109 = vector.extract_strided_slice %16 {offsets = [0, 14], sizes = [4, 1], strides = [1, 1]} : vector<4x27xf32> to vector<4x1xf32>
    %110 = vector.broadcast %109 : vector<4x1xf32> to vector<4x512xf32>
    %111 = arith.mulf %108, %110 : vector<4x512xf32>
    %112 = arith.addf %107, %111 : vector<4x512xf32>
    %c0_29 = arith.constant 0 : index
    %c193 = arith.constant 193 : index
    %113 = vector.load %arg7[%c0_29, %c193] : memref<8x768xf32, #tpu.memory_space<vmem>>, vector<4x512xf32>
    %114 = vector.extract_strided_slice %16 {offsets = [0, 23], sizes = [4, 1], strides = [1, 1]} : vector<4x27xf32> to vector<4x1xf32>
    %115 = vector.broadcast %114 : vector<4x1xf32> to vector<4x512xf32>
    %116 = arith.mulf %113, %115 : vector<4x512xf32>
    %117 = arith.addf %112, %116 : vector<4x512xf32>
    %118 = vector.broadcast %7 : vector<1x512xf32> to vector<4x512xf32>
    %119 = arith.mulf %117, %118 : vector<4x512xf32>
    %120 = arith.addf %103, %119 : vector<4x512xf32>
    %c0_30 = arith.constant 0 : index
    %c71 = arith.constant 71 : index
    %121 = vector.load %arg7[%c0_30, %c71] : memref<8x768xf32, #tpu.memory_space<vmem>>, vector<4x512xf32>
    %122 = vector.extract_strided_slice %16 {offsets = [0, 6], sizes = [4, 1], strides = [1, 1]} : vector<4x27xf32> to vector<4x1xf32>
    %123 = vector.broadcast %122 : vector<4x1xf32> to vector<4x512xf32>
    %124 = arith.mulf %121, %123 : vector<4x512xf32>
    %c0_31 = arith.constant 0 : index
    %c135 = arith.constant 135 : index
    %125 = vector.load %arg7[%c0_31, %c135] : memref<8x768xf32, #tpu.memory_space<vmem>>, vector<4x512xf32>
    %126 = vector.extract_strided_slice %16 {offsets = [0, 15], sizes = [4, 1], strides = [1, 1]} : vector<4x27xf32> to vector<4x1xf32>
    %127 = vector.broadcast %126 : vector<4x1xf32> to vector<4x512xf32>
    %128 = arith.mulf %125, %127 : vector<4x512xf32>
    %129 = arith.addf %124, %128 : vector<4x512xf32>
    %c0_32 = arith.constant 0 : index
    %c199 = arith.constant 199 : index
    %130 = vector.load %arg7[%c0_32, %c199] : memref<8x768xf32, #tpu.memory_space<vmem>>, vector<4x512xf32>
    %131 = vector.extract_strided_slice %16 {offsets = [0, 24], sizes = [4, 1], strides = [1, 1]} : vector<4x27xf32> to vector<4x1xf32>
    %132 = vector.broadcast %131 : vector<4x1xf32> to vector<4x512xf32>
    %133 = arith.mulf %130, %132 : vector<4x512xf32>
    %134 = arith.addf %129, %133 : vector<4x512xf32>
    %135 = vector.broadcast %10 : vector<1x512xf32> to vector<4x512xf32>
    %136 = arith.mulf %134, %135 : vector<4x512xf32>
    %137 = arith.addf %120, %136 : vector<4x512xf32>
    %c0_33 = arith.constant 0 : index
    %c72 = arith.constant 72 : index
    %138 = vector.load %arg7[%c0_33, %c72] : memref<8x768xf32, #tpu.memory_space<vmem>>, vector<4x512xf32>
    %139 = vector.extract_strided_slice %16 {offsets = [0, 7], sizes = [4, 1], strides = [1, 1]} : vector<4x27xf32> to vector<4x1xf32>
    %140 = vector.broadcast %139 : vector<4x1xf32> to vector<4x512xf32>
    %141 = arith.mulf %138, %140 : vector<4x512xf32>
    %c0_34 = arith.constant 0 : index
    %c136 = arith.constant 136 : index
    %142 = vector.load %arg7[%c0_34, %c136] : memref<8x768xf32, #tpu.memory_space<vmem>>, vector<4x512xf32>
    %143 = vector.extract_strided_slice %16 {offsets = [0, 16], sizes = [4, 1], strides = [1, 1]} : vector<4x27xf32> to vector<4x1xf32>
    %144 = vector.broadcast %143 : vector<4x1xf32> to vector<4x512xf32>
    %145 = arith.mulf %142, %144 : vector<4x512xf32>
    %146 = arith.addf %141, %145 : vector<4x512xf32>
    %c0_35 = arith.constant 0 : index
    %c200 = arith.constant 200 : index
    %147 = vector.load %arg7[%c0_35, %c200] : memref<8x768xf32, #tpu.memory_space<vmem>>, vector<4x512xf32>
    %148 = vector.extract_strided_slice %16 {offsets = [0, 25], sizes = [4, 1], strides = [1, 1]} : vector<4x27xf32> to vector<4x1xf32>
    %149 = vector.broadcast %148 : vector<4x1xf32> to vector<4x512xf32>
    %150 = arith.mulf %147, %149 : vector<4x512xf32>
    %151 = arith.addf %146, %150 : vector<4x512xf32>
    %152 = vector.broadcast %5 : vector<1x512xf32> to vector<4x512xf32>
    %153 = arith.mulf %151, %152 : vector<4x512xf32>
    %154 = arith.addf %137, %153 : vector<4x512xf32>
    %c0_36 = arith.constant 0 : index
    %c73 = arith.constant 73 : index
    %155 = vector.load %arg7[%c0_36, %c73] : memref<8x768xf32, #tpu.memory_space<vmem>>, vector<4x512xf32>
    %156 = vector.extract_strided_slice %16 {offsets = [0, 8], sizes = [4, 1], strides = [1, 1]} : vector<4x27xf32> to vector<4x1xf32>
    %157 = vector.broadcast %156 : vector<4x1xf32> to vector<4x512xf32>
    %158 = arith.mulf %155, %157 : vector<4x512xf32>
    %c0_37 = arith.constant 0 : index
    %c137 = arith.constant 137 : index
    %159 = vector.load %arg7[%c0_37, %c137] : memref<8x768xf32, #tpu.memory_space<vmem>>, vector<4x512xf32>
    %160 = vector.extract_strided_slice %16 {offsets = [0, 17], sizes = [4, 1], strides = [1, 1]} : vector<4x27xf32> to vector<4x1xf32>
    %161 = vector.broadcast %160 : vector<4x1xf32> to vector<4x512xf32>
    %162 = arith.mulf %159, %161 : vector<4x512xf32>
    %163 = arith.addf %158, %162 : vector<4x512xf32>
    %c0_38 = arith.constant 0 : index
    %c201 = arith.constant 201 : index
    %164 = vector.load %arg7[%c0_38, %c201] : memref<8x768xf32, #tpu.memory_space<vmem>>, vector<4x512xf32>
    %165 = vector.extract_strided_slice %16 {offsets = [0, 26], sizes = [4, 1], strides = [1, 1]} : vector<4x27xf32> to vector<4x1xf32>
    %166 = vector.broadcast %165 : vector<4x1xf32> to vector<4x512xf32>
    %167 = arith.mulf %164, %166 : vector<4x512xf32>
    %168 = arith.addf %163, %167 : vector<4x512xf32>
    %169 = vector.broadcast %11 : vector<1x512xf32> to vector<4x512xf32>
    %170 = arith.mulf %168, %169 : vector<4x512xf32>
    %171 = arith.addf %154, %170 : vector<4x512xf32>
    %cst_39 = arith.constant dense<0.000000e+00> : vector<512xf32>
    %172 = vector.multi_reduction <add>, %171, %cst_39 [0] : vector<4x512xf32> to vector<512xf32>
    %173 = vector.shape_cast %172 : vector<512xf32> to vector<1x512xf32>
    %cst_40 = arith.constant 4.000000e+00 : f32
    %174 = vector.broadcast %cst_40 : f32 to vector<1x512xf32>
    %175 = arith.divf %173, %174 : vector<1x512xf32>
    %176 = vector.broadcast %175 : vector<1x512xf32> to vector<4x512xf32>
    %177 = arith.subf %171, %176 : vector<4x512xf32>
    %178 = arith.mulf %177, %177 : vector<4x512xf32>
    %cst_41 = arith.constant dense<0.000000e+00> : vector<512xf32>
    %179 = vector.multi_reduction <add>, %178, %cst_41 [0] : vector<4x512xf32> to vector<512xf32>
    %180 = vector.shape_cast %179 : vector<512xf32> to vector<1x512xf32>
    %cst_42 = arith.constant 4.000000e+00 : f32
    %181 = vector.broadcast %cst_42 : f32 to vector<1x512xf32>
    %182 = arith.divf %180, %181 : vector<1x512xf32>
    %183 = vector.broadcast %175 : vector<1x512xf32> to vector<4x512xf32>
    %184 = arith.subf %171, %183 : vector<4x512xf32>
    %cst_43 = arith.constant 9.99999997E-7 : f32
    %185 = vector.broadcast %cst_43 : f32 to vector<1x512xf32>
    %186 = arith.addf %182, %185 : vector<1x512xf32>
    %187 = math.rsqrt %186 : vector<1x512xf32>
    %188 = vector.broadcast %187 : vector<1x512xf32> to vector<4x512xf32>
    %189 = arith.mulf %184, %188 : vector<4x512xf32>
    %190 = vector.extract_strided_slice %14 {offsets = [0, 1], sizes = [4, 1], strides = [1, 1]} : vector<8x50xf32> to vector<4x1xf32>
    %191 = vector.broadcast %190 : vector<4x1xf32> to vector<4x512xf32>
    %192 = arith.mulf %189, %191 : vector<4x512xf32>
    %193 = vector.extract_strided_slice %14 {offsets = [0, 2], sizes = [4, 1], strides = [1, 1]} : vector<8x50xf32> to vector<4x1xf32>
    %194 = vector.broadcast %193 : vector<4x1xf32> to vector<4x512xf32>
    %195 = arith.addf %192, %194 : vector<4x512xf32>
    %196 = vector.extract_strided_slice %14 {offsets = [0, 34], sizes = [8, 4], strides = [1, 1]} : vector<8x50xf32> to vector<8x4xf32>
    %cst_44 = arith.constant 0.000000e+00 : f32
    %197 = vector.broadcast %cst_44 : f32 to vector<8x512xf32>
    %198 = vector.extract_strided_slice %14 {offsets = [0, 3], sizes = [8, 1], strides = [1, 1]} : vector<8x50xf32> to vector<8x1xf32>
    %199 = vector.broadcast %198 : vector<8x1xf32> to vector<8x512xf32>
    %200 = arith.addf %197, %199 : vector<8x512xf32>
    %201 = vector.extract_strided_slice %195 {offsets = [0, 0], sizes = [1, 512], strides = [1, 1]} : vector<4x512xf32> to vector<1x512xf32>
    %202 = vector.extract_strided_slice %196 {offsets = [0, 0], sizes = [8, 1], strides = [1, 1]} : vector<8x4xf32> to vector<8x1xf32>
    %203 = vector.broadcast %201 : vector<1x512xf32> to vector<8x512xf32>
    %204 = vector.broadcast %202 : vector<8x1xf32> to vector<8x512xf32>
    %205 = arith.mulf %203, %204 : vector<8x512xf32>
    %206 = arith.addf %200, %205 : vector<8x512xf32>
    %207 = vector.extract_strided_slice %195 {offsets = [1, 0], sizes = [1, 512], strides = [1, 1]} : vector<4x512xf32> to vector<1x512xf32>
    %208 = vector.extract_strided_slice %196 {offsets = [0, 1], sizes = [8, 1], strides = [1, 1]} : vector<8x4xf32> to vector<8x1xf32>
    %209 = vector.broadcast %207 : vector<1x512xf32> to vector<8x512xf32>
    %210 = vector.broadcast %208 : vector<8x1xf32> to vector<8x512xf32>
    %211 = arith.mulf %209, %210 : vector<8x512xf32>
    %212 = arith.addf %206, %211 : vector<8x512xf32>
    %213 = vector.extract_strided_slice %195 {offsets = [2, 0], sizes = [1, 512], strides = [1, 1]} : vector<4x512xf32> to vector<1x512xf32>
    %214 = vector.extract_strided_slice %196 {offsets = [0, 2], sizes = [8, 1], strides = [1, 1]} : vector<8x4xf32> to vector<8x1xf32>
    %215 = vector.broadcast %213 : vector<1x512xf32> to vector<8x512xf32>
    %216 = vector.broadcast %214 : vector<8x1xf32> to vector<8x512xf32>
    %217 = arith.mulf %215, %216 : vector<8x512xf32>
    %218 = arith.addf %212, %217 : vector<8x512xf32>
    %219 = vector.extract_strided_slice %195 {offsets = [3, 0], sizes = [1, 512], strides = [1, 1]} : vector<4x512xf32> to vector<1x512xf32>
    %220 = vector.extract_strided_slice %196 {offsets = [0, 3], sizes = [8, 1], strides = [1, 1]} : vector<8x4xf32> to vector<8x1xf32>
    %221 = vector.broadcast %219 : vector<1x512xf32> to vector<8x512xf32>
    %222 = vector.broadcast %220 : vector<8x1xf32> to vector<8x512xf32>
    %223 = arith.mulf %221, %222 : vector<8x512xf32>
    %224 = arith.addf %218, %223 : vector<8x512xf32>
    %cst_45 = arith.constant 5.000000e-01 : f32
    %225 = vector.broadcast %cst_45 : f32 to vector<8x512xf32>
    %226 = arith.mulf %225, %224 : vector<8x512xf32>
    %cst_46 = arith.constant 0.707106769 : f32
    %227 = vector.broadcast %cst_46 : f32 to vector<8x512xf32>
    %228 = arith.mulf %224, %227 : vector<8x512xf32>
    %229 = math.erf %228 : vector<8x512xf32>
    %cst_47 = arith.constant 1.000000e+00 : f32
    %230 = vector.broadcast %cst_47 : f32 to vector<8x512xf32>
    %231 = arith.addf %230, %229 : vector<8x512xf32>
    %232 = arith.mulf %226, %231 : vector<8x512xf32>
    %233 = vector.extract_strided_slice %14 {offsets = [0, 38], sizes = [8, 8], strides = [1, 1]} : vector<8x50xf32> to vector<8x8xf32>
    %cst_48 = arith.constant 0.000000e+00 : f32
    %234 = vector.broadcast %cst_48 : f32 to vector<8x512xf32>
    %235 = vector.extract_strided_slice %14 {offsets = [0, 4], sizes = [8, 1], strides = [1, 1]} : vector<8x50xf32> to vector<8x1xf32>
    %236 = vector.broadcast %235 : vector<8x1xf32> to vector<8x512xf32>
    %237 = arith.addf %234, %236 : vector<8x512xf32>
    %238 = vector.extract_strided_slice %232 {offsets = [0, 0], sizes = [1, 512], strides = [1, 1]} : vector<8x512xf32> to vector<1x512xf32>
    %239 = vector.extract_strided_slice %233 {offsets = [0, 0], sizes = [8, 1], strides = [1, 1]} : vector<8x8xf32> to vector<8x1xf32>
    %240 = vector.broadcast %238 : vector<1x512xf32> to vector<8x512xf32>
    %241 = vector.broadcast %239 : vector<8x1xf32> to vector<8x512xf32>
    %242 = arith.mulf %240, %241 : vector<8x512xf32>
    %243 = arith.addf %237, %242 : vector<8x512xf32>
    %244 = vector.extract_strided_slice %232 {offsets = [1, 0], sizes = [1, 512], strides = [1, 1]} : vector<8x512xf32> to vector<1x512xf32>
    %245 = vector.extract_strided_slice %233 {offsets = [0, 1], sizes = [8, 1], strides = [1, 1]} : vector<8x8xf32> to vector<8x1xf32>
    %246 = vector.broadcast %244 : vector<1x512xf32> to vector<8x512xf32>
    %247 = vector.broadcast %245 : vector<8x1xf32> to vector<8x512xf32>
    %248 = arith.mulf %246, %247 : vector<8x512xf32>
    %249 = arith.addf %243, %248 : vector<8x512xf32>
    %250 = vector.extract_strided_slice %232 {offsets = [2, 0], sizes = [1, 512], strides = [1, 1]} : vector<8x512xf32> to vector<1x512xf32>
    %251 = vector.extract_strided_slice %233 {offsets = [0, 2], sizes = [8, 1], strides = [1, 1]} : vector<8x8xf32> to vector<8x1xf32>
    %252 = vector.broadcast %250 : vector<1x512xf32> to vector<8x512xf32>
    %253 = vector.broadcast %251 : vector<8x1xf32> to vector<8x512xf32>
    %254 = arith.mulf %252, %253 : vector<8x512xf32>
    %255 = arith.addf %249, %254 : vector<8x512xf32>
    %256 = vector.extract_strided_slice %232 {offsets = [3, 0], sizes = [1, 512], strides = [1, 1]} : vector<8x512xf32> to vector<1x512xf32>
    %257 = vector.extract_strided_slice %233 {offsets = [0, 3], sizes = [8, 1], strides = [1, 1]} : vector<8x8xf32> to vector<8x1xf32>
    %258 = vector.broadcast %256 : vector<1x512xf32> to vector<8x512xf32>
    %259 = vector.broadcast %257 : vector<8x1xf32> to vector<8x512xf32>
    %260 = arith.mulf %258, %259 : vector<8x512xf32>
    %261 = arith.addf %255, %260 : vector<8x512xf32>
    %262 = vector.extract_strided_slice %232 {offsets = [4, 0], sizes = [1, 512], strides = [1, 1]} : vector<8x512xf32> to vector<1x512xf32>
    %263 = vector.extract_strided_slice %233 {offsets = [0, 4], sizes = [8, 1], strides = [1, 1]} : vector<8x8xf32> to vector<8x1xf32>
    %264 = vector.broadcast %262 : vector<1x512xf32> to vector<8x512xf32>
    %265 = vector.broadcast %263 : vector<8x1xf32> to vector<8x512xf32>
    %266 = arith.mulf %264, %265 : vector<8x512xf32>
    %267 = arith.addf %261, %266 : vector<8x512xf32>
    %268 = vector.extract_strided_slice %232 {offsets = [5, 0], sizes = [1, 512], strides = [1, 1]} : vector<8x512xf32> to vector<1x512xf32>
    %269 = vector.extract_strided_slice %233 {offsets = [0, 5], sizes = [8, 1], strides = [1, 1]} : vector<8x8xf32> to vector<8x1xf32>
    %270 = vector.broadcast %268 : vector<1x512xf32> to vector<8x512xf32>
    %271 = vector.broadcast %269 : vector<8x1xf32> to vector<8x512xf32>
    %272 = arith.mulf %270, %271 : vector<8x512xf32>
    %273 = arith.addf %267, %272 : vector<8x512xf32>
    %274 = vector.extract_strided_slice %232 {offsets = [6, 0], sizes = [1, 512], strides = [1, 1]} : vector<8x512xf32> to vector<1x512xf32>
    %275 = vector.extract_strided_slice %233 {offsets = [0, 6], sizes = [8, 1], strides = [1, 1]} : vector<8x8xf32> to vector<8x1xf32>
    %276 = vector.broadcast %274 : vector<1x512xf32> to vector<8x512xf32>
    %277 = vector.broadcast %275 : vector<8x1xf32> to vector<8x512xf32>
    %278 = arith.mulf %276, %277 : vector<8x512xf32>
    %279 = arith.addf %273, %278 : vector<8x512xf32>
    %280 = vector.extract_strided_slice %232 {offsets = [7, 0], sizes = [1, 512], strides = [1, 1]} : vector<8x512xf32> to vector<1x512xf32>
    %281 = vector.extract_strided_slice %233 {offsets = [0, 7], sizes = [8, 1], strides = [1, 1]} : vector<8x8xf32> to vector<8x1xf32>
    %282 = vector.broadcast %280 : vector<1x512xf32> to vector<8x512xf32>
    %283 = vector.broadcast %281 : vector<8x1xf32> to vector<8x512xf32>
    %284 = arith.mulf %282, %283 : vector<8x512xf32>
    %285 = arith.addf %279, %284 : vector<8x512xf32>
    %286 = vector.extract_strided_slice %14 {offsets = [0, 5], sizes = [8, 1], strides = [1, 1]} : vector<8x50xf32> to vector<8x1xf32>
    %287 = vector.broadcast %286 : vector<8x1xf32> to vector<8x512xf32>
    %288 = arith.mulf %285, %287 : vector<8x512xf32>
    %289 = vector.extract_strided_slice %14 {offsets = [0, 46], sizes = [8, 4], strides = [1, 1]} : vector<8x50xf32> to vector<8x4xf32>
    %cst_49 = arith.constant 0.000000e+00 : f32
    %290 = vector.broadcast %cst_49 : f32 to vector<8x512xf32>
    %291 = vector.extract_strided_slice %14 {offsets = [0, 6], sizes = [8, 1], strides = [1, 1]} : vector<8x50xf32> to vector<8x1xf32>
    %292 = vector.broadcast %291 : vector<8x1xf32> to vector<8x512xf32>
    %293 = arith.addf %290, %292 : vector<8x512xf32>
    %294 = vector.extract_strided_slice %13 {offsets = [0, 0], sizes = [1, 512], strides = [1, 1]} : vector<4x512xf32> to vector<1x512xf32>
    %295 = vector.extract_strided_slice %289 {offsets = [0, 0], sizes = [8, 1], strides = [1, 1]} : vector<8x4xf32> to vector<8x1xf32>
    %296 = vector.broadcast %294 : vector<1x512xf32> to vector<8x512xf32>
    %297 = vector.broadcast %295 : vector<8x1xf32> to vector<8x512xf32>
    %298 = arith.mulf %296, %297 : vector<8x512xf32>
    %299 = arith.addf %293, %298 : vector<8x512xf32>
    %300 = vector.extract_strided_slice %13 {offsets = [1, 0], sizes = [1, 512], strides = [1, 1]} : vector<4x512xf32> to vector<1x512xf32>
    %301 = vector.extract_strided_slice %289 {offsets = [0, 1], sizes = [8, 1], strides = [1, 1]} : vector<8x4xf32> to vector<8x1xf32>
    %302 = vector.broadcast %300 : vector<1x512xf32> to vector<8x512xf32>
    %303 = vector.broadcast %301 : vector<8x1xf32> to vector<8x512xf32>
    %304 = arith.mulf %302, %303 : vector<8x512xf32>
    %305 = arith.addf %299, %304 : vector<8x512xf32>
    %306 = vector.extract_strided_slice %13 {offsets = [2, 0], sizes = [1, 512], strides = [1, 1]} : vector<4x512xf32> to vector<1x512xf32>
    %307 = vector.extract_strided_slice %289 {offsets = [0, 2], sizes = [8, 1], strides = [1, 1]} : vector<8x4xf32> to vector<8x1xf32>
    %308 = vector.broadcast %306 : vector<1x512xf32> to vector<8x512xf32>
    %309 = vector.broadcast %307 : vector<8x1xf32> to vector<8x512xf32>
    %310 = arith.mulf %308, %309 : vector<8x512xf32>
    %311 = arith.addf %305, %310 : vector<8x512xf32>
    %312 = vector.extract_strided_slice %13 {offsets = [3, 0], sizes = [1, 512], strides = [1, 1]} : vector<4x512xf32> to vector<1x512xf32>
    %313 = vector.extract_strided_slice %289 {offsets = [0, 3], sizes = [8, 1], strides = [1, 1]} : vector<8x4xf32> to vector<8x1xf32>
    %314 = vector.broadcast %312 : vector<1x512xf32> to vector<8x512xf32>
    %315 = vector.broadcast %313 : vector<8x1xf32> to vector<8x512xf32>
    %316 = arith.mulf %314, %315 : vector<8x512xf32>
    %317 = arith.addf %311, %316 : vector<8x512xf32>
    %318 = arith.addf %288, %317 : vector<8x512xf32>
    %c0_50 = arith.constant 0 : index
    %c0_51 = arith.constant 0 : index
    %319 = vector.load %arg4[%c0_50, %c0_51] : memref<16x57xf32, #tpu.memory_space<vmem>>, vector<16x57xf32>
    %c0_52 = arith.constant 0 : index
    %c128_53 = arith.constant 128 : index
    %320 = vector.load %arg7[%c0_52, %c128_53] : memref<8x768xf32, #tpu.memory_space<vmem>>, vector<8x512xf32>
    tpu.vector_store %arg7[%c0_52, %c128_53], %318 {strides = array<i32>} : memref<8x768xf32, #tpu.memory_space<vmem>>, vector<8x512xf32>,
    %321 = vector.extract_strided_slice %319 {offsets = [0, 6], sizes = [8, 27], strides = [1, 1]} : vector<16x57xf32> to vector<8x27xf32>
    %cst_54 = arith.constant 0.000000e+00 : f32
    %322 = vector.broadcast %cst_54 : f32 to vector<8x512xf32>
    %323 = vector.extract_strided_slice %319 {offsets = [0, 0], sizes = [8, 1], strides = [1, 1]} : vector<16x57xf32> to vector<8x1xf32>
    %324 = vector.broadcast %323 : vector<8x1xf32> to vector<8x512xf32>
    %325 = arith.addf %322, %324 : vector<8x512xf32>
    %c0_55 = arith.constant 0 : index
    %c55_56 = arith.constant 55 : index
    %326 = vector.load %arg7[%c0_55, %c55_56] : memref<8x768xf32, #tpu.memory_space<vmem>>, vector<8x512xf32>
    %327 = vector.extract_strided_slice %321 {offsets = [0, 0], sizes = [8, 1], strides = [1, 1]} : vector<8x27xf32> to vector<8x1xf32>
    %328 = vector.broadcast %327 : vector<8x1xf32> to vector<8x512xf32>
    %329 = arith.mulf %326, %328 : vector<8x512xf32>
    %c0_57 = arith.constant 0 : index
    %c119_58 = arith.constant 119 : index
    %330 = vector.load %arg7[%c0_57, %c119_58] : memref<8x768xf32, #tpu.memory_space<vmem>>, vector<8x512xf32>
    %331 = vector.extract_strided_slice %321 {offsets = [0, 9], sizes = [8, 1], strides = [1, 1]} : vector<8x27xf32> to vector<8x1xf32>
    %332 = vector.broadcast %331 : vector<8x1xf32> to vector<8x512xf32>
    %333 = arith.mulf %330, %332 : vector<8x512xf32>
    %334 = arith.addf %329, %333 : vector<8x512xf32>
    %c0_59 = arith.constant 0 : index
    %c183_60 = arith.constant 183 : index
    %335 = vector.load %arg7[%c0_59, %c183_60] : memref<8x768xf32, #tpu.memory_space<vmem>>, vector<8x512xf32>
    %336 = vector.extract_strided_slice %321 {offsets = [0, 18], sizes = [8, 1], strides = [1, 1]} : vector<8x27xf32> to vector<8x1xf32>
    %337 = vector.broadcast %336 : vector<8x1xf32> to vector<8x512xf32>
    %338 = arith.mulf %335, %337 : vector<8x512xf32>
    %339 = arith.addf %334, %338 : vector<8x512xf32>
    %340 = vector.broadcast %8 : vector<1x512xf32> to vector<8x512xf32>
    %341 = arith.mulf %339, %340 : vector<8x512xf32>
    %342 = arith.addf %325, %341 : vector<8x512xf32>
    %c0_61 = arith.constant 0 : index
    %c56_62 = arith.constant 56 : index
    %343 = vector.load %arg7[%c0_61, %c56_62] : memref<8x768xf32, #tpu.memory_space<vmem>>, vector<8x512xf32>
    %344 = vector.extract_strided_slice %321 {offsets = [0, 1], sizes = [8, 1], strides = [1, 1]} : vector<8x27xf32> to vector<8x1xf32>
    %345 = vector.broadcast %344 : vector<8x1xf32> to vector<8x512xf32>
    %346 = arith.mulf %343, %345 : vector<8x512xf32>
    %c0_63 = arith.constant 0 : index
    %c120_64 = arith.constant 120 : index
    %347 = vector.load %arg7[%c0_63, %c120_64] : memref<8x768xf32, #tpu.memory_space<vmem>>, vector<8x512xf32>
    %348 = vector.extract_strided_slice %321 {offsets = [0, 10], sizes = [8, 1], strides = [1, 1]} : vector<8x27xf32> to vector<8x1xf32>
    %349 = vector.broadcast %348 : vector<8x1xf32> to vector<8x512xf32>
    %350 = arith.mulf %347, %349 : vector<8x512xf32>
    %351 = arith.addf %346, %350 : vector<8x512xf32>
    %c0_65 = arith.constant 0 : index
    %c184_66 = arith.constant 184 : index
    %352 = vector.load %arg7[%c0_65, %c184_66] : memref<8x768xf32, #tpu.memory_space<vmem>>, vector<8x512xf32>
    %353 = vector.extract_strided_slice %321 {offsets = [0, 19], sizes = [8, 1], strides = [1, 1]} : vector<8x27xf32> to vector<8x1xf32>
    %354 = vector.broadcast %353 : vector<8x1xf32> to vector<8x512xf32>
    %355 = arith.mulf %352, %354 : vector<8x512xf32>
    %356 = arith.addf %351, %355 : vector<8x512xf32>
    %357 = vector.broadcast %4 : vector<1x512xf32> to vector<8x512xf32>
    %358 = arith.mulf %356, %357 : vector<8x512xf32>
    %359 = arith.addf %342, %358 : vector<8x512xf32>
    %c0_67 = arith.constant 0 : index
    %c57_68 = arith.constant 57 : index
    %360 = vector.load %arg7[%c0_67, %c57_68] : memref<8x768xf32, #tpu.memory_space<vmem>>, vector<8x512xf32>
    %361 = vector.extract_strided_slice %321 {offsets = [0, 2], sizes = [8, 1], strides = [1, 1]} : vector<8x27xf32> to vector<8x1xf32>
    %362 = vector.broadcast %361 : vector<8x1xf32> to vector<8x512xf32>
    %363 = arith.mulf %360, %362 : vector<8x512xf32>
    %c0_69 = arith.constant 0 : index
    %c121_70 = arith.constant 121 : index
    %364 = vector.load %arg7[%c0_69, %c121_70] : memref<8x768xf32, #tpu.memory_space<vmem>>, vector<8x512xf32>
    %365 = vector.extract_strided_slice %321 {offsets = [0, 11], sizes = [8, 1], strides = [1, 1]} : vector<8x27xf32> to vector<8x1xf32>
    %366 = vector.broadcast %365 : vector<8x1xf32> to vector<8x512xf32>
    %367 = arith.mulf %364, %366 : vector<8x512xf32>
    %368 = arith.addf %363, %367 : vector<8x512xf32>
    %c0_71 = arith.constant 0 : index
    %c185_72 = arith.constant 185 : index
    %369 = vector.load %arg7[%c0_71, %c185_72] : memref<8x768xf32, #tpu.memory_space<vmem>>, vector<8x512xf32>
    %370 = vector.extract_strided_slice %321 {offsets = [0, 20], sizes = [8, 1], strides = [1, 1]} : vector<8x27xf32> to vector<8x1xf32>
    %371 = vector.broadcast %370 : vector<8x1xf32> to vector<8x512xf32>
    %372 = arith.mulf %369, %371 : vector<8x512xf32>
    %373 = arith.addf %368, %372 : vector<8x512xf32>
    %374 = vector.broadcast %9 : vector<1x512xf32> to vector<8x512xf32>
    %375 = arith.mulf %373, %374 : vector<8x512xf32>
    %376 = arith.addf %359, %375 : vector<8x512xf32>
    %c0_73 = arith.constant 0 : index
    %c63_74 = arith.constant 63 : index
    %377 = vector.load %arg7[%c0_73, %c63_74] : memref<8x768xf32, #tpu.memory_space<vmem>>, vector<8x512xf32>
    %378 = vector.extract_strided_slice %321 {offsets = [0, 3], sizes = [8, 1], strides = [1, 1]} : vector<8x27xf32> to vector<8x1xf32>
    %379 = vector.broadcast %378 : vector<8x1xf32> to vector<8x512xf32>
    %380 = arith.mulf %377, %379 : vector<8x512xf32>
    %c0_75 = arith.constant 0 : index
    %c127_76 = arith.constant 127 : index
    %381 = vector.load %arg7[%c0_75, %c127_76] : memref<8x768xf32, #tpu.memory_space<vmem>>, vector<8x512xf32>
    %382 = vector.extract_strided_slice %321 {offsets = [0, 12], sizes = [8, 1], strides = [1, 1]} : vector<8x27xf32> to vector<8x1xf32>
    %383 = vector.broadcast %382 : vector<8x1xf32> to vector<8x512xf32>
    %384 = arith.mulf %381, %383 : vector<8x512xf32>
    %385 = arith.addf %380, %384 : vector<8x512xf32>
    %c0_77 = arith.constant 0 : index
    %c191_78 = arith.constant 191 : index
    %386 = vector.load %arg7[%c0_77, %c191_78] : memref<8x768xf32, #tpu.memory_space<vmem>>, vector<8x512xf32>
    %387 = vector.extract_strided_slice %321 {offsets = [0, 21], sizes = [8, 1], strides = [1, 1]} : vector<8x27xf32> to vector<8x1xf32>
    %388 = vector.broadcast %387 : vector<8x1xf32> to vector<8x512xf32>
    %389 = arith.mulf %386, %388 : vector<8x512xf32>
    %390 = arith.addf %385, %389 : vector<8x512xf32>
    %391 = vector.broadcast %6 : vector<1x512xf32> to vector<8x512xf32>
    %392 = arith.mulf %390, %391 : vector<8x512xf32>
    %393 = arith.addf %376, %392 : vector<8x512xf32>
    %c0_79 = arith.constant 0 : index
    %c64_80 = arith.constant 64 : index
    %394 = vector.load %arg7[%c0_79, %c64_80] : memref<8x768xf32, #tpu.memory_space<vmem>>, vector<8x512xf32>
    %395 = vector.extract_strided_slice %321 {offsets = [0, 4], sizes = [8, 1], strides = [1, 1]} : vector<8x27xf32> to vector<8x1xf32>
    %396 = vector.broadcast %395 : vector<8x1xf32> to vector<8x512xf32>
    %397 = arith.mulf %394, %396 : vector<8x512xf32>
    %c0_81 = arith.constant 0 : index
    %c128_82 = arith.constant 128 : index
    %398 = vector.load %arg7[%c0_81, %c128_82] : memref<8x768xf32, #tpu.memory_space<vmem>>, vector<8x512xf32>
    %399 = vector.extract_strided_slice %321 {offsets = [0, 13], sizes = [8, 1], strides = [1, 1]} : vector<8x27xf32> to vector<8x1xf32>
    %400 = vector.broadcast %399 : vector<8x1xf32> to vector<8x512xf32>
    %401 = arith.mulf %398, %400 : vector<8x512xf32>
    %402 = arith.addf %397, %401 : vector<8x512xf32>
    %c0_83 = arith.constant 0 : index
    %c192_84 = arith.constant 192 : index
    %403 = vector.load %arg7[%c0_83, %c192_84] : memref<8x768xf32, #tpu.memory_space<vmem>>, vector<8x512xf32>
    %404 = vector.extract_strided_slice %321 {offsets = [0, 22], sizes = [8, 1], strides = [1, 1]} : vector<8x27xf32> to vector<8x1xf32>
    %405 = vector.broadcast %404 : vector<8x1xf32> to vector<8x512xf32>
    %406 = arith.mulf %403, %405 : vector<8x512xf32>
    %407 = arith.addf %402, %406 : vector<8x512xf32>
    %408 = arith.addf %393, %407 : vector<8x512xf32>
    %c0_85 = arith.constant 0 : index
    %c65_86 = arith.constant 65 : index
    %409 = vector.load %arg7[%c0_85, %c65_86] : memref<8x768xf32, #tpu.memory_space<vmem>>, vector<8x512xf32>
    %410 = vector.extract_strided_slice %321 {offsets = [0, 5], sizes = [8, 1], strides = [1, 1]} : vector<8x27xf32> to vector<8x1xf32>
    %411 = vector.broadcast %410 : vector<8x1xf32> to vector<8x512xf32>
    %412 = arith.mulf %409, %411 : vector<8x512xf32>
    %c0_87 = arith.constant 0 : index
    %c129_88 = arith.constant 129 : index
    %413 = vector.load %arg7[%c0_87, %c129_88] : memref<8x768xf32, #tpu.memory_space<vmem>>, vector<8x512xf32>
    %414 = vector.extract_strided_slice %321 {offsets = [0, 14], sizes = [8, 1], strides = [1, 1]} : vector<8x27xf32> to vector<8x1xf32>
    %415 = vector.broadcast %414 : vector<8x1xf32> to vector<8x512xf32>
    %416 = arith.mulf %413, %415 : vector<8x512xf32>
    %417 = arith.addf %412, %416 : vector<8x512xf32>
    %c0_89 = arith.constant 0 : index
    %c193_90 = arith.constant 193 : index
    %418 = vector.load %arg7[%c0_89, %c193_90] : memref<8x768xf32, #tpu.memory_space<vmem>>, vector<8x512xf32>
    %419 = vector.extract_strided_slice %321 {offsets = [0, 23], sizes = [8, 1], strides = [1, 1]} : vector<8x27xf32> to vector<8x1xf32>
    %420 = vector.broadcast %419 : vector<8x1xf32> to vector<8x512xf32>
    %421 = arith.mulf %418, %420 : vector<8x512xf32>
    %422 = arith.addf %417, %421 : vector<8x512xf32>
    %423 = vector.broadcast %7 : vector<1x512xf32> to vector<8x512xf32>
    %424 = arith.mulf %422, %423 : vector<8x512xf32>
    %425 = arith.addf %408, %424 : vector<8x512xf32>
    %c0_91 = arith.constant 0 : index
    %c71_92 = arith.constant 71 : index
    %426 = vector.load %arg7[%c0_91, %c71_92] : memref<8x768xf32, #tpu.memory_space<vmem>>, vector<8x512xf32>
    %427 = vector.extract_strided_slice %321 {offsets = [0, 6], sizes = [8, 1], strides = [1, 1]} : vector<8x27xf32> to vector<8x1xf32>
    %428 = vector.broadcast %427 : vector<8x1xf32> to vector<8x512xf32>
    %429 = arith.mulf %426, %428 : vector<8x512xf32>
    %c0_93 = arith.constant 0 : index
    %c135_94 = arith.constant 135 : index
    %430 = vector.load %arg7[%c0_93, %c135_94] : memref<8x768xf32, #tpu.memory_space<vmem>>, vector<8x512xf32>
    %431 = vector.extract_strided_slice %321 {offsets = [0, 15], sizes = [8, 1], strides = [1, 1]} : vector<8x27xf32> to vector<8x1xf32>
    %432 = vector.broadcast %431 : vector<8x1xf32> to vector<8x512xf32>
    %433 = arith.mulf %430, %432 : vector<8x512xf32>
    %434 = arith.addf %429, %433 : vector<8x512xf32>
    %c0_95 = arith.constant 0 : index
    %c199_96 = arith.constant 199 : index
    %435 = vector.load %arg7[%c0_95, %c199_96] : memref<8x768xf32, #tpu.memory_space<vmem>>, vector<8x512xf32>
    %436 = vector.extract_strided_slice %321 {offsets = [0, 24], sizes = [8, 1], strides = [1, 1]} : vector<8x27xf32> to vector<8x1xf32>
    %437 = vector.broadcast %436 : vector<8x1xf32> to vector<8x512xf32>
    %438 = arith.mulf %435, %437 : vector<8x512xf32>
    %439 = arith.addf %434, %438 : vector<8x512xf32>
    %440 = vector.broadcast %10 : vector<1x512xf32> to vector<8x512xf32>
    %441 = arith.mulf %439, %440 : vector<8x512xf32>
    %442 = arith.addf %425, %441 : vector<8x512xf32>
    %c0_97 = arith.constant 0 : index
    %c72_98 = arith.constant 72 : index
    %443 = vector.load %arg7[%c0_97, %c72_98] : memref<8x768xf32, #tpu.memory_space<vmem>>, vector<8x512xf32>
    %444 = vector.extract_strided_slice %321 {offsets = [0, 7], sizes = [8, 1], strides = [1, 1]} : vector<8x27xf32> to vector<8x1xf32>
    %445 = vector.broadcast %444 : vector<8x1xf32> to vector<8x512xf32>
    %446 = arith.mulf %443, %445 : vector<8x512xf32>
    %c0_99 = arith.constant 0 : index
    %c136_100 = arith.constant 136 : index
    %447 = vector.load %arg7[%c0_99, %c136_100] : memref<8x768xf32, #tpu.memory_space<vmem>>, vector<8x512xf32>
    %448 = vector.extract_strided_slice %321 {offsets = [0, 16], sizes = [8, 1], strides = [1, 1]} : vector<8x27xf32> to vector<8x1xf32>
    %449 = vector.broadcast %448 : vector<8x1xf32> to vector<8x512xf32>
    %450 = arith.mulf %447, %449 : vector<8x512xf32>
    %451 = arith.addf %446, %450 : vector<8x512xf32>
    %c0_101 = arith.constant 0 : index
    %c200_102 = arith.constant 200 : index
    %452 = vector.load %arg7[%c0_101, %c200_102] : memref<8x768xf32, #tpu.memory_space<vmem>>, vector<8x512xf32>
    %453 = vector.extract_strided_slice %321 {offsets = [0, 25], sizes = [8, 1], strides = [1, 1]} : vector<8x27xf32> to vector<8x1xf32>
    %454 = vector.broadcast %453 : vector<8x1xf32> to vector<8x512xf32>
    %455 = arith.mulf %452, %454 : vector<8x512xf32>
    %456 = arith.addf %451, %455 : vector<8x512xf32>
    %457 = vector.broadcast %5 : vector<1x512xf32> to vector<8x512xf32>
    %458 = arith.mulf %456, %457 : vector<8x512xf32>
    %459 = arith.addf %442, %458 : vector<8x512xf32>
    %c0_103 = arith.constant 0 : index
    %c73_104 = arith.constant 73 : index
    %460 = vector.load %arg7[%c0_103, %c73_104] : memref<8x768xf32, #tpu.memory_space<vmem>>, vector<8x512xf32>
    %461 = vector.extract_strided_slice %321 {offsets = [0, 8], sizes = [8, 1], strides = [1, 1]} : vector<8x27xf32> to vector<8x1xf32>
    %462 = vector.broadcast %461 : vector<8x1xf32> to vector<8x512xf32>
    %463 = arith.mulf %460, %462 : vector<8x512xf32>
    %c0_105 = arith.constant 0 : index
    %c137_106 = arith.constant 137 : index
    %464 = vector.load %arg7[%c0_105, %c137_106] : memref<8x768xf32, #tpu.memory_space<vmem>>, vector<8x512xf32>
    %465 = vector.extract_strided_slice %321 {offsets = [0, 17], sizes = [8, 1], strides = [1, 1]} : vector<8x27xf32> to vector<8x1xf32>
    %466 = vector.broadcast %465 : vector<8x1xf32> to vector<8x512xf32>
    %467 = arith.mulf %464, %466 : vector<8x512xf32>
    %468 = arith.addf %463, %467 : vector<8x512xf32>
    %c0_107 = arith.constant 0 : index
    %c201_108 = arith.constant 201 : index
    %469 = vector.load %arg7[%c0_107, %c201_108] : memref<8x768xf32, #tpu.memory_space<vmem>>, vector<8x512xf32>
    %470 = vector.extract_strided_slice %321 {offsets = [0, 26], sizes = [8, 1], strides = [1, 1]} : vector<8x27xf32> to vector<8x1xf32>
    %471 = vector.broadcast %470 : vector<8x1xf32> to vector<8x512xf32>
    %472 = arith.mulf %469, %471 : vector<8x512xf32>
    %473 = arith.addf %468, %472 : vector<8x512xf32>
    %474 = vector.broadcast %11 : vector<1x512xf32> to vector<8x512xf32>
    %475 = arith.mulf %473, %474 : vector<8x512xf32>
    %476 = arith.addf %459, %475 : vector<8x512xf32>
    %cst_109 = arith.constant dense<0.000000e+00> : vector<512xf32>
    %477 = vector.multi_reduction <add>, %476, %cst_109 [0] : vector<8x512xf32> to vector<512xf32>
    %478 = vector.shape_cast %477 : vector<512xf32> to vector<1x512xf32>
    %cst_110 = arith.constant 8.000000e+00 : f32
    %479 = vector.broadcast %cst_110 : f32 to vector<1x512xf32>
    %480 = arith.divf %478, %479 : vector<1x512xf32>
    %481 = vector.broadcast %480 : vector<1x512xf32> to vector<8x512xf32>
    %482 = arith.subf %476, %481 : vector<8x512xf32>
    %483 = arith.mulf %482, %482 : vector<8x512xf32>
    %cst_111 = arith.constant dense<0.000000e+00> : vector<512xf32>
    %484 = vector.multi_reduction <add>, %483, %cst_111 [0] : vector<8x512xf32> to vector<512xf32>
    %485 = vector.shape_cast %484 : vector<512xf32> to vector<1x512xf32>
    %cst_112 = arith.constant 8.000000e+00 : f32
    %486 = vector.broadcast %cst_112 : f32 to vector<1x512xf32>
    %487 = arith.divf %485, %486 : vector<1x512xf32>
    %488 = vector.broadcast %480 : vector<1x512xf32> to vector<8x512xf32>
    %489 = arith.subf %476, %488 : vector<8x512xf32>
    %cst_113 = arith.constant 9.99999997E-7 : f32
    %490 = vector.broadcast %cst_113 : f32 to vector<1x512xf32>
    %491 = arith.addf %487, %490 : vector<1x512xf32>
    %492 = math.rsqrt %491 : vector<1x512xf32>
    %493 = vector.broadcast %492 : vector<1x512xf32> to vector<8x512xf32>
    %494 = arith.mulf %489, %493 : vector<8x512xf32>
    %495 = vector.extract_strided_slice %319 {offsets = [0, 1], sizes = [8, 1], strides = [1, 1]} : vector<16x57xf32> to vector<8x1xf32>
    %496 = vector.broadcast %495 : vector<8x1xf32> to vector<8x512xf32>
    %497 = arith.mulf %494, %496 : vector<8x512xf32>
    %498 = vector.extract_strided_slice %319 {offsets = [0, 2], sizes = [8, 1], strides = [1, 1]} : vector<16x57xf32> to vector<8x1xf32>
    %499 = vector.broadcast %498 : vector<8x1xf32> to vector<8x512xf32>
    %500 = arith.addf %497, %499 : vector<8x512xf32>
    %501 = vector.extract_strided_slice %319 {offsets = [0, 33], sizes = [16, 8], strides = [1, 1]} : vector<16x57xf32> to vector<16x8xf32>
    %cst_114 = arith.constant 0.000000e+00 : f32
    %502 = vector.broadcast %cst_114 : f32 to vector<16x512xf32>
    %503 = vector.extract_strided_slice %319 {offsets = [0, 3], sizes = [16, 1], strides = [1, 1]} : vector<16x57xf32> to vector<16x1xf32>
    %504 = vector.broadcast %503 : vector<16x1xf32> to vector<16x512xf32>
    %505 = arith.addf %502, %504 : vector<16x512xf32>
    %506 = vector.extract_strided_slice %500 {offsets = [0, 0], sizes = [1, 512], strides = [1, 1]} : vector<8x512xf32> to vector<1x512xf32>
    %507 = vector.extract_strided_slice %501 {offsets = [0, 0], sizes = [16, 1], strides = [1, 1]} : vector<16x8xf32> to vector<16x1xf32>
    %508 = vector.broadcast %506 : vector<1x512xf32> to vector<16x512xf32>
    %509 = vector.broadcast %507 : vector<16x1xf32> to vector<16x512xf32>
    %510 = arith.mulf %508, %509 : vector<16x512xf32>
    %511 = arith.addf %505, %510 : vector<16x512xf32>
    %512 = vector.extract_strided_slice %500 {offsets = [1, 0], sizes = [1, 512], strides = [1, 1]} : vector<8x512xf32> to vector<1x512xf32>
    %513 = vector.extract_strided_slice %501 {offsets = [0, 1], sizes = [16, 1], strides = [1, 1]} : vector<16x8xf32> to vector<16x1xf32>
    %514 = vector.broadcast %512 : vector<1x512xf32> to vector<16x512xf32>
    %515 = vector.broadcast %513 : vector<16x1xf32> to vector<16x512xf32>
    %516 = arith.mulf %514, %515 : vector<16x512xf32>
    %517 = arith.addf %511, %516 : vector<16x512xf32>
    %518 = vector.extract_strided_slice %500 {offsets = [2, 0], sizes = [1, 512], strides = [1, 1]} : vector<8x512xf32> to vector<1x512xf32>
    %519 = vector.extract_strided_slice %501 {offsets = [0, 2], sizes = [16, 1], strides = [1, 1]} : vector<16x8xf32> to vector<16x1xf32>
    %520 = vector.broadcast %518 : vector<1x512xf32> to vector<16x512xf32>
    %521 = vector.broadcast %519 : vector<16x1xf32> to vector<16x512xf32>
    %522 = arith.mulf %520, %521 : vector<16x512xf32>
    %523 = arith.addf %517, %522 : vector<16x512xf32>
    %524 = vector.extract_strided_slice %500 {offsets = [3, 0], sizes = [1, 512], strides = [1, 1]} : vector<8x512xf32> to vector<1x512xf32>
    %525 = vector.extract_strided_slice %501 {offsets = [0, 3], sizes = [16, 1], strides = [1, 1]} : vector<16x8xf32> to vector<16x1xf32>
    %526 = vector.broadcast %524 : vector<1x512xf32> to vector<16x512xf32>
    %527 = vector.broadcast %525 : vector<16x1xf32> to vector<16x512xf32>
    %528 = arith.mulf %526, %527 : vector<16x512xf32>
    %529 = arith.addf %523, %528 : vector<16x512xf32>
    %530 = vector.extract_strided_slice %500 {offsets = [4, 0], sizes = [1, 512], strides = [1, 1]} : vector<8x512xf32> to vector<1x512xf32>
    %531 = vector.extract_strided_slice %501 {offsets = [0, 4], sizes = [16, 1], strides = [1, 1]} : vector<16x8xf32> to vector<16x1xf32>
    %532 = vector.broadcast %530 : vector<1x512xf32> to vector<16x512xf32>
    %533 = vector.broadcast %531 : vector<16x1xf32> to vector<16x512xf32>
    %534 = arith.mulf %532, %533 : vector<16x512xf32>
    %535 = arith.addf %529, %534 : vector<16x512xf32>
    %536 = vector.extract_strided_slice %500 {offsets = [5, 0], sizes = [1, 512], strides = [1, 1]} : vector<8x512xf32> to vector<1x512xf32>
    %537 = vector.extract_strided_slice %501 {offsets = [0, 5], sizes = [16, 1], strides = [1, 1]} : vector<16x8xf32> to vector<16x1xf32>
    %538 = vector.broadcast %536 : vector<1x512xf32> to vector<16x512xf32>
    %539 = vector.broadcast %537 : vector<16x1xf32> to vector<16x512xf32>
    %540 = arith.mulf %538, %539 : vector<16x512xf32>
    %541 = arith.addf %535, %540 : vector<16x512xf32>
    %542 = vector.extract_strided_slice %500 {offsets = [6, 0], sizes = [1, 512], strides = [1, 1]} : vector<8x512xf32> to vector<1x512xf32>
    %543 = vector.extract_strided_slice %501 {offsets = [0, 6], sizes = [16, 1], strides = [1, 1]} : vector<16x8xf32> to vector<16x1xf32>
    %544 = vector.broadcast %542 : vector<1x512xf32> to vector<16x512xf32>
    %545 = vector.broadcast %543 : vector<16x1xf32> to vector<16x512xf32>
    %546 = arith.mulf %544, %545 : vector<16x512xf32>
    %547 = arith.addf %541, %546 : vector<16x512xf32>
    %548 = vector.extract_strided_slice %500 {offsets = [7, 0], sizes = [1, 512], strides = [1, 1]} : vector<8x512xf32> to vector<1x512xf32>
    %549 = vector.extract_strided_slice %501 {offsets = [0, 7], sizes = [16, 1], strides = [1, 1]} : vector<16x8xf32> to vector<16x1xf32>
    %550 = vector.broadcast %548 : vector<1x512xf32> to vector<16x512xf32>
    %551 = vector.broadcast %549 : vector<16x1xf32> to vector<16x512xf32>
    %552 = arith.mulf %550, %551 : vector<16x512xf32>
    %553 = arith.addf %547, %552 : vector<16x512xf32>
    %cst_115 = arith.constant 5.000000e-01 : f32
    %554 = vector.broadcast %cst_115 : f32 to vector<16x512xf32>
    %555 = arith.mulf %554, %553 : vector<16x512xf32>
    %cst_116 = arith.constant 0.707106769 : f32
    %556 = vector.broadcast %cst_116 : f32 to vector<16x512xf32>
    %557 = arith.mulf %553, %556 : vector<16x512xf32>
    %558 = math.erf %557 : vector<16x512xf32>
    %cst_117 = arith.constant 1.000000e+00 : f32
    %559 = vector.broadcast %cst_117 : f32 to vector<16x512xf32>
    %560 = arith.addf %559, %558 : vector<16x512xf32>
    %561 = arith.mulf %555, %560 : vector<16x512xf32>
    %562 = vector.extract_strided_slice %319 {offsets = [0, 41], sizes = [8, 16], strides = [1, 1]} : vector<16x57xf32> to vector<8x16xf32>
    %cst_118 = arith.constant 0.000000e+00 : f32
    %563 = vector.broadcast %cst_118 : f32 to vector<8x512xf32>
    %564 = vector.extract_strided_slice %319 {offsets = [0, 4], sizes = [8, 1], strides = [1, 1]} : vector<16x57xf32> to vector<8x1xf32>
    %565 = vector.broadcast %564 : vector<8x1xf32> to vector<8x512xf32>
    %566 = arith.addf %563, %565 : vector<8x512xf32>
    %567 = vector.extract_strided_slice %561 {offsets = [0, 0], sizes = [1, 512], strides = [1, 1]} : vector<16x512xf32> to vector<1x512xf32>
    %568 = vector.extract_strided_slice %562 {offsets = [0, 0], sizes = [8, 1], strides = [1, 1]} : vector<8x16xf32> to vector<8x1xf32>
    %569 = vector.broadcast %567 : vector<1x512xf32> to vector<8x512xf32>
    %570 = vector.broadcast %568 : vector<8x1xf32> to vector<8x512xf32>
    %571 = arith.mulf %569, %570 : vector<8x512xf32>
    %572 = arith.addf %566, %571 : vector<8x512xf32>
    %573 = vector.extract_strided_slice %561 {offsets = [1, 0], sizes = [1, 512], strides = [1, 1]} : vector<16x512xf32> to vector<1x512xf32>
    %574 = vector.extract_strided_slice %562 {offsets = [0, 1], sizes = [8, 1], strides = [1, 1]} : vector<8x16xf32> to vector<8x1xf32>
    %575 = vector.broadcast %573 : vector<1x512xf32> to vector<8x512xf32>
    %576 = vector.broadcast %574 : vector<8x1xf32> to vector<8x512xf32>
    %577 = arith.mulf %575, %576 : vector<8x512xf32>
    %578 = arith.addf %572, %577 : vector<8x512xf32>
    %579 = vector.extract_strided_slice %561 {offsets = [2, 0], sizes = [1, 512], strides = [1, 1]} : vector<16x512xf32> to vector<1x512xf32>
    %580 = vector.extract_strided_slice %562 {offsets = [0, 2], sizes = [8, 1], strides = [1, 1]} : vector<8x16xf32> to vector<8x1xf32>
    %581 = vector.broadcast %579 : vector<1x512xf32> to vector<8x512xf32>
    %582 = vector.broadcast %580 : vector<8x1xf32> to vector<8x512xf32>
    %583 = arith.mulf %581, %582 : vector<8x512xf32>
    %584 = arith.addf %578, %583 : vector<8x512xf32>
    %585 = vector.extract_strided_slice %561 {offsets = [3, 0], sizes = [1, 512], strides = [1, 1]} : vector<16x512xf32> to vector<1x512xf32>
    %586 = vector.extract_strided_slice %562 {offsets = [0, 3], sizes = [8, 1], strides = [1, 1]} : vector<8x16xf32> to vector<8x1xf32>
    %587 = vector.broadcast %585 : vector<1x512xf32> to vector<8x512xf32>
    %588 = vector.broadcast %586 : vector<8x1xf32> to vector<8x512xf32>
    %589 = arith.mulf %587, %588 : vector<8x512xf32>
    %590 = arith.addf %584, %589 : vector<8x512xf32>
    %591 = vector.extract_strided_slice %561 {offsets = [4, 0], sizes = [1, 512], strides = [1, 1]} : vector<16x512xf32> to vector<1x512xf32>
    %592 = vector.extract_strided_slice %562 {offsets = [0, 4], sizes = [8, 1], strides = [1, 1]} : vector<8x16xf32> to vector<8x1xf32>
    %593 = vector.broadcast %591 : vector<1x512xf32> to vector<8x512xf32>
    %594 = vector.broadcast %592 : vector<8x1xf32> to vector<8x512xf32>
    %595 = arith.mulf %593, %594 : vector<8x512xf32>
    %596 = arith.addf %590, %595 : vector<8x512xf32>
    %597 = vector.extract_strided_slice %561 {offsets = [5, 0], sizes = [1, 512], strides = [1, 1]} : vector<16x512xf32> to vector<1x512xf32>
    %598 = vector.extract_strided_slice %562 {offsets = [0, 5], sizes = [8, 1], strides = [1, 1]} : vector<8x16xf32> to vector<8x1xf32>
    %599 = vector.broadcast %597 : vector<1x512xf32> to vector<8x512xf32>
    %600 = vector.broadcast %598 : vector<8x1xf32> to vector<8x512xf32>
    %601 = arith.mulf %599, %600 : vector<8x512xf32>
    %602 = arith.addf %596, %601 : vector<8x512xf32>
    %603 = vector.extract_strided_slice %561 {offsets = [6, 0], sizes = [1, 512], strides = [1, 1]} : vector<16x512xf32> to vector<1x512xf32>
    %604 = vector.extract_strided_slice %562 {offsets = [0, 6], sizes = [8, 1], strides = [1, 1]} : vector<8x16xf32> to vector<8x1xf32>
    %605 = vector.broadcast %603 : vector<1x512xf32> to vector<8x512xf32>
    %606 = vector.broadcast %604 : vector<8x1xf32> to vector<8x512xf32>
    %607 = arith.mulf %605, %606 : vector<8x512xf32>
    %608 = arith.addf %602, %607 : vector<8x512xf32>
    %609 = vector.extract_strided_slice %561 {offsets = [7, 0], sizes = [1, 512], strides = [1, 1]} : vector<16x512xf32> to vector<1x512xf32>
    %610 = vector.extract_strided_slice %562 {offsets = [0, 7], sizes = [8, 1], strides = [1, 1]} : vector<8x16xf32> to vector<8x1xf32>
    %611 = vector.broadcast %609 : vector<1x512xf32> to vector<8x512xf32>
    %612 = vector.broadcast %610 : vector<8x1xf32> to vector<8x512xf32>
    %613 = arith.mulf %611, %612 : vector<8x512xf32>
    %614 = arith.addf %608, %613 : vector<8x512xf32>
    %615 = vector.extract_strided_slice %561 {offsets = [8, 0], sizes = [1, 512], strides = [1, 1]} : vector<16x512xf32> to vector<1x512xf32>
    %616 = vector.extract_strided_slice %562 {offsets = [0, 8], sizes = [8, 1], strides = [1, 1]} : vector<8x16xf32> to vector<8x1xf32>
    %617 = vector.broadcast %615 : vector<1x512xf32> to vector<8x512xf32>
    %618 = vector.broadcast %616 : vector<8x1xf32> to vector<8x512xf32>
    %619 = arith.mulf %617, %618 : vector<8x512xf32>
    %620 = arith.addf %614, %619 : vector<8x512xf32>
    %621 = vector.extract_strided_slice %561 {offsets = [9, 0], sizes = [1, 512], strides = [1, 1]} : vector<16x512xf32> to vector<1x512xf32>
    %622 = vector.extract_strided_slice %562 {offsets = [0, 9], sizes = [8, 1], strides = [1, 1]} : vector<8x16xf32> to vector<8x1xf32>
    %623 = vector.broadcast %621 : vector<1x512xf32> to vector<8x512xf32>
    %624 = vector.broadcast %622 : vector<8x1xf32> to vector<8x512xf32>
    %625 = arith.mulf %623, %624 : vector<8x512xf32>
    %626 = arith.addf %620, %625 : vector<8x512xf32>
    %627 = vector.extract_strided_slice %561 {offsets = [10, 0], sizes = [1, 512], strides = [1, 1]} : vector<16x512xf32> to vector<1x512xf32>
    %628 = vector.extract_strided_slice %562 {offsets = [0, 10], sizes = [8, 1], strides = [1, 1]} : vector<8x16xf32> to vector<8x1xf32>
    %629 = vector.broadcast %627 : vector<1x512xf32> to vector<8x512xf32>
    %630 = vector.broadcast %628 : vector<8x1xf32> to vector<8x512xf32>
    %631 = arith.mulf %629, %630 : vector<8x512xf32>
    %632 = arith.addf %626, %631 : vector<8x512xf32>
    %633 = vector.extract_strided_slice %561 {offsets = [11, 0], sizes = [1, 512], strides = [1, 1]} : vector<16x512xf32> to vector<1x512xf32>
    %634 = vector.extract_strided_slice %562 {offsets = [0, 11], sizes = [8, 1], strides = [1, 1]} : vector<8x16xf32> to vector<8x1xf32>
    %635 = vector.broadcast %633 : vector<1x512xf32> to vector<8x512xf32>
    %636 = vector.broadcast %634 : vector<8x1xf32> to vector<8x512xf32>
    %637 = arith.mulf %635, %636 : vector<8x512xf32>
    %638 = arith.addf %632, %637 : vector<8x512xf32>
    %639 = vector.extract_strided_slice %561 {offsets = [12, 0], sizes = [1, 512], strides = [1, 1]} : vector<16x512xf32> to vector<1x512xf32>
    %640 = vector.extract_strided_slice %562 {offsets = [0, 12], sizes = [8, 1], strides = [1, 1]} : vector<8x16xf32> to vector<8x1xf32>
    %641 = vector.broadcast %639 : vector<1x512xf32> to vector<8x512xf32>
    %642 = vector.broadcast %640 : vector<8x1xf32> to vector<8x512xf32>
    %643 = arith.mulf %641, %642 : vector<8x512xf32>
    %644 = arith.addf %638, %643 : vector<8x512xf32>
    %645 = vector.extract_strided_slice %561 {offsets = [13, 0], sizes = [1, 512], strides = [1, 1]} : vector<16x512xf32> to vector<1x512xf32>
    %646 = vector.extract_strided_slice %562 {offsets = [0, 13], sizes = [8, 1], strides = [1, 1]} : vector<8x16xf32> to vector<8x1xf32>
    %647 = vector.broadcast %645 : vector<1x512xf32> to vector<8x512xf32>
    %648 = vector.broadcast %646 : vector<8x1xf32> to vector<8x512xf32>
    %649 = arith.mulf %647, %648 : vector<8x512xf32>
    %650 = arith.addf %644, %649 : vector<8x512xf32>
    %651 = vector.extract_strided_slice %561 {offsets = [14, 0], sizes = [1, 512], strides = [1, 1]} : vector<16x512xf32> to vector<1x512xf32>
    %652 = vector.extract_strided_slice %562 {offsets = [0, 14], sizes = [8, 1], strides = [1, 1]} : vector<8x16xf32> to vector<8x1xf32>
    %653 = vector.broadcast %651 : vector<1x512xf32> to vector<8x512xf32>
    %654 = vector.broadcast %652 : vector<8x1xf32> to vector<8x512xf32>
    %655 = arith.mulf %653, %654 : vector<8x512xf32>
    %656 = arith.addf %650, %655 : vector<8x512xf32>
    %657 = vector.extract_strided_slice %561 {offsets = [15, 0], sizes = [1, 512], strides = [1, 1]} : vector<16x512xf32> to vector<1x512xf32>
    %658 = vector.extract_strided_slice %562 {offsets = [0, 15], sizes = [8, 1], strides = [1, 1]} : vector<8x16xf32> to vector<8x1xf32>
    %659 = vector.broadcast %657 : vector<1x512xf32> to vector<8x512xf32>
    %660 = vector.broadcast %658 : vector<8x1xf32> to vector<8x512xf32>
    %661 = arith.mulf %659, %660 : vector<8x512xf32>
    %662 = arith.addf %656, %661 : vector<8x512xf32>
    %663 = vector.extract_strided_slice %319 {offsets = [0, 5], sizes = [8, 1], strides = [1, 1]} : vector<16x57xf32> to vector<8x1xf32>
    %664 = vector.broadcast %663 : vector<8x1xf32> to vector<8x512xf32>
    %665 = arith.mulf %662, %664 : vector<8x512xf32>
    %666 = arith.addf %665, %318 : vector<8x512xf32>
    %c0_119 = arith.constant 0 : index
    %c0_120 = arith.constant 0 : index
    %667 = vector.load %arg5[%c0_119, %c0_120] : memref<16x57xf32, #tpu.memory_space<vmem>>, vector<16x57xf32>
    %c0_121 = arith.constant 0 : index
    %c128_122 = arith.constant 128 : index
    %668 = vector.load %arg7[%c0_121, %c128_122] : memref<8x768xf32, #tpu.memory_space<vmem>>, vector<8x512xf32>
    tpu.vector_store %arg7[%c0_121, %c128_122], %666 {strides = array<i32>} : memref<8x768xf32, #tpu.memory_space<vmem>>, vector<8x512xf32>,
    %669 = vector.extract_strided_slice %667 {offsets = [0, 6], sizes = [8, 27], strides = [1, 1]} : vector<16x57xf32> to vector<8x27xf32>
    %cst_123 = arith.constant 0.000000e+00 : f32
    %670 = vector.broadcast %cst_123 : f32 to vector<8x512xf32>
    %671 = vector.extract_strided_slice %667 {offsets = [0, 0], sizes = [8, 1], strides = [1, 1]} : vector<16x57xf32> to vector<8x1xf32>
    %672 = vector.broadcast %671 : vector<8x1xf32> to vector<8x512xf32>
    %673 = arith.addf %670, %672 : vector<8x512xf32>
    %c0_124 = arith.constant 0 : index
    %c55_125 = arith.constant 55 : index
    %674 = vector.load %arg7[%c0_124, %c55_125] : memref<8x768xf32, #tpu.memory_space<vmem>>, vector<8x512xf32>
    %675 = vector.extract_strided_slice %669 {offsets = [0, 0], sizes = [8, 1], strides = [1, 1]} : vector<8x27xf32> to vector<8x1xf32>
    %676 = vector.broadcast %675 : vector<8x1xf32> to vector<8x512xf32>
    %677 = arith.mulf %674, %676 : vector<8x512xf32>
    %c0_126 = arith.constant 0 : index
    %c119_127 = arith.constant 119 : index
    %678 = vector.load %arg7[%c0_126, %c119_127] : memref<8x768xf32, #tpu.memory_space<vmem>>, vector<8x512xf32>
    %679 = vector.extract_strided_slice %669 {offsets = [0, 9], sizes = [8, 1], strides = [1, 1]} : vector<8x27xf32> to vector<8x1xf32>
    %680 = vector.broadcast %679 : vector<8x1xf32> to vector<8x512xf32>
    %681 = arith.mulf %678, %680 : vector<8x512xf32>
    %682 = arith.addf %677, %681 : vector<8x512xf32>
    %c0_128 = arith.constant 0 : index
    %c183_129 = arith.constant 183 : index
    %683 = vector.load %arg7[%c0_128, %c183_129] : memref<8x768xf32, #tpu.memory_space<vmem>>, vector<8x512xf32>
    %684 = vector.extract_strided_slice %669 {offsets = [0, 18], sizes = [8, 1], strides = [1, 1]} : vector<8x27xf32> to vector<8x1xf32>
    %685 = vector.broadcast %684 : vector<8x1xf32> to vector<8x512xf32>
    %686 = arith.mulf %683, %685 : vector<8x512xf32>
    %687 = arith.addf %682, %686 : vector<8x512xf32>
    %688 = vector.broadcast %8 : vector<1x512xf32> to vector<8x512xf32>
    %689 = arith.mulf %687, %688 : vector<8x512xf32>
    %690 = arith.addf %673, %689 : vector<8x512xf32>
    %c0_130 = arith.constant 0 : index
    %c56_131 = arith.constant 56 : index
    %691 = vector.load %arg7[%c0_130, %c56_131] : memref<8x768xf32, #tpu.memory_space<vmem>>, vector<8x512xf32>
    %692 = vector.extract_strided_slice %669 {offsets = [0, 1], sizes = [8, 1], strides = [1, 1]} : vector<8x27xf32> to vector<8x1xf32>
    %693 = vector.broadcast %692 : vector<8x1xf32> to vector<8x512xf32>
    %694 = arith.mulf %691, %693 : vector<8x512xf32>
    %c0_132 = arith.constant 0 : index
    %c120_133 = arith.constant 120 : index
    %695 = vector.load %arg7[%c0_132, %c120_133] : memref<8x768xf32, #tpu.memory_space<vmem>>, vector<8x512xf32>
    %696 = vector.extract_strided_slice %669 {offsets = [0, 10], sizes = [8, 1], strides = [1, 1]} : vector<8x27xf32> to vector<8x1xf32>
    %697 = vector.broadcast %696 : vector<8x1xf32> to vector<8x512xf32>
    %698 = arith.mulf %695, %697 : vector<8x512xf32>
    %699 = arith.addf %694, %698 : vector<8x512xf32>
    %c0_134 = arith.constant 0 : index
    %c184_135 = arith.constant 184 : index
    %700 = vector.load %arg7[%c0_134, %c184_135] : memref<8x768xf32, #tpu.memory_space<vmem>>, vector<8x512xf32>
    %701 = vector.extract_strided_slice %669 {offsets = [0, 19], sizes = [8, 1], strides = [1, 1]} : vector<8x27xf32> to vector<8x1xf32>
    %702 = vector.broadcast %701 : vector<8x1xf32> to vector<8x512xf32>
    %703 = arith.mulf %700, %702 : vector<8x512xf32>
    %704 = arith.addf %699, %703 : vector<8x512xf32>
    %705 = vector.broadcast %4 : vector<1x512xf32> to vector<8x512xf32>
    %706 = arith.mulf %704, %705 : vector<8x512xf32>
    %707 = arith.addf %690, %706 : vector<8x512xf32>
    %c0_136 = arith.constant 0 : index
    %c57_137 = arith.constant 57 : index
    %708 = vector.load %arg7[%c0_136, %c57_137] : memref<8x768xf32, #tpu.memory_space<vmem>>, vector<8x512xf32>
    %709 = vector.extract_strided_slice %669 {offsets = [0, 2], sizes = [8, 1], strides = [1, 1]} : vector<8x27xf32> to vector<8x1xf32>
    %710 = vector.broadcast %709 : vector<8x1xf32> to vector<8x512xf32>
    %711 = arith.mulf %708, %710 : vector<8x512xf32>
    %c0_138 = arith.constant 0 : index
    %c121_139 = arith.constant 121 : index
    %712 = vector.load %arg7[%c0_138, %c121_139] : memref<8x768xf32, #tpu.memory_space<vmem>>, vector<8x512xf32>
    %713 = vector.extract_strided_slice %669 {offsets = [0, 11], sizes = [8, 1], strides = [1, 1]} : vector<8x27xf32> to vector<8x1xf32>
    %714 = vector.broadcast %713 : vector<8x1xf32> to vector<8x512xf32>
    %715 = arith.mulf %712, %714 : vector<8x512xf32>
    %716 = arith.addf %711, %715 : vector<8x512xf32>
    %c0_140 = arith.constant 0 : index
    %c185_141 = arith.constant 185 : index
    %717 = vector.load %arg7[%c0_140, %c185_141] : memref<8x768xf32, #tpu.memory_space<vmem>>, vector<8x512xf32>
    %718 = vector.extract_strided_slice %669 {offsets = [0, 20], sizes = [8, 1], strides = [1, 1]} : vector<8x27xf32> to vector<8x1xf32>
    %719 = vector.broadcast %718 : vector<8x1xf32> to vector<8x512xf32>
    %720 = arith.mulf %717, %719 : vector<8x512xf32>
    %721 = arith.addf %716, %720 : vector<8x512xf32>
    %722 = vector.broadcast %9 : vector<1x512xf32> to vector<8x512xf32>
    %723 = arith.mulf %721, %722 : vector<8x512xf32>
    %724 = arith.addf %707, %723 : vector<8x512xf32>
    %c0_142 = arith.constant 0 : index
    %c63_143 = arith.constant 63 : index
    %725 = vector.load %arg7[%c0_142, %c63_143] : memref<8x768xf32, #tpu.memory_space<vmem>>, vector<8x512xf32>
    %726 = vector.extract_strided_slice %669 {offsets = [0, 3], sizes = [8, 1], strides = [1, 1]} : vector<8x27xf32> to vector<8x1xf32>
    %727 = vector.broadcast %726 : vector<8x1xf32> to vector<8x512xf32>
    %728 = arith.mulf %725, %727 : vector<8x512xf32>
    %c0_144 = arith.constant 0 : index
    %c127_145 = arith.constant 127 : index
    %729 = vector.load %arg7[%c0_144, %c127_145] : memref<8x768xf32, #tpu.memory_space<vmem>>, vector<8x512xf32>
    %730 = vector.extract_strided_slice %669 {offsets = [0, 12], sizes = [8, 1], strides = [1, 1]} : vector<8x27xf32> to vector<8x1xf32>
    %731 = vector.broadcast %730 : vector<8x1xf32> to vector<8x512xf32>
    %732 = arith.mulf %729, %731 : vector<8x512xf32>
    %733 = arith.addf %728, %732 : vector<8x512xf32>
    %c0_146 = arith.constant 0 : index
    %c191_147 = arith.constant 191 : index
    %734 = vector.load %arg7[%c0_146, %c191_147] : memref<8x768xf32, #tpu.memory_space<vmem>>, vector<8x512xf32>
    %735 = vector.extract_strided_slice %669 {offsets = [0, 21], sizes = [8, 1], strides = [1, 1]} : vector<8x27xf32> to vector<8x1xf32>
    %736 = vector.broadcast %735 : vector<8x1xf32> to vector<8x512xf32>
    %737 = arith.mulf %734, %736 : vector<8x512xf32>
    %738 = arith.addf %733, %737 : vector<8x512xf32>
    %739 = vector.broadcast %6 : vector<1x512xf32> to vector<8x512xf32>
    %740 = arith.mulf %738, %739 : vector<8x512xf32>
    %741 = arith.addf %724, %740 : vector<8x512xf32>
    %c0_148 = arith.constant 0 : index
    %c64_149 = arith.constant 64 : index
    %742 = vector.load %arg7[%c0_148, %c64_149] : memref<8x768xf32, #tpu.memory_space<vmem>>, vector<8x512xf32>
    %743 = vector.extract_strided_slice %669 {offsets = [0, 4], sizes = [8, 1], strides = [1, 1]} : vector<8x27xf32> to vector<8x1xf32>
    %744 = vector.broadcast %743 : vector<8x1xf32> to vector<8x512xf32>
    %745 = arith.mulf %742, %744 : vector<8x512xf32>
    %c0_150 = arith.constant 0 : index
    %c128_151 = arith.constant 128 : index
    %746 = vector.load %arg7[%c0_150, %c128_151] : memref<8x768xf32, #tpu.memory_space<vmem>>, vector<8x512xf32>
    %747 = vector.extract_strided_slice %669 {offsets = [0, 13], sizes = [8, 1], strides = [1, 1]} : vector<8x27xf32> to vector<8x1xf32>
    %748 = vector.broadcast %747 : vector<8x1xf32> to vector<8x512xf32>
    %749 = arith.mulf %746, %748 : vector<8x512xf32>
    %750 = arith.addf %745, %749 : vector<8x512xf32>
    %c0_152 = arith.constant 0 : index
    %c192_153 = arith.constant 192 : index
    %751 = vector.load %arg7[%c0_152, %c192_153] : memref<8x768xf32, #tpu.memory_space<vmem>>, vector<8x512xf32>
    %752 = vector.extract_strided_slice %669 {offsets = [0, 22], sizes = [8, 1], strides = [1, 1]} : vector<8x27xf32> to vector<8x1xf32>
    %753 = vector.broadcast %752 : vector<8x1xf32> to vector<8x512xf32>
    %754 = arith.mulf %751, %753 : vector<8x512xf32>
    %755 = arith.addf %750, %754 : vector<8x512xf32>
    %756 = arith.addf %741, %755 : vector<8x512xf32>
    %c0_154 = arith.constant 0 : index
    %c65_155 = arith.constant 65 : index
    %757 = vector.load %arg7[%c0_154, %c65_155] : memref<8x768xf32, #tpu.memory_space<vmem>>, vector<8x512xf32>
    %758 = vector.extract_strided_slice %669 {offsets = [0, 5], sizes = [8, 1], strides = [1, 1]} : vector<8x27xf32> to vector<8x1xf32>
    %759 = vector.broadcast %758 : vector<8x1xf32> to vector<8x512xf32>
    %760 = arith.mulf %757, %759 : vector<8x512xf32>
    %c0_156 = arith.constant 0 : index
    %c129_157 = arith.constant 129 : index
    %761 = vector.load %arg7[%c0_156, %c129_157] : memref<8x768xf32, #tpu.memory_space<vmem>>, vector<8x512xf32>
    %762 = vector.extract_strided_slice %669 {offsets = [0, 14], sizes = [8, 1], strides = [1, 1]} : vector<8x27xf32> to vector<8x1xf32>
    %763 = vector.broadcast %762 : vector<8x1xf32> to vector<8x512xf32>
    %764 = arith.mulf %761, %763 : vector<8x512xf32>
    %765 = arith.addf %760, %764 : vector<8x512xf32>
    %c0_158 = arith.constant 0 : index
    %c193_159 = arith.constant 193 : index
    %766 = vector.load %arg7[%c0_158, %c193_159] : memref<8x768xf32, #tpu.memory_space<vmem>>, vector<8x512xf32>
    %767 = vector.extract_strided_slice %669 {offsets = [0, 23], sizes = [8, 1], strides = [1, 1]} : vector<8x27xf32> to vector<8x1xf32>
    %768 = vector.broadcast %767 : vector<8x1xf32> to vector<8x512xf32>
    %769 = arith.mulf %766, %768 : vector<8x512xf32>
    %770 = arith.addf %765, %769 : vector<8x512xf32>
    %771 = vector.broadcast %7 : vector<1x512xf32> to vector<8x512xf32>
    %772 = arith.mulf %770, %771 : vector<8x512xf32>
    %773 = arith.addf %756, %772 : vector<8x512xf32>
    %c0_160 = arith.constant 0 : index
    %c71_161 = arith.constant 71 : index
    %774 = vector.load %arg7[%c0_160, %c71_161] : memref<8x768xf32, #tpu.memory_space<vmem>>, vector<8x512xf32>
    %775 = vector.extract_strided_slice %669 {offsets = [0, 6], sizes = [8, 1], strides = [1, 1]} : vector<8x27xf32> to vector<8x1xf32>
    %776 = vector.broadcast %775 : vector<8x1xf32> to vector<8x512xf32>
    %777 = arith.mulf %774, %776 : vector<8x512xf32>
    %c0_162 = arith.constant 0 : index
    %c135_163 = arith.constant 135 : index
    %778 = vector.load %arg7[%c0_162, %c135_163] : memref<8x768xf32, #tpu.memory_space<vmem>>, vector<8x512xf32>
    %779 = vector.extract_strided_slice %669 {offsets = [0, 15], sizes = [8, 1], strides = [1, 1]} : vector<8x27xf32> to vector<8x1xf32>
    %780 = vector.broadcast %779 : vector<8x1xf32> to vector<8x512xf32>
    %781 = arith.mulf %778, %780 : vector<8x512xf32>
    %782 = arith.addf %777, %781 : vector<8x512xf32>
    %c0_164 = arith.constant 0 : index
    %c199_165 = arith.constant 199 : index
    %783 = vector.load %arg7[%c0_164, %c199_165] : memref<8x768xf32, #tpu.memory_space<vmem>>, vector<8x512xf32>
    %784 = vector.extract_strided_slice %669 {offsets = [0, 24], sizes = [8, 1], strides = [1, 1]} : vector<8x27xf32> to vector<8x1xf32>
    %785 = vector.broadcast %784 : vector<8x1xf32> to vector<8x512xf32>
    %786 = arith.mulf %783, %785 : vector<8x512xf32>
    %787 = arith.addf %782, %786 : vector<8x512xf32>
    %788 = vector.broadcast %10 : vector<1x512xf32> to vector<8x512xf32>
    %789 = arith.mulf %787, %788 : vector<8x512xf32>
    %790 = arith.addf %773, %789 : vector<8x512xf32>
    %c0_166 = arith.constant 0 : index
    %c72_167 = arith.constant 72 : index
    %791 = vector.load %arg7[%c0_166, %c72_167] : memref<8x768xf32, #tpu.memory_space<vmem>>, vector<8x512xf32>
    %792 = vector.extract_strided_slice %669 {offsets = [0, 7], sizes = [8, 1], strides = [1, 1]} : vector<8x27xf32> to vector<8x1xf32>
    %793 = vector.broadcast %792 : vector<8x1xf32> to vector<8x512xf32>
    %794 = arith.mulf %791, %793 : vector<8x512xf32>
    %c0_168 = arith.constant 0 : index
    %c136_169 = arith.constant 136 : index
    %795 = vector.load %arg7[%c0_168, %c136_169] : memref<8x768xf32, #tpu.memory_space<vmem>>, vector<8x512xf32>
    %796 = vector.extract_strided_slice %669 {offsets = [0, 16], sizes = [8, 1], strides = [1, 1]} : vector<8x27xf32> to vector<8x1xf32>
    %797 = vector.broadcast %796 : vector<8x1xf32> to vector<8x512xf32>
    %798 = arith.mulf %795, %797 : vector<8x512xf32>
    %799 = arith.addf %794, %798 : vector<8x512xf32>
    %c0_170 = arith.constant 0 : index
    %c200_171 = arith.constant 200 : index
    %800 = vector.load %arg7[%c0_170, %c200_171] : memref<8x768xf32, #tpu.memory_space<vmem>>, vector<8x512xf32>
    %801 = vector.extract_strided_slice %669 {offsets = [0, 25], sizes = [8, 1], strides = [1, 1]} : vector<8x27xf32> to vector<8x1xf32>
    %802 = vector.broadcast %801 : vector<8x1xf32> to vector<8x512xf32>
    %803 = arith.mulf %800, %802 : vector<8x512xf32>
    %804 = arith.addf %799, %803 : vector<8x512xf32>
    %805 = vector.broadcast %5 : vector<1x512xf32> to vector<8x512xf32>
    %806 = arith.mulf %804, %805 : vector<8x512xf32>
    %807 = arith.addf %790, %806 : vector<8x512xf32>
    %c0_172 = arith.constant 0 : index
    %c73_173 = arith.constant 73 : index
    %808 = vector.load %arg7[%c0_172, %c73_173] : memref<8x768xf32, #tpu.memory_space<vmem>>, vector<8x512xf32>
    %809 = vector.extract_strided_slice %669 {offsets = [0, 8], sizes = [8, 1], strides = [1, 1]} : vector<8x27xf32> to vector<8x1xf32>
    %810 = vector.broadcast %809 : vector<8x1xf32> to vector<8x512xf32>
    %811 = arith.mulf %808, %810 : vector<8x512xf32>
    %c0_174 = arith.constant 0 : index
    %c137_175 = arith.constant 137 : index
    %812 = vector.load %arg7[%c0_174, %c137_175] : memref<8x768xf32, #tpu.memory_space<vmem>>, vector<8x512xf32>
    %813 = vector.extract_strided_slice %669 {offsets = [0, 17], sizes = [8, 1], strides = [1, 1]} : vector<8x27xf32> to vector<8x1xf32>
    %814 = vector.broadcast %813 : vector<8x1xf32> to vector<8x512xf32>
    %815 = arith.mulf %812, %814 : vector<8x512xf32>
    %816 = arith.addf %811, %815 : vector<8x512xf32>
    %c0_176 = arith.constant 0 : index
    %c201_177 = arith.constant 201 : index
    %817 = vector.load %arg7[%c0_176, %c201_177] : memref<8x768xf32, #tpu.memory_space<vmem>>, vector<8x512xf32>
    %818 = vector.extract_strided_slice %669 {offsets = [0, 26], sizes = [8, 1], strides = [1, 1]} : vector<8x27xf32> to vector<8x1xf32>
    %819 = vector.broadcast %818 : vector<8x1xf32> to vector<8x512xf32>
    %820 = arith.mulf %817, %819 : vector<8x512xf32>
    %821 = arith.addf %816, %820 : vector<8x512xf32>
    %822 = vector.broadcast %11 : vector<1x512xf32> to vector<8x512xf32>
    %823 = arith.mulf %821, %822 : vector<8x512xf32>
    %824 = arith.addf %807, %823 : vector<8x512xf32>
    %cst_178 = arith.constant dense<0.000000e+00> : vector<512xf32>
    %825 = vector.multi_reduction <add>, %824, %cst_178 [0] : vector<8x512xf32> to vector<512xf32>
    %826 = vector.shape_cast %825 : vector<512xf32> to vector<1x512xf32>
    %cst_179 = arith.constant 8.000000e+00 : f32
    %827 = vector.broadcast %cst_179 : f32 to vector<1x512xf32>
    %828 = arith.divf %826, %827 : vector<1x512xf32>
    %829 = vector.broadcast %828 : vector<1x512xf32> to vector<8x512xf32>
    %830 = arith.subf %824, %829 : vector<8x512xf32>
    %831 = arith.mulf %830, %830 : vector<8x512xf32>
    %cst_180 = arith.constant dense<0.000000e+00> : vector<512xf32>
    %832 = vector.multi_reduction <add>, %831, %cst_180 [0] : vector<8x512xf32> to vector<512xf32>
    %833 = vector.shape_cast %832 : vector<512xf32> to vector<1x512xf32>
    %cst_181 = arith.constant 8.000000e+00 : f32
    %834 = vector.broadcast %cst_181 : f32 to vector<1x512xf32>
    %835 = arith.divf %833, %834 : vector<1x512xf32>
    %836 = vector.broadcast %828 : vector<1x512xf32> to vector<8x512xf32>
    %837 = arith.subf %824, %836 : vector<8x512xf32>
    %cst_182 = arith.constant 9.99999997E-7 : f32
    %838 = vector.broadcast %cst_182 : f32 to vector<1x512xf32>
    %839 = arith.addf %835, %838 : vector<1x512xf32>
    %840 = math.rsqrt %839 : vector<1x512xf32>
    %841 = vector.broadcast %840 : vector<1x512xf32> to vector<8x512xf32>
    %842 = arith.mulf %837, %841 : vector<8x512xf32>
    %843 = vector.extract_strided_slice %667 {offsets = [0, 1], sizes = [8, 1], strides = [1, 1]} : vector<16x57xf32> to vector<8x1xf32>
    %844 = vector.broadcast %843 : vector<8x1xf32> to vector<8x512xf32>
    %845 = arith.mulf %842, %844 : vector<8x512xf32>
    %846 = vector.extract_strided_slice %667 {offsets = [0, 2], sizes = [8, 1], strides = [1, 1]} : vector<16x57xf32> to vector<8x1xf32>
    %847 = vector.broadcast %846 : vector<8x1xf32> to vector<8x512xf32>
    %848 = arith.addf %845, %847 : vector<8x512xf32>
    %849 = vector.extract_strided_slice %667 {offsets = [0, 33], sizes = [16, 8], strides = [1, 1]} : vector<16x57xf32> to vector<16x8xf32>
    %cst_183 = arith.constant 0.000000e+00 : f32
    %850 = vector.broadcast %cst_183 : f32 to vector<16x512xf32>
    %851 = vector.extract_strided_slice %667 {offsets = [0, 3], sizes = [16, 1], strides = [1, 1]} : vector<16x57xf32> to vector<16x1xf32>
    %852 = vector.broadcast %851 : vector<16x1xf32> to vector<16x512xf32>
    %853 = arith.addf %850, %852 : vector<16x512xf32>
    %854 = vector.extract_strided_slice %848 {offsets = [0, 0], sizes = [1, 512], strides = [1, 1]} : vector<8x512xf32> to vector<1x512xf32>
    %855 = vector.extract_strided_slice %849 {offsets = [0, 0], sizes = [16, 1], strides = [1, 1]} : vector<16x8xf32> to vector<16x1xf32>
    %856 = vector.broadcast %854 : vector<1x512xf32> to vector<16x512xf32>
    %857 = vector.broadcast %855 : vector<16x1xf32> to vector<16x512xf32>
    %858 = arith.mulf %856, %857 : vector<16x512xf32>
    %859 = arith.addf %853, %858 : vector<16x512xf32>
    %860 = vector.extract_strided_slice %848 {offsets = [1, 0], sizes = [1, 512], strides = [1, 1]} : vector<8x512xf32> to vector<1x512xf32>
    %861 = vector.extract_strided_slice %849 {offsets = [0, 1], sizes = [16, 1], strides = [1, 1]} : vector<16x8xf32> to vector<16x1xf32>
    %862 = vector.broadcast %860 : vector<1x512xf32> to vector<16x512xf32>
    %863 = vector.broadcast %861 : vector<16x1xf32> to vector<16x512xf32>
    %864 = arith.mulf %862, %863 : vector<16x512xf32>
    %865 = arith.addf %859, %864 : vector<16x512xf32>
    %866 = vector.extract_strided_slice %848 {offsets = [2, 0], sizes = [1, 512], strides = [1, 1]} : vector<8x512xf32> to vector<1x512xf32>
    %867 = vector.extract_strided_slice %849 {offsets = [0, 2], sizes = [16, 1], strides = [1, 1]} : vector<16x8xf32> to vector<16x1xf32>
    %868 = vector.broadcast %866 : vector<1x512xf32> to vector<16x512xf32>
    %869 = vector.broadcast %867 : vector<16x1xf32> to vector<16x512xf32>
    %870 = arith.mulf %868, %869 : vector<16x512xf32>
    %871 = arith.addf %865, %870 : vector<16x512xf32>
    %872 = vector.extract_strided_slice %848 {offsets = [3, 0], sizes = [1, 512], strides = [1, 1]} : vector<8x512xf32> to vector<1x512xf32>
    %873 = vector.extract_strided_slice %849 {offsets = [0, 3], sizes = [16, 1], strides = [1, 1]} : vector<16x8xf32> to vector<16x1xf32>
    %874 = vector.broadcast %872 : vector<1x512xf32> to vector<16x512xf32>
    %875 = vector.broadcast %873 : vector<16x1xf32> to vector<16x512xf32>
    %876 = arith.mulf %874, %875 : vector<16x512xf32>
    %877 = arith.addf %871, %876 : vector<16x512xf32>
    %878 = vector.extract_strided_slice %848 {offsets = [4, 0], sizes = [1, 512], strides = [1, 1]} : vector<8x512xf32> to vector<1x512xf32>
    %879 = vector.extract_strided_slice %849 {offsets = [0, 4], sizes = [16, 1], strides = [1, 1]} : vector<16x8xf32> to vector<16x1xf32>
    %880 = vector.broadcast %878 : vector<1x512xf32> to vector<16x512xf32>
    %881 = vector.broadcast %879 : vector<16x1xf32> to vector<16x512xf32>
    %882 = arith.mulf %880, %881 : vector<16x512xf32>
    %883 = arith.addf %877, %882 : vector<16x512xf32>
    %884 = vector.extract_strided_slice %848 {offsets = [5, 0], sizes = [1, 512], strides = [1, 1]} : vector<8x512xf32> to vector<1x512xf32>
    %885 = vector.extract_strided_slice %849 {offsets = [0, 5], sizes = [16, 1], strides = [1, 1]} : vector<16x8xf32> to vector<16x1xf32>
    %886 = vector.broadcast %884 : vector<1x512xf32> to vector<16x512xf32>
    %887 = vector.broadcast %885 : vector<16x1xf32> to vector<16x512xf32>
    %888 = arith.mulf %886, %887 : vector<16x512xf32>
    %889 = arith.addf %883, %888 : vector<16x512xf32>
    %890 = vector.extract_strided_slice %848 {offsets = [6, 0], sizes = [1, 512], strides = [1, 1]} : vector<8x512xf32> to vector<1x512xf32>
    %891 = vector.extract_strided_slice %849 {offsets = [0, 6], sizes = [16, 1], strides = [1, 1]} : vector<16x8xf32> to vector<16x1xf32>
    %892 = vector.broadcast %890 : vector<1x512xf32> to vector<16x512xf32>
    %893 = vector.broadcast %891 : vector<16x1xf32> to vector<16x512xf32>
    %894 = arith.mulf %892, %893 : vector<16x512xf32>
    %895 = arith.addf %889, %894 : vector<16x512xf32>
    %896 = vector.extract_strided_slice %848 {offsets = [7, 0], sizes = [1, 512], strides = [1, 1]} : vector<8x512xf32> to vector<1x512xf32>
    %897 = vector.extract_strided_slice %849 {offsets = [0, 7], sizes = [16, 1], strides = [1, 1]} : vector<16x8xf32> to vector<16x1xf32>
    %898 = vector.broadcast %896 : vector<1x512xf32> to vector<16x512xf32>
    %899 = vector.broadcast %897 : vector<16x1xf32> to vector<16x512xf32>
    %900 = arith.mulf %898, %899 : vector<16x512xf32>
    %901 = arith.addf %895, %900 : vector<16x512xf32>
    %cst_184 = arith.constant 5.000000e-01 : f32
    %902 = vector.broadcast %cst_184 : f32 to vector<16x512xf32>
    %903 = arith.mulf %902, %901 : vector<16x512xf32>
    %cst_185 = arith.constant 0.707106769 : f32
    %904 = vector.broadcast %cst_185 : f32 to vector<16x512xf32>
    %905 = arith.mulf %901, %904 : vector<16x512xf32>
    %906 = math.erf %905 : vector<16x512xf32>
    %cst_186 = arith.constant 1.000000e+00 : f32
    %907 = vector.broadcast %cst_186 : f32 to vector<16x512xf32>
    %908 = arith.addf %907, %906 : vector<16x512xf32>
    %909 = arith.mulf %903, %908 : vector<16x512xf32>
    %910 = vector.extract_strided_slice %667 {offsets = [0, 41], sizes = [8, 16], strides = [1, 1]} : vector<16x57xf32> to vector<8x16xf32>
    %cst_187 = arith.constant 0.000000e+00 : f32
    %911 = vector.broadcast %cst_187 : f32 to vector<8x512xf32>
    %912 = vector.extract_strided_slice %667 {offsets = [0, 4], sizes = [8, 1], strides = [1, 1]} : vector<16x57xf32> to vector<8x1xf32>
    %913 = vector.broadcast %912 : vector<8x1xf32> to vector<8x512xf32>
    %914 = arith.addf %911, %913 : vector<8x512xf32>
    %915 = vector.extract_strided_slice %909 {offsets = [0, 0], sizes = [1, 512], strides = [1, 1]} : vector<16x512xf32> to vector<1x512xf32>
    %916 = vector.extract_strided_slice %910 {offsets = [0, 0], sizes = [8, 1], strides = [1, 1]} : vector<8x16xf32> to vector<8x1xf32>
    %917 = vector.broadcast %915 : vector<1x512xf32> to vector<8x512xf32>
    %918 = vector.broadcast %916 : vector<8x1xf32> to vector<8x512xf32>
    %919 = arith.mulf %917, %918 : vector<8x512xf32>
    %920 = arith.addf %914, %919 : vector<8x512xf32>
    %921 = vector.extract_strided_slice %909 {offsets = [1, 0], sizes = [1, 512], strides = [1, 1]} : vector<16x512xf32> to vector<1x512xf32>
    %922 = vector.extract_strided_slice %910 {offsets = [0, 1], sizes = [8, 1], strides = [1, 1]} : vector<8x16xf32> to vector<8x1xf32>
    %923 = vector.broadcast %921 : vector<1x512xf32> to vector<8x512xf32>
    %924 = vector.broadcast %922 : vector<8x1xf32> to vector<8x512xf32>
    %925 = arith.mulf %923, %924 : vector<8x512xf32>
    %926 = arith.addf %920, %925 : vector<8x512xf32>
    %927 = vector.extract_strided_slice %909 {offsets = [2, 0], sizes = [1, 512], strides = [1, 1]} : vector<16x512xf32> to vector<1x512xf32>
    %928 = vector.extract_strided_slice %910 {offsets = [0, 2], sizes = [8, 1], strides = [1, 1]} : vector<8x16xf32> to vector<8x1xf32>
    %929 = vector.broadcast %927 : vector<1x512xf32> to vector<8x512xf32>
    %930 = vector.broadcast %928 : vector<8x1xf32> to vector<8x512xf32>
    %931 = arith.mulf %929, %930 : vector<8x512xf32>
    %932 = arith.addf %926, %931 : vector<8x512xf32>
    %933 = vector.extract_strided_slice %909 {offsets = [3, 0], sizes = [1, 512], strides = [1, 1]} : vector<16x512xf32> to vector<1x512xf32>
    %934 = vector.extract_strided_slice %910 {offsets = [0, 3], sizes = [8, 1], strides = [1, 1]} : vector<8x16xf32> to vector<8x1xf32>
    %935 = vector.broadcast %933 : vector<1x512xf32> to vector<8x512xf32>
    %936 = vector.broadcast %934 : vector<8x1xf32> to vector<8x512xf32>
    %937 = arith.mulf %935, %936 : vector<8x512xf32>
    %938 = arith.addf %932, %937 : vector<8x512xf32>
    %939 = vector.extract_strided_slice %909 {offsets = [4, 0], sizes = [1, 512], strides = [1, 1]} : vector<16x512xf32> to vector<1x512xf32>
    %940 = vector.extract_strided_slice %910 {offsets = [0, 4], sizes = [8, 1], strides = [1, 1]} : vector<8x16xf32> to vector<8x1xf32>
    %941 = vector.broadcast %939 : vector<1x512xf32> to vector<8x512xf32>
    %942 = vector.broadcast %940 : vector<8x1xf32> to vector<8x512xf32>
    %943 = arith.mulf %941, %942 : vector<8x512xf32>
    %944 = arith.addf %938, %943 : vector<8x512xf32>
    %945 = vector.extract_strided_slice %909 {offsets = [5, 0], sizes = [1, 512], strides = [1, 1]} : vector<16x512xf32> to vector<1x512xf32>
    %946 = vector.extract_strided_slice %910 {offsets = [0, 5], sizes = [8, 1], strides = [1, 1]} : vector<8x16xf32> to vector<8x1xf32>
    %947 = vector.broadcast %945 : vector<1x512xf32> to vector<8x512xf32>
    %948 = vector.broadcast %946 : vector<8x1xf32> to vector<8x512xf32>
    %949 = arith.mulf %947, %948 : vector<8x512xf32>
    %950 = arith.addf %944, %949 : vector<8x512xf32>
    %951 = vector.extract_strided_slice %909 {offsets = [6, 0], sizes = [1, 512], strides = [1, 1]} : vector<16x512xf32> to vector<1x512xf32>
    %952 = vector.extract_strided_slice %910 {offsets = [0, 6], sizes = [8, 1], strides = [1, 1]} : vector<8x16xf32> to vector<8x1xf32>
    %953 = vector.broadcast %951 : vector<1x512xf32> to vector<8x512xf32>
    %954 = vector.broadcast %952 : vector<8x1xf32> to vector<8x512xf32>
    %955 = arith.mulf %953, %954 : vector<8x512xf32>
    %956 = arith.addf %950, %955 : vector<8x512xf32>
    %957 = vector.extract_strided_slice %909 {offsets = [7, 0], sizes = [1, 512], strides = [1, 1]} : vector<16x512xf32> to vector<1x512xf32>
    %958 = vector.extract_strided_slice %910 {offsets = [0, 7], sizes = [8, 1], strides = [1, 1]} : vector<8x16xf32> to vector<8x1xf32>
    %959 = vector.broadcast %957 : vector<1x512xf32> to vector<8x512xf32>
    %960 = vector.broadcast %958 : vector<8x1xf32> to vector<8x512xf32>
    %961 = arith.mulf %959, %960 : vector<8x512xf32>
    %962 = arith.addf %956, %961 : vector<8x512xf32>
    %963 = vector.extract_strided_slice %909 {offsets = [8, 0], sizes = [1, 512], strides = [1, 1]} : vector<16x512xf32> to vector<1x512xf32>
    %964 = vector.extract_strided_slice %910 {offsets = [0, 8], sizes = [8, 1], strides = [1, 1]} : vector<8x16xf32> to vector<8x1xf32>
    %965 = vector.broadcast %963 : vector<1x512xf32> to vector<8x512xf32>
    %966 = vector.broadcast %964 : vector<8x1xf32> to vector<8x512xf32>
    %967 = arith.mulf %965, %966 : vector<8x512xf32>
    %968 = arith.addf %962, %967 : vector<8x512xf32>
    %969 = vector.extract_strided_slice %909 {offsets = [9, 0], sizes = [1, 512], strides = [1, 1]} : vector<16x512xf32> to vector<1x512xf32>
    %970 = vector.extract_strided_slice %910 {offsets = [0, 9], sizes = [8, 1], strides = [1, 1]} : vector<8x16xf32> to vector<8x1xf32>
    %971 = vector.broadcast %969 : vector<1x512xf32> to vector<8x512xf32>
    %972 = vector.broadcast %970 : vector<8x1xf32> to vector<8x512xf32>
    %973 = arith.mulf %971, %972 : vector<8x512xf32>
    %974 = arith.addf %968, %973 : vector<8x512xf32>
    %975 = vector.extract_strided_slice %909 {offsets = [10, 0], sizes = [1, 512], strides = [1, 1]} : vector<16x512xf32> to vector<1x512xf32>
    %976 = vector.extract_strided_slice %910 {offsets = [0, 10], sizes = [8, 1], strides = [1, 1]} : vector<8x16xf32> to vector<8x1xf32>
    %977 = vector.broadcast %975 : vector<1x512xf32> to vector<8x512xf32>
    %978 = vector.broadcast %976 : vector<8x1xf32> to vector<8x512xf32>
    %979 = arith.mulf %977, %978 : vector<8x512xf32>
    %980 = arith.addf %974, %979 : vector<8x512xf32>
    %981 = vector.extract_strided_slice %909 {offsets = [11, 0], sizes = [1, 512], strides = [1, 1]} : vector<16x512xf32> to vector<1x512xf32>
    %982 = vector.extract_strided_slice %910 {offsets = [0, 11], sizes = [8, 1], strides = [1, 1]} : vector<8x16xf32> to vector<8x1xf32>
    %983 = vector.broadcast %981 : vector<1x512xf32> to vector<8x512xf32>
    %984 = vector.broadcast %982 : vector<8x1xf32> to vector<8x512xf32>
    %985 = arith.mulf %983, %984 : vector<8x512xf32>
    %986 = arith.addf %980, %985 : vector<8x512xf32>
    %987 = vector.extract_strided_slice %909 {offsets = [12, 0], sizes = [1, 512], strides = [1, 1]} : vector<16x512xf32> to vector<1x512xf32>
    %988 = vector.extract_strided_slice %910 {offsets = [0, 12], sizes = [8, 1], strides = [1, 1]} : vector<8x16xf32> to vector<8x1xf32>
    %989 = vector.broadcast %987 : vector<1x512xf32> to vector<8x512xf32>
    %990 = vector.broadcast %988 : vector<8x1xf32> to vector<8x512xf32>
    %991 = arith.mulf %989, %990 : vector<8x512xf32>
    %992 = arith.addf %986, %991 : vector<8x512xf32>
    %993 = vector.extract_strided_slice %909 {offsets = [13, 0], sizes = [1, 512], strides = [1, 1]} : vector<16x512xf32> to vector<1x512xf32>
    %994 = vector.extract_strided_slice %910 {offsets = [0, 13], sizes = [8, 1], strides = [1, 1]} : vector<8x16xf32> to vector<8x1xf32>
    %995 = vector.broadcast %993 : vector<1x512xf32> to vector<8x512xf32>
    %996 = vector.broadcast %994 : vector<8x1xf32> to vector<8x512xf32>
    %997 = arith.mulf %995, %996 : vector<8x512xf32>
    %998 = arith.addf %992, %997 : vector<8x512xf32>
    %999 = vector.extract_strided_slice %909 {offsets = [14, 0], sizes = [1, 512], strides = [1, 1]} : vector<16x512xf32> to vector<1x512xf32>
    %1000 = vector.extract_strided_slice %910 {offsets = [0, 14], sizes = [8, 1], strides = [1, 1]} : vector<8x16xf32> to vector<8x1xf32>
    %1001 = vector.broadcast %999 : vector<1x512xf32> to vector<8x512xf32>
    %1002 = vector.broadcast %1000 : vector<8x1xf32> to vector<8x512xf32>
    %1003 = arith.mulf %1001, %1002 : vector<8x512xf32>
    %1004 = arith.addf %998, %1003 : vector<8x512xf32>
    %1005 = vector.extract_strided_slice %909 {offsets = [15, 0], sizes = [1, 512], strides = [1, 1]} : vector<16x512xf32> to vector<1x512xf32>
    %1006 = vector.extract_strided_slice %910 {offsets = [0, 15], sizes = [8, 1], strides = [1, 1]} : vector<8x16xf32> to vector<8x1xf32>
    %1007 = vector.broadcast %1005 : vector<1x512xf32> to vector<8x512xf32>
    %1008 = vector.broadcast %1006 : vector<8x1xf32> to vector<8x512xf32>
    %1009 = arith.mulf %1007, %1008 : vector<8x512xf32>
    %1010 = arith.addf %1004, %1009 : vector<8x512xf32>
    %1011 = vector.extract_strided_slice %667 {offsets = [0, 5], sizes = [8, 1], strides = [1, 1]} : vector<16x57xf32> to vector<8x1xf32>
    %1012 = vector.broadcast %1011 : vector<8x1xf32> to vector<8x512xf32>
    %1013 = arith.mulf %1010, %1012 : vector<8x512xf32>
    %1014 = arith.addf %1013, %666 : vector<8x512xf32>
    %1015 = arith.addf %1014, %318 : vector<8x512xf32>
    %cst_188 = arith.constant 0.000000e+00 : f32
    %1016 = vector.broadcast %cst_188 : f32 to vector<8x512xf32>
    %1017 = arith.cmpf ogt, %1015, %1016 : vector<8x512xf32>
    %cst_189 = arith.constant 0.000000e+00 : f32
    %1018 = vector.broadcast %cst_189 : f32 to vector<8x512xf32>
    %1019 = arith.minimumf %1015, %1018 : vector<8x512xf32>
    %1020 = math.exp %1019 : vector<8x512xf32>
    %cst_190 = arith.constant 1.000000e+00 : f32
    %1021 = vector.broadcast %cst_190 : f32 to vector<8x512xf32>
    %1022 = arith.subf %1020, %1021 : vector<8x512xf32>
    %1023 = arith.select %1017, %1015, %1022 : vector<8x512xi1>, vector<8x512xf32>
    %c0_191 = arith.constant 0 : index
    %c0_192 = arith.constant 0 : index
    %c0_193 = arith.constant 0 : index
    %1024 = vector.load %arg6[%c0_191, %c0_192, %c0_193] : memref<1x8x512xf32, #tpu.memory_space<vmem>>, vector<1x8x512xf32>
    %1025 = vector.shape_cast %1024 : vector<1x8x512xf32> to vector<8x512xf32>
    %1026 = vector.shape_cast %1023 : vector<8x512xf32> to vector<1x8x512xf32>
    tpu.vector_store %arg6[%c0_191, %c0_192, %c0_193], %1026 {strides = array<i32>} : memref<1x8x512xf32, #tpu.memory_space<vmem>>, vector<1x8x512xf32>,
    return
  }
  func.func @transform_0(%arg0: i32) -> (i32, i32, i32) {
    %c0_i32 = arith.constant 0 : i32
    %c0_i32_0 = arith.constant 0 : i32
    %c0_i32_1 = arith.constant 0 : i32
    return %arg0, %c0_i32, %c0_i32_0 : i32, i32, i32
  }
  func.func @transform_1(%arg0: i32) -> (i32, i32) {
    %c0_i32 = arith.constant 0 : i32
    %c0_i32_0 = arith.constant 0 : i32
    %c0_i32_1 = arith.constant 0 : i32
    return %c0_i32, %c0_i32_0 : i32, i32
  }
  func.func @transform_2(%arg0: i32) -> (i32, i32) {
    %c0_i32 = arith.constant 0 : i32
    %c0_i32_0 = arith.constant 0 : i32
    %c0_i32_1 = arith.constant 0 : i32
    return %c0_i32, %c0_i32_0 : i32, i32
  }
  func.func @transform_3(%arg0: i32) -> (i32, i32) {
    %c0_i32 = arith.constant 0 : i32
    %c0_i32_0 = arith.constant 0 : i32
    %c0_i32_1 = arith.constant 0 : i32
    return %c0_i32, %c0_i32_0 : i32, i32
  }
  func.func @transform_4(%arg0: i32) -> (i32, i32) {
    %c0_i32 = arith.constant 0 : i32
    %c0_i32_0 = arith.constant 0 : i32
    %c0_i32_1 = arith.constant 0 : i32
    return %c0_i32, %c0_i32_0 : i32, i32
  }
  func.func @transform_5(%arg0: i32) -> (i32, i32, i32) {
    %c0_i32 = arith.constant 0 : i32
    %c0_i32_0 = arith.constant 0 : i32
    %c0_i32_1 = arith.constant 0 : i32
    return %arg0, %c0_i32, %c0_i32_0 : i32, i32, i32
  }
}

</mosaic_0001>

<bundles_post_ra>
// kernel: tpu_custom_call.1
= control target key start
LH: loop header
LB: loop body
LE: loop exit
PB: predicated region body
PF: predicated region fallthrough
CT: control target
= control target key end

     0   :  { %10 = vsyncpa [#allocation4], 0  ;;  %s12513_s0 = inlined_call_operand.hbm [shape: f32[2,4,512], index: 0, kind: input, shape index: {}]   ;;  %s12514_s1 = inlined_call_operand.hbm [shape: f32[4,512], index: 1, kind: input, shape index: {}]   ;;  %s12515_s2 = inlined_call_operand.hbm [shape: f32[8,50], index: 2, kind: input, shape index: {}]   ;;  %s12516_s3 = inlined_call_operand.hbm [shape: f32[16,57], index: 3, kind: input, shape index: {}]   ;;  %s12517_s4 = inlined_call_operand.hbm [shape: f32[16,57], index: 4, kind: input, shape index: {}]   ;;  %s12518_s5 = inlined_call_operand.hbm [shape: f32[2,8,512], index: 5, kind: output, shape index: {}]  }
   0x1   :  { %12 = vsyncpa [#allocation4 + $0x1], 0 }
   0x2   :  { %13 = vsyncpa [#allocation7], 0 }
   0x3   :  { %14 = vsyncpa [#allocation10], 0 }
   0x4   :  { %15 = vsyncpa [#allocation5], 0 }
   0x5   :  { %17 = vsyncpa [#allocation5 + $0x1], 0  ;;  %s7429_s18 = smov 0   ;;  %s7431_s19 = smov 0  }
   0x6   :  { %s7433_s20 = smov 0   ;;  %s7435_s21 = smov 0  }
   0x7 LB: > { %s7316_s22 = smov [#allocation6]   ;;  %s7450_s24 = sadd.s32 4294967295, %s7314_s21   ;;  %s7314_s21 = sphi %s7435_s21, %s13540_s21   ;;  %s7310_s20 = sphi %s7433_s20, %s13539_s20   ;;  %s7306_s19 = sphi %s7431_s19, %s13538_s19   ;;  %s7302_s18 = sphi %s7429_s18, %s13537_s18  }
   0x8   : > { %s177_s23 = sshll.u32 %s7316_s22, 4  ;;  %p6617_p0 = scmp.ge.s32.totalorder %s7314_s21, 1  ;;  %s178_s23 = int_to_ptr.vmem [resolvable:$true] %s177_s23 }
   0x9   : > { %p12519_p1 = scmp.eq.s32.totalorder %s7450_s24, 0  ;;  %p164_p2 = scmp.lt.s32.totalorder %s7314_s21, 3 }
   0xa   : > { %s7317_s26 = smov [#allocation9]   ;;  %s7318_s29 = smov [#allocation8]  }
   0xb   : > { %p7455_p3 = pnand %p6617_p0, %p164_p2  ;;  %s198_s27 = sshll.u32 %s7317_s26, 4  ;;  %s7462_s27 = int_to_ptr.vmem [resolvable:$true] %s198_s27 }
   0xc   : > { %s188_s30 = sshll.u32 %s7318_s29, 4  ;;  %s7121_s6 = scalar_lea.vmem %s178_s23, 256  ;;  %s7470_s30 = int_to_ptr.vmem [resolvable:$true] %s188_s30 }
   0xd   : > { %s12917_s25 = scalar_select %p7455_p3, 1, 0 }
   0xe   : > { %p6671_p5 = pneg %p7455_p3  ;;  %p7122_p8 = scmp.ne.s32.totalorder %s178_s23, %s7121_s6 }
   0xf   : > { %p7129_p11 = scmp.lt.s32.totalorder %s178_s23, %s178_s23  ;;  %p7130_p12 = scmp.lt.s32.totalorder %s7121_s6, %s7121_s6 }
  0x10   : > { %p7466_p6 = pnand %p6671_p5, %p12519_p1 }
  0x11   : > { %p7131_p13 = por %p7130_p12, %p7129_p11 }
  0x12   : > { %p7112_p7 = pneg %p7466_p6 }
  0x14   : > { %p7124_p9 = pnand %p7122_p8, %p7112_p7 }
  0x16   : > { %p7125_p10 = pneg %p7124_p9 }
  0x18   : > { %p7132_p0 = pnand %p7131_p13, %p7125_p10 }
  0x1a   : > { %7135 = shalt.err (!%p7132_p0)
}
  0x1b   : > { %6674 = dma.hbm_to_vmem [thread:$0]  (!%p7466_p6), %s12514_s1, 256, %s178_s23, [#allocation7]  }
  0x1c   : > { %s7147_s9 = scalar_lea.vmem %s7462_s27, 256  ;;  %p7155_p9 = scmp.lt.s32.totalorder %s7462_s27, %s7462_s27 }
  0x1d   : > { %p7148_p2 = scmp.ne.s32.totalorder %s7462_s27, %s7147_s9  ;;  %p7156_p10 = scmp.lt.s32.totalorder %s7147_s9, %s7147_s9 }
  0x1f   : > { %p7150_p5 = pnand %p7148_p2, %p7112_p7  ;;  %p7157_p11 = por %p7156_p10, %p7155_p9 }
  0x21   : > { %p7151_p8 = pneg %p7150_p5 }
  0x23   : > { %p7158_p12 = pnand %p7157_p11, %p7151_p8 }
  0x25   : > { %7161 = shalt.err (!%p7158_p12)
}
  0x26   : > { %s7319_s10 = smov 128   ;;  %s7320_s11 = smov 8  }
  0x27   : > { %6680 = dma.hbm_to_vmem [thread:$0]  (!%p7466_p6), %s12516_s3, 256, %s7462_s27, [#allocation10], %s7319_s10, %s7319_s10, %s7320_s11  }
  0x28   : > { %s7173_s14 = scalar_lea.vmem %s7470_s30, 128  ;;  %p7181_p5 = scmp.lt.s32.totalorder %s7470_s30, %s7470_s30 }
  0x29   : > { %p7174_p13 = scmp.ne.s32.totalorder %s7470_s30, %s7173_s14  ;;  %p7182_p8 = scmp.lt.s32.totalorder %s7173_s14, %s7173_s14 }
  0x2b   : > { %p7176_p0 = pnand %p7174_p13, %p7112_p7  ;;  %p7183_p9 = por %p7182_p8, %p7181_p5 }
  0x2d   : > { %p7177_p2 = pneg %p7176_p0 }
  0x2f   : > { %p7184_p10 = pnand %p7183_p9, %p7177_p2 }
  0x31   : > { %7187 = shalt.err (!%p7184_p10)
}
  0x32   : > { %6677 = dma.hbm_to_vmem [thread:$0]  (!%p7466_p6), %s12515_s2, 128, %s7470_s30, [#allocation7]  }
  0x33   : > { %s7321_s17 = smov [#allocation11]  }
  0x34   : > { %s211_s22 = sshll.u32 %s7321_s17, 4  ;;  %s212_s22 = int_to_ptr.vmem [resolvable:$true] %s211_s22 }
  0x35   : > { %s7199_s23 = scalar_lea.vmem %s212_s22, 256  ;;  %p7207_p0 = scmp.lt.s32.totalorder %s212_s22, %s212_s22 }
  0x36   : > { %p7200_p11 = scmp.ne.s32.totalorder %s212_s22, %s7199_s23  ;;  %p7208_p2 = scmp.lt.s32.totalorder %s7199_s23, %s7199_s23 }
  0x38   : > { %p7202_p12 = pnand %p7200_p11, %p7112_p7  ;;  %p7209_p5 = por %p7208_p2, %p7207_p0 }
  0x3a   : > { %p7203_p13 = pneg %p7202_p12 }
  0x3c   : > { %p7210_p8 = pnand %p7209_p5, %p7203_p13 }
  0x3e   : > { %7213 = shalt.err (!%p7210_p8)
}
  0x3f   : > { %6683 = dma.hbm_to_vmem [thread:$0]  (!%p7466_p6), %s12517_s4, 256, %s212_s22, [#allocation10], %s7319_s10, %s7319_s10, %s7320_s11  }
  0x40   : > { %s6616_s29 = sadd.s32 4294967294, %s7314_s21   ;;  %s7518_s28 = sadd.s32 1, %s7314_s21  }
  0x41   : > { %s27_s30 = ssub.s32 %s7314_s21, %s7518_s28  ;;  %s30_s6 = sadd.s32 1, %s7310_s20 }
  0x42   : > { %p28_p7 = scmp.eq.s32.totalorder %s27_s30, 0  ;;  %p37_p9 = scmp.ne.s32.totalorder %s7310_s20, %s7306_s19 }
  0x43   : > { %p38_p10 = scmp.eq.s32.totalorder %s7314_s21, 0  ;;  %p43_p11 = scmp.ne.s32.totalorder %s7306_s19, %s7302_s18 }
  0x44   : > { %s7529_s7 = scalar_select %p28_p7, %s7310_s20, %s30_s6  }
  0x45   : > { %p7531_p12 = por %p38_p10, %p37_p9  ;;  %p7537_p6 = por %p12519_p1, %p43_p11 }
  0x46   : > { %p151_p13 = scmp.eq.s32.totalorder %s7450_s24, 1  ;;  %p157_p0 = scmp.eq.s32.totalorder %s6616_s29, 1 }
  0x47   : > { %s12920_s9 = scalar_select %p7537_p6, 1, 0 }
  0x48   : > { %p6696_p2 = scmp.lt.s32.totalorder %s7314_s21, 2  ;;  %s225_s10 = sand.u32 1, %s7310_s20  }
  0x49   : > { %p7544_p5 = por %p151_p13, %p37_p9  ;;  %p7548_p8 = por %p157_p0, %p43_p11 }
  0x4a   : > { %s6623_s13 = sshll.u32 %s225_s10, 4  ;;  %s6649_s14 = sshll.u32 %s7314_s21, 8 }
  0x4b   : > { %s12921_s11 = scalar_select %p7544_p5, 1, 0 }
  0x4c   : > { %s12922_s12 = scalar_select %p7548_p8, 1, 0 }
  0x4d   : > { %s7556_s17 = scalar_lea.hbm %s12513_s0, %s6649_s14  ;;  %s229_s22 = scalar_lea.vmem [#allocation3], %s6623_s13 }
  0x4e   : > { %s237_s23 = sshll.u32 %s229_s22, 4  ;;  %p7560_p7 = pnand %p6696_p2, %p7531_p12  ;;  %s238_s23 = int_to_ptr.vmem [resolvable:$true] %s237_s23 }
  0x4f   : > { %s226_s27 = scalar_lea.sflag [#allocation4], %s225_s10  ;;  %s7214_s29 = scalar_lea.hbm %s7556_s17, 256 }
  0x50   : > { %p7215_p9 = scmp.ne.s32.totalorder %s7556_s17, %s7214_s29  ;;  %p7216_p10 = pneg %p7560_p7 }
  0x51   : > { %s7219_s14 = scalar_lea.hbm %s12513_s0, 512  ;;  %p7220_p0 = scmp.lt.s32.totalorder %s7556_s17, %s12513_s0 }
  0x52   : > { %p7217_p11 = pnand %p7216_p10, %p7215_p9  ;;  %p7221_p12 = scmp.lt.s32.totalorder %s7219_s14, %s7214_s29 }
  0x54   : > { %p7218_p13 = pneg %p7217_p11  ;;  %p7222_p2 = por %p7221_p12, %p7220_p0 }
  0x56   : > { %p7223_p4 = pnand %p7222_p2, %p7218_p13 }
  0x58   : > { %7226 = shalt.err (!%p7223_p4)
}
  0x59   : > { %s7227_s8 = scalar_lea.vmem %s238_s23, 256  ;;  %s7322_s10 = smov [#allocation3]  }
  0x5a   : > { %p7228_p1 = scmp.ne.s32.totalorder %s238_s23, %s7227_s8  ;;  %s7232_s16 = sshll.u32 %s7322_s10, 4  ;;  %s7233_s16 = int_to_ptr.vmem [resolvable:$false] %s7232_s16 }
  0x5b   : > { %s7234_s22 = scalar_lea.vmem %s7233_s16, 512  ;;  %p7235_p9 = scmp.lt.s32.totalorder %s238_s23, %s7233_s16 }
  0x5c   : > { %p7230_p8 = pnand %p7228_p1, %p7216_p10  ;;  %p7236_p11 = scmp.lt.s32.totalorder %s7234_s22, %s7227_s8 }
  0x5e   : > { %p7231_p5 = pneg %p7230_p8  ;;  %p7237_p6 = por %p7236_p11, %p7235_p9 }
  0x60   : > { %p7238_p3 = pnand %p7237_p6, %p7231_p5 }
  0x62   : > { %7241 = shalt.err (!%p7238_p3)
}
  0x63   : > { %6687 = dma.hbm_to_vmem [thread:$0]  (!%p7560_p7), %s7556_s17, 256, %s238_s23, %s226_s27  }
  0x64   : > { %p12924_p13 = scmp.ne.s32.totalorder %s12917_s25, 0 }
  0x66   : > { %246 = sbr.rel (%p12924_p13) target bundleno = 3359 (0xd1f), region = 40 }
  0x6b   : > { %s7581_s29 = sand.u32 1, %s7306_s19   ;;  %p12925_p1 = scmp.ne.s32.totalorder %s12920_s9, 0 }
  0x6c   : > { %s6627_s30 = sshll.u32 %s7581_s29, 4  ;;  %s249_s6 = scalar_lea.sflag [#allocation4], %s7581_s29 }
  0x6d   : > { %s252_s14 = scalar_lea.vmem [#allocation3], %s6627_s30 }
  0x6e   : > { %7285 = dma.done.wait (%p12925_p1), %s249_s6, 256  }
  0x6f   : > { %7287 = vsyncadd (%p12925_p1), %s249_s6, 4294967040  ;;  %p12926_p3 = scmp.eq.s32.totalorder %s7450_s24, 0 }
  0x71   : > { %7289 = dma.done.wait (%p12926_p3), [#allocation7], 384   ;;  %p12927_p4 = pmov %p12926_p3 }
  0x72   : > { %p12928_p6 = pmov %p12926_p3 }
  0x73   : > { %7291 = vsyncadd (%p12927_p4), [#allocation7], 4294966912 }
  0x74   : > { %7293 = dma.done.wait (%p12928_p6), [#allocation10], 512   ;;  %p12929_p5 = pmov %p12926_p3 }
  0x75   : > { %v12559_v0 = vmov 16   ;;  %v12565_v1 = vmov 0   ;;  %v418_v2 = vlaneseq  ;;  %v7601_v4 = vld [vmem:[#allocation8] sm:$0xff]  ;;  %v7603_v5 = vld [vmem:[#allocation6] sm:$0xff]  ;;  %v7605_v6 = vld [vmem:[#allocation6 + $0x8] sm:$0xff]  ;;  %v7325_v7 = vmov 0.0  }
  0x76   : > { %7295 = vsyncadd (%p12929_p5), [#allocation10], 4294966784  ;;  %6817 = vset.pattern.permute.xlu1 %v12559_v0  ;;  %6815 = vset.pattern.permute.xlu0 %v12565_v1  ;;  %295 = vst [vmem:[#allocation2 + $0x20] sm:$0xff] %v7325_v7  ;;  %v6633_v8 = vrot.slane %v7603_v5, 10  ;;  %v6634_v11 = vrot.slane %v7605_v6, 10  ;;  %v7617_v12 = vld [vmem:[%s252_s14] sm:$0xff] }
  0x77   : > { %v7599_v3 = vshrl.u32 %v418_v2, 7  ;;  %296 = vst [vmem:[#allocation2 + $0x8] sm:$0xff] %v7325_v7  ;;  %359 = vperm.xlu1 %6817, %v7601_v4   ;;  %340 = vperm.xlu0 %6815, %v7601_v4   ;;  %12932 = vst [vmem:[#allocation19_spill] sm:$0xff] %v7617_v12  ;;  %v7619_v13 = vld [vmem:[%s252_s14 + $0x8] sm:$0xff]  ;;  %v12557_v16 = vmov 25   ;;  %v12561_v17 = vmov 7   ;;  %v330_v25 = vcombine.high %v7617_v12, %v7617_v12 }
  0x78   : > { %12933 = vst [vmem:[#allocation20_spill] sm:$0xff] %v7619_v13  ;;  %334 = vst [vmem:[#allocation2 + $0x28] sm:$0xf] %v7617_v12  ;;  %v7624_v14 = vmul.f32 %v6633_v8, %v7603_v5  ;;  %v7627_v15 = vmul.f32 %v6634_v11, %v7605_v6  ;;  %s7328_s25 = smov 55   ;;  %v12563_v26 = vmov 17   ;;  %v12555_v27 = vmov 8  }
  0x79   : > { %v7611_v9 = vsub.s32 0, %v7599_v3  ;;  %v7614_v10 = vsub.s32 4, %v7599_v3  ;;  %336 = vst [vmem:[#allocation2 + $0x10] sm:$0xf] %v7619_v13  ;;  %335 = vst [vmem:[#allocation2] sm:$0xf] %v330_v25  ;;  %v331_v28 = vcombine.high %v7619_v13, %v7619_v13 }
  0x7a   : > { %12934 = vst [vmem:[#allocation21_spill] sm:$0xff] %v7624_v14  ;;  %12935 = vst [vmem:[#allocation22_spill] sm:$0xff] %v7627_v15  ;;  %v12543_v34 = vmov 9   ;;  %v6635_v35 = vrot.slane %v7603_v5, 11  ;;  %s7332_s9 = smov 56   ;;  %v12553_v36 = vmov 26  }
  0x7b   : > { %12930 = vst [vmem:[#allocation17_spill] sm:$0xff] %v7611_v9  ;;  %12931 = vst [vmem:[#allocation18_spill] sm:$0xff] %v7614_v10  ;;  %6818 = vset.pattern.permute.xlu1 %v12557_v16  ;;  %6816 = vset.pattern.permute.xlu0 %v12561_v17  ;;  %v425_v18 = vrot.slane %v7624_v14, %v7614_v10  ;;  %v421_v19 = vrot.slane %v7624_v14, %v7611_v9  ;;  %v6636_v41 = vrot.slane %v7605_v6, 11  ;;  %v12551_v45 = vmov 18   ;;  %s7335_s17 = smov 57   ;;  %s7339_s23 = smov 63  }
  0x7c   : > { %403 = vperm.xlu1 %6818, %v7601_v4   ;;  %350 = vperm.xlu0 %6816, %v7601_v4   ;;  %v429_v20 = vrot.slane %v7627_v15, %v7611_v9  ;;  %v433_v24 = vrot.slane %v7627_v15, %v7614_v10  ;;  %v549_v30 = vrot.slane %v7603_v5, %v7611_v9  ;;  %v7683_v48 = vsub.s32 2, %v7599_v3  ;;  %s7348_s26 = smov 64   ;;  %s7349_s27 = smov 65  }
  0x7d   : > { %v445_v21 = vrot.slane %v425_v18, %v7611_v9  ;;  %v441_v22 = vrot.slane %v421_v19, %v7611_v9  ;;  %337 = vst [vmem:[#allocation2 + $0x18] sm:$0xf] %v331_v28  ;;  %v553_v32 = vrot.slane %v7603_v5, %v7614_v10  ;;  %v557_v33 = vrot.slane %v7605_v6, %v7611_v9  ;;  %v7727_v25 = vld [vmem:[#allocation2 + $0x20] sm:$0xf]  ;;  %s7353_s13 = smov 71   ;;  %s7357_s15 = smov 119  }
  0x7e   : > { %v449_v23 = vrot.slane %v429_v20, %v7611_v9  ;;  %v453_v29 = vrot.slane %v433_v24, %v7611_v9  ;;  %v569_v31 = vrot.slane %v549_v30, %v7611_v9  ;;  %v561_v38 = vrot.slane %v7605_v6, %v7614_v10  ;;  %12936 = vst [vmem:[#allocation23_spill] sm:$0xff] %v7683_v48  ;;  %s7358_s8 = smov 127   ;;  %s7359_s10 = smov 126  }
  0x7f   : > { %v573_v37 = vrot.slane %v553_v32, %v7611_v9  ;;  %v577_v39 = vrot.slane %v557_v33, %v7611_v9  ;;  %v315_v40 = vmul.f32 %v6635_v35, %v7603_v5  ;;  %v316_v44 = vmul.f32 %v6636_v41, %v7605_v6  ;;  %s7360_s16 = smov 120   ;;  %s7361_s22 = smov 118  }
  0x80   : > { %460 = vrot.lane.b32.xlu1 %v445_v21, %s7328_s25  ;;  %458 = vrot.lane.b32.xlu0 %v441_v22, %s7328_s25  ;;  %v581_v42 = vrot.slane %v561_v38, %v7611_v9  ;;  %v12549_v51 = vmov 19   ;;  %v12541_v52 = vmov 27   ;;  %v857_v55 = vrot.slane %v7603_v5, %v7683_v48  ;;  %v7725_v24 = vld [vmem:[#allocation2] sm:$0xf]  ;;  %s7362_s30 = smov 112   ;;  %s7363_s6 = smov 72  }
  0x81   : > { %6820 = vset.pattern.permute.xlu1 %v12563_v26  ;;  %6819 = vset.pattern.permute.xlu0 %v12555_v27  ;;  %v704_v43 = vrot.slane %v315_v40, %v7611_v9  ;;  %v712_v47 = vrot.slane %v316_v44, %v7611_v9  ;;  %v708_v50 = vrot.slane %v315_v40, %v7614_v10  ;;  %v12539_v59 = vmov 10   ;;  %v7745_v40 = vld [vmem:[#allocation2 + $0x10] sm:$0xf]  ;;  %s7366_s14 = smov 111   ;;  %p13534_p7 = scmp.ne.s32.totalorder %s12921_s11, 0 }
  0x82   : > { %v716_v54 = vrot.slane %v316_v44, %v7614_v10  ;;  %v877_v57 = vrot.slane %v857_v55, %v7683_v48  ;;  %v865_v58 = vrot.slane %v7605_v6, %v7683_v48  ;;  %v12537_v61 = vmov 20  }
  0x83   : > { %v724_v46 = vrot.slane %v704_v43, %v7611_v9  ;;  %v732_v49 = vrot.slane %v712_v47, %v7611_v9  ;;  %v728_v53 = vrot.slane %v708_v50, %v7611_v9  ;;  %v7703_v62 = vsub.s32 6, %v7599_v3 }
  0x84   : > { %495 = vperm.xlu1 %6820, %v7601_v4   ;;  %462 = vrot.lane.b32.xlu0 %v449_v23, %s7328_s25  ;;  %v736_v56 = vrot.slane %v716_v54, %v7611_v9  ;;  %v885_v60 = vrot.slane %v865_v58, %v7683_v48  ;;  %v12529_v2 = vmov 28   ;;  %v12525_v11 = vmov 29   ;;  %v7731_v30 = vld [vmem:[#allocation2 + $0x18] sm:$0xf] }
  0x85   : > { %12937 = vst [vmem:[#allocation24_spill] sm:$0xff] %v7703_v62  ;;  %v861_v63 = vrot.slane %v7603_v5, %v7703_v62  ;;  %v869_v8 = vrot.slane %v7605_v6, %v7703_v62  ;;  %v12527_v19 = vmov 11   ;;  %v12533_v20 = vmov 21   ;;  %12939 = vst [vmem:[#allocation26_spill] sm:$0xff] %v7731_v30 }
  0x86   : > { %v12545_v21 = vmov 12   ;;  %v12523_v22 = vmov 30   ;;  %v12547_v23 = vmov 22   ;;  %vm382_vm0 = vcmask 523264  }
  0x87   : > { %v881_v7 = vrot.slane %v861_v63, %v7683_v48  ;;  %v889_v18 = vrot.slane %v869_v8, %v7683_v48  ;;  %vm594_vm1 = vcmask 457728   ;;  %vm749_vm2 = vcmask 465920  }
  0x88   : > { %464 = vrot.lane.b32.xlu1 %v453_v29, %s7328_s25  ;;  %486 = vperm.xlu0 %6819, %v7601_v4   ;;  %vm902_vm3 = vcmask 515072   ;;  %vm1141_vm4 = vcmask 531456   ;;  %vm1296_vm5 = vcmask 580608   ;;  %vm1449_vm6 = vcmask 588800  }
  0x89   : > { %6822 = vset.pattern.permute.xlu1 %v12543_v34  ;;  %vm1602_vm7 = vcmask 596992   ;;  %vm466_vm8 = vcmask 449536   ;;  %vm623_vm9 = vcmask 1039360   ;;  %vm778_vm10 = vcmask 1031168  }
  0x8a   : > { %vm931_vm11 = vcmask 982016   ;;  %vm1017_vm12 = vcmask 973824   ;;  %vm1170_vm13 = vcmask 965632   ;;  %vm1325_vm14 = vcmask 916480  }
  0x8b   : > { %vm1478_vm15 = vcmask 908288  }
  0x8c   : > { %586 = vrot.lane.b32.xlu1 %v569_v31, %s7332_s9  ;;  %6821 = vset.pattern.permute.xlu0 %v12553_v36  ;;  %v7733_v31 = vld [vmem:[#allocation2 + $0x28] sm:$0xf] }
  0x8d   : > { %533 = vperm.xlu0 %6821, %v7601_v4  }
  0x90   : > { %588 = vrot.lane.b32.xlu1 %v573_v37, %s7332_s9 }
  0x91   : > { %590 = vrot.lane.b32.xlu0 %v577_v39, %s7332_s9 }
  0x92   : > { %6823 = vset.pattern.permute.xlu0 %v12551_v45 }
  0x94   : > { %592 = vrot.lane.b32.xlu1 %v581_v42, %s7332_s9  ;;  %s7367_s9 = smov 73  }
  0x95   : > { %648 = vperm.xlu0 %6823, %v7601_v4  }
  0x98   : > { %639 = vperm.xlu1 %6822, %v7601_v4  }
  0x99   : > { %741 = vrot.lane.b32.xlu0 %v724_v46, %s7335_s17 }
  0x9a   : > { %6826 = vset.pattern.permute.xlu0 %v12549_v51 }
  0x9c   : > { %6824 = vset.pattern.permute.xlu1 %v12541_v52 }
  0x9d   : > { %686 = vperm.xlu1 %6824, %v7601_v4   ;;  %745 = vrot.lane.b32.xlu0 %v732_v49, %s7335_s17 }
  0xa1   : > { %743 = vrot.lane.b32.xlu1 %v728_v53, %s7335_s17  ;;  %803 = vperm.xlu0 %6826, %v7601_v4  }
  0xa2   : > { %6825 = vset.pattern.permute.xlu1 %v12539_v59 }
  0xa5   : > { %747 = vrot.lane.b32.xlu1 %v736_v56, %s7335_s17  ;;  %894 = vrot.lane.b32.xlu0 %v877_v57, %s7339_s23  ;;  %s7370_s17 = smov 110  }
  0xa6   : > { %6829 = vset.pattern.permute.xlu0 %v12537_v61 }
  0xa9   : > { %794 = vperm.xlu1 %6825, %v7601_v4   ;;  %898 = vrot.lane.b32.xlu0 %v885_v60, %s7339_s23 }
  0xad   : > { %6827 = vset.pattern.permute.xlu1 %v12529_v2  ;;  %956 = vperm.xlu0 %6829, %v7601_v4  }
  0xae   : > { %841 = vperm.xlu1 %6827, %v7601_v4  }
  0xb1   : > { %6830 = vset.pattern.permute.xlu0 %v12525_v11 }
  0xb2   : > { %989 = vperm.xlu0 %6830, %v7601_v4   ;;  %896 = vrot.lane.b32.xlu1 %v881_v7, %s7339_s23 }
  0xb3   : > { %6828 = vset.pattern.permute.xlu1 %v12527_v19 }
  0xb6   : > { %6832 = vset.pattern.permute.xlu0 %v12533_v20  ;;  %900 = vrot.lane.b32.xlu1 %v889_v18, %s7339_s23 }
  0xb7   : > { %1042 = vperm.xlu0 %6832, %v7601_v4  }
  0xba   : > { %947 = vperm.xlu1 %6828, %v7601_v4  }
  0xbb   : > { %6835 = vset.pattern.permute.xlu0 %v12547_v23 }
  0xbe   : > { %6831 = vset.pattern.permute.xlu1 %v12545_v21 }
  0xbf   : > { %1033 = vperm.xlu1 %6831, %v7601_v4  }
  0xc3   : > { %6833 = vset.pattern.permute.xlu1 %v12523_v22  ;;  %v7838_v22 = vld [vmem:[#allocation2 + $0x18] sm:$0xf] }
  0xf2   : > { %v360_v28 = vpop.permute.xlu1 %359  ;;  %v7729_v29 = vpop.permute.xlu0 %340 }
  0xf3   : > { %12938 = vst [vmem:[#allocation25_spill] sm:$0xff] %v7729_v29  ;;  %v364_v32 = vmul.f32 %v360_v28, %v7725_v24  ;;  %v362_v33 = vmul.f32 %v360_v28, %v7727_v25  ;;  %v366_v35 = vmul.f32 %v360_v28, %v7731_v30  ;;  %v363_v37 = vmul.f32 %v360_v28, %v7733_v31 }
  0xf4   : > { %v365_v41 = vmul.f32 %v360_v28, %v7745_v40  ;;  %v6637_v29 = vrot.slane %v7603_v5, 9 }
  0xf5   : > { %376 = vrot.lane.b32.xlu0 %v364_v32, %s7348_s26  ;;  %372 = vrot.lane.b32.xlu1 %v362_v33, %s7348_s26 }
  0xf7   : > { %v7741_v38 = vpop.permute.xlu1 %403  ;;  %v7743_v39 = vpop.permute.xlu0 %350 }
  0xf8   : > { %12940 = vst [vmem:[#allocation27_spill] sm:$0xff] %v7741_v38  ;;  %12941 = vst [vmem:[#allocation28_spill] sm:$0xff] %v7743_v39 }
  0xf9   : > { %380 = vrot.lane.b32.xlu0 %v366_v35, %s7348_s26  ;;  %374 = vrot.lane.b32.xlu1 %v363_v37, %s7348_s26 }
  0xfb   : > { %v7750_v42 = vpop.permute.xlu1 %460  ;;  %v7752_v43 = vpop.permute.xlu0 %458 }
  0xfc   : > { %12942 = vst [vmem:[#allocation29_spill] sm:$0xff] %v7750_v42  ;;  %12943 = vst [vmem:[#allocation30_spill] sm:$0xff] %v7752_v43  ;;  %v7912_v43 = vsub.s32 1, %v7599_v3 }
  0xfd   : > { %378 = vrot.lane.b32.xlu1 %v365_v41, %s7348_s26 }
  0xfe   : > { %12965 = vst [vmem:[#allocation52_spill] sm:$0xff] %v7912_v43 }
  0xff   : > { %v496_v44 = vpop.permute.xlu1 %495  ;;  %v7755_v46 = vpop.permute.xlu0 %462 }
 0x100   : > { %12944 = vst [vmem:[#allocation31_spill] sm:$0xff] %v7755_v46  ;;  %v499_v47 = vmul.f32 %v496_v44, %v7733_v31  ;;  %v498_v49 = vmul.f32 %v496_v44, %v7727_v25  ;;  %v501_v50 = vmul.f32 %v496_v44, %v7745_v40  ;;  %v500_v53 = vmul.f32 %v496_v44, %v7725_v24 }
 0x101   : > { %v502_v55 = vmul.f32 %v496_v44, %v7731_v30 }
 0x102   : > { %510 = vrot.lane.b32.xlu0 %v499_v47, %s7348_s26  ;;  %508 = vrot.lane.b32.xlu1 %v498_v49, %s7348_s26 }
 0x103   : > { %v7763_v54 = vpop.permute.xlu0 %486 }
 0x106   : > { %514 = vrot.lane.b32.xlu0 %v501_v50, %s7348_s26  ;;  %512 = vrot.lane.b32.xlu1 %v500_v53, %s7348_s26 }
 0x108   : > { %v7768_v56 = vpop.permute.xlu0 %533 }
 0x10a   : > { %516 = vrot.lane.b32.xlu1 %v502_v55, %s7348_s26 }
 0x10c   : > { %v7771_v57 = vpop.permute.xlu0 %590 }
 0x110   : > { %v649_v58 = vpop.permute.xlu0 %648 }
 0x111   : > { %v653_v60 = vmul.f32 %v649_v58, %v7725_v24  ;;  %v651_v63 = vmul.f32 %v649_v58, %v7727_v25  ;;  %v655_v8 = vmul.f32 %v649_v58, %v7731_v30  ;;  %v652_v18 = vmul.f32 %v649_v58, %v7733_v31 }
 0x112   : > { %v654_v32 = vmul.f32 %v649_v58, %v7745_v40 }
 0x113   : > { %665 = vrot.lane.b32.xlu0 %v653_v60, %s7348_s26  ;;  %661 = vrot.lane.b32.xlu1 %v651_v63, %s7348_s26 }
 0x114   : > { %v7777_v7 = vpop.permute.xlu0 %741 }
 0x115   : > { %12945 = vst [vmem:[#allocation32_spill] sm:$0xff] %v7777_v7 }
 0x117   : > { %669 = vrot.lane.b32.xlu0 %v655_v8, %s7348_s26  ;;  %663 = vrot.lane.b32.xlu1 %v652_v18, %s7348_s26  ;;  %v7810_v8 = vsub.s32 3, %v7599_v3 }
 0x118   : > { %v7783_v28 = vpop.permute.xlu0 %745 }
 0x119   : > { %12946 = vst [vmem:[#allocation33_spill] sm:$0xff] %v7783_v28  ;;  %12949 = vst [vmem:[#allocation36_spill] sm:$0xff] %v7810_v8 }
 0x11b   : > { %667 = vrot.lane.b32.xlu1 %v654_v32, %s7348_s26 }
 0x11c   : > { %v804_v33 = vpop.permute.xlu0 %803 }
 0x11d   : > { %v808_v35 = vmul.f32 %v804_v33, %v7725_v24  ;;  %v806_v37 = vmul.f32 %v804_v33, %v7727_v25  ;;  %v810_v44 = vmul.f32 %v804_v33, %v7731_v30  ;;  %v807_v47 = vmul.f32 %v804_v33, %v7733_v31 }
 0x11e   : > { %v809_v50 = vmul.f32 %v804_v33, %v7745_v40  ;;  %v7813_v33 = vld [vmem:[#allocation2 + $0x10] sm:$0xf] }
 0x11f   : > { %820 = vrot.lane.b32.xlu0 %v808_v35, %s7348_s26  ;;  %816 = vrot.lane.b32.xlu1 %v806_v37, %s7348_s26  ;;  %v7817_v37 = vld [vmem:[#allocation2 + $0x28] sm:$0xf] }
 0x120   : > { %v7791_v41 = vpop.permute.xlu0 %894 }
 0x121   : > { %12947 = vst [vmem:[#allocation34_spill] sm:$0xff] %v7791_v41 }
 0x123   : > { %824 = vrot.lane.b32.xlu0 %v810_v44, %s7348_s26  ;;  %818 = vrot.lane.b32.xlu1 %v807_v47, %s7348_s26  ;;  %v1096_v47 = vrot.slane %v7603_v5, %v7810_v8 }
 0x124   : > { %v7797_v49 = vpop.permute.xlu0 %898 }
 0x125   : > { %12948 = vst [vmem:[#allocation35_spill] sm:$0xff] %v7797_v49 }
 0x127   : > { %822 = vrot.lane.b32.xlu1 %v809_v50, %s7348_s26  ;;  %v7823_v50 = vld [vmem:[#allocation2 + $0x8] sm:$0xf] }
 0x128   : > { %v957_v53 = vpop.permute.xlu0 %956 }
 0x129   : > { %v961_v55 = vmul.f32 %v957_v53, %v7745_v40  ;;  %v959_v58 = vmul.f32 %v957_v53, %v7733_v31  ;;  %v960_v63 = vmul.f32 %v957_v53, %v7725_v24  ;;  %v962_v18 = vmul.f32 %v957_v53, %v7731_v30 }
 0x12b   : > { %971 = vrot.lane.b32.xlu0 %v961_v55, %s7348_s26  ;;  %967 = vrot.lane.b32.xlu1 %v959_v58, %s7348_s26  ;;  %v7827_v55 = vld [vmem:[#allocation2] sm:$0xf] }
 0x12d   : > { %v7805_v60 = vpop.permute.xlu0 %989 }
 0x12f   : > { %969 = vrot.lane.b32.xlu1 %v960_v63, %s7348_s26  ;;  %v1116_v63 = vrot.slane %v1096_v47, %v7810_v8 }
 0x132   : > { %v1043_v32 = vpop.permute.xlu0 %1042 }
 0x133   : > { %973 = vrot.lane.b32.xlu1 %v962_v18, %s7348_s26  ;;  %v1047_v35 = vmul.f32 %v1043_v32, %v7813_v33  ;;  %v1045_v44 = vmul.f32 %v1043_v32, %v7817_v37  ;;  %v1049_v53 = vmul.f32 %v1043_v32, %v7823_v50  ;;  %v1046_v58 = vmul.f32 %v1043_v32, %v7827_v55 }
 0x134   : > { %v1104_v18 = vrot.slane %v7605_v6, %v7810_v8 }
 0x135   : > { %1059 = vrot.lane.b32.xlu0 %v1047_v35, %s7348_s26  ;;  %v7836_v35 = vsub.s32 7, %v7599_v3 }
 0x137   : > { %1055 = vrot.lane.b32.xlu1 %v1045_v44, %s7348_s26  ;;  %12950 = vst [vmem:[#allocation37_spill] sm:$0xff] %v7836_v35  ;;  %v1048_v44 = vmul.f32 %v1043_v32, %v7838_v22  ;;  %v1100_v47 = vrot.slane %v7603_v5, %v7836_v35  ;;  %v1108_v11 = vrot.slane %v7605_v6, %v7836_v35  ;;  %v6638_v35 = vrot.slane %v7605_v6, 9 }
 0x139   : > { %1063 = vrot.lane.b32.xlu0 %v1049_v53, %s7348_s26  ;;  %v1124_v53 = vrot.slane %v1104_v18, %v7810_v8  ;;  %v1128_v32 = vrot.slane %v1108_v11, %v7810_v8  ;;  %v12535_v18 = vmov 31  }
 0x13b   : > { %1057 = vrot.lane.b32.xlu1 %v1046_v58, %s7348_s26  ;;  %v1120_v58 = vrot.slane %v1100_v47, %v7810_v8  ;;  %v324_v8 = vmul.f32 %v6638_v35, %v7605_v6  ;;  %v12589_v35 = vmov 14  }
 0x13d   : > { %1133 = vrot.lane.b32.xlu0 %v1116_v63, %s7349_s27  ;;  %v12531_v63 = vmov 13  }
 0x13f   : > { %1061 = vrot.lane.b32.xlu1 %v1048_v44, %s7348_s26  ;;  %v7854_v44 = vpop.permute.xlu1 %464 }
 0x140   : > { %12951 = vst [vmem:[#allocation38_spill] sm:$0xff] %v7854_v44 }
 0x141   : > { %1137 = vrot.lane.b32.xlu0 %v1124_v53, %s7349_s27 }
 0x143   : > { %1080 = vperm.xlu1 %6833, %v7601_v4   ;;  %v7856_v53 = vpop.permute.xlu1 %586 }
 0x144   : > { %12952 = vst [vmem:[#allocation39_spill] sm:$0xff] %v7856_v53 }
 0x145   : > { %1195 = vperm.xlu0 %6835, %v7601_v4  }
 0x147   : > { %1135 = vrot.lane.b32.xlu1 %v1120_v58, %s7349_s27  ;;  %v7858_v47 = vpop.permute.xlu1 %588 }
 0x148   : > { %6834 = vset.pattern.permute.xlu1 %v12531_v63 }
 0x14b   : > { %1139 = vrot.lane.b32.xlu1 %v1128_v32, %s7349_s27  ;;  %v7860_v19 = vpop.permute.xlu1 %592 }
 0x14c   : > { %12953 = vst [vmem:[#allocation40_spill] sm:$0xff] %v7860_v19 }
 0x14f   : > { %1186 = vperm.xlu1 %6834, %v7601_v4   ;;  %v7864_v11 = vpop.permute.xlu1 %639 }
 0x153   : > { %6836 = vset.pattern.permute.xlu1 %v12535_v18  ;;  %v7868_v32 = vpop.permute.xlu1 %686 }
 0x157   : > { %v7872_v20 = vpop.permute.xlu1 %743 }
 0x158   : > { %12956 = vst [vmem:[#allocation43_spill] sm:$0xff] %v7872_v20 }
 0x15b   : > { %v7878_v59 = vpop.permute.xlu1 %747 }
 0x15c   : > { %12957 = vst [vmem:[#allocation44_spill] sm:$0xff] %v7878_v59 }
 0x15f   : > { %v7882_v34 = vpop.permute.xlu1 %794 }
 0x163   : > { %v7886_v23 = vpop.permute.xlu1 %841 }
 0x167   : > { %v7862_v58 = vpop.permute.xlu0 %376  ;;  %v7890_v45 = vpop.permute.xlu1 %896 }
 0x168   : > { %12954 = vst [vmem:[#allocation41_spill] sm:$0xff] %v7862_v58  ;;  %12958 = vst [vmem:[#allocation45_spill] sm:$0xff] %v7890_v45  ;;  %v323_v58 = vmul.f32 %v6637_v29, %v7603_v5  ;;  %v7930_v5 = vsub.s32 5, %v7599_v3  ;;  %v493_v45 = vmul.f32 %v7763_v54, %v7731_v30 }
 0x16a   : > { %v1251_v62 = vrot.slane %v323_v58, %v7912_v43  ;;  %12967 = vst [vmem:[#allocation54_spill] sm:$0xff] %v7930_v5  ;;  %v1255_v10 = vrot.slane %v323_v58, %v7930_v5  ;;  %v12598_v58 = vmov 32  }
 0x16b   : > { %v7866_v2 = vpop.permute.xlu0 %380  ;;  %v7896_v16 = vpop.permute.xlu1 %900 }
 0x16c   : > { %12955 = vst [vmem:[#allocation42_spill] sm:$0xff] %v7866_v2  ;;  %12960 = vst [vmem:[#allocation47_spill] sm:$0xff] %v7896_v16  ;;  %v12582_v2 = vmov 24   ;;  %v1271_v29 = vrot.slane %v1251_v62, %v7912_v43  ;;  %v1275_v3 = vrot.slane %v1255_v10, %v7912_v43  ;;  %v1263_v62 = vrot.slane %v324_v8, %v7930_v5 }
 0x16d   : > { %6838 = vset.pattern.permute.xlu0 %v12582_v2 }
 0x16f   : > { %v7898_v0 = vpop.permute.xlu1 %947 }
 0x173   : > { %v7902_v26 = vpop.permute.xlu1 %1033 }
 0x174   : > { %v7870_v63 = vpop.permute.xlu0 %510 }
 0x177   : > { %v7906_v46 = vpop.permute.xlu1 %372 }
 0x178   : > { %v7874_v18 = vpop.permute.xlu0 %514  ;;  %12963 = vst [vmem:[#allocation50_spill] sm:$0xff] %v7906_v46 }
 0x17b   : > { %v7919_v46 = vpop.permute.xlu1 %374 }
 0x17c   : > { %12966 = vst [vmem:[#allocation53_spill] sm:$0xff] %v7919_v46 }
 0x185   : > { %v7876_v61 = vpop.permute.xlu0 %665 }
 0x189   : > { %v7880_v52 = vpop.permute.xlu0 %669 }
 0x191   : > { %v7884_v21 = vpop.permute.xlu0 %820 }
 0x195   : > { %v7888_v51 = vpop.permute.xlu0 %824 }
 0x19d   : > { %v7892_v36 = vpop.permute.xlu0 %971 }
 0x1a7   : > { %v7894_v27 = vpop.permute.xlu0 %1059 }
 0x1a8   : > { %12959 = vst [vmem:[#allocation46_spill] sm:$0xff] %v7894_v27 }
 0x1ab   : > { %v7900_v17 = vpop.permute.xlu0 %1063 }
 0x1ac   : > { %12961 = vst [vmem:[#allocation48_spill] sm:$0xff] %v7900_v17 }
 0x1af   : > { %v7904_v1 = vpop.permute.xlu0 %1133 }
 0x1b0   : > { %12962 = vst [vmem:[#allocation49_spill] sm:$0xff] %v7904_v1 }
 0x1b3   : > { %v7908_v44 = vpop.permute.xlu0 %1137 }
 0x1b4   : > { %12964 = vst [vmem:[#allocation51_spill] sm:$0xff] %v7908_v44 }
 0x1c0   : > { %v1196_v42 = vpop.permute.xlu0 %1195 }
 0x1c1   : > { %v1200_v38 = vmul.f32 %v1196_v42, %v7813_v33  ;;  %v1198_v39 = vmul.f32 %v1196_v42, %v7817_v37  ;;  %v1202_v48 = vmul.f32 %v1196_v42, %v7823_v50  ;;  %v1199_v2 = vmul.f32 %v1196_v42, %v7827_v55 }
 0x1c2   : > { %v1201_v46 = vmul.f32 %v1196_v42, %v7838_v22 }
 0x1c3   : > { %1212 = vrot.lane.b32.xlu0 %v1200_v38, %s7348_s26  ;;  %1208 = vrot.lane.b32.xlu1 %v1198_v39, %s7348_s26  ;;  %v1259_v38 = vrot.slane %v324_v8, %v7912_v43  ;;  %v7934_v39 = vpop.permute.xlu1 %378 }
 0x1c4   : > { %12968 = vst [vmem:[#allocation55_spill] sm:$0xff] %v7934_v39 }
 0x1c5   : > { %v1279_v6 = vrot.slane %v1259_v38, %v7912_v43 }
 0x1c7   : > { %1216 = vrot.lane.b32.xlu0 %v1202_v48, %s7348_s26  ;;  %1210 = vrot.lane.b32.xlu1 %v1199_v2, %s7348_s26  ;;  %v7940_v48 = vpop.permute.xlu1 %508  ;;  %v1283_v2 = vrot.slane %v1263_v62, %v7912_v43 }
 0x1cb   : > { %1214 = vrot.lane.b32.xlu1 %v1201_v46, %s7348_s26  ;;  %1288 = vrot.lane.b32.xlu0 %v1271_v29, %s7353_s13  ;;  %v7947_v42 = vpop.permute.xlu1 %512  ;;  %v12591_v46 = vmov 23  }
 0x1cf   : > { %1233 = vperm.xlu1 %6836, %v7601_v4   ;;  %1292 = vrot.lane.b32.xlu0 %v1279_v6, %s7353_s13  ;;  %v7952_v10 = vpop.permute.xlu1 %516 }
 0x1d3   : > { %1290 = vrot.lane.b32.xlu1 %v1275_v3, %s7353_s13  ;;  %1503 = vperm.xlu0 %6838, %v7601_v4   ;;  %v7955_v8 = vpop.permute.xlu1 %661 }
 0x1d4   : > { %6837 = vset.pattern.permute.xlu1 %v12591_v46 }
 0x1d7   : > { %1294 = vrot.lane.b32.xlu1 %v1283_v2, %s7353_s13  ;;  %6839 = vset.pattern.permute.xlu0 %v12589_v35  ;;  %v7958_v29 = vpop.permute.xlu1 %663 }
 0x1d8   : > { %1341 = vperm.xlu0 %6839, %v7601_v4  }
 0x1db   : > { %1350 = vperm.xlu1 %6837, %v7601_v4   ;;  %v7960_v38 = vpop.permute.xlu1 %667 }
 0x1df   : > { %6840 = vset.pattern.permute.xlu1 %v12598_v58  ;;  %v7962_v6 = vpop.permute.xlu1 %816 }
 0x1e0   : > { %12969 = vst [vmem:[#allocation56_spill] sm:$0xff] %v7962_v6  ;;  %v531_v6 = vadd.f32 %v7952_v10, %v493_v45  ;;  %v693_v45 = vmul.f32 %v7868_v32, %v7823_v50 }
 0x1e3   : > { %v7964_v3 = vpop.permute.xlu1 %818 }
 0x1e7   : > { %v7966_v62 = vpop.permute.xlu1 %822 }
 0x1e8   : > { %12970 = vst [vmem:[#allocation57_spill] sm:$0xff] %v7966_v62 }
 0x1eb   : > { %v968_v2 = vpop.permute.xlu1 %967 }
 0x1ef   : > { %v970_v35 = vpop.permute.xlu1 %969 }
 0x1f0   : > { %v976_v41 = vsel %vm382_vm0, %v970_v35, %v7892_v36 }
 0x1f3   : > { %v974_v46 = vpop.permute.xlu1 %973 }
 0x1f7   : > { %v7968_v39 = vpop.permute.xlu1 %1055 }
 0x1fb   : > { %v7970_v13 = vpop.permute.xlu1 %1057 }
 0x1fc   : > { %12971 = vst [vmem:[#allocation58_spill] sm:$0xff] %v7970_v13 }
 0x1ff   : > { %v7972_v12 = vpop.permute.xlu1 %1061 }
 0x200   : > { %12972 = vst [vmem:[#allocation59_spill] sm:$0xff] %v7972_v12 }
 0x203   : > { %v7974_v58 = vpop.permute.xlu1 %1080 }
 0x207   : > { %v7976_v9 = vpop.permute.xlu1 %1135 }
 0x208   : > { %12973 = vst [vmem:[#allocation60_spill] sm:$0xff] %v7976_v9  ;;  %v954_v9 = vmul.f32 %v7898_v0, %v7731_v30 }
 0x20b   : > { %v7978_v15 = vpop.permute.xlu1 %1139 }
 0x20c   : > { %12974 = vst [vmem:[#allocation61_spill] sm:$0xff] %v7978_v15 }
 0x20f   : > { %v7980_v14 = vpop.permute.xlu1 %1186 }
 0x235   : > { %v7982_v5 = vpop.permute.xlu1 %1208 }
 0x239   : > { %v7984_v43 = vpop.permute.xlu1 %1210 }
 0x23a   : > { %12975 = vst [vmem:[#allocation62_spill] sm:$0xff] %v7984_v43  ;;  %v987_v43 = vadd.f32 %v974_v46, %v954_v9  ;;  %v646_v9 = vmul.f32 %v7864_v11, %v7731_v30 }
 0x23c   : > { %v684_v20 = vadd.f32 %v7880_v52, %v646_v9  ;;  %v519_v9 = vsel %vm382_vm0, %v7870_v63, %v7947_v42 }
 0x23d   : > { %v7986_v17 = vpop.permute.xlu1 %1214 }
 0x23e   : > { %12976 = vst [vmem:[#allocation63_spill] sm:$0xff] %v7986_v17  ;;  %v952_v17 = vmul.f32 %v7898_v0, %v7725_v24 }
 0x240   : > { %v985_v28 = vadd.f32 %v976_v41, %v952_v17  ;;  %v801_v17 = vmul.f32 %v7882_v34, %v7731_v30  ;;  %v951_v41 = vmul.f32 %v7898_v0, %v7733_v31  ;;  %v698_v30 = vadd.f32 %v693_v45, %v684_v20 }
 0x241   : > { %v993_v20 = vmul.f32 %v7805_v60, %v7827_v55  ;;  %v1036_v45 = vmul.f32 %v7902_v26, %v7727_v25 }
 0x24a   : > { %v7988_v44 = vpop.permute.xlu1 %1233 }
 0x24e   : > { %v7990_v27 = vpop.permute.xlu1 %1290 }
 0x24f   : > { %12977 = vst [vmem:[#allocation64_spill] sm:$0xff] %v7990_v27 }
 0x252   : > { %v7992_v49 = vpop.permute.xlu1 %1294 }
 0x253   : > { %12978 = vst [vmem:[#allocation65_spill] sm:$0xff] %v7992_v49 }
 0x256   : > { %v1351_v12 = vpop.permute.xlu1 %1350 }
 0x257   : > { %v1355_v15 = vmul.f32 %v1351_v12, %v7813_v33  ;;  %v1353_v13 = vmul.f32 %v1351_v12, %v7817_v37  ;;  %v1357_v27 = vmul.f32 %v1351_v12, %v7823_v50  ;;  %v1354_v49 = vmul.f32 %v1351_v12, %v7827_v55 }
 0x258   : > { %v1356_v7 = vmul.f32 %v1351_v12, %v7838_v22 }
 0x259   : > { %1367 = vrot.lane.b32.xlu0 %v1355_v15, %s7348_s26  ;;  %1363 = vrot.lane.b32.xlu1 %v1353_v13, %s7348_s26  ;;  %v996_v13 = vmul.f32 %v7805_v60, %v7823_v50  ;;  %v950_v15 = vmul.f32 %v7898_v0, %v7727_v25 }
 0x25b   : > { %v1001_v62 = vadd.f32 %v996_v13, %v987_v43  ;;  %v983_v43 = vadd.f32 %v968_v2, %v950_v15 }
 0x25d   : > { %1371 = vrot.lane.b32.xlu0 %v1357_v27, %s7348_s26  ;;  %1365 = vrot.lane.b32.xlu1 %v1354_v49, %s7348_s26  ;;  %v540_v27 = vmul.f32 %v7768_v56, %v7823_v50  ;;  %v994_v49 = vmul.f32 %v7805_v60, %v7813_v33 }
 0x25f   : > { %v545_v12 = vadd.f32 %v540_v27, %v531_v6  ;;  %v999_v13 = vadd.f32 %v994_v49, %v985_v28  ;;  %v848_v6 = vmul.f32 %v7886_v23, %v7823_v50  ;;  %v953_v28 = vmul.f32 %v7898_v0, %v7745_v40 }
 0x260   : > { %v977_v49 = vsel %vm382_vm0, %v7892_v36, %v974_v46 }
 0x261   : > { %1015 = vrot.lane.b32.xlu0 %v1001_v62, %s7357_s15  ;;  %1369 = vrot.lane.b32.xlu1 %v1356_v7, %s7348_s26  ;;  %v975_v62 = vsel %vm382_vm0, %v968_v2, %v970_v35  ;;  %v992_v7 = vmul.f32 %v7805_v60, %v7817_v37  ;;  %v839_v35 = vadd.f32 %v7888_v51, %v801_v17 }
 0x262   : > { %v984_v15 = vadd.f32 %v975_v62, %v951_v41  ;;  %v607_v27 = vmul.f32 %v7860_v19, %v545_v12  ;;  %v521_v17 = vsel %vm382_vm0, %v7874_v18, %v7952_v10  ;;  %v762_v12 = vmul.f32 %v7878_v59, %v698_v30 }
 0x263   : > { %v997_v2 = vadd.f32 %v992_v7, %v983_v43  ;;  %v853_v43 = vadd.f32 %v848_v6, %v839_v35  ;;  %v986_v46 = vadd.f32 %v977_v49, %v953_v28  ;;  %v1083_v41 = vmul.f32 %v7974_v58, %v7817_v37  ;;  %v8065_v7 = vpop.permute.xlu0 %1212 }
 0x264   : > { %v998_v36 = vadd.f32 %v993_v20, %v984_v15  ;;  %v492_v62 = vmul.f32 %v7763_v54, %v7745_v40  ;;  %v995_v10 = vmul.f32 %v7805_v60, %v7838_v22  ;;  %v1074_v30 = vadd.f32 %v7968_v39, %v1036_v45 }
 0x265   : > { %1011 = vrot.lane.b32.xlu0 %v999_v13, %s7357_s15  ;;  %1388 = vperm.xlu1 %6840, %v7601_v4   ;;  %v490_v4 = vmul.f32 %v7763_v54, %v7733_v31  ;;  %v537_v13 = vmul.f32 %v7768_v56, %v7827_v55  ;;  %v518_v6 = vsel %vm382_vm0, %v7940_v48, %v7870_v63 }
 0x266   : > { %v530_v35 = vadd.f32 %v521_v17, %v492_v62  ;;  %v1000_v60 = vadd.f32 %v995_v10, %v986_v46  ;;  %v915_v15 = vmul.f32 %v7896_v16, %v853_v43  ;;  %v8085_v49 = vsel %vm594_vm1, %v7856_v53, %v7858_v47 }
 0x267   : > { %v528_v0 = vadd.f32 %v519_v9, %v490_v4  ;;  %v1189_v9 = vmul.f32 %v7980_v14, %v7727_v25  ;;  %v1236_v4 = vmul.f32 %v7988_v44, %v7817_v37  ;;  %12979 = vst [vmem:[#allocation66_spill] sm:$0xff] %v8085_v49  ;;  %v489_v63 = vmul.f32 %v7763_v54, %v7727_v25  ;;  %v8104_v46 = vpop.permute.xlu0 %1216 }
 0x268   : > { %v539_v48 = vmul.f32 %v7768_v56, %v7838_v22  ;;  %v672_v20 = vsel %vm382_vm0, %v7958_v29, %v7876_v61  ;;  %v645_v45 = vmul.f32 %v7864_v11, %v7745_v40 }
 0x269   : > { %621 = vrot.lane.b32.xlu0 %v607_v27, %s7358_s8  ;;  %1007 = vrot.lane.b32.xlu1 %v997_v2, %s7357_s15  ;;  %v542_v28 = vadd.f32 %v537_v13, %v528_v0  ;;  %v643_v2 = vmul.f32 %v7864_v11, %v7733_v31  ;;  %v1088_v27 = vadd.f32 %v1083_v41, %v1074_v30 }
 0x26a   : > { %v1227_v0 = vadd.f32 %v7982_v5, %v1189_v9  ;;  %v527_v17 = vadd.f32 %v518_v6, %v489_v63  ;;  %v544_v43 = vadd.f32 %v539_v48, %v530_v35  ;;  %v536_v30 = vmul.f32 %v7768_v56, %v7817_v37 }
 0x26b   : > { %v681_v41 = vadd.f32 %v672_v20, %v643_v2  ;;  %v1150_v13 = vmul.f32 %v7904_v1, %v1088_v27  ;;  %v604_v62 = vmul.f32 %v8085_v49, %v542_v28  ;;  %v491_v9 = vmul.f32 %v7763_v54, %v7725_v24  ;;  %v8128_v2 = vpop.permute.xlu0 %1288 }
 0x26c   : > { %v1241_v10 = vadd.f32 %v1236_v4, %v1227_v0  ;;  %v642_v6 = vmul.f32 %v7864_v11, %v7727_v25  ;;  %v692_v28 = vmul.f32 %v7868_v32, %v7838_v22  ;;  %v541_v54 = vadd.f32 %v536_v30, %v527_v17  ;;  %12981 = vst [vmem:[#allocation68_spill] sm:$0xff] %v8128_v2  ;;  %v12982_v17 = vld [vmem:[#allocation43_spill] sm:$0xff] }
 0x26d   : > { %776 = vrot.lane.b32.xlu0 %v762_v12, %s7359_s10  ;;  %1009 = vrot.lane.b32.xlu1 %v998_v36, %s7357_s15  ;;  %v520_v12 = vsel %vm382_vm0, %v7947_v42, %v7874_v18  ;;  %v690_v36 = vmul.f32 %v7868_v32, %v7827_v55  ;;  %v674_v18 = vsel %vm382_vm0, %v7960_v38, %v7880_v52 }
 0x26e   : > { %v8118_v42 = vsel %vm594_vm1, %v7771_v57, %v7860_v19  ;;  %v529_v35 = vadd.f32 %v520_v12, %v491_v9  ;;  %v798_v52 = vmul.f32 %v7882_v34, %v7733_v31  ;;  %v683_v4 = vadd.f32 %v674_v18, %v645_v45  ;;  %v12983_v12 = vld [vmem:[#allocation32_spill] sm:$0xff]  ;;  %v12986_v9 = vld [vmem:[#allocation57_spill] sm:$0xff] }
 0x26f   : > { %12980 = vst [vmem:[#allocation67_spill] sm:$0xff] %v8118_v42  ;;  %v695_v27 = vadd.f32 %v690_v36, %v681_v41  ;;  %v1305_v63 = vmul.f32 %v8128_v2, %v1241_v10  ;;  %v644_v48 = vmul.f32 %v7864_v11, %v7725_v24  ;;  %v827_v20 = vsel %vm382_vm0, %v7964_v3, %v7884_v21 }
 0x270   : > { %v538_v0 = vmul.f32 %v7768_v56, %v7813_v33  ;;  %v689_v11 = vmul.f32 %v7868_v32, %v7817_v37  ;;  %v845_v56 = vmul.f32 %v7886_v23, %v7827_v55  ;;  %v603_v45 = vmul.f32 %v7856_v53, %v541_v54 }
 0x271   : > { %929 = vrot.lane.b32.xlu0 %v915_v15, %s7360_s16  ;;  %1013 = vrot.lane.b32.xlu1 %v1000_v60, %s7357_s15  ;;  %v606_v60 = vmul.f32 %v8118_v42, %v544_v43  ;;  %v671_v15 = vsel %vm382_vm0, %v7955_v8, %v7958_v29  ;;  %v8145_v43 = vsel %vm749_vm2, %v12983_v12, %v12982_v17 }
 0x272   : > { %12984 = vst [vmem:[#allocation43_spill] sm:$0xff] %v8145_v43  ;;  %v800_v8 = vmul.f32 %v7882_v34, %v7745_v40  ;;  %v680_v29 = vadd.f32 %v671_v15, %v642_v6  ;;  %v543_v36 = vadd.f32 %v538_v0, %v529_v35  ;;  %v673_v41 = vsel %vm382_vm0, %v7876_v61, %v7960_v38  ;;  %v12987_v6 = vld [vmem:[#allocation33_spill] sm:$0xff]  ;;  %v12989_v35 = vld [vmem:[#allocation56_spill] sm:$0xff] }
 0x273   : > { %v759_v10 = vmul.f32 %v8145_v43, %v695_v27  ;;  %v8163_v30 = vsel %vm594_vm1, %v7858_v47, %v7771_v57  ;;  %v829_v18 = vsel %vm382_vm0, %v12986_v9, %v7888_v51  ;;  %v8171_v54 = vsel %vm749_vm2, %v12987_v6, %v7878_v59 }
 0x274   : > { %12985 = vst [vmem:[#allocation69_spill] sm:$0xff] %v8163_v30  ;;  %12988 = vst [vmem:[#allocation57_spill] sm:$0xff] %v8171_v54  ;;  %v797_v61 = vmul.f32 %v7882_v34, %v7727_v25  ;;  %v691_v57 = vmul.f32 %v7868_v32, %v7813_v33  ;;  %v682_v47 = vadd.f32 %v673_v41, %v644_v48  ;;  %v12991_v32 = vld [vmem:[#allocation34_spill] sm:$0xff]  ;;  %vm1631_vm1 = vcmask 900096  }
 0x275   : > { %1160 = vrot.lane.b32.xlu0 %v1150_v13, %s7361_s22  ;;  %615 = vrot.lane.b32.xlu1 %v604_v62, %s7358_s8  ;;  %v697_v13 = vadd.f32 %v692_v28, %v683_v4  ;;  %v836_v62 = vadd.f32 %v827_v20, %v798_v52  ;;  %v847_v51 = vmul.f32 %v7886_v23, %v7838_v22 }
 0x276   : > { %v605_v38 = vmul.f32 %v8163_v30, %v543_v36  ;;  %v694_v28 = vadd.f32 %v689_v11, %v680_v29  ;;  %v826_v52 = vsel %vm382_vm0, %v12989_v35, %v7964_v3  ;;  %v838_v15 = vadd.f32 %v829_v18, %v800_v8  ;;  %v12993_v8 = vld [vmem:[#allocation58_spill] sm:$0xff]  ;;  %v12999_v35 = vld [vmem:[#allocation60_spill] sm:$0xff] }
 0x277   : > { %v761_v27 = vmul.f32 %v8171_v54, %v697_v13  ;;  %v799_v4 = vmul.f32 %v7882_v34, %v7725_v24  ;;  %v844_v20 = vmul.f32 %v7886_v23, %v7817_v37  ;;  %v1037_v0 = vmul.f32 %v7902_v26, %v7733_v31 }
 0x278   : > { %v835_v3 = vadd.f32 %v826_v52, %v797_v61  ;;  %v1065_v34 = vsel %vm382_vm0, %v7968_v39, %v12993_v8  ;;  %v758_v11 = vmul.f32 %v12983_v12, %v694_v28  ;;  %v696_v29 = vadd.f32 %v691_v57, %v682_v47  ;;  %v12995_v39 = vld [vmem:[#allocation35_spill] sm:$0xff] }
 0x279   : > { %1315 = vrot.lane.b32.xlu0 %v1305_v63, %s7362_s30  ;;  %619 = vrot.lane.b32.xlu1 %v606_v60, %s7358_s8  ;;  %v850_v60 = vadd.f32 %v845_v56, %v836_v62  ;;  %v12990_v63 = vld [vmem:[#allocation45_spill] sm:$0xff]  ;;  %v828_v56 = vsel %vm382_vm0, %v7884_v21, %v12986_v9  ;;  %v1084_v36 = vmul.f32 %v7974_v58, %v7827_v55 }
 0x27a   : > { %v8191_v48 = vsel %vm902_vm3, %v12991_v32, %v12990_v63  ;;  %v8212_v13 = vsel %vm749_vm2, %v12982_v17, %v12987_v6  ;;  %v1075_v62 = vadd.f32 %v1065_v34, %v1037_v0  ;;  %v8219_v21 = vsel %vm902_vm3, %v12995_v39, %v7896_v16 }
 0x27b   : > { %12992 = vst [vmem:[#allocation33_spill] sm:$0xff] %v8191_v48  ;;  %v912_v41 = vmul.f32 %v8191_v48, %v850_v60  ;;  %12994 = vst [vmem:[#allocation56_spill] sm:$0xff] %v8212_v13  ;;  %v846_v9 = vmul.f32 %v7886_v23, %v7813_v33  ;;  %v837_v18 = vadd.f32 %v828_v56, %v799_v4  ;;  %v13001_v4 = vld [vmem:[#allocation62_spill] sm:$0xff]  ;;  %vm1654_vm2 = vcmask 1043456  }
 0x27c   : > { %12996 = vst [vmem:[#allocation45_spill] sm:$0xff] %v8219_v21  ;;  %v1039_v17 = vmul.f32 %v7902_v26, %v7745_v40  ;;  %v1089_v6 = vadd.f32 %v1084_v36, %v1075_v62  ;;  %v760_v61 = vmul.f32 %v8212_v13, %v696_v29  ;;  %v1038_v47 = vmul.f32 %v7902_v26, %v7725_v24  ;;  %v13004_v36 = vld [vmem:[#allocation61_spill] sm:$0xff] }
 0x27d   : > { %613 = vrot.lane.b32.xlu0 %v603_v45, %s7358_s8  ;;  %770 = vrot.lane.b32.xlu1 %v759_v10, %s7359_s10  ;;  %v852_v45 = vadd.f32 %v847_v51, %v838_v15  ;;  %v849_v10 = vadd.f32 %v844_v20, %v835_v3  ;;  %v12997_v51 = vld [vmem:[#allocation59_spill] sm:$0xff]  ;;  %v8235_v23 = vsel %vm1141_vm4, %v7904_v1, %v12999_v35 }
 0x27e   : > { %13000 = vst [vmem:[#allocation58_spill] sm:$0xff] %v8235_v23  ;;  %v1190_v60 = vmul.f32 %v7980_v14, %v7733_v31  ;;  %v1086_v15 = vmul.f32 %v7974_v58, %v7838_v22  ;;  %v1218_v20 = vsel %vm382_vm0, %v7982_v5, %v13001_v4  ;;  %v1151_v34 = vmul.f32 %v8235_v23, %v1089_v6 }
 0x27f   : > { %v914_v57 = vmul.f32 %v8219_v21, %v852_v45  ;;  %v911_v0 = vmul.f32 %v12991_v32, %v849_v10  ;;  %v8258_v29 = vsel %vm902_vm3, %v12990_v63, %v12995_v39  ;;  %v13003_v45 = vld [vmem:[#allocation26_spill] sm:$0xff]  ;;  %v1191_v10 = vmul.f32 %v7980_v14, %v7725_v24  ;;  %v13007_v39 = vld [vmem:[#allocation48_spill] sm:$0xff] }
 0x280   : > { %13002 = vst [vmem:[#allocation35_spill] sm:$0xff] %v8258_v29  ;;  %v1040_v5 = vmul.f32 %v7902_v26, %v13003_v45  ;;  %v1219_v26 = vsel %vm382_vm0, %v13001_v4, %v8065_v7  ;;  %v1087_v6 = vmul.f32 %v7974_v58, %v7823_v50  ;;  %vm1676_vm3 = vcmask 445440  }
 0x281   : > { %617 = vrot.lane.b32.xlu0 %v605_v38, %s7358_s8  ;;  %774 = vrot.lane.b32.xlu1 %v761_v27, %s7359_s10  ;;  %v12998_v38 = vld [vmem:[#allocation46_spill] sm:$0xff]  ;;  %v851_v27 = vadd.f32 %v846_v9, %v837_v18  ;;  %v1228_v9 = vadd.f32 %v1218_v20, %v1190_v60  ;;  %v1068_v18 = vsel %vm382_vm0, %v12997_v51, %v13007_v39 }
 0x282   : > { %v1067_v28 = vsel %vm382_vm0, %v12998_v38, %v12997_v51  ;;  %v1066_v52 = vsel %vm382_vm0, %v12993_v8, %v12998_v38  ;;  %v1085_v8 = vmul.f32 %v7974_v58, %v7813_v33  ;;  %v1078_v60 = vadd.f32 %v1068_v18, %v1040_v5  ;;  %v1293_v58 = vpop.permute.xlu0 %1292 }
 0x283   : > { %v1077_v3 = vadd.f32 %v1067_v28, %v1039_v17  ;;  %v1076_v56 = vadd.f32 %v1066_v52, %v1038_v47  ;;  %v913_v17 = vmul.f32 %v8258_v29, %v851_v27  ;;  %v13009_v28 = vld [vmem:[#allocation64_spill] sm:$0xff]  ;;  %v1239_v5 = vmul.f32 %v7988_v44, %v7838_v22 }
 0x284   : > { %v8291_v52 = vsel %vm1296_vm5, %v8128_v2, %v13009_v28 }
 0x285   : > { %768 = vrot.lane.b32.xlu0 %v758_v11, %s7359_s10  ;;  %923 = vrot.lane.b32.xlu1 %v912_v41, %s7360_s16  ;;  %v1237_v11 = vmul.f32 %v7988_v44, %v7827_v55  ;;  %v13005_v41 = vld [vmem:[#allocation51_spill] sm:$0xff]  ;;  %v1091_v63 = vadd.f32 %v1086_v15, %v1077_v3  ;;  %13010 = vst [vmem:[#allocation60_spill] sm:$0xff] %v8291_v52 }
 0x286   : > { %v8265_v62 = vsel %vm1141_vm4, %v13005_v41, %v13004_v36  ;;  %v8286_v51 = vsel %vm1141_vm4, %v12999_v35, %v13005_v41  ;;  %v1229_v15 = vadd.f32 %v1219_v26, %v1191_v10  ;;  %v1192_v35 = vmul.f32 %v7980_v14, %v7745_v40  ;;  %v13011_v3 = vld [vmem:[#allocation63_spill] sm:$0xff] }
 0x287   : > { %13006 = vst [vmem:[#allocation59_spill] sm:$0xff] %v8265_v62  ;;  %v1242_v47 = vadd.f32 %v1237_v11, %v1228_v9  ;;  %v1153_v38 = vmul.f32 %v8265_v62, %v1091_v63  ;;  %13008 = vst [vmem:[#allocation46_spill] sm:$0xff] %v8286_v51  ;;  %v8307_v11 = vsel %vm1296_vm5, %v13009_v28, %v1293_v58  ;;  %v13013_v63 = vld [vmem:[#allocation65_spill] sm:$0xff]  ;;  %vm1646_vm4 = vcmask 1043896  }
 0x288   : > { %13012 = vst [vmem:[#allocation62_spill] sm:$0xff] %v8307_v11  ;;  %v8321_v39 = vsel %vm1296_vm5, %v1293_v58, %v13013_v63  ;;  %vm3313_vm5 = vcmask 1047992  }
 0x289   : > { %772 = vrot.lane.b32.xlu0 %v760_v61, %s7359_s10  ;;  %927 = vrot.lane.b32.xlu1 %v914_v57, %s7360_s16  ;;  %v1090_v61 = vadd.f32 %v1085_v8, %v1076_v56  ;;  %v1238_v57 = vmul.f32 %v7988_v44, %v7813_v33  ;;  %v1306_v20 = vmul.f32 %v8291_v52, %v1242_v47 }
 0x28a   : > { %v1220_v8 = vsel %vm382_vm0, %v8065_v7, %v13011_v3  ;;  %v1193_v56 = vmul.f32 %v7980_v14, %v13003_v45  ;;  %v1240_v7 = vmul.f32 %v7988_v44, %v7823_v50  ;;  %13014 = vst [vmem:[#allocation26_spill] sm:$0xff] %v8321_v39  ;;  %v7087_v14 = vld [vmem:[#allocation6] sm:$0xff]  ;;  %v13015_v45 = vld [vmem:[#allocation52_spill] sm:$0xff] }
 0x28b   : > { %v1152_v27 = vmul.f32 %v8286_v51, %v1090_v61  ;;  %v1243_v4 = vadd.f32 %v1238_v57, %v1229_v15  ;;  %v1230_v41 = vadd.f32 %v1220_v8, %v1192_v35  ;;  %v1404_v18 = vrot.slane %v7087_v14, %v13015_v45  ;;  %v13016_v44 = vld [vmem:[#allocation54_spill] sm:$0xff] }
 0x28d   : > { %921 = vrot.lane.b32.xlu0 %v911_v0, %s7360_s16  ;;  %1162 = vrot.lane.b32.xlu1 %v1151_v34, %s7361_s22  ;;  %v1092_v0 = vadd.f32 %v1087_v6, %v1078_v60  ;;  %v1221_v34 = vsel %vm382_vm0, %v13011_v3, %v8104_v46  ;;  %v1307_v46 = vmul.f32 %v8307_v11, %v1243_v4  ;;  %v12631_v4 = vmov 15  }
 0x28e   : > { %v1231_v10 = vadd.f32 %v1221_v34, %v1193_v56  ;;  %v1244_v26 = vadd.f32 %v1239_v5, %v1230_v41  ;;  %v1408_v6 = vrot.slane %v7087_v14, %v13016_v44  ;;  %v1424_v47 = vrot.slane %v1404_v18, %v13015_v45  ;;  %6841 = vset.pattern.permute.xlu1 %v12631_v4 }
 0x28f   : > { %v1154_v9 = vmul.f32 %v13004_v36, %v1092_v0  ;;  %v8339_v0 = vpop.permute.xlu0 %1503 }
 0x290   : > { %v1308_v61 = vmul.f32 %v8321_v39, %v1244_v26  ;;  %v1428_v60 = vrot.slane %v1408_v6, %v13015_v45 }
 0x291   : > { %925 = vrot.lane.b32.xlu0 %v913_v17, %s7360_s16  ;;  %1166 = vrot.lane.b32.xlu1 %v1153_v38, %s7361_s22  ;;  %v1245_v17 = vadd.f32 %v1240_v7, %v1231_v10  ;;  %v7088_v38 = vld [vmem:[#allocation6 + $0x8] sm:$0xff] }
 0x292   : > { %v1412_v28 = vrot.slane %v7088_v38, %v13015_v45  ;;  %v1416_v15 = vrot.slane %v7088_v38, %v13016_v44 }
 0x293   : > { %v1309_v57 = vmul.f32 %v13013_v63, %v1245_v17  ;;  %v1342_v35 = vpop.permute.xlu0 %1341 }
 0x294   : > { %v1432_v58 = vrot.slane %v1412_v28, %v13015_v45  ;;  %v1344_v51 = vmul.f32 %v1342_v35, %v7727_v25  ;;  %v1345_v42 = vmul.f32 %v1342_v35, %v7733_v31  ;;  %v1346_v25 = vmul.f32 %v1342_v35, %v7725_v24  ;;  %v8414_v24 = vld [vmem:[#allocation2 + $0x18] sm:$0xf] }
 0x295   : > { %1164 = vrot.lane.b32.xlu0 %v1152_v27, %s7361_s22  ;;  %1317 = vrot.lane.b32.xlu1 %v1306_v20, %s7362_s30  ;;  %v1436_v27 = vrot.slane %v1416_v15, %v13015_v45  ;;  %v12629_v20 = vmov 33   ;;  %13028 = vst [vmem:[#allocation77_spill] sm:$0xff] %v8414_v24  ;;  %v1347_v2 = vmul.f32 %v1342_v35, %v7745_v40 }
 0x296   : > { %6842 = vset.pattern.permute.xlu0 %v12629_v20 }
 0x299   : > { %1168 = vrot.lane.b32.xlu0 %v1154_v9, %s7361_s22  ;;  %1319 = vrot.lane.b32.xlu1 %v1307_v46, %s7362_s30 }
 0x29d   : > { %1321 = vrot.lane.b32.xlu0 %v1308_v61, %s7362_s30  ;;  %1323 = vrot.lane.b32.xlu1 %v1309_v57, %s7362_s30 }
 0x2a1   : > { %1441 = vrot.lane.b32.xlu0 %v1424_v47, %s7363_s6  ;;  %1443 = vrot.lane.b32.xlu1 %v1428_v60, %s7363_s6 }
 0x2a5   : > { %1445 = vrot.lane.b32.xlu0 %v1432_v58, %s7363_s6  ;;  %1447 = vrot.lane.b32.xlu1 %v1436_v27, %s7363_s6 }
 0x2cb   : > { %v1368_v3 = vpop.permute.xlu0 %1367  ;;  %v1364_v34 = vpop.permute.xlu1 %1363 }
 0x2cc   : > { %v1382_v48 = vadd.f32 %v1364_v34, %v1344_v51 }
 0x2cf   : > { %v1372_v8 = vpop.permute.xlu0 %1371  ;;  %v1366_v5 = vpop.permute.xlu1 %1365 }
 0x2d0   : > { %v1373_v12 = vsel %vm382_vm0, %v1364_v34, %v1366_v5  ;;  %v1374_v51 = vsel %vm382_vm0, %v1366_v5, %v1368_v3 }
 0x2d1   : > { %v1383_v30 = vadd.f32 %v1373_v12, %v1345_v42  ;;  %v1384_v53 = vadd.f32 %v1374_v51, %v1346_v25 }
 0x2d3   : > { %v8341_v56 = vpop.permute.xlu0 %1015  ;;  %v1370_v10 = vpop.permute.xlu1 %1369 }
 0x2d4   : > { %v1375_v34 = vsel %vm382_vm0, %v1368_v3, %v1370_v10 }
 0x2d5   : > { %v1385_v51 = vadd.f32 %v1375_v34, %v1347_v2 }
 0x2d7   : > { %v8343_v7 = vpop.permute.xlu0 %1011 }
 0x2db   : > { %v8345_v41 = vpop.permute.xlu0 %621 }
 0x2df   : > { %v8347_v46 = vpop.permute.xlu0 %776 }
 0x2e0   : > { %v1389_v9 = vpop.permute.xlu1 %1388 }
 0x2e1   : > { %v1391_v21 = vmul.f32 %v1389_v9, %v7817_v37  ;;  %v1395_v5 = vmul.f32 %v1389_v9, %v7823_v50  ;;  %v1394_v42 = vmul.f32 %v1389_v9, %v7838_v22 }
 0x2e3   : > { %v8349_v14 = vpop.permute.xlu0 %929  ;;  %v1396_v54 = vadd.f32 %v1391_v21, %v1382_v48  ;;  %v1392_v48 = vmul.f32 %v1389_v9, %v7827_v55  ;;  %v1393_v21 = vmul.f32 %v1389_v9, %v7813_v33  ;;  %v13033_v9 = vld [vmem:[#allocation21_spill] sm:$0xff] }
 0x2e4   : > { %v8351_v18 = vpop.permute.xlu1 %1007 }
 0x2e5   : > { %13017 = vst [vmem:[#allocation51_spill] sm:$0xff] %v8351_v18  ;;  %v1397_v16 = vadd.f32 %v1392_v48, %v1383_v30  ;;  %v1398_v59 = vadd.f32 %v1393_v21, %v1384_v53  ;;  %v1399_v53 = vadd.f32 %v1394_v42, %v1385_v51  ;;  %v1561_v48 = vrot.slane %v13033_v9, %v13016_v44 }
 0x2e7   : > { %v8353_v26 = vpop.permute.xlu0 %1160  ;;  %v1581_v21 = vrot.slane %v1561_v48, %v13015_v45  ;;  %v8489_v48 = vld [vmem:[#allocation2 + $0x20] sm:$0xf] }
 0x2e8   : > { %13018 = vst [vmem:[#allocation48_spill] sm:$0xff] %v8353_v26  ;;  %v8355_v17 = vpop.permute.xlu1 %1009  ;;  %13040 = vst [vmem:[#allocation85_spill] sm:$0xff] %v8489_v48  ;;  %v8510_v26 = vld [vmem:[#allocation2 + $0x18] sm:$0xf] }
 0x2eb   : > { %v8357_v6 = vpop.permute.xlu0 %1315 }
 0x2ec   : > { %13019 = vst [vmem:[#allocation64_spill] sm:$0xff] %v8357_v6  ;;  %v8359_v61 = vpop.permute.xlu1 %1013 }
 0x2ef   : > { %v8361_v57 = vpop.permute.xlu0 %613 }
 0x2f0   : > { %13020 = vst [vmem:[#allocation63_spill] sm:$0xff] %v8361_v57  ;;  %v8363_v47 = vpop.permute.xlu1 %615  ;;  %v13078_v57 = vld [vmem:[#allocation23_spill] sm:$0xff] }
 0x2f3   : > { %v8365_v38 = vpop.permute.xlu0 %617 }
 0x2f4   : > { %v8367_v28 = vpop.permute.xlu1 %619 }
 0x2f7   : > { %v8369_v60 = vpop.permute.xlu0 %768 }
 0x2f8   : > { %13021 = vst [vmem:[#allocation70_spill] sm:$0xff] %v8369_v60  ;;  %v8371_v15 = vpop.permute.xlu1 %770 }
 0x2fb   : > { %v8373_v58 = vpop.permute.xlu0 %772 }
 0x2fc   : > { %v8375_v27 = vpop.permute.xlu1 %774 }
 0x2ff   : > { %v8377_v20 = vpop.permute.xlu0 %921 }
 0x300   : > { %13022 = vst [vmem:[#allocation71_spill] sm:$0xff] %v8377_v20  ;;  %v8379_v4 = vpop.permute.xlu1 %923 }
 0x303   : > { %v8381_v39 = vpop.permute.xlu0 %925 }
 0x304   : > { %v8383_v52 = vpop.permute.xlu1 %927 }
 0x307   : > { %v8385_v63 = vpop.permute.xlu0 %1164 }
 0x308   : > { %v8387_v36 = vpop.permute.xlu1 %1162 }
 0x30b   : > { %v8389_v11 = vpop.permute.xlu0 %1168 }
 0x30c   : > { %13023 = vst [vmem:[#allocation72_spill] sm:$0xff] %v8389_v11  ;;  %v8392_v62 = vpop.permute.xlu1 %1166 }
 0x30d   : > { %13024 = vst [vmem:[#allocation73_spill] sm:$0xff] %v8392_v62 }
 0x30f   : > { %v8395_v23 = vpop.permute.xlu0 %1321 }
 0x310   : > { %13025 = vst [vmem:[#allocation74_spill] sm:$0xff] %v8395_v23  ;;  %v8397_v29 = vpop.permute.xlu1 %1317 }
 0x313   : > { %v8399_v32 = vpop.permute.xlu0 %1441 }
 0x314   : > { %13026 = vst [vmem:[#allocation75_spill] sm:$0xff] %v8399_v32  ;;  %v8401_v43 = vpop.permute.xlu1 %1319  ;;  %v1458_v13 = vmul.f32 %v8399_v32, %v1396_v54  ;;  %v1376_v54 = vsel %vm382_vm0, %v1370_v10, %v1372_v8 }
 0x316   : > { %1468 = vrot.lane.b32.xlu0 %v1458_v13, %s7366_s14  ;;  %v1348_v13 = vmul.f32 %v8414_v24, %v1342_v35  ;;  %v1508_v35 = vmul.f32 %v8339_v0, %v7813_v33  ;;  %v1557_v33 = vrot.slane %v13033_v9, %v13015_v45 }
 0x317   : > { %v1446_v31 = vpop.permute.xlu0 %1445 }
 0x318   : > { %v8409_v49 = vpop.permute.xlu1 %1323  ;;  %v1386_v12 = vadd.f32 %v1376_v54, %v1348_v13  ;;  %v13034_v54 = vld [vmem:[#allocation22_spill] sm:$0xff]  ;;  %v1510_v13 = vmul.f32 %v8339_v0, %v7823_v50  ;;  %v12679_v50 = vmov 2  }
 0x319   : > { %13027 = vst [vmem:[#allocation76_spill] sm:$0xff] %v8409_v49 }
 0x31a   : > { %v1400_v1 = vadd.f32 %v1395_v5, %v1386_v12  ;;  %v1565_v5 = vrot.slane %v13034_v54, %v13015_v45 }
 0x31c   : > { %v1444_v19 = vpop.permute.xlu1 %1443  ;;  %v1585_v42 = vrot.slane %v1565_v5, %v13015_v45 }
 0x31d   : > { %v8423_v8 = vsel %vm1449_vm6, %v8399_v32, %v1444_v19  ;;  %v8426_v25 = vsel %vm1449_vm6, %v1444_v19, %v1446_v31 }
 0x31e   : > { %13029 = vst [vmem:[#allocation78_spill] sm:$0xff] %v8423_v8  ;;  %13030 = vst [vmem:[#allocation79_spill] sm:$0xff] %v8426_v25  ;;  %v1459_v3 = vmul.f32 %v8423_v8, %v1397_v16  ;;  %v1460_v10 = vmul.f32 %v8426_v25, %v1398_v59  ;;  %v1506_v16 = vmul.f32 %v8339_v0, %v7817_v37  ;;  %v8445_v59 = vld [vmem:[#allocation8] sm:$0xff]  ;;  %v8504_v25 = vld [vmem:[#allocation2 + $0x10] sm:$0xf] }
 0x31f   : > { %v1509_v37 = vmul.f32 %v8339_v0, %v7838_v22  ;;  %v1577_v22 = vrot.slane %v1557_v33, %v13015_v45  ;;  %v8493_v33 = vld [vmem:[#allocation2 + $0x28] sm:$0xf] }
 0x320   : > { %1472 = vrot.lane.b32.xlu0 %v1460_v10, %s7366_s14  ;;  %1470 = vrot.lane.b32.xlu1 %v1459_v3, %s7366_s14  ;;  %v8432_v40 = vpop.permute.xlu1 %1447  ;;  %13041 = vst [vmem:[#allocation86_spill] sm:$0xff] %v8493_v33 }
 0x321   : > { %13031 = vst [vmem:[#allocation80_spill] sm:$0xff] %v8432_v40  ;;  %v8436_v30 = vsel %vm1449_vm6, %v1446_v31, %v8432_v40  ;;  %v1462_v19 = vmul.f32 %v8432_v40, %v1400_v1  ;;  %v1507_v1 = vmul.f32 %v8339_v0, %v7827_v55  ;;  %v1569_v31 = vrot.slane %v13034_v54, %v13016_v44 }
 0x322   : > { %13032 = vst [vmem:[#allocation81_spill] sm:$0xff] %v8436_v30  ;;  %v1461_v2 = vmul.f32 %v8436_v30, %v1399_v53  ;;  %v12681_v0 = vmov 1  }
 0x323   : > { %v1589_v34 = vrot.slane %v1569_v31, %v13015_v45  ;;  %v8496_v31 = vld [vmem:[#allocation2 + $0x28] sm:$0xf] }
 0x324   : > { %1476 = vrot.lane.b32.xlu0 %v1462_v19, %s7366_s14  ;;  %1474 = vrot.lane.b32.xlu1 %v1461_v2, %s7366_s14 }
 0x328   : > { %1516 = vrot.lane.b32.xlu0 %v1506_v16, %s7348_s26  ;;  %1494 = vperm.xlu1 %6841, %v8445_v59  }
 0x32c   : > { %1520 = vrot.lane.b32.xlu0 %v1508_v35, %s7348_s26  ;;  %1518 = vrot.lane.b32.xlu1 %v1507_v1, %s7348_s26 }
 0x32d   : > { %6844 = vset.pattern.permute.xlu1 %v12679_v50  ;;  %v8501_v50 = vld [vmem:[#allocation2] sm:$0xf] }
 0x32e   : > { %13042 = vst [vmem:[#allocation87_spill] sm:$0xff] %v8501_v50 }
 0x330   : > { %1541 = vperm.xlu0 %6842, %v8445_v59   ;;  %1522 = vrot.lane.b32.xlu1 %v1509_v37, %s7348_s26 }
 0x334   : > { %1524 = vrot.lane.b32.xlu1 %v1510_v13, %s7348_s26  ;;  %1596 = vrot.lane.b32.xlu0 %v1581_v21, %s7367_s9 }
 0x335   : > { %6843 = vset.pattern.permute.xlu0 %v12681_v0 }
 0x338   : > { %1594 = vrot.lane.b32.xlu1 %v1577_v22, %s7367_s9  ;;  %1600 = vrot.lane.b32.xlu0 %v1589_v34, %s7367_s9 }
 0x33c   : > { %1598 = vrot.lane.b32.xlu1 %v1585_v42, %s7367_s9 }
 0x388   : > { %v8479_v12 = vpop.permute.xlu0 %1468 }
 0x389   : > { %13035 = vst [vmem:[#allocation21_spill] sm:$0xff] %v8479_v12 }
 0x392   : > { %v8481_v51 = vpop.permute.xlu0 %1472  ;;  %v8483_v3 = vpop.permute.xlu1 %1470 }
 0x393   : > { %13036 = vst [vmem:[#allocation22_spill] sm:$0xff] %v8481_v51  ;;  %13037 = vst [vmem:[#allocation82_spill] sm:$0xff] %v8483_v3 }
 0x396   : > { %v8485_v10 = vpop.permute.xlu0 %1476  ;;  %v8487_v53 = vpop.permute.xlu1 %1474 }
 0x397   : > { %13038 = vst [vmem:[#allocation83_spill] sm:$0xff] %v8485_v10  ;;  %13039 = vst [vmem:[#allocation84_spill] sm:$0xff] %v8487_v53 }
 0x39a   : > { %v1517_v19 = vpop.permute.xlu0 %1516 }
 0x39e   : > { %v1521_v16 = vpop.permute.xlu0 %1520 }
 0x3a3   : > { %v1495_v2 = vpop.permute.xlu1 %1494 }
 0x3a4   : > { %v1497_v37 = vmul.f32 %v8489_v48, %v1495_v2  ;;  %v1498_v13 = vmul.f32 %v8496_v31, %v1495_v2  ;;  %v1499_v0 = vmul.f32 %v8501_v50, %v1495_v2  ;;  %v1500_v8 = vmul.f32 %v8504_v25, %v1495_v2 }
 0x3a5   : > { %v1501_v12 = vmul.f32 %v8414_v24, %v1495_v2 }
 0x3a6   : > { %v1535_v42 = vadd.f32 %v1517_v19, %v1497_v37 }
 0x3a7   : > { %v1519_v35 = vpop.permute.xlu1 %1518 }
 0x3a8   : > { %v1526_v21 = vsel %vm382_vm0, %v1517_v19, %v1519_v35  ;;  %v1527_v32 = vsel %vm382_vm0, %v1519_v35, %v1521_v16 }
 0x3a9   : > { %v1536_v40 = vadd.f32 %v1526_v21, %v1498_v13  ;;  %v8515_v13 = vld [vmem:[#allocation2 + $0x10] sm:$0xf]  ;;  %v1537_v35 = vadd.f32 %v1527_v32, %v1499_v0 }
 0x3aa   : > { %13044 = vst [vmem:[#allocation89_spill] sm:$0xff] %v8515_v13 }
 0x3ab   : > { %v1542_v1 = vpop.permute.xlu0 %1541  ;;  %v1523_v9 = vpop.permute.xlu1 %1522 }
 0x3ac   : > { %v1544_v54 = vmul.f32 %v8493_v33, %v1542_v1  ;;  %v1545_v34 = vmul.f32 %v1542_v1, %v7827_v55  ;;  %v1528_v5 = vsel %vm382_vm0, %v1521_v16, %v1523_v9  ;;  %v1547_v19 = vmul.f32 %v8510_v26, %v1542_v1 }
 0x3ad   : > { %v1538_v37 = vadd.f32 %v1528_v5, %v1500_v8  ;;  %v1546_v20 = vmul.f32 %v8515_v13, %v1542_v1 }
 0x3ae   : > { %v1549_v6 = vadd.f32 %v1544_v54, %v1535_v42  ;;  %v1550_v21 = vadd.f32 %v1545_v34, %v1536_v40 }
 0x3af   : > { %v1525_v22 = vpop.permute.xlu1 %1524  ;;  %v1597_v30 = vpop.permute.xlu0 %1596  ;;  %v1552_v40 = vadd.f32 %v1547_v19, %v1538_v37  ;;  %v1551_v5 = vadd.f32 %v1546_v20, %v1537_v35  ;;  %v12728_v20 = vmov 34   ;;  %v12722_v19 = vmov 37  }
 0x3b0   : > { %v1529_v55 = vsel %vm382_vm0, %v1523_v9, %v1525_v22  ;;  %v8523_v9 = vld [vmem:[#allocation2 + $0x8] sm:$0xf]  ;;  %v12720_v37 = vmov 35   ;;  %v12714_v35 = vmov 42  }
 0x3b1   : > { %13046 = vst [vmem:[#allocation91_spill] sm:$0xff] %v8523_v9  ;;  %v1548_v54 = vmul.f32 %v8523_v9, %v1542_v1  ;;  %v1539_v22 = vadd.f32 %v1529_v55, %v1501_v12 }
 0x3b3   : > { %v8513_v18 = vpop.permute.xlu1 %1594  ;;  %v8528_v34 = vpop.permute.xlu0 %1600  ;;  %v1553_v0 = vadd.f32 %v1548_v54, %v1539_v22  ;;  %v12701_v54 = vmov 4   ;;  %v12708_v22 = vmov 45  }
 0x3b4   : > { %13043 = vst [vmem:[#allocation88_spill] sm:$0xff] %v8513_v18  ;;  %v8520_v16 = vsel %vm1602_vm7, %v8513_v18, %v1597_v30  ;;  %v1611_v2 = vmul.f32 %v8513_v18, %v1549_v6  ;;  %13047 = vst [vmem:[#allocation92_spill] sm:$0xff] %v8528_v34  ;;  %v13073_v18 = vld [vmem:[#allocation17_spill] sm:$0xff] }
 0x3b5   : > { %13045 = vst [vmem:[#allocation90_spill] sm:$0xff] %v8520_v16  ;;  %v1612_v8 = vmul.f32 %v8520_v16, %v1550_v21  ;;  %v1615_v55 = vmul.f32 %v8528_v34, %v1553_v0  ;;  %v12724_v21 = vmov 39   ;;  %v12703_v0 = vmov 41  }
 0x3b6   : > { %1621 = vrot.lane.b32.xlu1 %v1611_v2, %s7370_s17  ;;  %v12726_v2 = vmov 36  }
 0x3b7   : > { %1623 = vrot.lane.b32.xlu0 %v1612_v8, %s7370_s17  ;;  %v1599_v42 = vpop.permute.xlu1 %1598  ;;  %v12712_v8 = vmov 38  }
 0x3b8   : > { %v8532_v6 = vsel %vm1602_vm7, %v1597_v30, %v1599_v42  ;;  %v8536_v32 = vsel %vm1602_vm7, %v1599_v42, %v8528_v34  ;;  %v12730_v30 = vmov 3   ;;  %v12693_v42 = vmov 49  }
 0x3b9   : > { %13048 = vst [vmem:[#allocation93_spill] sm:$0xff] %v8532_v6  ;;  %13049 = vst [vmem:[#allocation94_spill] sm:$0xff] %v8536_v32  ;;  %v1613_v12 = vmul.f32 %v8532_v6, %v1551_v5  ;;  %v1614_v1 = vmul.f32 %v8536_v32, %v1552_v40  ;;  %v12695_v40 = vmov 46   ;;  %v12718_v5 = vmov 40  }
 0x3bb   : > { %1627 = vrot.lane.b32.xlu0 %v1614_v1, %s7370_s17  ;;  %1625 = vrot.lane.b32.xlu1 %v1613_v12, %s7370_s17  ;;  %v12707_v12 = vmov 6   ;;  %v12697_v1 = vmov 43  }
 0x3bf   : > { %1629 = vrot.lane.b32.xlu1 %v1615_v55, %s7370_s17  ;;  %1756 = vperm.xlu0 %6843, %v8445_v59   ;;  %v12699_v55 = vmov 44  }
 0x3c3   : > { %1765 = vperm.xlu1 %6844, %v8445_v59   ;;  %6846 = vset.pattern.permute.xlu0 %v12728_v20 }
 0x3c4   : > { %1799 = vperm.xlu0 %6846, %v8445_v59  }
 0x3c7   : > { %6845 = vset.pattern.permute.xlu1 %v12730_v30 }
 0x3c8   : > { %1774 = vperm.xlu1 %6845, %v8445_v59   ;;  %6849 = vset.pattern.permute.xlu0 %v12722_v19 }
 0x3c9   : > { %1901 = vperm.xlu0 %6849, %v8445_v59  }
 0x3cc   : > { %6847 = vset.pattern.permute.xlu1 %v12720_v37 }
 0x3cd   : > { %1833 = vperm.xlu1 %6847, %v8445_v59   ;;  %6852 = vset.pattern.permute.xlu0 %v12724_v21 }
 0x3ce   : > { %1999 = vperm.xlu0 %6852, %v8445_v59  }
 0x3d1   : > { %6848 = vset.pattern.permute.xlu1 %v12726_v2 }
 0x3d2   : > { %1867 = vperm.xlu1 %6848, %v8445_v59   ;;  %6855 = vset.pattern.permute.xlu0 %v12714_v35 }
 0x3d3   : > { %2101 = vperm.xlu0 %6855, %v8445_v59  }
 0x3d6   : > { %6850 = vset.pattern.permute.xlu1 %v12701_v54 }
 0x3d7   : > { %1940 = vperm.xlu1 %6850, %v8445_v59   ;;  %6858 = vset.pattern.permute.xlu0 %v12708_v22 }
 0x3d8   : > { %2203 = vperm.xlu0 %6858, %v8445_v59  }
 0x3db   : > { %6851 = vset.pattern.permute.xlu1 %v12712_v8 }
 0x3dc   : > { %1965 = vperm.xlu1 %6851, %v8445_v59   ;;  %6861 = vset.pattern.permute.xlu0 %v12695_v40  ;;  %v12710_v40 = vmov 47  }
 0x3dd   : > { %2267 = vperm.xlu0 %6861, %v8445_v59  }
 0x3e0   : > { %6853 = vset.pattern.permute.xlu1 %v12718_v5 }
 0x3e1   : > { %2033 = vperm.xlu1 %6853, %v8445_v59   ;;  %6864 = vset.pattern.permute.xlu0 %v12693_v42  ;;  %v12705_v42 = vmov 5  }
 0x3e2   : > { %2411 = vperm.xlu0 %6864, %v8445_v59  }
 0x3e5   : > { %6854 = vset.pattern.permute.xlu1 %v12703_v0 }
 0x3e6   : > { %2067 = vperm.xlu1 %6854, %v8445_v59   ;;  %6866 = vset.pattern.permute.xlu0 %v12707_v12 }
 0x3ea   : > { %6856 = vset.pattern.permute.xlu1 %v12697_v1  ;;  %v12716_v1 = vmov 48  }
 0x3eb   : > { %2135 = vperm.xlu1 %6856, %v8445_v59  }
 0x3ef   : > { %6857 = vset.pattern.permute.xlu1 %v12699_v55  ;;  %v13050_v55 = vmov 0  }
 0x3f0   : > { %2169 = vperm.xlu1 %6857, %v8445_v59  }
 0x3f4   : > { %6859 = vset.pattern.permute.xlu1 %v12705_v42 }
 0x3f5   : > { %2217 = vperm.xlu1 %6859, %v8445_v59  }
 0x3f9   : > { %6860 = vset.pattern.permute.xlu1 %v12707_v12 }
 0x3fa   : > { %2226 = vperm.xlu1 %6860, %v8445_v59  }
 0x3fe   : > { %6862 = vset.pattern.permute.xlu1 %v12710_v40 }
 0x3ff   : > { %2315 = vperm.xlu1 %6862, %v8445_v59  }
 0x403   : > { %6863 = vset.pattern.permute.xlu1 %v12716_v1 }
 0x404   : > { %2363 = vperm.xlu1 %6863, %v8445_v59  }
 0x408   : > { %6865 = vset.pattern.permute.xlu1 %v13050_v55 }
 0x428   : > { %v8588_v54 = vpop.permute.xlu1 %1621 }
 0x429   : > { %13051 = vst [vmem:[#allocation95_spill] sm:$0xff] %v8588_v54  ;;  %v8598_v40 = vpop.permute.xlu0 %1623 }
 0x42a   : > { %13056 = vst [vmem:[#allocation100_spill] sm:$0xff] %v8598_v40 }
 0x42d   : > { %v8590_v0 = vpop.permute.xlu1 %1625  ;;  %v8604_v1 = vpop.permute.xlu0 %1627 }
 0x42e   : > { %13052 = vst [vmem:[#allocation96_spill] sm:$0xff] %v8590_v0  ;;  %13059 = vst [vmem:[#allocation103_spill] sm:$0xff] %v8604_v1  ;;  %v13080_v1 = vld [vmem:[#allocation37_spill] sm:$0xff] }
 0x431   : > { %v8592_v42 = vpop.permute.xlu1 %1629 }
 0x432   : > { %13053 = vst [vmem:[#allocation97_spill] sm:$0xff] %v8592_v42 }
 0x43a   : > { %v8608_v5 = vpop.permute.xlu0 %1756 }
 0x43b   : > { %13061 = vst [vmem:[#allocation105_spill] sm:$0xff] %v8608_v5  ;;  %v13077_v5 = vld [vmem:[#allocation36_spill] sm:$0xff] }
 0x43e   : > { %v8594_v12 = vpop.permute.xlu1 %1765 }
 0x43f   : > { %13054 = vst [vmem:[#allocation98_spill] sm:$0xff] %v8594_v12  ;;  %v8612_v19 = vpop.permute.xlu0 %1799 }
 0x440   : > { %13063 = vst [vmem:[#allocation107_spill] sm:$0xff] %v8612_v19 }
 0x443   : > { %v8596_v22 = vpop.permute.xlu1 %1774 }
 0x444   : > { %13055 = vst [vmem:[#allocation99_spill] sm:$0xff] %v8596_v22  ;;  %v8616_v2 = vpop.permute.xlu0 %1901 }
 0x445   : > { %13065 = vst [vmem:[#allocation109_spill] sm:$0xff] %v8616_v2 }
 0x448   : > { %v8600_v8 = vpop.permute.xlu1 %1833 }
 0x449   : > { %13057 = vst [vmem:[#allocation101_spill] sm:$0xff] %v8600_v8  ;;  %v8620_v30 = vpop.permute.xlu0 %1999 }
 0x44a   : > { %13067 = vst [vmem:[#allocation111_spill] sm:$0xff] %v8620_v30 }
 0x44d   : > { %v8602_v35 = vpop.permute.xlu1 %1867 }
 0x44e   : > { %13058 = vst [vmem:[#allocation102_spill] sm:$0xff] %v8602_v35  ;;  %v8624_v32 = vpop.permute.xlu0 %2101  ;;  %v13076_v35 = vld [vmem:[#allocation18_spill] sm:$0xff] }
 0x44f   : > { %13069 = vst [vmem:[#allocation113_spill] sm:$0xff] %v8624_v32 }
 0x452   : > { %v8606_v59 = vpop.permute.xlu1 %1940 }
 0x453   : > { %13060 = vst [vmem:[#allocation104_spill] sm:$0xff] %v8606_v59  ;;  %v8628_v6 = vpop.permute.xlu0 %2203  ;;  %v13074_v59 = vld [vmem:[#allocation19_spill] sm:$0xff] }
 0x454   : > { %13071 = vst [vmem:[#allocation115_spill] sm:$0xff] %v8628_v6  ;;  %v2285_v22 = vrot.slane %v13074_v59, %v13016_v44  ;;  %v2377_v54 = vrot.slane %v13074_v59, %v13077_v5  ;;  %v2381_v42 = vrot.slane %v13074_v59, %v13080_v1 }
 0x456   : > { %v2397_v40 = vrot.slane %v2377_v54, %v13077_v5 }
 0x457   : > { %v8610_v37 = vpop.permute.xlu1 %1965 }
 0x458   : > { %13062 = vst [vmem:[#allocation106_spill] sm:$0xff] %v8610_v37  ;;  %v2233_v37 = vrot.slane %v13074_v59, %v13073_v18  ;;  %v2268_v8 = vpop.permute.xlu0 %2267 }
 0x45c   : > { %v8614_v21 = vpop.permute.xlu1 %2033 }
 0x45d   : > { %13064 = vst [vmem:[#allocation108_spill] sm:$0xff] %v8614_v21  ;;  %v13075_v21 = vld [vmem:[#allocation20_spill] sm:$0xff] }
 0x45e   : > { %v2241_v2 = vrot.slane %v13075_v21, %v13073_v18  ;;  %v2289_v32 = vrot.slane %v13075_v21, %v13015_v45  ;;  %v2337_v50 = vrot.slane %v13075_v21, %v13078_v57 }
 0x460   : > { %v2261_v30 = vrot.slane %v2241_v2, %v13073_v18  ;;  %v2309_v60 = vrot.slane %v2289_v32, %v13015_v45  ;;  %v13079_v2 = vld [vmem:[#allocation24_spill] sm:$0xff]  ;;  %v2305_v32 = vrot.slane %v2285_v22, %v13015_v45 }
 0x461   : > { %v8618_v20 = vpop.permute.xlu1 %2067  ;;  %v2333_v13 = vrot.slane %v13074_v59, %v13079_v2  ;;  %v2341_v33 = vrot.slane %v13075_v21, %v13079_v2 }
 0x462   : > { %13066 = vst [vmem:[#allocation110_spill] sm:$0xff] %v8618_v20  ;;  %v2237_v20 = vrot.slane %v13074_v59, %v13076_v35  ;;  %v2272_v48 = vmul.f32 %v2268_v8, %v2261_v30  ;;  %v2412_v30 = vpop.permute.xlu0 %2411 }
 0x463   : > { %v2353_v2 = vrot.slane %v2333_v13, %v13078_v57  ;;  %v2361_v23 = vrot.slane %v2341_v33, %v13078_v57  ;;  %v2414_v13 = vmul.f32 %v2412_v30, %v2397_v40 }
 0x464   : > { %v2257_v19 = vrot.slane %v2237_v20, %v13073_v18 }
 0x466   : > { %v8622_v55 = vpop.permute.xlu1 %2135  ;;  %v2271_v53 = vmul.f32 %v2268_v8, %v2257_v19  ;;  %v2389_v19 = vrot.slane %v13075_v21, %v13080_v1 }
 0x467   : > { %13068 = vst [vmem:[#allocation112_spill] sm:$0xff] %v8622_v55  ;;  %v2281_v55 = vrot.slane %v13074_v59, %v13015_v45 }
 0x469   : > { %v2301_v12 = vrot.slane %v2281_v55, %v13015_v45  ;;  %v2293_v55 = vrot.slane %v13075_v21, %v13016_v44 }
 0x46b   : > { %v8626_v34 = vpop.permute.xlu1 %2169  ;;  %v2313_v22 = vrot.slane %v2293_v55, %v13015_v45 }
 0x46c   : > { %13070 = vst [vmem:[#allocation114_spill] sm:$0xff] %v8626_v34  ;;  %v2253_v34 = vrot.slane %v2233_v37, %v13073_v18  ;;  %v2385_v37 = vrot.slane %v13075_v21, %v13077_v5 }
 0x46e   : > { %v2270_v20 = vmul.f32 %v2268_v8, %v2253_v34  ;;  %v2405_v34 = vrot.slane %v2385_v37, %v13077_v5 }
 0x470   : > { %v8630_v16 = vpop.permute.xlu1 %2217  ;;  %v2416_v3 = vmul.f32 %v2412_v30, %v2405_v34  ;;  %v13092_v34 = vmov 16  }
 0x471   : > { %13072 = vst [vmem:[#allocation116_spill] sm:$0xff] %v8630_v16  ;;  %v2245_v16 = vrot.slane %v13075_v21, %v13076_v35  ;;  %v2329_v35 = vrot.slane %v13074_v59, %v13078_v57 }
 0x473   : > { %v2265_v9 = vrot.slane %v2245_v16, %v13073_v18  ;;  %v2349_v44 = vrot.slane %v2329_v35, %v13078_v57  ;;  %v2357_v16 = vrot.slane %v2337_v50, %v13078_v57 }
 0x475   : > { %v2227_v6 = vpop.permute.xlu1 %2226 }
 0x476   : > { %v2274_v18 = vadd.f32 %v2270_v20, %v2227_v6  ;;  %v2276_v54 = vadd.f32 %v2272_v48, %v2227_v6  ;;  %v2275_v37 = vadd.f32 %v2271_v53, %v2227_v6 }
 0x47a   : > { %v2316_v24 = vpop.permute.xlu1 %2315 }
 0x47b   : > { %v2318_v10 = vmul.f32 %v2316_v24, %v2301_v12  ;;  %v2320_v0 = vmul.f32 %v2316_v24, %v2309_v60  ;;  %v2273_v12 = vmul.f32 %v2268_v8, %v2265_v9  ;;  %v2319_v59 = vmul.f32 %v2316_v24, %v2305_v32 }
 0x47c   : > { %v2401_v60 = vrot.slane %v2381_v42, %v13077_v5  ;;  %v2321_v55 = vmul.f32 %v2316_v24, %v2313_v22  ;;  %v2409_v9 = vrot.slane %v2389_v19, %v13077_v5  ;;  %v8682_v24 = vld [vmem:[#allocation9] sm:$0xff]  ;;  %v13095_v22 = vmov 26  }
 0x47d   : > { %v2322_v35 = vadd.f32 %v2318_v10, %v2274_v18  ;;  %v2324_v50 = vadd.f32 %v2320_v0, %v2276_v54  ;;  %v2323_v45 = vadd.f32 %v2319_v59, %v2275_v37  ;;  %v2277_v11 = vadd.f32 %v2273_v12, %v2227_v6  ;;  %13081 = vst [vmem:[#allocation19_spill] sm:$0xff] %v8682_v24  ;;  %v13096_v19 = vld [vmem:[#allocation41_spill] sm:$0xff]  ;;  %v13098_v59 = vld [vmem:[#allocation28_spill] sm:$0xff] }
 0x47e   : > { %v2415_v48 = vmul.f32 %v2412_v30, %v2401_v60  ;;  %v13097_v12 = vld [vmem:[#allocation53_spill] sm:$0xff]  ;;  %v354_v60 = vmul.f32 %v8496_v31, %v13098_v59 }
 0x47f   : > { %v2364_v49 = vpop.permute.xlu1 %2363  ;;  %v2325_v18 = vadd.f32 %v2321_v55, %v2277_v11  ;;  %v13084_v11 = vmov 15   ;;  %v384_v54 = vsel %vm382_vm0, %v13097_v12, %v13096_v19  ;;  %v13101_v55 = vld [vmem:[#allocation55_spill] sm:$0xff] }
 0x480   : > { %v2366_v51 = vmul.f32 %v2364_v49, %v2349_v44  ;;  %v2367_v20 = vmul.f32 %v2364_v49, %v2353_v2  ;;  %v2368_v62 = vmul.f32 %v2364_v49, %v2357_v16  ;;  %v2369_v21 = vmul.f32 %v2364_v49, %v2361_v23  ;;  %v8704_v2 = vld [vmem:[#allocation2 + $0x20] sm:$0xff] }
 0x481   : > { %v2417_v44 = vmul.f32 %v2412_v30, %v2409_v9  ;;  %v13082_v49 = vmov 24   ;;  %v13083_v23 = vmov 17   ;;  %13091 = vst [vmem:[#allocation121_spill] sm:$0xff] %v8704_v2  ;;  %v13093_v16 = vmov 25  }
 0x482   : > { %v2372_v33 = vadd.f32 %v2368_v62, %v2324_v50  ;;  %v2370_v57 = vadd.f32 %v2366_v51, %v2322_v35  ;;  %v2371_v53 = vadd.f32 %v2367_v20, %v2323_v45  ;;  %v2373_v40 = vadd.f32 %v2369_v21, %v2325_v18  ;;  %v7100_v35 = vld [vmem:[#allocation2] sm:$0xf]  ;;  %v13100_v20 = vld [vmem:[#allocation42_spill] sm:$0xff] }
 0x483   : > { %v13085_v45 = vmov 7   ;;  %v13094_v30 = vmov 8   ;;  %v393_v37 = vadd.f32 %v384_v54, %v354_v60  ;;  %v356_v21 = vmul.f32 %v8504_v25, %v13098_v59  ;;  %v13107_v25 = vld [vmem:[#allocation25_spill] sm:$0xff]  ;;  %v13109_v60 = vld [vmem:[#allocation38_spill] sm:$0xff] }
 0x484   : > { %v2420_v8 = vadd.f32 %v2416_v3, %v2372_v33  ;;  %v2418_v42 = vadd.f32 %v2414_v13, %v2370_v57  ;;  %v2419_v10 = vadd.f32 %v2415_v48, %v2371_v53  ;;  %v2421_v62 = vadd.f32 %v2417_v44, %v2373_v40  ;;  %v13099_v13 = vld [vmem:[#allocation27_spill] sm:$0xff]  ;;  %v13104_v53 = vld [vmem:[#allocation30_spill] sm:$0xff] }
 0x485   : > { %v407_v50 = vmul.f32 %v7100_v35, %v13099_v13  ;;  %v386_v33 = vsel %vm382_vm0, %v13101_v55, %v13100_v20  ;;  %v409_v44 = vmul.f32 %v8510_v26, %v13099_v13  ;;  %v780_v26 = vsel %vm778_vm10, %v8371_v15, %v8373_v58 }
 0x486   : > { %2430 = vrot.lane.b32.xlu0 %v2420_v8, %s7328_s25  ;;  %2426 = vrot.lane.b32.xlu1 %v2418_v42, %s7328_s25  ;;  %v395_v8 = vadd.f32 %v386_v33, %v356_v21  ;;  %v13103_v42 = vld [vmem:[#allocation29_spill] sm:$0xff]  ;;  %v933_v21 = vsel %vm931_vm11, %v8379_v4, %v8381_v39 }
 0x487   : > { %v412_v48 = vadd.f32 %v407_v50, %v393_v37  ;;  %v8733_v31 = vsel %vm466_vm8, %v13104_v53, %v13103_v42  ;;  %v13110_v37 = vld [vmem:[#allocation31_spill] sm:$0xff] }
 0x488   : > { %13105 = vst [vmem:[#allocation53_spill] sm:$0xff] %v8733_v31  ;;  %v414_v40 = vadd.f32 %v409_v44, %v395_v8  ;;  %v8749_v35 = vsel %vm466_vm8, %v13110_v37, %v13109_v60  ;;  %v627_v44 = vsel %vm623_vm9, %v8367_v28, %v8345_v41 }
 0x489   : > { %13111 = vst [vmem:[#allocation42_spill] sm:$0xff] %v8749_v35 }
 0x48a   : > { %2428 = vrot.lane.b32.xlu1 %v2419_v10, %s7328_s25  ;;  %2488 = vperm.xlu0 %6866, %v8682_v24   ;;  %v476_v10 = vmul.f32 %v8733_v31, %v412_v48  ;;  %v478_v48 = vmul.f32 %v8749_v35, %v414_v40  ;;  %v782_v40 = vsel %vm778_vm10, %v8375_v27, %v8347_v46  ;;  %v13117_v35 = vmov 19   ;;  %v13118_v31 = vld [vmem:[#allocation76_spill] sm:$0xff] }
 0x48e   : > { %2432 = vrot.lane.b32.xlu1 %v2421_v62, %s7328_s25  ;;  %6868 = vset.pattern.permute.xlu0 %v13082_v49  ;;  %v625_v62 = vsel %vm623_vm9, %v8363_v47, %v8365_v38  ;;  %v13116_v49 = vld [vmem:[#allocation82_spill] sm:$0xff]  ;;  %s6632_s25 = sshll.u32 %s7581_s29, 5 }
 0x48f   : > { %2540 = vperm.xlu0 %6868, %v8682_v24   ;;  %s294_s23 = scalar_lea.vmem [#allocation12], %s6632_s25 }
 0x490   : > { %s6508_s27 = sshll.u32 %s294_s23, 4  ;;  %s12470_s27 = int_to_ptr.vmem [resolvable:$true] %s6508_s27 }
 0x492   : > { %2478 = vperm.xlu1 %6865, %v8682_v24  }
 0x493   : > { %6873 = vset.pattern.permute.xlu0 %v13083_v23 }
 0x496   : > { %6867 = vset.pattern.permute.xlu1 %v13084_v11 }
 0x497   : > { %2497 = vperm.xlu1 %6867, %v8682_v24  }
 0x49b   : > { %6869 = vset.pattern.permute.xlu1 %v13085_v45  ;;  %v13122_v45 = vld [vmem:[#allocation83_spill] sm:$0xff] }
 0x4f8   : > { %v8694_v57 = vpop.permute.xlu1 %2426 }
 0x4f9   : > { %13086 = vst [vmem:[#allocation20_spill] sm:$0xff] %v8694_v57 }
 0x4fc   : > { %v8696_v51 = vpop.permute.xlu1 %2428 }
 0x4fd   : > { %13087 = vst [vmem:[#allocation117_spill] sm:$0xff] %v8696_v51 }
 0x500   : > { %v8698_v3 = vpop.permute.xlu1 %2432 }
 0x501   : > { %13088 = vst [vmem:[#allocation118_spill] sm:$0xff] %v8698_v3 }
 0x50d   : > { %v8700_v6 = vpop.permute.xlu1 %2478 }
 0x50e   : > { %13089 = vst [vmem:[#allocation119_spill] sm:$0xff] %v8700_v6  ;;  %v13119_v6 = vld [vmem:[#allocation74_spill] sm:$0xff] }
 0x512   : > { %v8702_v0 = vpop.permute.xlu1 %2497 }
 0x513   : > { %13090 = vst [vmem:[#allocation120_spill] sm:$0xff] %v8702_v0  ;;  %v2500_v32 = vmul.f32 %v8704_v2, %v8702_v0 }
 0x515   : > { %2510 = vrot.lane.b32.xlu1 %v2500_v32, %s7348_s26  ;;  %v481_v32 = vadd.f32 %v476_v10, %v13107_v25  ;;  %v483_v10 = vadd.f32 %v478_v48, %v13107_v25  ;;  %v1172_v48 = vsel %vm1170_vm13, %v8387_v36, %v8385_v63 }
 0x517   : > { %v634_v33 = vadd.f32 %v625_v62, %v481_v32  ;;  %v636_v62 = vadd.f32 %v627_v44, %v483_v10  ;;  %v1019_v32 = vsel %vm1017_vm12, %v8355_v17, %v8343_v7  ;;  %v1327_v44 = vsel %vm1325_vm14, %v8397_v29, %v8401_v43 }
 0x519   : > { %2564 = vperm.xlu1 %6869, %v8682_v24   ;;  %v789_v8 = vadd.f32 %v780_v26, %v634_v33  ;;  %v935_v26 = vsel %vm931_vm11, %v8383_v52, %v8349_v14 }
 0x51d   : > { %6870 = vset.pattern.permute.xlu1 %v13092_v34  ;;  %v13123_v34 = vld [vmem:[#allocation84_spill] sm:$0xff] }
 0x51e   : > { %2573 = vperm.xlu1 %6870, %v8682_v24  }
 0x522   : > { %6871 = vset.pattern.permute.xlu1 %v13093_v16  ;;  %v13115_v16 = vld [vmem:[#allocation22_spill] sm:$0xff] }
 0x523   : > { %2611 = vperm.xlu1 %6871, %v8682_v24  }
 0x527   : > { %6872 = vset.pattern.permute.xlu1 %v13094_v30 }
 0x528   : > { %2659 = vperm.xlu1 %6872, %v8682_v24  }
 0x52c   : > { %6874 = vset.pattern.permute.xlu1 %v13095_v22  ;;  %v942_v22 = vadd.f32 %v933_v21, %v789_v8  ;;  %v13112_v21 = vmov 18  }
 0x52e   : > { %v1028_v33 = vadd.f32 %v1019_v32, %v942_v22  ;;  %v1021_v22 = vsel %vm1017_vm12, %v8359_v61, %v8341_v56 }
 0x530   : > { %v1181_v10 = vadd.f32 %v1172_v48, %v1028_v33  ;;  %v1329_v33 = vsel %vm1325_vm14, %v13119_v6, %v13118_v31  ;;  %v13120_v48 = vld [vmem:[#allocation96_spill] sm:$0xff] }
 0x587   : > { %v8726_v9 = vpop.permute.xlu1 %2510 }
 0x588   : > { %13102 = vst [vmem:[#allocation41_spill] sm:$0xff] %v8726_v9  ;;  %v13121_v9 = vld [vmem:[#allocation100_spill] sm:$0xff] }
 0x589   : > { %v1633_v23 = vsel %vm1631_vm1, %v13121_v9, %v13120_v48 }
 0x594   : > { %v8735_v18 = vpop.permute.xlu1 %2564 }
 0x595   : > { %13106 = vst [vmem:[#allocation28_spill] sm:$0xff] %v8735_v18 }
 0x599   : > { %v8744_v54 = vpop.permute.xlu1 %2573 }
 0x59a   : > { %13108 = vst [vmem:[#allocation27_spill] sm:$0xff] %v8744_v54  ;;  %v2576_v50 = vmul.f32 %v8704_v2, %v8744_v54  ;;  %v13126_v54 = vmov 22  }
 0x59c   : > { %2586 = vrot.lane.b32.xlu0 %v2576_v50, %s7348_s26  ;;  %v791_v50 = vadd.f32 %v782_v40, %v636_v62  ;;  %v13113_v40 = vld [vmem:[#allocation72_spill] sm:$0xff]  ;;  %v13114_v62 = vld [vmem:[#allocation73_spill] sm:$0xff] }
 0x59d   : > { %v1174_v32 = vsel %vm1170_vm13, %v13114_v62, %v13113_v40 }
 0x59e   : > { %v944_v8 = vadd.f32 %v935_v26, %v791_v50  ;;  %v1480_v26 = vsel %vm1478_vm15, %v13116_v49, %v13115_v16 }
 0x5a0   : > { %2668 = vperm.xlu0 %6873, %v8682_v24   ;;  %v1030_v50 = vadd.f32 %v1021_v22, %v944_v8  ;;  %v1482_v8 = vsel %vm1478_vm15, %v13123_v34, %v13122_v45  ;;  %v13124_v22 = vld [vmem:[#allocation97_spill] sm:$0xff] }
 0x5a2   : > { %v1183_v11 = vadd.f32 %v1174_v32, %v1030_v50 }
 0x5a4   : > { %6876 = vset.pattern.permute.xlu0 %v13112_v21  ;;  %v1336_v21 = vadd.f32 %v1327_v44, %v1181_v10  ;;  %v1338_v44 = vadd.f32 %v1329_v33, %v1183_v11 }
 0x5a5   : > { %2763 = vperm.xlu0 %6876, %v8682_v24  }
 0x5a6   : > { %v1489_v30 = vadd.f32 %v1480_v26, %v1336_v21  ;;  %v1491_v0 = vadd.f32 %v1482_v8, %v1338_v44  ;;  %v13127_v21 = vmov 12  }
 0x5a8   : > { %v1642_v10 = vadd.f32 %v1633_v23, %v1489_v30 }
 0x5a9   : > { %6879 = vset.pattern.permute.xlu0 %v13117_v35  ;;  %v13125_v35 = vld [vmem:[#allocation103_spill] sm:$0xff] }
 0x5aa   : > { %2858 = vperm.xlu0 %6879, %v8682_v24   ;;  %v1635_v18 = vsel %vm1631_vm1, %v13125_v35, %v13124_v22  ;;  %v1655_v3 = vsel %vm1654_vm2, %v1642_v10, 0.0 }
 0x5ab   : > { %v1644_v32 = vadd.f32 %v1635_v18, %v1491_v0  ;;  %v1656_v26 = vrot.slane %v1655_v3, 4 }
 0x5ad   : > { %v1669_v50 = vsel %vm1654_vm2, %v1644_v32, 0.0  ;;  %v1657_v11 = vadd.f32 %v1656_v26, %v1655_v3 }
 0x5ae   : > { %6882 = vset.pattern.permute.xlu0 %v13126_v54  ;;  %v1670_v23 = vrot.slane %v1669_v50, 4 }
 0x5af   : > { %3133 = vperm.xlu0 %6882, %v8682_v24   ;;  %v1658_v30 = vrot.slane %v1657_v11, 2 }
 0x5b0   : > { %v1671_v33 = vadd.f32 %v1670_v23, %v1669_v50 }
 0x5b1   : > { %v1659_v57 = vadd.f32 %v1658_v30, %v1657_v11 }
 0x5b2   : > { %v1672_v51 = vrot.slane %v1671_v33, 2 }
 0x5b3   : > { %6887 = vset.pattern.permute.xlu0 %v13127_v21  ;;  %v1660_v1 = vrot.slane %v1659_v57, 1 }
 0x5b4   : > { %v1673_v5 = vadd.f32 %v1672_v51, %v1671_v33 }
 0x5b5   : > { %v1661_v54 = vadd.f32 %v1660_v1, %v1659_v57 }
 0x5b6   : > { %v1674_v8 = vrot.slane %v1673_v5, 1 }
 0x5b7   : > { %v1686_v44 = vmul.f32 0.25, %v1661_v54 }
 0x5b8   : > { %v1675_v24 = vadd.f32 %v1674_v8, %v1673_v5  ;;  %v13130_v8 = vld [vmem:[#allocation85_spill] sm:$0xff] }
 0x5b9   : > { %v8811_v2 = vsub.f32 %v1642_v10, %v1686_v44  ;;  %v13128_v10 = vld [vmem:[#allocation77_spill] sm:$0xff]  ;;  %v353_v44 = vmul.f32 %v13130_v8, %v13098_v59 }
 0x5ba   : > { %v1688_v0 = vmul.f32 0.25, %v1675_v24  ;;  %v357_v24 = vmul.f32 %v13128_v10, %v13098_v59 }
 0x5bb   : > { %v1696_v18 = vmul.f32 %v8811_v2, %v8811_v2 }
 0x5bc   : > { %v8815_v21 = vsub.f32 %v1644_v32, %v1688_v0  ;;  %v396_v11 = vadd.f32 %v13100_v20, %v357_v24  ;;  %v13129_v32 = vld [vmem:[#allocation50_spill] sm:$0xff]  ;;  %v13131_v0 = vld [vmem:[#allocation91_spill] sm:$0xff]  ;;  %v385_v20 = vsel %vm382_vm0, %v13096_v19, %v13101_v55 }
 0x5bd   : > { %v1707_v3 = vsel %vm1654_vm2, %v1696_v18, 0.0  ;;  %v383_v23 = vsel %vm382_vm0, %v13129_v32, %v13097_v12  ;;  %v410_v18 = vmul.f32 %v13131_v0, %v13099_v13  ;;  %v13133_v12 = vld [vmem:[#allocation87_spill] sm:$0xff] }
 0x5be   : > { %v1698_v26 = vmul.f32 %v8815_v21, %v8815_v21  ;;  %v1708_v50 = vrot.slane %v1707_v3, 4 }
 0x5c0   : > { %v1721_v51 = vsel %vm1654_vm2, %v1698_v26, 0.0  ;;  %v1709_v1 = vadd.f32 %v1708_v50, %v1707_v3  ;;  %v392_v3 = vadd.f32 %v383_v23, %v353_v44  ;;  %v415_v26 = vadd.f32 %v410_v18, %v396_v11  ;;  %v13134_v11 = vld [vmem:[#allocation89_spill] sm:$0xff] }
 0x5c1   : > { %v1722_v57 = vrot.slane %v1721_v51, 4  ;;  %v408_v23 = vmul.f32 %v13134_v11, %v13099_v13 }
 0x5c2   : > { %v1710_v54 = vrot.slane %v1709_v1, 2  ;;  %v479_v32 = vmul.f32 %v13109_v60, %v415_v26 }
 0x5c3   : > { %v1723_v5 = vadd.f32 %v1722_v57, %v1721_v51  ;;  %v13132_v57 = vld [vmem:[#allocation86_spill] sm:$0xff] }
 0x5c4   : > { %v1711_v30 = vadd.f32 %v1710_v54, %v1709_v1  ;;  %v406_v10 = vmul.f32 %v13132_v57, %v13099_v13  ;;  %v355_v1 = vmul.f32 %v13133_v12, %v13098_v59  ;;  %v484_v44 = vadd.f32 %v479_v32, %v13107_v25  ;;  %v13138_v12 = vld [vmem:[#allocation71_spill] sm:$0xff] }
 0x5c5   : > { %v1724_v33 = vrot.slane %v1723_v5, 2  ;;  %v8847_v59 = vsel %vm466_vm8, %v13103_v42, %v13110_v37  ;;  %v626_v37 = vsel %vm623_vm9, %v8365_v38, %v8367_v28  ;;  %v934_v38 = vsel %vm931_vm11, %v8381_v39, %v8383_v52 }
 0x5c6   : > { %v1712_v50 = vrot.slane %v1711_v30, 1  ;;  %v411_v54 = vadd.f32 %v406_v10, %v392_v3  ;;  %v394_v24 = vadd.f32 %v385_v20, %v355_v1  ;;  %v637_v19 = vadd.f32 %v8345_v41, %v484_v44  ;;  %13135 = vst [vmem:[#allocation55_spill] sm:$0xff] %v8847_v59 }
 0x5c7   : > { %v1725_v51 = vadd.f32 %v1724_v33, %v1723_v5 }
 0x5c8   : > { %v1713_v8 = vadd.f32 %v1712_v50, %v1711_v30  ;;  %v475_v5 = vmul.f32 %v13104_v53, %v411_v54  ;;  %v413_v33 = vadd.f32 %v408_v23, %v394_v24  ;;  %v13136_v30 = vld [vmem:[#allocation63_spill] sm:$0xff]  ;;  %v792_v3 = vadd.f32 %v8347_v46, %v637_v19  ;;  %v13141_v23 = vld [vmem:[#allocation64_spill] sm:$0xff] }
 0x5c9   : > { %v1726_v0 = vrot.slane %v1725_v51, 1  ;;  %v624_v13 = vsel %vm623_vm9, %v13136_v30, %v8363_v47  ;;  %v932_v47 = vsel %vm931_vm11, %v13138_v12, %v8379_v4  ;;  %v1326_v52 = vsel %vm1325_vm14, %v13141_v23, %v8397_v29 }
 0x5ca   : > { %v1736_v18 = vmul.f32 0.25, %v1713_v8  ;;  %v480_v55 = vadd.f32 %v475_v5, %v13107_v25  ;;  %v477_v26 = vmul.f32 %v8847_v59, %v413_v33  ;;  %v945_v20 = vadd.f32 %v8349_v14, %v792_v3 }
 0x5cb   : > { %v1727_v57 = vadd.f32 %v1726_v0, %v1725_v51  ;;  %v13137_v51 = vld [vmem:[#allocation70_spill] sm:$0xff]  ;;  %v13140_v0 = vld [vmem:[#allocation48_spill] sm:$0xff]  ;;  %v1020_v5 = vsel %vm1017_vm12, %v8343_v7, %v8359_v61  ;;  %v1328_v29 = vsel %vm1325_vm14, %v8401_v43, %v13119_v6  ;;  %v1634_v6 = vsel %vm1631_vm1, %v13120_v48, %v13125_v35 }
 0x5cc   : > { %v1741_v50 = vadd.f32 1e-06, %v1736_v18  ;;  %v779_v41 = vsel %vm778_vm10, %v13137_v51, %v8371_v15  ;;  %v633_v42 = vadd.f32 %v624_v13, %v480_v55  ;;  %v482_v46 = vadd.f32 %v477_v26, %v13107_v25  ;;  %v13139_v25 = vld [vmem:[#allocation51_spill] sm:$0xff] }
 0x5cd   : > { %v1738_v10 = vmul.f32 0.25, %v1727_v57  ;;  %v781_v15 = vsel %vm778_vm10, %v8373_v58, %v8375_v27  ;;  %v1031_v32 = vadd.f32 %v8341_v56, %v945_v20  ;;  %v1018_v8 = vsel %vm1017_vm12, %v13139_v25, %v8355_v17  ;;  %v13147_v20 = vld [vmem:[#allocation98_spill] sm:$0xff] }
 0x5ce   : > { %v788_v1 = vadd.f32 %v779_v41, %v633_v42  ;;  %6997 = vrsqrt.f32 %v1741_v50  ;;  %v635_v24 = vadd.f32 %v626_v37, %v482_v46  ;;  %v1171_v58 = vsel %vm1170_vm13, %v13140_v0, %v8387_v36  ;;  %v13142_v36 = vld [vmem:[#allocation21_spill] sm:$0xff] }
 0x5cf   : > { %v1743_v54 = vadd.f32 1e-06, %v1738_v10  ;;  %v1184_v4 = vadd.f32 %v13113_v40, %v1031_v32  ;;  %v1173_v17 = vsel %vm1170_vm13, %v8385_v63, %v13114_v62  ;;  %v1479_v33 = vsel %vm1478_vm15, %v13142_v36, %v13116_v49  ;;  %v8903_v62 = vpop.permute.xlu0 %2430  ;;  %v13145_v50 = vld [vmem:[#allocation105_spill] sm:$0xff] }
 0x5d0   : > { %v941_v14 = vadd.f32 %v932_v47, %v788_v1  ;;  %v790_v28 = vadd.f32 %v781_v15, %v635_v24  ;;  %v1481_v49 = vsel %vm1478_vm15, %v13115_v16, %v13123_v34  ;;  %v13148_v1 = vld [vmem:[#allocation17_spill] sm:$0xff] }
 0x5d1   : > { %6999 = vrsqrt.f32 %v1743_v54  ;;  %v1339_v56 = vadd.f32 %v13118_v31, %v1184_v4 }
 0x5d2   : > { %v943_v27 = vadd.f32 %v934_v38, %v790_v28  ;;  %v1027_v11 = vadd.f32 %v1018_v8, %v941_v14  ;;  %v13149_v38 = vld [vmem:[#allocation107_spill] sm:$0xff] }
 0x5d3   : > { %v1492_v40 = vadd.f32 %v13122_v45, %v1339_v56  ;;  %v13143_v45 = vld [vmem:[#allocation95_spill] sm:$0xff]  ;;  %v8916_v30 = vpop.permute.xlu0 %2488 }
 0x5d4   : > { %v1180_v39 = vadd.f32 %v1171_v58, %v1027_v11  ;;  %v1029_v31 = vadd.f32 %v1020_v5, %v943_v27  ;;  %v1632_v7 = vsel %vm1631_vm1, %v13143_v45, %v13121_v9  ;;  %13144 = vst [vmem:[#allocation29_spill] sm:$0xff] %v8916_v30  ;;  %v13150_v58 = vld [vmem:[#allocation121_spill] sm:$0xff]  ;;  %v13151_v11 = vld [vmem:[#allocation52_spill] sm:$0xff]  ;;  %v13155_v45 = vld [vmem:[#allocation19_spill] sm:$0xff] }
 0x5d5   : > { %v8895_v18 = vadd.f32 %v13124_v22, %v1492_v40 }
 0x5d6   : > { %v1335_v44 = vadd.f32 %v1326_v52, %v1180_v39  ;;  %v1182_v61 = vadd.f32 %v1173_v17, %v1029_v31  ;;  %v13152_v52 = vld [vmem:[#allocation99_spill] sm:$0xff] }
 0x5d7   : > { %v1677_v43 = vsel %vm1676_vm3, %v8895_v18, 0.0  ;;  %v8926_v48 = vpop.permute.xlu0 %2540 }
 0x5d8   : > { %v1488_v63 = vadd.f32 %v1479_v33, %v1335_v44  ;;  %v1337_v22 = vadd.f32 %v1328_v29, %v1182_v61  ;;  %v1678_v3 = vrot.slane %v1677_v43, 4  ;;  %13146 = vst [vmem:[#allocation25_spill] sm:$0xff] %v8926_v48  ;;  %v13153_v33 = vld [vmem:[#allocation101_spill] sm:$0xff]  ;;  %v13154_v44 = vld [vmem:[#allocation23_spill] sm:$0xff] }
 0x5da   : > { %v8908_v19 = vadd.f32 %v1632_v7, %v1488_v63  ;;  %v1490_v9 = vadd.f32 %v1481_v49, %v1337_v22  ;;  %v1679_v41 = vadd.f32 %v1678_v3, %v1677_v43 }
 0x5db   : > { %v6998_v57 = vpop.eup %6997 }
 0x5dc   : > { %v1751_v55 = vmul.f32 %v6998_v57, %v8811_v2  ;;  %v1647_v34 = vsel %vm1646_vm4, %v8908_v19, 0.0  ;;  %v8920_v16 = vadd.f32 %v1634_v6, %v1490_v9  ;;  %v1680_v47 = vrot.slane %v1679_v41, 2  ;;  %v13156_v9 = vld [vmem:[#allocation102_spill] sm:$0xff] }
 0x5dd   : > { %v1648_v51 = vrot.slane %v1647_v34, 4 }
 0x5de   : > { %v7000_v13 = vpop.eup %6999  ;;  %v1760_v10 = vmul.f32 %v13145_v50, %v1751_v55  ;;  %v1662_v35 = vsel %vm1654_vm2, %v8920_v16, 0.0  ;;  %v1681_v14 = vadd.f32 %v1680_v47, %v1679_v41  ;;  %v13159_v47 = vld [vmem:[#allocation109_spill] sm:$0xff] }
 0x5df   : > { %v1753_v26 = vmul.f32 %v7000_v13, %v8815_v21  ;;  %v1649_v37 = vadd.f32 %v1648_v51, %v1647_v34  ;;  %v1663_v12 = vrot.slane %v1662_v35, 4  ;;  %v13157_v13 = vld [vmem:[#allocation36_spill] sm:$0xff]  ;;  %v13158_v34 = vmov 9  }
 0x5e0   : > { %v1769_v42 = vadd.f32 %v13147_v20, %v1760_v10  ;;  %v1682_v0 = vrot.slane %v1681_v14, 1 }
 0x5e1   : > { %v1762_v2 = vmul.f32 %v13145_v50, %v1753_v26  ;;  %v1650_v15 = vrot.slane %v1649_v37, 2  ;;  %v1664_v24 = vadd.f32 %v1663_v12, %v1662_v35 }
 0x5e2   : > { %v1785_v21 = vrot.slane %v1769_v42, %v13148_v1  ;;  %v1819_v56 = vrot.slane %v1769_v42, %v13151_v11  ;;  %v1683_v17 = vadd.f32 %v1682_v0, %v1681_v14  ;;  %v1853_v29 = vrot.slane %v1769_v42, %v13154_v44 }
 0x5e3   : > { %v1771_v46 = vadd.f32 %v13147_v20, %v1762_v2  ;;  %v1651_v25 = vadd.f32 %v1650_v15, %v1649_v37  ;;  %v1665_v8 = vrot.slane %v1664_v24, 2  ;;  %v1887_v3 = vrot.slane %v1769_v42, %v13157_v13 }
 0x5e4   : > { %v1803_v28 = vmul.f32 %v13149_v38, %v1785_v21  ;;  %v1837_v31 = vmul.f32 %v13153_v33, %v1819_v56  ;;  %v1689_v49 = vmul.f32 0.25, %v1683_v17  ;;  %v1871_v55 = vmul.f32 %v13156_v9, %v1853_v29 }
 0x5e5   : > { %v1793_v32 = vrot.slane %v1771_v46, %v13148_v1  ;;  %v1652_v40 = vrot.slane %v1651_v25, 1  ;;  %v1666_v5 = vadd.f32 %v1665_v8, %v1664_v24  ;;  %v1827_v36 = vrot.slane %v1771_v46, %v13151_v11 }
 0x5e6   : > { %v1808_v39 = vadd.f32 %v1803_v28, %v13152_v52  ;;  %v1861_v6 = vrot.slane %v1771_v46, %v13154_v44  ;;  %v8960_v2 = vsub.f32 %v8895_v18, %v1689_v49  ;;  %v1895_v12 = vrot.slane %v1771_v46, %v13157_v13 }
 0x5e7   : > { %v1805_v23 = vmul.f32 %v13149_v38, %v1793_v32  ;;  %v1653_v63 = vadd.f32 %v1652_v40, %v1651_v25  ;;  %v1667_v57 = vrot.slane %v1666_v5, 1  ;;  %v1839_v43 = vmul.f32 %v13153_v33, %v1827_v36 }
 0x5e8   : > { %v1842_v61 = vadd.f32 %v1837_v31, %v1808_v39  ;;  %v1873_v37 = vmul.f32 %v13156_v9, %v1861_v6  ;;  %v1905_v42 = vmul.f32 %v13159_v47, %v1887_v3  ;;  %v13160_v24 = vmov 27  }
 0x5e9   : > { %v1810_v7 = vadd.f32 %v1805_v23, %v13152_v52  ;;  %v1685_v41 = vmul.f32 0.25, %v1653_v63  ;;  %v1668_v35 = vadd.f32 %v1667_v57, %v1666_v5  ;;  %v1699_v18 = vmul.f32 %v8960_v2, %v8960_v2 }
 0x5ea   : > { %v1876_v10 = vadd.f32 %v1871_v55, %v1842_v61  ;;  %v1907_v28 = vmul.f32 %v13159_v47, %v1895_v12  ;;  %v13161_v56 = vmov 10   ;;  %v13162_v36 = vmov 20  }
 0x5eb   : > { %v1844_v26 = vadd.f32 %v1839_v43, %v1810_v7  ;;  %v8968_v14 = vsub.f32 %v8908_v19, %v1685_v41  ;;  %v1687_v32 = vmul.f32 0.25, %v1668_v35  ;;  %v13163_v61 = vmov 21  }
 0x5ec   : > { %v1910_v15 = vadd.f32 %v1905_v42, %v1876_v10  ;;  %v13164_v6 = vmov 23   ;;  %v13165_v12 = vmov 28  }
 0x5ed   : > { %v1878_v21 = vadd.f32 %v1873_v37, %v1844_v26  ;;  %v1695_v46 = vmul.f32 %v8968_v14, %v8968_v14  ;;  %v8977_v0 = vsub.f32 %v8920_v16, %v1687_v32 }
 0x5ee   : > { %v1920_v8 = vmul.f32 0.70710677, %v1910_v15  ;;  %v1915_v41 = vmul.f32 0.5, %v1910_v15  ;;  %v13166_v15 = vmov 11  }
 0x5ef   : > { %v1912_v25 = vadd.f32 %v1907_v28, %v1878_v21  ;;  %v1700_v39 = vsel %vm1646_vm4, %v1695_v46, 0.0  ;;  %v1697_v40 = vmul.f32 %v8977_v0, %v8977_v0 }
 0x5f0   : > { %7001 = verf.f32 %v1920_v8  ;;  %v1701_v5 = vrot.slane %v1700_v39, 4 }
 0x5f1   : > { %v1922_v19 = vmul.f32 0.70710677, %v1912_v25  ;;  %v1714_v16 = vsel %vm1654_vm2, %v1697_v40, 0.0 }
 0x5f2   : > { %v1702_v31 = vadd.f32 %v1701_v5, %v1700_v39  ;;  %v1715_v29 = vrot.slane %v1714_v16, 4  ;;  %v13167_v39 = vld [vmem:[#allocation106_spill] sm:$0xff] }
 0x5f3   : > { %7003 = verf.f32 %v1922_v19 }
 0x5f4   : > { %v1703_v57 = vrot.slane %v1702_v31, 2  ;;  %v1716_v49 = vadd.f32 %v1715_v29, %v1714_v16 }
 0x5f6   : > { %v1704_v26 = vadd.f32 %v1703_v57, %v1702_v31  ;;  %v1717_v10 = vrot.slane %v1716_v49, 2  ;;  %v13168_v31 = vmov 29  }
 0x5f8   : > { %v1705_v42 = vrot.slane %v1704_v26, 1  ;;  %v1718_v21 = vadd.f32 %v1717_v10, %v1716_v49  ;;  %v13171_v10 = vmov 30  }
 0x5fa   : > { %v1706_v46 = vadd.f32 %v1705_v42, %v1704_v26 }
 0x5fc   : > { %v1735_v5 = vmul.f32 0.25, %v1706_v46 }
 0x5fd   : > { %v7002_v63 = vpop.eup %7001 }
 0x5fe   : > { %v1930_v55 = vadd.f32 1.0, %v7002_v63  ;;  %v1740_v57 = vadd.f32 1e-06, %v1735_v5  ;;  %v13174_v5 = vld [vmem:[#allocation110_spill] sm:$0xff] }
 0x600   : > { %v7004_v3 = vpop.eup %7003  ;;  %v8992_v37 = vmul.f32 %v1930_v55, %v1915_v41  ;;  %v13170_v55 = vld [vmem:[#allocation111_spill] sm:$0xff] }
 0x601   : > { %v1932_v35 = vadd.f32 1.0, %v7004_v3 }
 0x602   : > { %v1951_v8 = vrot.slane %v8992_v37, %v13148_v1  ;;  %v1985_v16 = vrot.slane %v8992_v37, %v13151_v11  ;;  %v2019_v26 = vrot.slane %v8992_v37, %v13154_v44 }
 0x604   : > { %v1969_v40 = vmul.f32 %v13167_v39, %v1951_v8  ;;  %v2003_v3 = vmul.f32 %v13170_v55, %v1985_v16  ;;  %v2053_v8 = vrot.slane %v8992_v37, %v13157_v13 }
 0x60e   : > { %v8932_v54 = vpop.permute.xlu0 %2586 }
 0x61b   : > { %v8936_v4 = vpop.permute.xlu0 %2668 }
 0x61c   : > { %v2671_v27 = vmul.f32 %v13150_v58, %v8936_v4 }
 0x61e   : > { %2681 = vrot.lane.b32.xlu1 %v2671_v27, %s7348_s26  ;;  %v1728_v27 = vsel %vm1676_vm3, %v1699_v18, 0.0  ;;  %v1917_v18 = vmul.f32 0.5, %v1912_v25 }
 0x61f   : > { %v1729_v23 = vrot.slane %v1728_v27, 4 }
 0x620   : > { %v8949_v22 = vpop.permute.xlu0 %2763  ;;  %v8996_v28 = vmul.f32 %v1932_v35, %v1917_v18 }
 0x621   : > { %v2766_v51 = vmul.f32 %v13150_v58, %v8949_v22  ;;  %v1730_v17 = vadd.f32 %v1729_v23, %v1728_v27  ;;  %v1719_v27 = vrot.slane %v1718_v21, 1 }
 0x622   : > { %2706 = vperm.xlu1 %6874, %v13155_v45   ;;  %v1959_v23 = vrot.slane %v8996_v28, %v13148_v1 }
 0x623   : > { %v1731_v7 = vrot.slane %v1730_v17, 2 }
 0x624   : > { %v1971_v29 = vmul.f32 %v13167_v39, %v1959_v23 }
 0x625   : > { %v1732_v43 = vadd.f32 %v1731_v7, %v1730_v17  ;;  %v1720_v17 = vadd.f32 %v1719_v27, %v1718_v21  ;;  %v13169_v7 = vld [vmem:[#allocation104_spill] sm:$0xff]  ;;  %v2027_v21 = vrot.slane %v8996_v28, %v13154_v44 }
 0x626   : > { %6875 = vset.pattern.permute.xlu1 %v13158_v34  ;;  %v1974_v63 = vadd.f32 %v1969_v40, %v13169_v7  ;;  %v2061_v40 = vrot.slane %v8996_v28, %v13157_v13 }
 0x627   : > { %2754 = vperm.xlu1 %6875, %v13155_v45   ;;  %v1737_v49 = vmul.f32 0.25, %v1720_v17  ;;  %v2071_v17 = vmul.f32 %v13174_v5, %v2053_v8 }
 0x628   : > { %v2008_v41 = vadd.f32 %v2003_v3, %v1974_v63  ;;  %v13177_v3 = vld [vmem:[#allocation54_spill] sm:$0xff] }
 0x629   : > { %v1742_v35 = vadd.f32 1e-06, %v1737_v49  ;;  %v13176_v49 = vmov 14  }
 0x62b   : > { %2776 = vrot.lane.b32.xlu1 %v2766_v51, %s7348_s26  ;;  %v1733_v51 = vrot.slane %v1732_v43, 1 }
 0x62c   : > { %6877 = vset.pattern.permute.xlu1 %v13160_v24 }
 0x62d   : > { %v1734_v32 = vadd.f32 %v1733_v51, %v1732_v43  ;;  %v1993_v43 = vrot.slane %v8996_v28, %v13151_v11  ;;  %v1976_v51 = vadd.f32 %v1971_v29, %v13169_v7  ;;  %v9033_v29 = vpop.permute.xlu0 %2858 }
 0x62f   : > { %2801 = vperm.xlu1 %6877, %v13155_v45   ;;  %v1739_v19 = vmul.f32 0.25, %v1734_v32  ;;  %v2005_v42 = vmul.f32 %v13170_v55, %v1993_v43  ;;  %v13172_v32 = vld [vmem:[#allocation108_spill] sm:$0xff] }
 0x630   : > { %v2037_v18 = vmul.f32 %v13172_v32, %v2019_v26  ;;  %v2039_v23 = vmul.f32 %v13172_v32, %v2027_v21  ;;  %v2121_v26 = vrot.slane %v8992_v37, %v13177_v3 }
 0x631   : > { %v1744_v25 = vadd.f32 1e-06, %v1739_v19  ;;  %v2010_v46 = vadd.f32 %v2005_v42, %v1976_v51  ;;  %v13173_v19 = vmov 13   ;;  %v2073_v51 = vmul.f32 %v13174_v5, %v2061_v40  ;;  %v9043_v8 = vpop.permute.xlu0 %3133 }
 0x632   : > { %v2042_v27 = vadd.f32 %v2037_v18, %v2008_v41 }
 0x633   : > { %6878 = vset.pattern.permute.xlu1 %v13161_v56  ;;  %7005 = vrsqrt.f32 %v1744_v25  ;;  %v13175_v25 = vld [vmem:[#allocation18_spill] sm:$0xff]  ;;  %v2044_v63 = vadd.f32 %v2039_v23, %v2010_v46  ;;  %v2129_v23 = vrot.slane %v8996_v28, %v13177_v3 }
 0x634   : > { %2849 = vperm.xlu1 %6878, %v13155_v45   ;;  %7007 = vrsqrt.f32 %v1740_v57  ;;  %v2087_v16 = vrot.slane %v8992_v37, %v13175_v25  ;;  %v2076_v57 = vadd.f32 %v2071_v17, %v2042_v27  ;;  %v2095_v41 = vrot.slane %v8996_v28, %v13175_v25  ;;  %v13179_v17 = vld [vmem:[#allocation112_spill] sm:$0xff] }
 0x635   : > { %7009 = vrsqrt.f32 %v1742_v35  ;;  %v13178_v35 = vld [vmem:[#allocation113_spill] sm:$0xff]  ;;  %v2078_v21 = vadd.f32 %v2073_v51, %v2044_v63  ;;  %v3140_v63 = vmul.f32 %v13150_v58, %v9043_v8 }
 0x636   : > { %v2105_v42 = vmul.f32 %v13178_v35, %v2087_v16  ;;  %v2107_v40 = vmul.f32 %v13178_v35, %v2095_v41  ;;  %v13181_v16 = vmov 32  }
 0x638   : > { %6880 = vset.pattern.permute.xlu1 %v13162_v36  ;;  %v2110_v18 = vadd.f32 %v2105_v42, %v2076_v57  ;;  %v2112_v57 = vadd.f32 %v2107_v40, %v2078_v21 }
 0x639   : > { %2943 = vperm.xlu1 %6880, %v13155_v45  }
 0x63d   : > { %6881 = vset.pattern.permute.xlu1 %v13163_v61 }
 0x63e   : > { %3038 = vperm.xlu1 %6881, %v13155_v45  }
 0x640   : > { %v7006_v43 = vpop.eup %7005 }
 0x641   : > { %v1754_v46 = vmul.f32 %v7006_v43, %v8960_v2  ;;  %v7008_v27 = vpop.eup %7007 }
 0x642   : > { %6883 = vset.pattern.permute.xlu1 %v13164_v6  ;;  %v1750_v43 = vmul.f32 %v7008_v27, %v8968_v14  ;;  %v7010_v42 = vpop.eup %7009 }
 0x643   : > { %3228 = vperm.xlu1 %6883, %v13155_v45   ;;  %v1763_v51 = vmul.f32 %v13145_v50, %v1754_v46  ;;  %v1752_v14 = vmul.f32 %v7010_v42, %v8977_v0 }
 0x645   : > { %v1772_v46 = vadd.f32 %v13147_v20, %v1763_v51  ;;  %v13187_v51 = vld [vmem:[#allocation20_spill] sm:$0xff] }
 0x647   : > { %6884 = vset.pattern.permute.xlu1 %v13165_v12  ;;  %v13182_v12 = vld [vmem:[#allocation114_spill] sm:$0xff]  ;;  %v1797_v0 = vrot.slane %v1772_v46, %v13148_v1 }
 0x648   : > { %2891 = vperm.xlu1 %6884, %v13155_v45  }
 0x64c   : > { %6885 = vset.pattern.permute.xlu1 %v13166_v15 }
 0x64d   : > { %2934 = vperm.xlu1 %6885, %v13155_v45  }
 0x651   : > { %6886 = vset.pattern.permute.xlu1 %v13168_v31 }
 0x652   : > { %2981 = vperm.xlu1 %6886, %v13155_v45  }
 0x656   : > { %6888 = vset.pattern.permute.xlu1 %v13171_v10  ;;  %v13180_v10 = vld [vmem:[#allocation24_spill] sm:$0xff] }
 0x657   : > { %3076 = vperm.xlu1 %6888, %v13155_v45   ;;  %v2163_v41 = vrot.slane %v8996_v28, %v13180_v10 }
 0x659   : > { %v2175_v27 = vmul.f32 %v13182_v12, %v2163_v41 }
 0x65b   : > { %6889 = vset.pattern.permute.xlu1 %v13173_v19  ;;  %v2155_v19 = vrot.slane %v8992_v37, %v13180_v10 }
 0x65c   : > { %3124 = vperm.xlu1 %6889, %v13155_v45  }
 0x65d   : > { %v2173_v56 = vmul.f32 %v13182_v12, %v2155_v19 }
 0x660   : > { %6891 = vset.pattern.permute.xlu1 %v13176_v49  ;;  %v2139_v49 = vmul.f32 %v13179_v17, %v2121_v26  ;;  %v2141_v26 = vmul.f32 %v13179_v17, %v2129_v23  ;;  %v13185_v23 = vld [vmem:[#allocation115_spill] sm:$0xff] }
 0x661   : > { %3219 = vperm.xlu1 %6891, %v13155_v45  }
 0x662   : > { %v2144_v2 = vadd.f32 %v2139_v49, %v2110_v18  ;;  %v2146_v21 = vadd.f32 %v2141_v26, %v2112_v57  ;;  %v13184_v49 = vmov 1   ;;  %v1759_v18 = vmul.f32 %v13145_v50, %v1750_v43  ;;  %v13186_v43 = vld [vmem:[#allocation117_spill] sm:$0xff]  ;;  %v13189_v26 = vld [vmem:[#allocation116_spill] sm:$0xff] }
 0x663   : > { %v2434_v42 = vsel %vm466_vm8, %v13187_v51, %v13186_v43 }
 0x664   : > { %v2178_v6 = vadd.f32 %v2173_v56, %v2144_v2  ;;  %v2180_v56 = vadd.f32 %v2175_v27, %v2146_v21  ;;  %v1768_v57 = vadd.f32 %v13147_v20, %v1759_v18  ;;  %v1806_v21 = vmul.f32 %v13149_v38, %v1797_v0  ;;  %v13191_v27 = vld [vmem:[#allocation118_spill] sm:$0xff] }
 0x665   : > { %6892 = vset.pattern.permute.xlu1 %v13181_v16  ;;  %v13183_v16 = vld [vmem:[#allocation37_spill] sm:$0xff]  ;;  %v1831_v18 = vrot.slane %v1772_v46, %v13151_v11 }
 0x666   : > { %3266 = vperm.xlu1 %6892, %v13155_v45   ;;  %v2189_v34 = vrot.slane %v8992_v37, %v13183_v16  ;;  %v2197_v19 = vrot.slane %v8996_v28, %v13183_v16 }
 0x667   : > { %v1840_v0 = vmul.f32 %v13153_v33, %v1831_v18  ;;  %v1899_v18 = vrot.slane %v1772_v46, %v13157_v13 }
 0x668   : > { %v2207_v40 = vmul.f32 %v13185_v23, %v2189_v34  ;;  %v2209_v2 = vmul.f32 %v13185_v23, %v2197_v19  ;;  %v13188_v34 = vmov 3  }
 0x66a   : > { %3154 = vrot.lane.b32.xlu1 %v3140_v63, %s7348_s26  ;;  %v2212_v37 = vadd.f32 %v2207_v40, %v2178_v6  ;;  %v1761_v63 = vmul.f32 %v13145_v50, %v1752_v14  ;;  %v2214_v41 = vadd.f32 %v2209_v2, %v2180_v56  ;;  %v1781_v50 = vrot.slane %v1768_v57, %v13148_v1 }
 0x66b   : > { %6893 = vset.pattern.permute.xlu1 %v13184_v49  ;;  %v2436_v40 = vsel %vm466_vm8, %v8903_v62, %v13191_v27  ;;  %v1865_v2 = vrot.slane %v1772_v46, %v13154_v44 }
 0x66c   : > { %v2221_v28 = vmul.f32 %v13189_v26, %v2212_v37  ;;  %v1770_v6 = vadd.f32 %v13147_v20, %v1761_v63  ;;  %v2223_v19 = vmul.f32 %v13189_v26, %v2214_v41  ;;  %v1802_v20 = vmul.f32 %v13149_v38, %v1781_v50 }
 0x66d   : > { %v1811_v37 = vadd.f32 %v1806_v21, %v13152_v52  ;;  %v1815_v63 = vrot.slane %v1768_v57, %v13151_v11  ;;  %v1849_v50 = vrot.slane %v1768_v57, %v13154_v44 }
 0x66e   : > { %3415 = vperm.xlu1 %6893, %v13155_v45   ;;  %v9087_v14 = vadd.f32 %v2434_v42, %v2221_v28  ;;  %v9099_v56 = vadd.f32 %v2436_v40, %v2223_v19  ;;  %v1807_v28 = vadd.f32 %v1802_v20, %v13152_v52  ;;  %v1823_v21 = vrot.slane %v1770_v6, %v13151_v11 }
 0x66f   : > { %v1845_v41 = vadd.f32 %v1840_v0, %v1811_v37  ;;  %v1836_v40 = vmul.f32 %v13153_v33, %v1815_v63  ;;  %v1874_v19 = vmul.f32 %v13156_v9, %v1865_v2  ;;  %v1857_v20 = vrot.slane %v1770_v6, %v13154_v44 }
 0x670   : > { %13190 = vst [vmem:[#allocation31_spill] sm:$0xff] %v9087_v14  ;;  %13192 = vst [vmem:[#allocation72_spill] sm:$0xff] %v9099_v56  ;;  %v1870_v37 = vmul.f32 %v13156_v9, %v1849_v50  ;;  %v1908_v0 = vmul.f32 %v13159_v47, %v1899_v18  ;;  %v13193_v63 = vmov 33  }
 0x672   : > { %6895 = vset.pattern.permute.xlu1 %v13188_v34  ;;  %v2448_v34 = vld [vmem:[#allocation9 + $0x8] sm:$0xff] }
 0x673   : > { %3433 = vperm.xlu1 %6895, %v13155_v45   ;;  %v1789_v45 = vrot.slane %v1770_v6, %v13148_v1 }
 0x675   : > { %v1804_v42 = vmul.f32 %v13149_v38, %v1789_v45  ;;  %v1883_v38 = vrot.slane %v1768_v57, %v13157_v13  ;;  %v1838_v45 = vmul.f32 %v13153_v33, %v1823_v21 }
 0x677   : > { %2456 = vrot.lane.b32.xlu1 %v9087_v14, %s7367_s9  ;;  %v1809_v49 = vadd.f32 %v1804_v42, %v13152_v52  ;;  %v1879_v14 = vadd.f32 %v1874_v19, %v1845_v41  ;;  %v1891_v52 = vrot.slane %v1770_v6, %v13157_v13  ;;  %v1904_v42 = vmul.f32 %v13159_v47, %v1883_v38 }
 0x679   : > { %v1843_v2 = vadd.f32 %v1838_v45, %v1809_v49  ;;  %v1913_v46 = vadd.f32 %v1908_v0, %v1879_v14  ;;  %v1906_v41 = vmul.f32 %v13159_v47, %v1891_v52 }
 0x67b   : > { %2460 = vrot.lane.b32.xlu1 %v9099_v56, %s7367_s9  ;;  %v1841_v56 = vadd.f32 %v1836_v40, %v1807_v28  ;;  %v1923_v33 = vmul.f32 0.70710677, %v1913_v46  ;;  %v9124_v40 = vpop.permute.xlu1 %2611 }
 0x67d   : > { %v1875_v61 = vadd.f32 %v1870_v37, %v1841_v56  ;;  %7011 = verf.f32 %v1923_v33 }
 0x67f   : > { %3438 = vperm.xlu1 %6895, %v2448_v34   ;;  %v1872_v34 = vmul.f32 %v13156_v9, %v1857_v20  ;;  %v1909_v28 = vadd.f32 %v1904_v42, %v1875_v61  ;;  %v9126_v49 = vpop.permute.xlu1 %2659  ;;  %v1918_v61 = vmul.f32 0.5, %v1913_v46 }
 0x681   : > { %v1877_v57 = vadd.f32 %v1872_v34, %v1843_v2  ;;  %v1919_v50 = vmul.f32 0.70710677, %v1909_v28  ;;  %v1914_v20 = vmul.f32 0.5, %v1909_v28 }
 0x683   : > { %6897 = vset.pattern.permute.xlu1 %v13193_v63  ;;  %v1911_v21 = vadd.f32 %v1906_v41, %v1877_v57  ;;  %7013 = verf.f32 %v1919_v50 }
 0x685   : > { %v1921_v19 = vmul.f32 0.70710677, %v1911_v21  ;;  %v1916_v52 = vmul.f32 0.5, %v1911_v21 }
 0x687   : > { %7015 = verf.f32 %v1921_v19 }
 0x68a   : > { %v7012_v9 = vpop.eup %7011 }
 0x68b   : > { %v1933_v6 = vadd.f32 1.0, %v7012_v9 }
 0x68d   : > { %v9132_v47 = vmul.f32 %v1933_v6, %v1918_v61 }
 0x68f   : > { %v1963_v34 = vrot.slane %v9132_v47, %v13148_v1  ;;  %v1997_v28 = vrot.slane %v9132_v47, %v13151_v11 }
 0x690   : > { %v9128_v14 = vpop.permute.xlu1 %2681  ;;  %v7014_v56 = vpop.eup %7013 }
 0x691   : > { %v1929_v38 = vadd.f32 1.0, %v7014_v56  ;;  %v1972_v33 = vmul.f32 %v13167_v39, %v1963_v34  ;;  %v2006_v6 = vmul.f32 %v13170_v55, %v1997_v28  ;;  %v2031_v56 = vrot.slane %v9132_v47, %v13154_v44 }
 0x693   : > { %v9136_v2 = vmul.f32 %v1929_v38, %v1914_v20  ;;  %v1977_v21 = vadd.f32 %v1972_v33, %v13169_v7  ;;  %v2065_v33 = vrot.slane %v9132_v47, %v13157_v13 }
 0x694   : > { %v7016_v45 = vpop.eup %7015 }
 0x695   : > { %v1931_v0 = vadd.f32 1.0, %v7016_v45  ;;  %v1947_v46 = vrot.slane %v9136_v2, %v13148_v1  ;;  %v1981_v9 = vrot.slane %v9136_v2, %v13151_v11  ;;  %v2011_v20 = vadd.f32 %v2006_v6, %v1977_v21 }
 0x697   : > { %v9142_v57 = vmul.f32 %v1931_v0, %v1916_v52  ;;  %v1968_v19 = vmul.f32 %v13167_v39, %v1947_v46  ;;  %v2002_v34 = vmul.f32 %v13170_v55, %v1981_v9  ;;  %v2015_v52 = vrot.slane %v9136_v2, %v13154_v44 }
 0x698   : > { %v2040_v46 = vmul.f32 %v13172_v32, %v2031_v56  ;;  %v2099_v56 = vrot.slane %v9132_v47, %v13175_v25 }
 0x699   : > { %v1955_v50 = vrot.slane %v9142_v57, %v13148_v1  ;;  %v1973_v45 = vadd.f32 %v1968_v19, %v13169_v7  ;;  %v1989_v0 = vrot.slane %v9142_v57, %v13151_v11  ;;  %v2023_v21 = vrot.slane %v9142_v57, %v13154_v44  ;;  %v9196_v44 = vld [vmem:[#allocation9] sm:$0xff] }
 0x69a   : > { %v2036_v6 = vmul.f32 %v13172_v32, %v2015_v52  ;;  %v2057_v52 = vrot.slane %v9142_v57, %v13157_v13  ;;  %13194 = vst [vmem:[#allocation73_spill] sm:$0xff] %v9196_v44 }
 0x69b   : > { %v1970_v38 = vmul.f32 %v13167_v39, %v1955_v50  ;;  %v2007_v36 = vadd.f32 %v2002_v34, %v1973_v45  ;;  %v2045_v39 = vadd.f32 %v2040_v46, %v2011_v20  ;;  %v2004_v19 = vmul.f32 %v13170_v55, %v1989_v0 }
 0x69c   : > { %v2133_v0 = vrot.slane %v9132_v47, %v13177_v3  ;;  %v2038_v34 = vmul.f32 %v13172_v32, %v2023_v21  ;;  %v2108_v46 = vmul.f32 %v13178_v35, %v2099_v56  ;;  %v2072_v21 = vmul.f32 %v13174_v5, %v2057_v52 }
 0x69d   : > { %v9130_v18 = vpop.permute.xlu1 %2706  ;;  %v1975_v28 = vadd.f32 %v1970_v38, %v13169_v7  ;;  %v2049_v7 = vrot.slane %v9136_v2, %v13157_v13  ;;  %v2074_v38 = vmul.f32 %v13174_v5, %v2065_v33  ;;  %v2041_v55 = vadd.f32 %v2036_v6, %v2007_v36 }
 0x69e   : > { %v2142_v32 = vmul.f32 %v13179_v17, %v2133_v0  ;;  %v2091_v6 = vrot.slane %v9142_v57, %v13175_v25  ;;  %v2125_v0 = vrot.slane %v9142_v57, %v13177_v3 }
 0x69f   : > { %v2009_v45 = vadd.f32 %v2004_v19, %v1975_v28  ;;  %v2079_v20 = vadd.f32 %v2074_v38, %v2045_v39  ;;  %v2070_v33 = vmul.f32 %v13174_v5, %v2049_v7  ;;  %v2167_v7 = vrot.slane %v9132_v47, %v13180_v10 }
 0x6a0   : > { %v13195_v38 = vmov 31  }
 0x6a1   : > { %v2043_v28 = vadd.f32 %v2038_v34, %v2009_v45  ;;  %v2075_v39 = vadd.f32 %v2070_v33, %v2041_v55  ;;  %v2113_v19 = vadd.f32 %v2108_v46, %v2079_v20  ;;  %v9212_v34 = vld [vmem:[#allocation2 + $0x20] sm:$0xff]  ;;  %v2106_v46 = vmul.f32 %v13178_v35, %v2091_v6 }
 0x6a2   : > { %v9134_v37 = vpop.permute.xlu1 %2754  ;;  %v2151_v33 = vrot.slane %v9136_v2, %v13180_v10 }
 0x6a3   : > { %v2077_v45 = vadd.f32 %v2072_v21, %v2043_v28  ;;  %v2147_v20 = vadd.f32 %v2142_v32, %v2113_v19  ;;  %v2176_v28 = vmul.f32 %v13182_v12, %v2167_v7 }
 0x6a4   : > { %v2172_v6 = vmul.f32 %v13182_v12, %v2151_v33 }
 0x6a5   : > { %v2111_v19 = vadd.f32 %v2106_v46, %v2077_v45  ;;  %v2181_v21 = vadd.f32 %v2176_v28, %v2147_v20 }
 0x6a6   : > { %v9140_v42 = vpop.permute.xlu1 %2776 }
 0x6aa   : > { %v9149_v41 = vpop.permute.xlu1 %2801 }
 0x6af   : > { %v9160_v61 = vpop.permute.xlu1 %2849 }
 0x6b4   : > { %v9173_v50 = vpop.permute.xlu1 %2943 }
 0x6b5   : > { %v2950_v9 = vmul.f32 %v13150_v58, %v9173_v50  ;;  %v2083_v58 = vrot.slane %v9136_v2, %v13175_v25 }
 0x6b7   : > { %2964 = vrot.lane.b32.xlu0 %v2950_v9, %s7348_s26  ;;  %v2117_v9 = vrot.slane %v9136_v2, %v13177_v3  ;;  %v2104_v56 = vmul.f32 %v13178_v35, %v2083_v58  ;;  %v2159_v35 = vrot.slane %v9142_v57, %v13180_v10 }
 0x6b9   : > { %v9199_v36 = vpop.permute.xlu1 %3038  ;;  %v2109_v55 = vadd.f32 %v2104_v56, %v2075_v39  ;;  %v2138_v58 = vmul.f32 %v13179_v17, %v2117_v9  ;;  %v2201_v39 = vrot.slane %v9132_v47, %v13183_v16  ;;  %v2140_v56 = vmul.f32 %v13179_v17, %v2125_v0 }
 0x6ba   : > { %v3045_v5 = vmul.f32 %v9212_v34, %v9199_v36  ;;  %v2185_v47 = vrot.slane %v9136_v2, %v13183_v16  ;;  %v2193_v0 = vrot.slane %v9142_v57, %v13183_v16  ;;  %v2435_v57 = vsel %vm466_vm8, %v13186_v43, %v8903_v62 }
 0x6bb   : > { %3029 = vperm.xlu0 %6887, %v9196_v44   ;;  %v2143_v32 = vadd.f32 %v2138_v58, %v2109_v55  ;;  %v2210_v7 = vmul.f32 %v13185_v23, %v2201_v39  ;;  %v2145_v55 = vadd.f32 %v2140_v56, %v2111_v19 }
 0x6bc   : > { %v2206_v17 = vmul.f32 %v13185_v23, %v2185_v47  ;;  %v2208_v2 = vmul.f32 %v13185_v23, %v2193_v0 }
 0x6bd   : > { %v2177_v45 = vadd.f32 %v2172_v6, %v2143_v32  ;;  %v2215_v20 = vadd.f32 %v2210_v7, %v2181_v21  ;;  %v13200_v32 = vmov 34  }
 0x6be   : > { %v9219_v52 = vpop.permute.xlu1 %3228 }
 0x6bf   : > { %6890 = vset.pattern.permute.xlu0 %v13195_v38  ;;  %v3235_v9 = vmul.f32 %v9212_v34, %v9219_v52  ;;  %v13196_v38 = vmov 2   ;;  %v2211_v58 = vadd.f32 %v2206_v17, %v2177_v45  ;;  %v2224_v33 = vmul.f32 %v13189_v26, %v2215_v20 }
 0x6c0   : > { %3171 = vperm.xlu0 %6890, %v9196_v44  }
 0x6c1   : > { %v9247_v28 = vadd.f32 %v13191_v27, %v2224_v33  ;;  %v2220_v39 = vmul.f32 %v13189_v26, %v2211_v58 }
 0x6c3   : > { %13197 = vst [vmem:[#allocation22_spill] sm:$0xff] %v9247_v28 }
 0x6c4   : > { %3059 = vrot.lane.b32.xlu0 %v3045_v5, %s7348_s26  ;;  %v2174_v5 = vmul.f32 %v13182_v12, %v2159_v35  ;;  %v9254_v12 = vadd.f32 %v13187_v51, %v2220_v39  ;;  %v9268_v51 = vpop.permute.xlu1 %2891 }
 0x6c5   : > { %6894 = vset.pattern.permute.xlu0 %v13196_v38 }
 0x6c6   : > { %v2179_v46 = vadd.f32 %v2174_v5, %v2145_v55  ;;  %13198 = vst [vmem:[#allocation82_spill] sm:$0xff] %v9254_v12 }
 0x6c8   : > { %3249 = vrot.lane.b32.xlu0 %v3235_v9, %s7348_s26  ;;  %v2213_v19 = vadd.f32 %v2208_v2, %v2179_v46  ;;  %v9270_v21 = vpop.permute.xlu1 %2934  ;;  %v13206_v2 = vld [vmem:[#allocation120_spill] sm:$0xff] }
 0x6ca   : > { %v2222_v23 = vmul.f32 %v13189_v26, %v2213_v19 }
 0x6cc   : > { %3424 = vperm.xlu0 %6894, %v9196_v44   ;;  %v9262_v27 = vadd.f32 %v2435_v57, %v2222_v23 }
 0x6cd   : > { %v9272_v9 = vpop.permute.xlu1 %2981 }
 0x6ce   : > { %13199 = vst [vmem:[#allocation76_spill] sm:$0xff] %v9262_v27 }
 0x6d0   : > { %2462 = vrot.lane.b32.xlu0 %v9247_v28, %s7367_s9 }
 0x6d1   : > { %6896 = vset.pattern.permute.xlu0 %v13193_v63 }
 0x6d2   : > { %v9274_v62 = vpop.permute.xlu1 %3076 }
 0x6d4   : > { %2454 = vrot.lane.b32.xlu0 %v9254_v12, %s7367_s9 }
 0x6d7   : > { %v9276_v43 = vpop.permute.xlu1 %3124 }
 0x6d8   : > { %2458 = vrot.lane.b32.xlu0 %v9262_v27, %s7367_s9 }
 0x6dc   : > { %3464 = vperm.xlu0 %6896, %v9196_v44   ;;  %v9278_v26 = vpop.permute.xlu1 %3219 }
 0x6e0   : > { %6899 = vset.pattern.permute.xlu0 %v13200_v32 }
 0x6e1   : > { %v9282_v35 = vpop.permute.xlu1 %3266 }
 0x6e5   : > { %v9286_v47 = vpop.permute.xlu1 %3154 }
 0x6e6   : > { %13201 = vst [vmem:[#allocation74_spill] sm:$0xff] %v9286_v47 }
 0x6e9   : > { %v9292_v55 = vpop.permute.xlu1 %3415 }
 0x6ea   : > { %13203 = vst [vmem:[#allocation100_spill] sm:$0xff] %v9292_v55 }
 0x6ee   : > { %v9296_v5 = vpop.permute.xlu1 %3433 }
 0x6ef   : > { %13204 = vst [vmem:[#allocation83_spill] sm:$0xff] %v9296_v5 }
 0x6f2   : > { %v2457_v58 = vpop.permute.xlu1 %2456 }
 0x6f6   : > { %v2461_v19 = vpop.permute.xlu1 %2460 }
 0x729   : > { %v9280_v56 = vpop.permute.xlu0 %2964 }
 0x736   : > { %v9284_v6 = vpop.permute.xlu0 %3029 }
 0x73b   : > { %v9288_v7 = vpop.permute.xlu0 %3171 }
 0x73c   : > { %13202 = vst [vmem:[#allocation96_spill] sm:$0xff] %v9288_v7 }
 0x73f   : > { %v9290_v45 = vpop.permute.xlu0 %3059 }
 0x743   : > { %v9294_v20 = vpop.permute.xlu0 %3249 }
 0x747   : > { %v9298_v17 = vpop.permute.xlu0 %3424 }
 0x748   : > { %13205 = vst [vmem:[#allocation84_spill] sm:$0xff] %v9298_v17 }
 0x74b   : > { %v2463_v0 = vpop.permute.xlu0 %2462 }
 0x74c   : > { %v9317_v38 = vsel %vm1602_vm7, %v2461_v19, %v2463_v0 }
 0x74f   : > { %v2455_v46 = vpop.permute.xlu0 %2454 }
 0x750   : > { %v9301_v33 = vsel %vm1602_vm7, %v2455_v46, %v2457_v58 }
 0x751   : > { %v2501_v39 = vmul.f32 %v13206_v2, %v9301_v33  ;;  %v2663_v11 = vmul.f32 %v9126_v49, %v9301_v33 }
 0x753   : > { %v2459_v57 = vpop.permute.xlu0 %2458  ;;  %2512 = vrot.lane.b32.xlu0 %v2501_v39, %s7348_s26  ;;  %v13207_v39 = vld [vmem:[#allocation27_spill] sm:$0xff] }
 0x754   : > { %v9307_v23 = vsel %vm1602_vm7, %v2457_v58, %v2459_v57  ;;  %v9310_v63 = vsel %vm1602_vm7, %v2459_v57, %v2461_v19  ;;  %v2504_v57 = vmul.f32 %v13206_v2, %v9317_v38  ;;  %v2580_v28 = vmul.f32 %v13207_v39, %v9317_v38 }
 0x755   : > { %v2503_v12 = vmul.f32 %v13206_v2, %v9310_v63  ;;  %v2502_v46 = vmul.f32 %v13206_v2, %v9307_v23  ;;  %v2578_v58 = vmul.f32 %v13207_v39, %v9307_v23  ;;  %v2577_v0 = vmul.f32 %v13207_v39, %v9301_v33 }
 0x756   : > { %v2579_v2 = vmul.f32 %v13207_v39, %v9310_v63  ;;  %v2675_v19 = vmul.f32 %v8936_v4, %v9317_v38  ;;  %v2674_v39 = vmul.f32 %v8936_v4, %v9310_v63  ;;  %v2616_v13 = vmul.f32 %v9124_v40, %v9310_v63 }
 0x757   : > { %2516 = vrot.lane.b32.xlu0 %v2503_v12, %s7348_s26  ;;  %2514 = vrot.lane.b32.xlu1 %v2502_v46, %s7348_s26  ;;  %v2673_v12 = vmul.f32 %v8936_v4, %v9307_v23  ;;  %v2672_v46 = vmul.f32 %v8936_v4, %v9301_v33  ;;  %v2769_v4 = vmul.f32 %v8949_v22, %v9310_v63 }
 0x758   : > { %v2710_v1 = vmul.f32 %v9130_v18, %v9307_v23 }
 0x75b   : > { %2590 = vrot.lane.b32.xlu0 %v2578_v58, %s7348_s26  ;;  %2518 = vrot.lane.b32.xlu1 %v2504_v57, %s7348_s26  ;;  %v2770_v58 = vmul.f32 %v8949_v22, %v9317_v38  ;;  %v2767_v57 = vmul.f32 %v8949_v22, %v9301_v33 }
 0x75f   : > { %2594 = vrot.lane.b32.xlu0 %v2580_v28, %s7348_s26  ;;  %2588 = vrot.lane.b32.xlu1 %v2577_v0, %s7348_s26  ;;  %v2768_v28 = vmul.f32 %v8949_v22, %v9307_v23  ;;  %v2862_v0 = vmul.f32 %v9033_v29, %v9307_v23  ;;  %v2863_v22 = vmul.f32 %v9033_v29, %v9310_v63 }
 0x763   : > { %2685 = vrot.lane.b32.xlu0 %v2673_v12, %s7348_s26  ;;  %2592 = vrot.lane.b32.xlu1 %v2579_v2, %s7348_s26  ;;  %v2864_v12 = vmul.f32 %v9033_v29, %v9317_v38  ;;  %v2861_v2 = vmul.f32 %v9033_v29, %v9301_v33  ;;  %v2949_v29 = vmul.f32 %v9173_v50, %v9317_v38 }
 0x767   : > { %2689 = vrot.lane.b32.xlu0 %v2675_v19, %s7348_s26  ;;  %2683 = vrot.lane.b32.xlu1 %v2672_v46, %s7348_s26  ;;  %v2946_v19 = vmul.f32 %v9173_v50, %v9301_v33  ;;  %v2948_v46 = vmul.f32 %v9173_v50, %v9310_v63 }
 0x76b   : > { %2780 = vrot.lane.b32.xlu0 %v2768_v28, %s7348_s26  ;;  %2687 = vrot.lane.b32.xlu1 %v2674_v39, %s7348_s26  ;;  %v2947_v28 = vmul.f32 %v9173_v50, %v9307_v23  ;;  %v3042_v39 = vmul.f32 %v9199_v36, %v9307_v23  ;;  %v3044_v50 = vmul.f32 %v9199_v36, %v9317_v38 }
 0x76f   : > { %2784 = vrot.lane.b32.xlu0 %v2770_v58, %s7348_s26  ;;  %2778 = vrot.lane.b32.xlu1 %v2767_v57, %s7348_s26  ;;  %v3043_v58 = vmul.f32 %v9199_v36, %v9310_v63  ;;  %v3041_v57 = vmul.f32 %v9199_v36, %v9301_v33  ;;  %v3138_v36 = vmul.f32 %v9043_v8, %v9310_v63 }
 0x773   : > { %2871 = vrot.lane.b32.xlu0 %v2862_v0, %s7348_s26  ;;  %2782 = vrot.lane.b32.xlu1 %v2769_v4, %s7348_s26  ;;  %v3136_v0 = vmul.f32 %v9043_v8, %v9301_v33  ;;  %v3139_v4 = vmul.f32 %v9043_v8, %v9317_v38 }
 0x777   : > { %2875 = vrot.lane.b32.xlu0 %v2864_v12, %s7348_s26  ;;  %2869 = vrot.lane.b32.xlu1 %v2861_v2, %s7348_s26  ;;  %v3137_v12 = vmul.f32 %v9043_v8, %v9307_v23  ;;  %v3232_v2 = vmul.f32 %v9219_v52, %v9307_v23  ;;  %v9420_v8 = vpop.permute.xlu0 %3464 }
 0x778   : > { %13208 = vst [vmem:[#allocation97_spill] sm:$0xff] %v9420_v8 }
 0x77b   : > { %2956 = vrot.lane.b32.xlu0 %v2946_v19, %s7348_s26  ;;  %2873 = vrot.lane.b32.xlu1 %v2863_v22, %s7348_s26  ;;  %v3233_v19 = vmul.f32 %v9219_v52, %v9310_v63  ;;  %v3231_v22 = vmul.f32 %v9219_v52, %v9301_v33 }
 0x77f   : > { %2960 = vrot.lane.b32.xlu0 %v2948_v46, %s7348_s26  ;;  %2958 = vrot.lane.b32.xlu1 %v2947_v28, %s7348_s26  ;;  %v3234_v46 = vmul.f32 %v9219_v52, %v9317_v38  ;;  %v9422_v28 = vpop.permute.xlu1 %3438 }
 0x780   : > { %13209 = vst [vmem:[#allocation103_spill] sm:$0xff] %v9422_v28 }
 0x783   : > { %3053 = vrot.lane.b32.xlu0 %v3042_v39, %s7348_s26  ;;  %2962 = vrot.lane.b32.xlu1 %v2949_v29, %s7348_s26  ;;  %v2492_v29 = vmul.f32 %v8916_v30, %v9301_v33 }
 0x787   : > { %3055 = vrot.lane.b32.xlu0 %v3043_v58, %s7348_s26  ;;  %3051 = vrot.lane.b32.xlu1 %v3041_v57, %s7348_s26  ;;  %v2493_v57 = vmul.f32 %v8916_v30, %v9307_v23 }
 0x78b   : > { %3146 = vrot.lane.b32.xlu0 %v3136_v0, %s7348_s26  ;;  %3057 = vrot.lane.b32.xlu1 %v3044_v50, %s7348_s26 }
 0x78f   : > { %3152 = vrot.lane.b32.xlu0 %v3139_v4, %s7348_s26  ;;  %3148 = vrot.lane.b32.xlu1 %v3137_v12, %s7348_s26  ;;  %v2544_v4 = vmul.f32 %v8926_v48, %v9307_v23 }
 0x793   : > { %3243 = vrot.lane.b32.xlu0 %v3232_v2, %s7348_s26  ;;  %3150 = vrot.lane.b32.xlu1 %v3138_v36, %s7348_s26  ;;  %v2545_v2 = vmul.f32 %v8926_v48, %v9310_v63 }
 0x797   : > { %3245 = vrot.lane.b32.xlu0 %v3233_v19, %s7348_s26  ;;  %3241 = vrot.lane.b32.xlu1 %v3231_v22, %s7348_s26 }
 0x79b   : > { %3247 = vrot.lane.b32.xlu1 %v3234_v46, %s7348_s26  ;;  %v2494_v46 = vmul.f32 %v8916_v30, %v9310_v63 }
 0x7c5   : > { %v9424_v39 = vpop.permute.xlu0 %2512 }
 0x7c6   : > { %13210 = vst [vmem:[#allocation77_spill] sm:$0xff] %v9424_v39 }
 0x7c9   : > { %v2515_v58 = vpop.permute.xlu1 %2514  ;;  %v2517_v0 = vpop.permute.xlu0 %2516 }
 0x7ca   : > { %v2521_v50 = vsel %vm382_vm0, %v9424_v39, %v2515_v58  ;;  %v2522_v52 = vsel %vm382_vm0, %v2515_v58, %v2517_v0 }
 0x7cb   : > { %v2530_v12 = vadd.f32 %v2521_v50, %v2492_v29  ;;  %v2531_v36 = vadd.f32 %v2522_v52, %v2493_v57  ;;  %v2546_v29 = vmul.f32 %v8926_v48, %v9317_v38  ;;  %v13215_v57 = vld [vmem:[#allocation28_spill] sm:$0xff] }
 0x7cc   : > { %v2568_v52 = vmul.f32 %v13215_v57, %v9301_v33 }
 0x7cd   : > { %v9437_v19 = vadd.f32 %v2544_v4, %v2530_v12  ;;  %v9439_v22 = vadd.f32 %v2545_v2, %v2531_v36  ;;  %v9443_v27 = vpop.permute.xlu1 %2518  ;;  %v2591_v28 = vpop.permute.xlu0 %2590  ;;  %v2615_v36 = vmul.f32 %v9124_v40, %v9307_v23 }
 0x7ce   : > { %13213 = vst [vmem:[#allocation91_spill] sm:$0xff] %v9443_v27  ;;  %v2523_v58 = vsel %vm382_vm0, %v2517_v0, %v9443_v27  ;;  %v2894_v27 = vmul.f32 %v9268_v51, %v9301_v33 }
 0x7cf   : > { %13211 = vst [vmem:[#allocation50_spill] sm:$0xff] %v9437_v19  ;;  %13212 = vst [vmem:[#allocation85_spill] sm:$0xff] %v9439_v22  ;;  %v2532_v50 = vadd.f32 %v2523_v58, %v2494_v46  ;;  %v2569_v46 = vmul.f32 %v13215_v57, %v9307_v23  ;;  %v2570_v58 = vmul.f32 %v13215_v57, %v9310_v63 }
 0x7d0   : > { %v2805_v22 = vmul.f32 %v9149_v41, %v9307_v23 }
 0x7d1   : > { %v9449_v16 = vadd.f32 %v2546_v29, %v2532_v50  ;;  %v9453_v4 = vpop.permute.xlu1 %2588  ;;  %v9455_v12 = vpop.permute.xlu0 %2594 }
 0x7d2   : > { %v2597_v2 = vsel %vm382_vm0, %v9453_v4, %v2591_v28 }
 0x7d3   : > { %13214 = vst [vmem:[#allocation86_spill] sm:$0xff] %v9449_v16  ;;  %v2606_v0 = vadd.f32 %v2597_v2, %v2568_v52  ;;  %v2617_v52 = vmul.f32 %v9124_v40, %v9317_v38  ;;  %v2758_v16 = vmul.f32 %v9134_v37, %v9301_v33 }
 0x7d5   : > { %v9461_v10 = vadd.f32 %v2615_v36, %v2606_v0  ;;  %v2593_v29 = vpop.permute.xlu1 %2592  ;;  %v2686_v50 = vpop.permute.xlu0 %2685 }
 0x7d6   : > { %v2598_v3 = vsel %vm382_vm0, %v2591_v28, %v2593_v29  ;;  %v2599_v25 = vsel %vm382_vm0, %v2593_v29, %v9455_v12 }
 0x7d7   : > { %v2607_v2 = vadd.f32 %v2598_v3, %v2569_v46  ;;  %v2608_v36 = vadd.f32 %v2599_v25, %v2570_v58  ;;  %v2665_v25 = vmul.f32 %v9126_v49, %v9310_v63 }
 0x7d9   : > { %v9474_v0 = vadd.f32 %v2616_v13, %v2607_v2  ;;  %v9476_v5 = vadd.f32 %v2617_v52, %v2608_v36  ;;  %v9480_v8 = vpop.permute.xlu1 %2683  ;;  %v9482_v28 = vpop.permute.xlu0 %2689  ;;  %v2664_v13 = vmul.f32 %v9126_v49, %v9307_v23  ;;  %v2711_v36 = vmul.f32 %v9130_v18, %v9310_v63 }
 0x7da   : > { %v2692_v29 = vsel %vm382_vm0, %v9480_v8, %v2686_v50 }
 0x7db   : > { %v2701_v17 = vadd.f32 %v2692_v29, %v2663_v11 }
 0x7dd   : > { %v9488_v3 = vadd.f32 %v2710_v1, %v2701_v17  ;;  %v2688_v46 = vpop.permute.xlu1 %2687  ;;  %v2781_v58 = vpop.permute.xlu0 %2780  ;;  %v2712_v1 = vmul.f32 %v9130_v18, %v9317_v38 }
 0x7de   : > { %v2693_v52 = vsel %vm382_vm0, %v2686_v50, %v2688_v46  ;;  %v2694_v2 = vsel %vm382_vm0, %v2688_v46, %v9482_v28 }
 0x7df   : > { %v2702_v11 = vadd.f32 %v2693_v52, %v2664_v13  ;;  %v2703_v17 = vadd.f32 %v2694_v2, %v2665_v25  ;;  %v2759_v25 = vmul.f32 %v9134_v37, %v9307_v23  ;;  %v2760_v52 = vmul.f32 %v9134_v37, %v9310_v63 }
 0x7e1   : > { %v9501_v29 = vadd.f32 %v2711_v36, %v2702_v11  ;;  %v9503_v55 = vadd.f32 %v2712_v1, %v2703_v17  ;;  %v9507_v19 = vpop.permute.xlu1 %2778  ;;  %v9509_v50 = vpop.permute.xlu0 %2784  ;;  %v2806_v17 = vmul.f32 %v9149_v41, %v9310_v63 }
 0x7e2   : > { %v2787_v46 = vsel %vm382_vm0, %v9507_v19, %v2781_v58 }
 0x7e3   : > { %v2796_v59 = vadd.f32 %v2787_v46, %v2758_v16  ;;  %v2852_v46 = vmul.f32 %v9212_v34, %v9160_v61 }
 0x7e5   : > { %v9515_v13 = vadd.f32 %v2805_v22, %v2796_v59  ;;  %v2783_v2 = vpop.permute.xlu1 %2782  ;;  %v2872_v36 = vpop.permute.xlu0 %2871  ;;  %v2807_v59 = vmul.f32 %v9149_v41, %v9317_v38 }
 0x7e6   : > { %v2788_v1 = vsel %vm382_vm0, %v2781_v58, %v2783_v2  ;;  %v2789_v11 = vsel %vm382_vm0, %v2783_v2, %v9509_v50  ;;  %v2853_v58 = vmul.f32 %v9160_v61, %v9301_v33 }
 0x7e7   : > { %v2797_v16 = vadd.f32 %v2788_v1, %v2759_v25  ;;  %v2798_v22 = vadd.f32 %v2789_v11, %v2760_v52  ;;  %v2856_v25 = vmul.f32 %v9160_v61, %v9317_v38  ;;  %v2895_v52 = vmul.f32 %v9268_v51, %v9307_v23 }
 0x7e9   : > { %v9530_v60 = vadd.f32 %v2806_v17, %v2797_v16  ;;  %v9532_v53 = vadd.f32 %v2807_v59, %v2798_v22  ;;  %v2870_v48 = vpop.permute.xlu1 %2869  ;;  %v2876_v2 = vpop.permute.xlu0 %2875  ;;  %v2898_v17 = vmul.f32 %v9212_v34, %v9268_v51  ;;  %v2937_v16 = vmul.f32 %v9212_v34, %v9270_v21 }
 0x7ea   : > { %v2877_v30 = vsel %vm382_vm0, %v2870_v48, %v2872_v36  ;;  %v2885_v39 = vadd.f32 %v2870_v48, %v2852_v46  ;;  %v2889_v59 = vadd.f32 %v2876_v2, %v2856_v25  ;;  %v2571_v22 = vmul.f32 %v13215_v57, %v9317_v38 }
 0x7eb   : > { %v2886_v1 = vadd.f32 %v2877_v30, %v2853_v58  ;;  %v2854_v48 = vmul.f32 %v9160_v61, %v9307_v23  ;;  %v2855_v46 = vmul.f32 %v9160_v61, %v9310_v63  ;;  %v2984_v61 = vmul.f32 %v9272_v9, %v9301_v33 }
 0x7ec   : > { %v2899_v11 = vadd.f32 %v2894_v27, %v2885_v39  ;;  %v2896_v27 = vmul.f32 %v9268_v51, %v9310_v63  ;;  %v2609_v32 = vadd.f32 %v9455_v12, %v2571_v22  ;;  %v2903_v44 = vadd.f32 %v2898_v17, %v2889_v59 }
 0x7ed   : > { %v2900_v31 = vadd.f32 %v2895_v52, %v2886_v1  ;;  %v2874_v15 = vpop.permute.xlu1 %2873  ;;  %v2957_v30 = vpop.permute.xlu0 %2956  ;;  %v2897_v52 = vmul.f32 %v9268_v51, %v9317_v38  ;;  %v2939_v51 = vmul.f32 %v9270_v21, %v9307_v23  ;;  %v2986_v22 = vmul.f32 %v9272_v9, %v9310_v63 }
 0x7ee   : > { %v2878_v39 = vsel %vm382_vm0, %v2872_v36, %v2874_v15  ;;  %v2879_v58 = vsel %vm382_vm0, %v2874_v15, %v2876_v2  ;;  %v2975_v25 = vadd.f32 %v2957_v30, %v2937_v16  ;;  %2909 = vrot.lane.b32.xlu0 %v2899_v11, %s7357_s15  ;;  %v2938_v36 = vmul.f32 %v9270_v21, %v9301_v33 }
 0x7ef   : > { %v2887_v1 = vadd.f32 %v2878_v39, %v2854_v48  ;;  %v2888_v24 = vadd.f32 %v2879_v58, %v2855_v46  ;;  %2911 = vrot.lane.b32.xlu1 %v2900_v31, %s7357_s15  ;;  %v2618_v46 = vmul.f32 %v9212_v34, %v9124_v40  ;;  %v2666_v31 = vmul.f32 %v9126_v49, %v9317_v38 }
 0x7f0   : > { %v2989_v16 = vadd.f32 %v2984_v61, %v2975_v25  ;;  %v13216_v61 = vld [vmem:[#allocation49_spill] sm:$0xff] }
 0x7f1   : > { %v2901_v15 = vadd.f32 %v2896_v27, %v2887_v1  ;;  %v2902_v2 = vadd.f32 %v2897_v52, %v2888_v24  ;;  %v2959_v11 = vpop.permute.xlu1 %2958  ;;  %v2961_v48 = vpop.permute.xlu0 %2960  ;;  %v2985_v24 = vmul.f32 %v9272_v9, %v9307_v23  ;;  %v2623_v39 = vadd.f32 %v2618_v46, %v2609_v32 }
 0x7f2   : > { %v2966_v12 = vsel %vm382_vm0, %v2957_v30, %v2959_v11  ;;  %v2967_v17 = vsel %vm382_vm0, %v2959_v11, %v2961_v48  ;;  %2917 = vrot.lane.b32.xlu0 %v2903_v44, %s7357_s15  ;;  %v2704_v58 = vadd.f32 %v9482_v28, %v2666_v31  ;;  %v2940_v44 = vmul.f32 %v9270_v21, %v9310_v63  ;;  %v13217_v31 = vld [vmem:[#allocation40_spill] sm:$0xff] }
 0x7f3   : > { %v2976_v59 = vadd.f32 %v2966_v12, %v2938_v36  ;;  %v2977_v27 = vadd.f32 %v2967_v17, %v2939_v51  ;;  %2915 = vrot.lane.b32.xlu1 %v2902_v2, %s7357_s15  ;;  %v2994_v36 = vmul.f32 %v2989_v16, %v13216_v61  ;;  %v2713_v11 = vmul.f32 %v9212_v34, %v9130_v18 }
 0x7f4   : > { %v2761_v32 = vmul.f32 %v9134_v37, %v9317_v38  ;;  %v2987_v2 = vmul.f32 %v9272_v9, %v9317_v38  ;;  %v2628_v12 = vmul.f32 %v2623_v39, %v13217_v31 }
 0x7f5   : > { %v9581_v25 = vadd.f32 %v2985_v24, %v2976_v59  ;;  %v9583_v30 = vadd.f32 %v2986_v22, %v2977_v27  ;;  %v9587_v52 = vpop.permute.xlu1 %2962  ;;  %v3054_v1 = vpop.permute.xlu0 %3053  ;;  %v2718_v46 = vadd.f32 %v2713_v11, %v2704_v58  ;;  %v3033_v24 = vmul.f32 %v9284_v6, %v9301_v33 }
 0x7f6   : > { %v2968_v28 = vsel %vm382_vm0, %v2961_v48, %v9587_v52  ;;  %2913 = vrot.lane.b32.xlu0 %v2901_v15, %s7357_s15  ;;  %v2799_v16 = vadd.f32 %v9509_v50, %v2761_v32  ;;  %v3034_v15 = vmul.f32 %v9284_v6, %v9307_v23  ;;  %v2808_v22 = vmul.f32 %v9212_v34, %v9149_v41 }
 0x7f7   : > { %v2978_v51 = vadd.f32 %v2968_v28, %v2940_v44  ;;  %3004 = vrot.lane.b32.xlu1 %v2994_v36, %s7361_s22  ;;  %v3032_v27 = vmul.f32 %v9212_v34, %v9284_v6  ;;  %v3080_v58 = vmul.f32 %v9274_v62, %v9307_v23  ;;  %v3081_v36 = vmul.f32 %v9274_v62, %v9310_v63 }
 0x7f8   : > { %v2813_v32 = vadd.f32 %v2808_v22, %v2799_v16  ;;  %v3127_v16 = vmul.f32 %v9212_v34, %v9276_v43 }
 0x7f9   : > { %v9602_v17 = vadd.f32 %v2987_v2, %v2978_v51  ;;  %v3052_v59 = vpop.permute.xlu1 %3051  ;;  %v3056_v48 = vpop.permute.xlu0 %3055  ;;  %v13218_v2 = vld [vmem:[#allocation44_spill] sm:$0xff] }
 0x7fa   : > { %v3061_v50 = vsel %vm382_vm0, %v3052_v59, %v3054_v1  ;;  %v3062_v39 = vsel %vm382_vm0, %v3054_v1, %v3056_v48  ;;  %2642 = vrot.lane.b32.xlu0 %v2628_v12, %s7358_s8  ;;  %v3070_v28 = vadd.f32 %v3052_v59, %v3032_v27  ;;  %v2723_v51 = vmul.f32 %v2718_v46, %v13218_v2 }
 0x7fb   : > { %v3071_v44 = vadd.f32 %v3061_v50, %v3033_v24  ;;  %v3072_v11 = vadd.f32 %v3062_v39, %v3034_v15  ;;  %v3035_v1 = vmul.f32 %v9284_v6, %v9310_v63  ;;  %v3079_v24 = vmul.f32 %v9274_v62, %v9301_v33  ;;  %v13219_v50 = vld [vmem:[#allocation47_spill] sm:$0xff] }
 0x7fc   : > { %v3082_v46 = vmul.f32 %v9274_v62, %v9317_v38  ;;  %v2818_v39 = vmul.f32 %v2813_v32, %v13219_v50 }
 0x7fd   : > { %v9620_v61 = vadd.f32 %v3080_v58, %v3071_v44  ;;  %v9622_v31 = vadd.f32 %v3081_v36, %v3072_v11  ;;  %v9626_v12 = vpop.permute.xlu1 %3057  ;;  %v3147_v47 = vpop.permute.xlu0 %3146  ;;  %v3084_v22 = vadd.f32 %v3079_v24, %v3070_v28  ;;  %v2596_v58 = vsel %vm382_vm0, %v8932_v54, %v9453_v4 }
 0x7fe   : > { %v3063_v15 = vsel %vm382_vm0, %v3056_v48, %v9626_v12  ;;  %2737 = vrot.lane.b32.xlu0 %v2723_v51, %s7359_s10  ;;  %v3165_v27 = vadd.f32 %v3147_v47, %v3127_v16  ;;  %v3128_v48 = vmul.f32 %v9276_v43, %v9301_v33  ;;  %v2567_v51 = vmul.f32 %v9212_v34, %v13215_v57 }
 0x7ff   : > { %v3073_v59 = vadd.f32 %v3063_v15, %v3035_v1  ;;  %v3174_v28 = vmul.f32 %v9288_v7, %v9301_v33  ;;  %v3175_v54 = vmul.f32 %v9288_v7, %v9307_v23  ;;  %v13220_v15 = vld [vmem:[#allocation68_spill] sm:$0xff]  ;;  %v3129_v57 = vmul.f32 %v9276_v43, %v9307_v23 }
 0x800   : > { %v2605_v1 = vadd.f32 %v2596_v58, %v2567_v51  ;;  %v3089_v16 = vmul.f32 %v3084_v22, %v13220_v15  ;;  %v3176_v58 = vmul.f32 %v9288_v7, %v9310_v63  ;;  %v3177_v51 = vmul.f32 %v9288_v7, %v9317_v38 }
 0x801   : > { %v9641_v44 = vadd.f32 %v3082_v46, %v3073_v59  ;;  %v3149_v36 = vpop.permute.xlu1 %3148  ;;  %v9645_v11 = vpop.permute.xlu0 %3152  ;;  %v3179_v24 = vadd.f32 %v3174_v28, %v3165_v27  ;;  %v3130_v59 = vmul.f32 %v9276_v43, %v9310_v63 }
 0x802   : > { %v3156_v32 = vsel %vm382_vm0, %v3147_v47, %v3149_v36  ;;  %2832 = vrot.lane.b32.xlu0 %v2818_v39, %s7360_s16  ;;  %v2614_v39 = vmul.f32 %v9124_v40, %v9301_v33  ;;  %v3222_v40 = vmul.f32 %v9212_v34, %v9278_v26 }
 0x803   : > { %v3166_v4 = vadd.f32 %v3156_v32, %v3128_v48  ;;  %v2662_v48 = vmul.f32 %v9212_v34, %v9126_v49  ;;  %v3223_v49 = vmul.f32 %v9278_v26, %v9301_v33 }
 0x805   : > { %v9656_v46 = vadd.f32 %v3175_v54, %v3166_v4  ;;  %v3151_v50 = vpop.permute.xlu1 %3150  ;;  %v3244_v47 = vpop.permute.xlu0 %3243  ;;  %v2619_v54 = vadd.f32 %v2614_v39, %v2605_v1  ;;  %v3224_v1 = vmul.f32 %v9278_v26, %v9307_v23 }
 0x806   : > { %v3157_v27 = vsel %vm382_vm0, %v3149_v36, %v3151_v50  ;;  %v3158_v22 = vsel %vm382_vm0, %v3151_v50, %v9645_v11  ;;  %3099 = vrot.lane.b32.xlu0 %v3089_v16, %s7362_s30  ;;  %v13221_v36 = vld [vmem:[#allocation75_spill] sm:$0xff]  ;;  %v2691_v50 = vsel %vm382_vm0, %v9128_v14, %v9480_v8  ;;  %v3270_v14 = vmul.f32 %v9282_v35, %v9307_v23 }
 0x807   : > { %v3167_v28 = vadd.f32 %v3157_v27, %v3129_v57  ;;  %v3168_v32 = vadd.f32 %v3158_v22, %v3130_v59  ;;  %v3184_v4 = vmul.f32 %v3179_v24, %v13221_v36  ;;  %v3269_v59 = vmul.f32 %v9282_v35, %v9301_v33 }
 0x808   : > { %v3271_v22 = vmul.f32 %v9282_v35, %v9310_v63  ;;  %v2709_v23 = vmul.f32 %v9130_v18, %v9301_v33  ;;  %v2786_v18 = vsel %vm382_vm0, %v9140_v42, %v9507_v19  ;;  %v13228_v42 = vld [vmem:[#allocation67_spill] sm:$0xff] }
 0x809   : > { %v9682_v16 = vadd.f32 %v3176_v58, %v3167_v28  ;;  %v9684_v15 = vadd.f32 %v3177_v51, %v3168_v32  ;;  %v3242_v2 = vpop.permute.xlu1 %3241  ;;  %v3246_v57 = vpop.permute.xlu0 %3245  ;;  %v2700_v51 = vadd.f32 %v2691_v50, %v2662_v48  ;;  %v13223_v32 = vld [vmem:[#allocation39_spill] sm:$0xff]  ;;  %v13224_v48 = vld [vmem:[#allocation88_spill] sm:$0xff]  ;;  %v2627_v19 = vmul.f32 %v9476_v5, %v13228_v42 }
 0x80a   : > { %v3251_v39 = vsel %vm382_vm0, %v3242_v2, %v3244_v47  ;;  %v3260_v27 = vadd.f32 %v3242_v2, %v3222_v40  ;;  %v3252_v24 = vsel %vm382_vm0, %v3244_v47, %v3246_v57  ;;  %3194 = vrot.lane.b32.xlu0 %v3184_v4, %s7366_s14  ;;  %v2624_v36 = vmul.f32 %v2619_v54, %v13223_v32  ;;  %v13288_v32 = vld [vmem:[#allocation29_spill] sm:$0xff] }
 0x80b   : > { %13222 = vst [vmem:[#allocation87_spill] sm:$0xff] %v9682_v16  ;;  %v3261_v8 = vadd.f32 %v3251_v39, %v3223_v49  ;;  %v3262_v58 = vadd.f32 %v3252_v24, %v3224_v1  ;;  %v3225_v2 = vmul.f32 %v9278_v26, %v9310_v63  ;;  %v3272_v54 = vmul.f32 %v9282_v35, %v9317_v38  ;;  %v13225_v63 = vld [vmem:[#allocation69_spill] sm:$0xff]  ;;  %v13227_v24 = vld [vmem:[#allocation32_spill] sm:$0xff] }
 0x80c   : > { %v3274_v28 = vadd.f32 %v3269_v59, %v3260_v27  ;;  %v2714_v50 = vadd.f32 %v2709_v23, %v2700_v51  ;;  %v2626_v1 = vmul.f32 %v9474_v0, %v13225_v63  ;;  %v2804_v0 = vmul.f32 %v9149_v41, %v9301_v33  ;;  %v13231_v51 = vld [vmem:[#allocation34_spill] sm:$0xff] }
 0x80d   : > { %v9698_v16 = vadd.f32 %v3270_v14, %v3261_v8  ;;  %v9700_v7 = vadd.f32 %v3271_v22, %v3262_v58  ;;  %v9704_v47 = vpop.permute.xlu1 %3247  ;;  %v13299_v63 = vld [vmem:[#allocation86_spill] sm:$0xff] }
 0x80e   : > { %v3253_v40 = vsel %vm382_vm0, %v3246_v57, %v9704_v47  ;;  %2634 = vrot.lane.b32.xlu0 %v2624_v36, %s7358_s8  ;;  %v3279_v49 = vmul.f32 %v3274_v28, %v13224_v48  ;;  %v2757_v36 = vmul.f32 %v9212_v34, %v9134_v37  ;;  %v13226_v57 = vld [vmem:[#allocation66_spill] sm:$0xff]  ;;  %v2719_v14 = vmul.f32 %v2714_v50, %v13227_v24  ;;  %v13229_v37 = vld [vmem:[#allocation56_spill] sm:$0xff]  ;;  %v13232_v28 = vld [vmem:[#allocation57_spill] sm:$0xff] }
 0x80f   : > { %v3263_v4 = vadd.f32 %v3253_v40, %v3225_v2  ;;  %v2625_v39 = vmul.f32 %v9461_v10, %v13226_v57  ;;  %v2721_v22 = vmul.f32 %v9501_v29, %v13229_v37  ;;  %v13230_v10 = vld [vmem:[#allocation43_spill] sm:$0xff]  ;;  %v2722_v5 = vmul.f32 %v9503_v55, %v13232_v28  ;;  %v13234_v29 = vld [vmem:[#allocation33_spill] sm:$0xff]  ;;  %v13235_v55 = vld [vmem:[#allocation58_spill] sm:$0xff] }
 0x810   : > { %3289 = vrot.lane.b32.xlu1 %v3279_v49, %s7370_s17  ;;  %v2795_v27 = vadd.f32 %v2786_v18, %v2757_v36  ;;  %v2720_v58 = vmul.f32 %v9488_v3, %v13230_v10  ;;  %v13233_v2 = vld [vmem:[#allocation35_spill] sm:$0xff]  ;;  %v2815_v40 = vmul.f32 %v9515_v13, %v13234_v29  ;;  %v2969_v3 = vsel %vm382_vm0, %v9587_v52, %v9280_v56  ;;  %v13236_v50 = vld [vmem:[#allocation45_spill] sm:$0xff] }
 0x811   : > { %v9720_v59 = vadd.f32 %v3272_v54, %v3263_v4  ;;  %v2816_v23 = vmul.f32 %v9530_v60, %v13233_v2  ;;  %v2941_v49 = vmul.f32 %v9270_v21, %v9317_v38  ;;  %v2995_v54 = vmul.f32 %v9581_v25, %v13235_v55  ;;  %v13237_v25 = vld [vmem:[#allocation59_spill] sm:$0xff]  ;;  %v13291_v2 = vld [vmem:[#allocation30_spill] sm:$0xff] }
 0x812   : > { %2638 = vrot.lane.b32.xlu0 %v2626_v1, %s7358_s8  ;;  %v2809_v8 = vadd.f32 %v2804_v0, %v2795_v27  ;;  %v3064_v60 = vsel %vm382_vm0, %v9626_v12, %v9290_v45  ;;  %v3036_v13 = vmul.f32 %v9284_v6, %v9317_v38  ;;  %v2817_v56 = vmul.f32 %v9532_v53, %v13236_v50  ;;  %v13238_v6 = vld [vmem:[#allocation46_spill] sm:$0xff]  ;;  %v13332_v37 = vld [vmem:[#allocation23_spill] sm:$0xff] }
 0x813   : > { %v2979_v4 = vadd.f32 %v2969_v3, %v2941_v49  ;;  %v2988_v21 = vmul.f32 %v9212_v34, %v9272_v9  ;;  %v2997_v1 = vmul.f32 %v9602_v17, %v13237_v25  ;;  %v3083_v45 = vmul.f32 %v9212_v34, %v9274_v62  ;;  %v13239_v53 = vld [vmem:[#allocation62_spill] sm:$0xff]  ;;  %v13241_v17 = vld [vmem:[#allocation65_spill] sm:$0xff]  ;;  %v13242_v62 = vld [vmem:[#allocation60_spill] sm:$0xff] }
 0x814   : > { %2636 = vrot.lane.b32.xlu1 %v2625_v39, %s7358_s8  ;;  %v2814_v41 = vmul.f32 %v2809_v8, %v13231_v51  ;;  %v3074_v52 = vadd.f32 %v3064_v60, %v3036_v13  ;;  %v2996_v12 = vmul.f32 %v9583_v30, %v13238_v6  ;;  %v3091_v9 = vmul.f32 %v9622_v31, %v13239_v53  ;;  %v13240_v39 = vld [vmem:[#allocation61_spill] sm:$0xff]  ;;  %v13248_v3 = vld [vmem:[#allocation96_spill] sm:$0xff] }
 0x815   : > { %v2993_v18 = vadd.f32 %v2988_v21, %v2979_v4  ;;  %v3090_v0 = vmul.f32 %v9620_v61, %v13242_v62  ;;  %v13243_v30 = vld [vmem:[#allocation81_spill] sm:$0xff]  ;;  %v3254_v31 = vsel %vm382_vm0, %v9704_v47, %v9294_v20  ;;  %v3226_v8 = vmul.f32 %v9278_v26, %v9317_v38  ;;  %v13251_v4 = vld [vmem:[#allocation87_spill] sm:$0xff]  ;;  %v13252_v13 = vld [vmem:[#allocation92_spill] sm:$0xff] }
 0x816   : > { %2729 = vrot.lane.b32.xlu0 %v2719_v14, %s7359_s10  ;;  %v3088_v36 = vadd.f32 %v3083_v45, %v3074_v52  ;;  %v3273_v26 = vmul.f32 %v9212_v34, %v9282_v35  ;;  %v13254_v21 = vld [vmem:[#allocation94_spill] sm:$0xff]  ;;  %v13257_v45 = vmov 39   ;;  %v9971_v62 = vld [vmem:[#allocation2 + $0x20] sm:$0xff]  ;;  %v2495_v10 = vmul.f32 %v13288_v32, %v9317_v38 }
 0x817   : > { %v2998_v27 = vmul.f32 %v2993_v18, %v13240_v39  ;;  %v3282_v52 = vmul.f32 %v9720_v59, %v13254_v21  ;;  %v13256_v18 = vld [vmem:[#allocation73_spill] sm:$0xff]  ;;  %v13260_v59 = vmov 35   ;;  %v2491_v51 = vmul.f32 %v9971_v62, %v13288_v32 }
 0x818   : > { %2640 = vrot.lane.b32.xlu1 %v2627_v19, %s7358_s8  ;;  %v3093_v14 = vmul.f32 %v3088_v36, %v13241_v17  ;;  %v3187_v19 = vmul.f32 %v9684_v15, %v13243_v30  ;;  %v3264_v15 = vadd.f32 %v3254_v31, %v3226_v8  ;;  %v13259_v36 = vmov 37   ;;  %v13290_v30 = vld [vmem:[#allocation25_spill] sm:$0xff] }
 0x819   : > { %v12840_v31 = vmov 51   ;;  %v2543_v17 = vmul.f32 %v13290_v30, %v9301_v33 }
 0x81a   : > { %2733 = vrot.lane.b32.xlu0 %v2721_v22, %s7359_s10  ;;  %v13244_v22 = vld [vmem:[#allocation26_spill] sm:$0xff]  ;;  %v3278_v49 = vadd.f32 %v3273_v26, %v3264_v15  ;;  %v13267_v15 = vmov 41  }
 0x81c   : > { %2731 = vrot.lane.b32.xlu1 %v2720_v58, %s7359_s10  ;;  %v3092_v58 = vmul.f32 %v9641_v44, %v13244_v22  ;;  %v13247_v44 = vld [vmem:[#allocation78_spill] sm:$0xff] }
 0x81e   : > { %2824 = vrot.lane.b32.xlu0 %v2814_v41, %s7360_s16  ;;  %v13245_v41 = vld [vmem:[#allocation74_spill] sm:$0xff] }
 0x81f   : > { %v3159_v61 = vsel %vm382_vm0, %v9645_v11, %v13245_v41  ;;  %v3178_v11 = vmul.f32 %v9212_v34, %v13248_v3  ;;  %v9856_v41 = vld [vmem:[#allocation9] sm:$0xff]  ;;  %v13270_v3 = vmov 16  }
 0x820   : > { %2735 = vrot.lane.b32.xlu1 %v2722_v5, %s7359_s10  ;;  %v3131_v5 = vmul.f32 %v9276_v43, %v9317_v38  ;;  %v13249_v43 = vld [vmem:[#allocation93_spill] sm:$0xff]  ;;  %v13292_v38 = vld [vmem:[#allocation38_spill] sm:$0xff] }
 0x822   : > { %2828 = vrot.lane.b32.xlu0 %v2816_v23, %s7360_s16  ;;  %v13246_v23 = vld [vmem:[#allocation90_spill] sm:$0xff]  ;;  %v3169_v47 = vadd.f32 %v3159_v61, %v3131_v5  ;;  %v13266_v61 = vmov 5  }
 0x823   : > { %v3280_v20 = vmul.f32 %v9698_v16, %v13246_v23  ;;  %v13250_v16 = vld [vmem:[#allocation79_spill] sm:$0xff]  ;;  %v13287_v23 = vld [vmem:[#allocation41_spill] sm:$0xff] }
 0x824   : > { %2826 = vrot.lane.b32.xlu1 %v2815_v40, %s7360_s16  ;;  %v3185_v40 = vmul.f32 %v9656_v46, %v13247_v44  ;;  %v3183_v60 = vadd.f32 %v3178_v11, %v3169_v47  ;;  %v3186_v35 = vmul.f32 %v13251_v4, %v13250_v16  ;;  %v13253_v46 = vld [vmem:[#allocation80_spill] sm:$0xff]  ;;  %v13268_v47 = vmov 6  }
 0x825   : > { %v13273_v4 = vmov 44  }
 0x826   : > { %3006 = vrot.lane.b32.xlu0 %v2995_v54, %s7361_s22  ;;  %v3281_v54 = vmul.f32 %v9700_v7, %v13249_v43  ;;  %v3188_v34 = vmul.f32 %v3183_v60, %v13253_v46  ;;  %v7103_v7 = vld [vmem:[#allocation9 + $0x8] sm:$0xff]  ;;  %v13272_v60 = vmov 19  }
 0x828   : > { %2830 = vrot.lane.b32.xlu1 %v2817_v56, %s7360_s16  ;;  %v3283_v56 = vmul.f32 %v3278_v49, %v13252_v13  ;;  %v13289_v13 = vld [vmem:[#allocation91_spill] sm:$0xff] }
 0x829   : > { %v2533_v16 = vadd.f32 %v13289_v13, %v2495_v10 }
 0x82a   : > { %3010 = vrot.lane.b32.xlu0 %v2997_v1, %s7361_s22  ;;  %v13255_v1 = vmov 36  }
 0x82c   : > { %3008 = vrot.lane.b32.xlu1 %v2996_v12, %s7361_s22  ;;  %v13258_v12 = vmov 34  }
 0x82e   : > { %3103 = vrot.lane.b32.xlu0 %v3091_v9, %s7362_s30  ;;  %v13261_v9 = vmov 40  }
 0x830   : > { %3012 = vrot.lane.b32.xlu1 %v2998_v27, %s7361_s22  ;;  %v13262_v27 = vmov 42  }
 0x832   : > { %3107 = vrot.lane.b32.xlu0 %v3093_v14, %s7362_s30  ;;  %v13263_v14 = vmov 38  }
 0x834   : > { %3101 = vrot.lane.b32.xlu1 %v3090_v0, %s7362_s30  ;;  %v13264_v0 = vmov 45  }
 0x836   : > { %3200 = vrot.lane.b32.xlu0 %v3187_v19, %s7366_s14  ;;  %v13265_v19 = vmov 48  }
 0x838   : > { %3105 = vrot.lane.b32.xlu1 %v3092_v58, %s7362_s30  ;;  %v12839_v58 = vmov 54  }
 0x83a   : > { %3291 = vrot.lane.b32.xlu0 %v3280_v20, %s7370_s17  ;;  %v9865_v20 = vld [vmem:[#allocation11] sm:$0xff] }
 0x83c   : > { %3196 = vrot.lane.b32.xlu1 %v3185_v40, %s7366_s14  ;;  %v13269_v40 = vmov 4  }
 0x83e   : > { %3293 = vrot.lane.b32.xlu0 %v3281_v54, %s7370_s17  ;;  %v13271_v54 = vmov 43  }
 0x840   : > { %3198 = vrot.lane.b32.xlu1 %v3186_v35, %s7366_s14  ;;  %v13274_v35 = vmov 22  }
 0x842   : > { %3297 = vrot.lane.b32.xlu0 %v3283_v56, %s7370_s17 }
 0x844   : > { %3202 = vrot.lane.b32.xlu1 %v3188_v34, %s7366_s14 }
 0x846   : > { %3516 = vperm.xlu0 %6899, %v7103_v7  }
 0x848   : > { %3295 = vrot.lane.b32.xlu1 %v3282_v52, %s7370_s17  ;;  %v13275_v52 = vmov 46  }
 0x84a   : > { %6901 = vset.pattern.permute.xlu0 %v13255_v1 }
 0x84b   : > { %3608 = vperm.xlu0 %6901, %v13256_v18  }
 0x84c   : > { %3468 = vperm.xlu1 %6897, %v7103_v7  }
 0x84f   : > { %6904 = vset.pattern.permute.xlu0 %v13257_v45 }
 0x850   : > { %6898 = vset.pattern.permute.xlu1 %v13258_v12  ;;  %3752 = vperm.xlu0 %6904, %v13256_v18  }
 0x851   : > { %3512 = vperm.xlu1 %6898, %v13256_v18  }
 0x854   : > { %6907 = vset.pattern.permute.xlu0 %v13259_v36 }
 0x855   : > { %6900 = vset.pattern.permute.xlu1 %v13260_v59  ;;  %3660 = vperm.xlu0 %6907, %v7103_v7  }
 0x856   : > { %3560 = vperm.xlu1 %6900, %v13256_v18  }
 0x859   : > { %6910 = vset.pattern.permute.xlu0 %v13261_v9 }
 0x85a   : > { %3564 = vperm.xlu1 %6900, %v7103_v7   ;;  %3804 = vperm.xlu0 %6910, %v7103_v7  }
 0x85e   : > { %6902 = vset.pattern.permute.xlu1 %v13259_v36  ;;  %6913 = vset.pattern.permute.xlu0 %v13262_v27  ;;  %v13283_v27 = vmov 0  }
 0x85f   : > { %3656 = vperm.xlu1 %6902, %v13256_v18   ;;  %3937 = vperm.xlu0 %6913, %v13256_v18  }
 0x860   : > { %v9890_v34 = vpop.permute.xlu0 %2909 }
 0x861   : > { %v9852_v8 = vpop.permute.xlu1 %2911 }
 0x863   : > { %6903 = vset.pattern.permute.xlu1 %v13263_v14  ;;  %6916 = vset.pattern.permute.xlu0 %v13264_v0 }
 0x864   : > { %3704 = vperm.xlu1 %6903, %v13256_v18   ;;  %4039 = vperm.xlu0 %6916, %v13256_v18  }
 0x865   : > { %v9861_v5 = vpop.permute.xlu1 %2915 }
 0x868   : > { %6905 = vset.pattern.permute.xlu1 %v13261_v9  ;;  %6919 = vset.pattern.permute.xlu0 %v13265_v19  ;;  %v12848_v19 = vmov 56   ;;  %v13284_v9 = vmov 15  }
 0x869   : > { %3800 = vperm.xlu1 %6905, %v13256_v18   ;;  %4141 = vperm.xlu0 %6919, %v13256_v18   ;;  %v9870_v26 = vpop.permute.xlu1 %3004 }
 0x86d   : > { %6906 = vset.pattern.permute.xlu1 %v13255_v1  ;;  %6922 = vset.pattern.permute.xlu0 %v12840_v31  ;;  %v13280_v31 = vmov 27  }
 0x86e   : > { %3612 = vperm.xlu1 %6906, %v7103_v7   ;;  %4243 = vperm.xlu0 %6922, %v13256_v18  }
 0x872   : > { %6908 = vset.pattern.permute.xlu1 %v13263_v14  ;;  %6925 = vset.pattern.permute.xlu0 %v12839_v58 }
 0x873   : > { %3708 = vperm.xlu1 %6908, %v7103_v7   ;;  %4345 = vperm.xlu0 %6925, %v9856_v41  }
 0x877   : > { %6909 = vset.pattern.permute.xlu1 %v13257_v45  ;;  %6928 = vset.pattern.permute.xlu0 %v13266_v61 }
 0x878   : > { %3756 = vperm.xlu1 %6909, %v7103_v7   ;;  %4427 = vperm.xlu0 %6928, %v9856_v41   ;;  %v13276_v7 = vmov 7  }
 0x87c   : > { %6911 = vset.pattern.permute.xlu1 %v13267_v15  ;;  %6930 = vset.pattern.permute.xlu0 %v13268_v47  ;;  %v9898_v47 = vpop.permute.xlu0 %2917  ;;  %v12844_v15 = vmov 55  }
 0x87d   : > { %3903 = vperm.xlu1 %6911, %v9856_v41   ;;  %4481 = vperm.xlu0 %6930, %v9865_v20  }
 0x880   : > { %v9906_v58 = vpop.permute.xlu0 %2913 }
 0x881   : > { %6912 = vset.pattern.permute.xlu1 %v13269_v40  ;;  %6932 = vset.pattern.permute.xlu0 %v13270_v3  ;;  %v13277_v3 = vmov 47   ;;  %v12843_v40 = vmov 53  }
 0x882   : > { %v9874_v11 = vpop.permute.xlu1 %3289  ;;  %3878 = vperm.xlu1 %6912, %v9856_v41   ;;  %4566 = vperm.xlu0 %6932, %v9865_v20  }
 0x886   : > { %v9878_v49 = vpop.permute.xlu1 %2636  ;;  %6914 = vset.pattern.permute.xlu1 %v13271_v54  ;;  %6935 = vset.pattern.permute.xlu0 %v13272_v60  ;;  %v13278_v60 = vmov 8   ;;  %v13282_v54 = vmov 29  }
 0x887   : > { %3971 = vperm.xlu1 %6914, %v9856_v41   ;;  %4851 = vperm.xlu0 %6935, %v9865_v20  }
 0x88a   : > { %v9886_v56 = vpop.permute.xlu1 %2640 }
 0x88b   : > { %6915 = vset.pattern.permute.xlu1 %v13273_v4  ;;  %6938 = vset.pattern.permute.xlu0 %v13274_v35  ;;  %v13281_v4 = vmov 11  }
 0x88c   : > { %4005 = vperm.xlu1 %6915, %v9856_v41   ;;  %5126 = vperm.xlu0 %6938, %v9865_v20  }
 0x88e   : > { %v9896_v18 = vpop.permute.xlu1 %2731 }
 0x890   : > { %6917 = vset.pattern.permute.xlu1 %v13275_v52  ;;  %6941 = vset.pattern.permute.xlu0 %v13276_v7  ;;  %v13279_v7 = vmov 49  }
 0x891   : > { %4073 = vperm.xlu1 %6917, %v9856_v41   ;;  %4557 = vperm.xlu0 %6941, %v9865_v20  }
 0x892   : > { %v9904_v35 = vpop.permute.xlu1 %2735 }
 0x895   : > { %6918 = vset.pattern.permute.xlu1 %v13277_v3  ;;  %6943 = vset.pattern.permute.xlu0 %v13278_v60  ;;  %v9914_v3 = vpop.permute.xlu0 %2642  ;;  %v12841_v60 = vmov 50  }
 0x896   : > { %4107 = vperm.xlu1 %6918, %v9856_v41   ;;  %4652 = vperm.xlu0 %6943, %v9865_v20   ;;  %v9912_v52 = vpop.permute.xlu1 %2826 }
 0x899   : > { %v9924_v61 = vpop.permute.xlu0 %2737 }
 0x89a   : > { %6920 = vset.pattern.permute.xlu1 %v13279_v7  ;;  %6946 = vset.pattern.permute.xlu0 %v13280_v31  ;;  %v9920_v7 = vpop.permute.xlu1 %2830  ;;  %v12842_v31 = vmov 52  }
 0x89b   : > { %4175 = vperm.xlu1 %6920, %v9856_v41   ;;  %4794 = vperm.xlu0 %6946, %v9865_v20  }
 0x89f   : > { %6921 = vset.pattern.permute.xlu1 %v12841_v60  ;;  %6948 = vset.pattern.permute.xlu0 %v13281_v4  ;;  %v9928_v60 = vpop.permute.xlu1 %3008  ;;  %v9931_v4 = vpop.permute.xlu0 %2832 }
 0x8a0   : > { %4209 = vperm.xlu1 %6921, %v9856_v41   ;;  %4927 = vperm.xlu0 %6948, %v9865_v20  }
 0x8a4   : > { %6923 = vset.pattern.permute.xlu1 %v12842_v31  ;;  %6950 = vset.pattern.permute.xlu0 %v13282_v54  ;;  %v9935_v31 = vpop.permute.xlu1 %3012  ;;  %v9937_v54 = vpop.permute.xlu0 %3099 }
 0x8a5   : > { %4277 = vperm.xlu1 %6923, %v9856_v41  }
 0x8a8   : > { %v9943_v0 = vpop.permute.xlu0 %3194 }
 0x8a9   : > { %6924 = vset.pattern.permute.xlu1 %v12843_v40  ;;  %v9941_v40 = vpop.permute.xlu1 %3101 }
 0x8aa   : > { %4311 = vperm.xlu1 %6924, %v9856_v41  }
 0x8ac   : > { %v2635_v45 = vpop.permute.xlu0 %2634 }
 0x8ad   : > { %v2644_v10 = vsel %vm623_vm9, %v2635_v45, %v9878_v49 }
 0x8ae   : > { %6926 = vset.pattern.permute.xlu1 %v12844_v15  ;;  %v9947_v15 = vpop.permute.xlu1 %3105 }
 0x8af   : > { %4379 = vperm.xlu1 %6926, %v9856_v41  }
 0x8b2   : > { %v9951_v14 = vpop.permute.xlu1 %3196 }
 0x8b3   : > { %6927 = vset.pattern.permute.xlu1 %v12848_v19  ;;  %v13285_v19 = vmov 17  }
 0x8b4   : > { %4413 = vperm.xlu1 %6927, %v9856_v41   ;;  %v2639_v41 = vpop.permute.xlu0 %2638 }
 0x8b6   : > { %v9954_v36 = vpop.permute.xlu1 %3198 }
 0x8b8   : > { %6929 = vset.pattern.permute.xlu1 %v13283_v27  ;;  %v2730_v1 = vpop.permute.xlu0 %2729 }
 0x8b9   : > { %4471 = vperm.xlu1 %6929, %v9865_v20  }
 0x8ba   : > { %v9956_v12 = vpop.permute.xlu1 %3202 }
 0x8bc   : > { %v2734_v27 = vpop.permute.xlu0 %2733 }
 0x8bd   : > { %6931 = vset.pattern.permute.xlu1 %v13284_v9 }
 0x8be   : > { %4490 = vperm.xlu1 %6931, %v9865_v20   ;;  %v9958_v59 = vpop.permute.xlu1 %3295 }
 0x8c0   : > { %v2825_v21 = vpop.permute.xlu0 %2824 }
 0x8c1   : > { %v2834_v45 = vsel %vm931_vm11, %v2825_v21, %v9912_v52 }
 0x8c2   : > { %6933 = vset.pattern.permute.xlu1 %v13285_v19  ;;  %v13286_v19 = vld [vmem:[#allocation77_spill] sm:$0xff] }
 0x8c3   : > { %v2520_v24 = vsel %vm382_vm0, %v13287_v23, %v13286_v19  ;;  %v2547_v23 = vmul.f32 %v9971_v62, %v13290_v30  ;;  %v13294_v30 = vld [vmem:[#allocation55_spill] sm:$0xff] }
 0x8c4   : > { %v2829_v55 = vpop.permute.xlu0 %2828  ;;  %v2529_v57 = vadd.f32 %v2520_v24, %v2491_v51  ;;  %v13293_v51 = vld [vmem:[#allocation119_spill] sm:$0xff] }
 0x8c5   : > { %v2552_v6 = vadd.f32 %v2547_v23, %v2533_v16  ;;  %v2739_v16 = vsel %vm778_vm10, %v2730_v1, %v9896_v18  ;;  %v2645_v1 = vsel %vm623_vm9, %v9878_v49, %v2639_v41 }
 0x8c6   : > { %v2548_v19 = vadd.f32 %v2543_v17, %v2529_v57  ;;  %v13295_v57 = vld [vmem:[#allocation85_spill] sm:$0xff] }
 0x8c7   : > { %v9960_v44 = vpop.permute.xlu1 %3468  ;;  %v2557_v32 = vmul.f32 %v2552_v6, %v13292_v38  ;;  %v2555_v17 = vmul.f32 %v13295_v57, %v13294_v30 }
 0x8c8   : > { %v9964_v43 = vpop.permute.xlu0 %3006  ;;  %v2553_v25 = vmul.f32 %v2548_v19, %v13291_v2  ;;  %v13296_v19 = vld [vmem:[#allocation53_spill] sm:$0xff]  ;;  %v13297_v2 = vld [vmem:[#allocation50_spill] sm:$0xff] }
 0x8c9   : > { %v2562_v13 = vadd.f32 %v2557_v32, %v13293_v51  ;;  %v2554_v6 = vmul.f32 %v13297_v2, %v13296_v19  ;;  %v2560_v30 = vadd.f32 %v2555_v17, %v13293_v51  ;;  %v13298_v19 = vld [vmem:[#allocation42_spill] sm:$0xff]  ;;  %v2919_v17 = vsel %vm1017_vm12, %v9890_v34, %v9852_v8 }
 0x8ca   : > { %v2558_v33 = vadd.f32 %v2553_v25, %v13293_v51  ;;  %v2646_v25 = vsel %vm623_vm9, %v2639_v41, %v9886_v56  ;;  %v2556_v49 = vmul.f32 %v13299_v63, %v13298_v19  ;;  %v2836_v41 = vsel %vm931_vm11, %v2829_v55, %v9920_v7 }
 0x8cb   : > { %v2657_v28 = vadd.f32 %v9914_v3, %v2562_v13  ;;  %v2559_v2 = vadd.f32 %v2554_v6, %v13293_v51  ;;  %v2655_v13 = vadd.f32 %v2646_v25, %v2560_v30  ;;  %v2835_v30 = vsel %vm931_vm11, %v9912_v52, %v2829_v55 }
 0x8cc   : > { %v9962_v9 = vpop.permute.xlu1 %3512  ;;  %v9975_v48 = vpop.permute.xlu0 %3010  ;;  %v2653_v38 = vadd.f32 %v2644_v10, %v2558_v33  ;;  %v2741_v10 = vsel %vm778_vm10, %v2734_v27, %v9904_v35  ;;  %v2742_v34 = vsel %vm778_vm10, %v9904_v35, %v9924_v61  ;;  %v3014_v55 = vsel %vm1170_vm13, %v9870_v26, %v9964_v43 }
 0x8cd   : > { %v2752_v57 = vadd.f32 %v9924_v61, %v2657_v28  ;;  %v2654_v28 = vadd.f32 %v2645_v1, %v2559_v2  ;;  %v2750_v6 = vadd.f32 %v2741_v10, %v2655_v13  ;;  %v2921_v61 = vsel %vm1017_vm12, %v9906_v58, %v9861_v5 }
 0x8ce   : > { %v2748_v32 = vadd.f32 %v2739_v16, %v2653_v38  ;;  %v2740_v38 = vsel %vm778_vm10, %v9896_v18, %v2734_v27  ;;  %v2647_v27 = vsel %vm623_vm9, %v9886_v56, %v9914_v3  ;;  %v3109_v56 = vsel %vm1325_vm14, %v9937_v54, %v9941_v40 }
 0x8cf   : > { %v2847_v21 = vadd.f32 %v9931_v4, %v2752_v57  ;;  %v2561_v57 = vadd.f32 %v2556_v49, %v13293_v51  ;;  %v2920_v51 = vsel %vm1017_vm12, %v9852_v8, %v9906_v58  ;;  %v2837_v26 = vsel %vm931_vm11, %v9920_v7, %v9931_v4 }
 0x8d0   : > { %v9986_v46 = vpop.permute.xlu0 %3103  ;;  %v2843_v33 = vadd.f32 %v2834_v45, %v2748_v32  ;;  %v2749_v45 = vadd.f32 %v2740_v38, %v2654_v28  ;;  %v2845_v32 = vadd.f32 %v2836_v41, %v2750_v6  ;;  %v3015_v54 = vsel %vm1170_vm13, %v9964_v43, %v9928_v60 }
 0x8d1   : > { %v9966_v29 = vpop.permute.xlu1 %3560  ;;  %v2932_v63 = vadd.f32 %v9898_v47, %v2847_v21  ;;  %v2656_v35 = vadd.f32 %v2647_v27, %v2561_v57  ;;  %v3016_v58 = vsel %vm1170_vm13, %v9928_v60, %v9975_v48  ;;  %v3110_v7 = vsel %vm1325_vm14, %v9941_v40, %v9986_v46 }
 0x8d2   : > { %v2928_v25 = vadd.f32 %v2919_v17, %v2843_v33  ;;  %v2844_v1 = vadd.f32 %v2835_v30, %v2749_v45  ;;  %v2930_v10 = vadd.f32 %v2921_v61, %v2845_v32  ;;  %v3204_v33 = vsel %vm1478_vm15, %v9943_v0, %v9951_v14 }
 0x8d3   : > { %v3027_v52 = vadd.f32 %v9935_v31, %v2932_v63  ;;  %v2751_v8 = vadd.f32 %v2742_v34, %v2656_v35  ;;  %v3111_v0 = vsel %vm1325_vm14, %v9986_v46, %v9947_v15  ;;  %v3205_v60 = vsel %vm1478_vm15, %v9951_v14, %v9954_v36 }
 0x8d4   : > { %v9992_v24 = vpop.permute.xlu0 %3107  ;;  %v3023_v2 = vadd.f32 %v3014_v55, %v2928_v25  ;;  %v2929_v21 = vadd.f32 %v2920_v51, %v2844_v1  ;;  %v3025_v41 = vadd.f32 %v3016_v58, %v2930_v10  ;;  %v2922_v45 = vsel %vm1017_vm12, %v9861_v5, %v9898_v47 }
 0x8d5   : > { %v9980_v22 = vpop.permute.xlu1 %3564  ;;  %v3122_v28 = vadd.f32 %v9992_v24, %v3027_v52  ;;  %v2846_v4 = vadd.f32 %v2837_v26, %v2751_v8  ;;  %v3017_v46 = vsel %vm1170_vm13, %v9975_v48, %v9935_v31 }
 0x8d6   : > { %v3118_v13 = vadd.f32 %v3109_v56, %v3023_v2  ;;  %v3024_v43 = vadd.f32 %v3015_v54, %v2929_v21  ;;  %v3120_v25 = vadd.f32 %v3111_v0, %v3025_v41 }
 0x8d7   : > { %v3217_v17 = vadd.f32 %v9956_v12, %v3122_v28  ;;  %v2931_v27 = vadd.f32 %v2922_v45, %v2846_v4 }
 0x8d8   : > { %v10011_v39 = vpop.permute.xlu0 %3200  ;;  %v3213_v49 = vadd.f32 %v3204_v33, %v3118_v13  ;;  %v3119_v30 = vadd.f32 %v3110_v7, %v3024_v43 }
 0x8d9   : > { %v3206_v40 = vsel %vm1478_vm15, %v9954_v36, %v10011_v39  ;;  %v3112_v36 = vsel %vm1325_vm14, %v9947_v15, %v9992_v24  ;;  %v3026_v34 = vadd.f32 %v3017_v46, %v2931_v27 }
 0x8da   : > { %v9988_v53 = vpop.permute.xlu1 %3656  ;;  %v3214_v63 = vadd.f32 %v3205_v60, %v3119_v30  ;;  %v3215_v5 = vadd.f32 %v3206_v40, %v3120_v25 }
 0x8db   : > { %v3121_v52 = vadd.f32 %v3112_v36, %v3026_v34 }
 0x8dc   : > { %v3292_v18 = vpop.permute.xlu0 %3291 }
 0x8dd   : > { %v3299_v14 = vsel %vm1631_vm1, %v9874_v11, %v3292_v18  ;;  %v3207_v11 = vsel %vm1478_vm15, %v10011_v39, %v9956_v12 }
 0x8de   : > { %v3308_v32 = vadd.f32 %v3299_v14, %v3213_v49  ;;  %v3216_v24 = vadd.f32 %v3207_v11, %v3121_v52 }
 0x8df   : > { %v10002_v23 = vpop.permute.xlu1 %3704 }
 0x8e0   : > { %v3294_v38 = vpop.permute.xlu0 %3293  ;;  %v3314_v56 = vsel %vm3313_vm5, %v3308_v32, 0.0 }
 0x8e1   : > { %v3301_v1 = vsel %vm1631_vm1, %v3294_v38, %v9958_v59  ;;  %v3300_v48 = vsel %vm1631_vm1, %v3292_v18, %v3294_v38  ;;  %v3315_v35 = vrot.slane %v3314_v56, 4 }
 0x8e2   : > { %v3310_v31 = vadd.f32 %v3301_v1, %v3215_v5  ;;  %v3309_v51 = vadd.f32 %v3300_v48, %v3214_v63 }
 0x8e3   : > { %v3316_v39 = vadd.f32 %v3315_v35, %v3314_v56 }
 0x8e4   : > { %v10023_v16 = vpop.permute.xlu1 %3800  ;;  %v3298_v57 = vpop.permute.xlu0 %3297  ;;  %v3327_v2 = vrot.slane %v3310_v31, 4  ;;  %v3321_v18 = vrot.slane %v3309_v51, 4 }
 0x8e5   : > { %v3312_v47 = vadd.f32 %v3298_v57, %v3217_v17  ;;  %v3302_v15 = vsel %vm1631_vm1, %v9958_v59, %v3298_v57  ;;  %v3317_v58 = vrot.slane %v3316_v39, 2 }
 0x8e6   : > { %v3311_v10 = vadd.f32 %v3302_v15, %v3216_v24  ;;  %v3328_v12 = vadd.f32 %v3327_v2, %v3310_v31  ;;  %v3322_v33 = vadd.f32 %v3321_v18, %v3309_v51 }
 0x8e7   : > { %v3339_v61 = vsel %vm466_vm8, %v3312_v47, 0.0  ;;  %v3318_v4 = vadd.f32 %v3317_v58, %v3316_v39 }
 0x8e8   : > { %v3340_v26 = vrot.slane %v3339_v61, 4  ;;  %v3333_v21 = vrot.slane %v3311_v10, 4  ;;  %v3329_v13 = vrot.slane %v3328_v12, 2  ;;  %v3323_v28 = vrot.slane %v3322_v33, 2 }
 0x8e9   : > { %v10049_v3 = vpop.permute.xlu1 %3612  ;;  %v3319_v17 = vrot.slane %v3318_v4, 1 }
 0x8ea   : > { %v3341_v8 = vadd.f32 %v3340_v26, %v3339_v61  ;;  %v3334_v59 = vadd.f32 %v3333_v21, %v3311_v10  ;;  %v3330_v43 = vadd.f32 %v3329_v13, %v3328_v12  ;;  %v3324_v0 = vadd.f32 %v3323_v28, %v3322_v33 }
 0x8eb   : > { %v3320_v25 = vadd.f32 %v3319_v17, %v3318_v4  ;;  %v10146_v17 = vpop.permute.xlu0 %3516 }
 0x8ec   : > { %v3342_v7 = vrot.slane %v3341_v8, 2  ;;  %v3335_v41 = vrot.slane %v3334_v59, 2  ;;  %v3331_v30 = vrot.slane %v3330_v43, 1  ;;  %v3325_v40 = vrot.slane %v3324_v0, 1 }
 0x8ed   : > { %v3347_v36 = vmul.f32 0.125, %v3320_v25 }
 0x8ee   : > { %v10080_v6 = vpop.permute.xlu1 %3708  ;;  %v3343_v49 = vadd.f32 %v3342_v7, %v3341_v8  ;;  %v3336_v46 = vadd.f32 %v3335_v41, %v3334_v59  ;;  %v3332_v14 = vadd.f32 %v3331_v30, %v3330_v43  ;;  %v3326_v63 = vadd.f32 %v3325_v40, %v3324_v0 }
 0x8ef   : > { %v10118_v56 = vsub.f32 %v3308_v32, %v3347_v36 }
 0x8f0   : > { %v3344_v45 = vrot.slane %v3343_v49, 1  ;;  %v3337_v1 = vrot.slane %v3336_v46, 1  ;;  %v3349_v5 = vmul.f32 0.125, %v3332_v14  ;;  %v3348_v34 = vmul.f32 0.125, %v3326_v63 }
 0x8f1   : > { %v3357_v2 = vmul.f32 %v10118_v56, %v10118_v56 }
 0x8f2   : > { %v3345_v57 = vadd.f32 %v3344_v45, %v3343_v49  ;;  %v3338_v11 = vadd.f32 %v3337_v1, %v3336_v46  ;;  %v10120_v61 = vsub.f32 %v3310_v31, %v3349_v5  ;;  %v10122_v15 = vsub.f32 %v3309_v51, %v3348_v34 }
 0x8f3   : > { %v10102_v55 = vpop.permute.xlu1 %3756 }
 0x8f4   : > { %13300 = vst [vmem:[#allocation89_spill] sm:$0xff] %v10102_v55  ;;  %v3351_v48 = vmul.f32 0.125, %v3345_v57  ;;  %v3350_v35 = vmul.f32 0.125, %v3338_v11  ;;  %v3359_v18 = vmul.f32 %v10120_v61, %v10120_v61  ;;  %v3358_v39 = vmul.f32 %v10122_v15, %v10122_v15  ;;  %v10150_v57 = vpop.permute.xlu0 %3608 }
 0x8f6   : > { %v10124_v24 = vsub.f32 %v3312_v47, %v3351_v48  ;;  %v10136_v31 = vsub.f32 %v3311_v10, %v3350_v35  ;;  %v3362_v47 = vsel %vm3313_vm5, %v3357_v2, 0.0  ;;  %v3375_v51 = vrot.slane %v3359_v18, 4 }
 0x8f7   : > { %v3369_v12 = vrot.slane %v3358_v39, 4  ;;  %v3363_v58 = vrot.slane %v3362_v47, 4 }
 0x8f8   : > { %v10108_v54 = vpop.permute.xlu1 %3903  ;;  %v3361_v32 = vmul.f32 %v10124_v24, %v10124_v24  ;;  %v3360_v8 = vmul.f32 %v10136_v31, %v10136_v31  ;;  %v3376_v28 = vadd.f32 %v3375_v51, %v3359_v18 }
 0x8f9   : > { %13301 = vst [vmem:[#allocation63_spill] sm:$0xff] %v10108_v54  ;;  %v3370_v7 = vadd.f32 %v3369_v12, %v3358_v39  ;;  %v3364_v4 = vadd.f32 %v3363_v58, %v3362_v47 }
 0x8fa   : > { %v3387_v33 = vsel %vm466_vm8, %v3361_v32, 0.0  ;;  %v3381_v59 = vrot.slane %v3360_v8, 4  ;;  %v3377_v10 = vrot.slane %v3376_v28, 2  ;;  %v10154_v32 = vpop.permute.xlu0 %3752 }
 0x8fb   : > { %v3388_v13 = vrot.slane %v3387_v33, 4  ;;  %v3371_v49 = vrot.slane %v3370_v7, 2  ;;  %v3365_v30 = vrot.slane %v3364_v4, 2 }
 0x8fc   : > { %v3382_v41 = vadd.f32 %v3381_v59, %v3360_v8  ;;  %v3378_v45 = vadd.f32 %v3377_v10, %v3376_v28 }
 0x8fd   : > { %v10110_v38 = vpop.permute.xlu1 %3878  ;;  %v3389_v43 = vadd.f32 %v3388_v13, %v3387_v33  ;;  %v3372_v46 = vadd.f32 %v3371_v49, %v3370_v7  ;;  %v3366_v63 = vadd.f32 %v3365_v30, %v3364_v4 }
 0x8fe   : > { %13302 = vst [vmem:[#allocation70_spill] sm:$0xff] %v10110_v38  ;;  %v3383_v25 = vrot.slane %v3382_v41, 2  ;;  %v3379_v36 = vrot.slane %v3378_v45, 1  ;;  %v10158_v28 = vpop.permute.xlu0 %3660 }
 0x8ff   : > { %v3390_v40 = vrot.slane %v3389_v43, 2  ;;  %v3373_v5 = vrot.slane %v3372_v46, 1  ;;  %v3367_v48 = vrot.slane %v3366_v63, 1 }
 0x900   : > { %v3384_v34 = vadd.f32 %v3383_v25, %v3382_v41  ;;  %v3380_v35 = vadd.f32 %v3379_v36, %v3378_v45 }
 0x901   : > { %v3391_v1 = vadd.f32 %v3390_v40, %v3389_v43  ;;  %v3374_v18 = vadd.f32 %v3373_v5, %v3372_v46  ;;  %v3368_v47 = vadd.f32 %v3367_v48, %v3366_v63 }
 0x902   : > { %v10112_v60 = vpop.permute.xlu1 %3971  ;;  %v3385_v39 = vrot.slane %v3384_v34, 1  ;;  %v3396_v12 = vmul.f32 0.125, %v3380_v35  ;;  %v10162_v40 = vpop.permute.xlu0 %3804 }
 0x903   : > { %13303 = vst [vmem:[#allocation71_spill] sm:$0xff] %v10112_v60  ;;  %v3392_v11 = vrot.slane %v3391_v1, 1  ;;  %v3395_v33 = vmul.f32 0.125, %v3374_v18  ;;  %v3394_v13 = vmul.f32 0.125, %v3368_v47  ;;  %13313 = vst [vmem:[#allocation99_spill] sm:$0xff] %v10162_v40  ;;  %v13336_v60 = vmov 24  }
 0x904   : > { %v3386_v8 = vadd.f32 %v3385_v39, %v3384_v34  ;;  %v3401_v59 = vadd.f32 1e-06, %v3396_v12  ;;  %v13319_v12 = vld [vmem:[#allocation100_spill] sm:$0xff] }
 0x905   : > { %v3393_v51 = vadd.f32 %v3392_v11, %v3391_v1  ;;  %v3400_v4 = vadd.f32 1e-06, %v3395_v33  ;;  %v3399_v10 = vadd.f32 1e-06, %v3394_v13 }
 0x906   : > { %v3397_v43 = vmul.f32 0.125, %v3386_v8  ;;  %7017 = vrsqrt.f32 %v3401_v59  ;;  %v10164_v45 = vpop.permute.xlu0 %3937  ;;  %v13321_v59 = vld [vmem:[#allocation84_spill] sm:$0xff] }
 0x907   : > { %v10114_v27 = vpop.permute.xlu1 %4005  ;;  %v3398_v7 = vmul.f32 0.125, %v3393_v51  ;;  %7019 = vrsqrt.f32 %v3400_v4  ;;  %13314 = vst [vmem:[#allocation101_spill] sm:$0xff] %v10164_v45  ;;  %v13337_v45 = vld [vmem:[#allocation18_spill] sm:$0xff] }
 0x908   : > { %13304 = vst [vmem:[#allocation51_spill] sm:$0xff] %v10114_v27  ;;  %v3402_v30 = vadd.f32 1e-06, %v3397_v43  ;;  %7021 = vrsqrt.f32 %v3399_v10  ;;  %v13322_v43 = vmov 18  }
 0x909   : > { %v3403_v49 = vadd.f32 1e-06, %v3398_v7 }
 0x90a   : > { %v10168_v25 = vpop.permute.xlu0 %4039 }
 0x90b   : > { %7023 = vrsqrt.f32 %v3403_v49  ;;  %13316 = vst [vmem:[#allocation102_spill] sm:$0xff] %v10168_v25  ;;  %v13323_v49 = vld [vmem:[#allocation17_spill] sm:$0xff] }
 0x90c   : > { %v10116_v52 = vpop.permute.xlu1 %4073  ;;  %7025 = vrsqrt.f32 %v3402_v30 }
 0x90d   : > { %13305 = vst [vmem:[#allocation48_spill] sm:$0xff] %v10116_v52 }
 0x90e   : > { %v10176_v18 = vpop.permute.xlu0 %4141 }
 0x90f   : > { %13318 = vst [vmem:[#allocation106_spill] sm:$0xff] %v10176_v18 }
 0x911   : > { %v10130_v26 = vpop.permute.xlu1 %4107 }
 0x912   : > { %13306 = vst [vmem:[#allocation64_spill] sm:$0xff] %v10130_v26 }
 0x913   : > { %v7018_v1 = vpop.eup %7017 }
 0x914   : > { %v7020_v36 = vpop.eup %7019  ;;  %v3411_v48 = vmul.f32 %v7018_v1, %v10120_v61 }
 0x915   : > { %v7022_v34 = vpop.eup %7021  ;;  %v3410_v35 = vmul.f32 %v7020_v36, %v10122_v15  ;;  %v10186_v15 = vpop.permute.xlu0 %4243 }
 0x916   : > { %v10142_v21 = vpop.permute.xlu1 %4175  ;;  %v3409_v47 = vmul.f32 %v7022_v34, %v10118_v56  ;;  %v3420_v33 = vmul.f32 %v13319_v12, %v3411_v48  ;;  %13320 = vst [vmem:[#allocation104_spill] sm:$0xff] %v10186_v15  ;;  %v13325_v34 = vmov 20  }
 0x917   : > { %13307 = vst [vmem:[#allocation21_spill] sm:$0xff] %v10142_v21  ;;  %v3419_v8 = vmul.f32 %v13319_v12, %v3410_v35  ;;  %v13326_v35 = vld [vmem:[#allocation97_spill] sm:$0xff] }
 0x918   : > { %v7024_v11 = vpop.eup %7023  ;;  %v3418_v61 = vmul.f32 %v13319_v12, %v3409_v47  ;;  %v10190_v4 = vadd.f32 %v13321_v59, %v3420_v33  ;;  %v13328_v33 = vld [vmem:[#allocation52_spill] sm:$0xff] }
 0x919   : > { %v7026_v39 = vpop.eup %7025  ;;  %v3413_v51 = vmul.f32 %v7024_v11, %v10124_v24  ;;  %v10193_v56 = vadd.f32 %v13321_v59, %v3419_v8 }
 0x91a   : > { %v3412_v13 = vmul.f32 %v7026_v39, %v10136_v31  ;;  %v10199_v31 = vadd.f32 %v13321_v59, %v3418_v61  ;;  %v10206_v30 = vrot.slane %v10190_v4, %v13323_v49  ;;  %v10239_v8 = vrot.slane %v10190_v4, %v13328_v33 }
 0x91b   : > { %v10144_v0 = vpop.permute.xlu1 %4209  ;;  %v3422_v7 = vmul.f32 %v13319_v12, %v3413_v51  ;;  %v10213_v36 = vrot.slane %v10193_v56, %v13323_v49  ;;  %v10245_v61 = vrot.slane %v10193_v56, %v13328_v33  ;;  %v10269_v42 = vrot.slane %v10190_v4, %v13332_v37 }
 0x91c   : > { %13308 = vst [vmem:[#allocation95_spill] sm:$0xff] %v10144_v0  ;;  %v3421_v24 = vmul.f32 %v13319_v12, %v3412_v13  ;;  %v10220_v48 = vrot.slane %v10199_v31, %v13323_v49  ;;  %v3473_v39 = vmul.f32 %v13326_v35, %v10206_v30 }
 0x91d   : > { %v10202_v10 = vadd.f32 %v13321_v59, %v3422_v7  ;;  %v3472_v51 = vmul.f32 %v13326_v35, %v10213_v36  ;;  %v13329_v7 = vmov 21  }
 0x91e   : > { %v10209_v1 = vadd.f32 %v13321_v59, %v3421_v24  ;;  %v3471_v13 = vmul.f32 %v13326_v35, %v10220_v48  ;;  %v13330_v24 = vld [vmem:[#allocation83_spill] sm:$0xff] }
 0x91f   : > { %v10225_v11 = vrot.slane %v10202_v10, %v13323_v49 }
 0x920   : > { %v10148_v14 = vpop.permute.xlu1 %4277  ;;  %v10231_v47 = vrot.slane %v10209_v1, %v13323_v49  ;;  %v10293_v15 = vrot.slane %v10209_v1, %v13332_v37 }
 0x921   : > { %13309 = vst [vmem:[#allocation105_spill] sm:$0xff] %v10148_v14  ;;  %v3475_v59 = vmul.f32 %v13326_v35, %v10225_v11 }
 0x922   : > { %v3474_v19 = vmul.f32 %v13326_v35, %v10231_v47  ;;  %v10274_v35 = vrot.slane %v10209_v1, %v13328_v33 }
 0x925   : > { %v10152_v2 = vpop.permute.xlu1 %4311 }
 0x926   : > { %13310 = vst [vmem:[#allocation98_spill] sm:$0xff] %v10152_v2  ;;  %v3484_v2 = vadd.f32 %v3474_v19, %v13330_v24 }
 0x92a   : > { %v10156_v58 = vpop.permute.xlu1 %4379 }
 0x92b   : > { %13311 = vst [vmem:[#allocation107_spill] sm:$0xff] %v10156_v58 }
 0x92f   : > { %v10160_v41 = vpop.permute.xlu1 %4413 }
 0x930   : > { %13312 = vst [vmem:[#allocation121_spill] sm:$0xff] %v10160_v41 }
 0x934   : > { %v10166_v46 = vpop.permute.xlu1 %4471 }
 0x935   : > { %13315 = vst [vmem:[#allocation19_spill] sm:$0xff] %v10166_v46  ;;  %v3482_v46 = vadd.f32 %v3472_v51, %v13330_v24  ;;  %v3520_v51 = vmul.f32 %v9962_v9, %v10245_v61 }
 0x937   : > { %v3530_v14 = vadd.f32 %v3520_v51, %v3482_v46  ;;  %v3522_v46 = vmul.f32 %v9962_v9, %v10274_v35 }
 0x939   : > { %v10170_v63 = vpop.permute.xlu1 %4490 }
 0x93a   : > { %13317 = vst [vmem:[#allocation109_spill] sm:$0xff] %v10170_v63  ;;  %v4493_v5 = vmul.f32 %v9971_v62, %v10170_v63  ;;  %v3481_v63 = vadd.f32 %v3471_v13, %v13330_v24  ;;  %v10287_v13 = vrot.slane %v10199_v31, %v13332_v37 }
 0x93c   : > { %4503 = vrot.lane.b32.xlu1 %v4493_v5, %s7348_s26  ;;  %v10215_v5 = vpop.permute.xlu0 %4345  ;;  %v3567_v26 = vmul.f32 %v9966_v29, %v10287_v13 }
 0x93d   : > { %13324 = vst [vmem:[#allocation111_spill] sm:$0xff] %v10215_v5  ;;  %v13333_v5 = vmov 23  }
 0x940   : > { %4661 = vperm.xlu1 %6933, %v9865_v20   ;;  %v10235_v12 = vpop.permute.xlu0 %4427 }
 0x941   : > { %13327 = vst [vmem:[#allocation108_spill] sm:$0xff] %v10235_v12  ;;  %v3485_v12 = vadd.f32 %v3475_v59, %v13330_v24  ;;  %v10297_v59 = vrot.slane %v10202_v10, %v13332_v37 }
 0x944   : > { %6934 = vset.pattern.permute.xlu1 %v13322_v43  ;;  %v3483_v43 = vadd.f32 %v3473_v39, %v13330_v24  ;;  %v10259_v50 = vpop.permute.xlu0 %4481  ;;  %v3521_v39 = vmul.f32 %v9962_v9, %v10239_v8 }
 0x945   : > { %4756 = vperm.xlu1 %6934, %v9865_v20   ;;  %13331 = vst [vmem:[#allocation110_spill] sm:$0xff] %v10259_v50  ;;  %v10280_v50 = vrot.slane %v10193_v56, %v13332_v37 }
 0x946   : > { %v3531_v58 = vadd.f32 %v3521_v39, %v3483_v43  ;;  %v3569_v39 = vmul.f32 %v9966_v29, %v10269_v42 }
 0x947   : > { %v3568_v51 = vmul.f32 %v9966_v29, %v10280_v50 }
 0x948   : > { %v10316_v21 = vpop.permute.xlu0 %4566  ;;  %v3579_v52 = vadd.f32 %v3569_v39, %v3531_v58 }
 0x949   : > { %6936 = vset.pattern.permute.xlu1 %v13325_v34  ;;  %v10253_v34 = vrot.slane %v10199_v31, %v13328_v33  ;;  %13335 = vst [vmem:[#allocation113_spill] sm:$0xff] %v10316_v21  ;;  %v3578_v27 = vadd.f32 %v3568_v51, %v3530_v14  ;;  %v10354_v51 = vrot.slane %v10199_v31, %v13337_v45 }
 0x94a   : > { %4936 = vperm.xlu1 %6936, %v9865_v20  }
 0x94b   : > { %v3519_v41 = vmul.f32 %v9962_v9, %v10253_v34  ;;  %13338 = vst [vmem:[#allocation112_spill] sm:$0xff] %v10354_v51 }
 0x94d   : > { %v3529_v24 = vadd.f32 %v3519_v41, %v3481_v63  ;;  %v3570_v41 = vmul.f32 %v9966_v29, %v10293_v15  ;;  %v3571_v63 = vmul.f32 %v9966_v29, %v10297_v59 }
 0x94e   : > { %6937 = vset.pattern.permute.xlu1 %v13329_v7  ;;  %v10263_v7 = vrot.slane %v10202_v10, %v13328_v33 }
 0x94f   : > { %5031 = vperm.xlu1 %6937, %v9865_v20   ;;  %v3577_v29 = vadd.f32 %v3567_v26, %v3529_v24 }
 0x950   : > { %v3523_v43 = vmul.f32 %v9962_v9, %v10263_v7  ;;  %v3532_v9 = vadd.f32 %v3522_v46, %v3484_v2 }
 0x952   : > { %v3533_v18 = vadd.f32 %v3523_v43, %v3485_v12  ;;  %v10331_v12 = vrot.slane %v10190_v4, %v13337_v45  ;;  %v4569_v43 = vmul.f32 %v9971_v62, %v10316_v21  ;;  %v3580_v38 = vadd.f32 %v3570_v41, %v3532_v9 }
 0x953   : > { %6939 = vset.pattern.permute.xlu1 %v13333_v5  ;;  %v13334_v5 = vld [vmem:[#allocation36_spill] sm:$0xff]  ;;  %v10358_v62 = vrot.slane %v10209_v1, %v13337_v45  ;;  %v10364_v21 = vrot.slane %v10202_v10, %v13337_v45 }
 0x954   : > { %5221 = vperm.xlu1 %6939, %v9865_v20   ;;  %v10306_v19 = vrot.slane %v10190_v4, %v13334_v5  ;;  %v10314_v0 = vrot.slane %v10193_v56, %v13334_v5  ;;  %v10322_v25 = vrot.slane %v10199_v31, %v13334_v5  ;;  %v10335_v58 = vrot.slane %v10202_v10, %v13334_v5 }
 0x955   : > { %v10348_v14 = vrot.slane %v10209_v1, %v13334_v5  ;;  %v3581_v46 = vadd.f32 %v3571_v63, %v3533_v18  ;;  %13339 = vst [vmem:[#allocation114_spill] sm:$0xff] %v10364_v21  ;;  %v3665_v18 = vmul.f32 %v9988_v53, %v10331_v12  ;;  %v13340_v63 = vld [vmem:[#allocation54_spill] sm:$0xff] }
 0x956   : > { %v3617_v2 = vmul.f32 %v10150_v57, %v10306_v19  ;;  %v3616_v39 = vmul.f32 %v10150_v57, %v10314_v0  ;;  %v3615_v26 = vmul.f32 %v10150_v57, %v10322_v25  ;;  %v10370_v5 = vrot.slane %v10190_v4, %v13340_v63 }
 0x957   : > { %v3618_v41 = vmul.f32 %v10150_v57, %v10348_v14  ;;  %v10392_v49 = vrot.slane %v10209_v1, %v13340_v63 }
 0x958   : > { %6940 = vset.pattern.permute.xlu1 %v13336_v60  ;;  %v10344_v60 = vrot.slane %v10193_v56, %v13337_v45  ;;  %v3627_v37 = vadd.f32 %v3617_v2, %v3579_v52  ;;  %v3626_v24 = vadd.f32 %v3616_v39, %v3578_v27  ;;  %13341 = vst [vmem:[#allocation115_spill] sm:$0xff] %v10370_v5  ;;  %v13342_v39 = vmov 25  }
 0x959   : > { %4533 = vperm.xlu1 %6940, %v9865_v20   ;;  %v3619_v52 = vmul.f32 %v10150_v57, %v10335_v58  ;;  %v10379_v27 = vrot.slane %v10193_v56, %v13340_v63  ;;  %v3625_v2 = vadd.f32 %v3615_v26, %v3577_v29  ;;  %v10386_v45 = vrot.slane %v10199_v31, %v13340_v63 }
 0x95a   : > { %v3664_v9 = vmul.f32 %v9988_v53, %v10344_v60  ;;  %v3675_v54 = vadd.f32 %v3665_v18, %v3627_v37  ;;  %v3628_v40 = vadd.f32 %v3618_v41, %v3580_v38  ;;  %v3667_v57 = vmul.f32 %v9988_v53, %v10364_v21  ;;  %v13343_v37 = vld [vmem:[#allocation24_spill] sm:$0xff] }
 0x95b   : > { %v3629_v33 = vadd.f32 %v3619_v52, %v3581_v46  ;;  %v10398_v29 = vrot.slane %v10202_v10, %v13340_v63  ;;  %v3713_v46 = vmul.f32 %v10002_v23, %v10370_v5  ;;  %v10404_v26 = vrot.slane %v10190_v4, %v13343_v37 }
 0x95c   : > { %v3674_v55 = vadd.f32 %v3664_v9, %v3626_v24  ;;  %v3666_v38 = vmul.f32 %v9988_v53, %v10358_v62  ;;  %v3712_v24 = vmul.f32 %v10002_v23, %v10379_v27  ;;  %v10413_v52 = vrot.slane %v10193_v56, %v13343_v37 }
 0x95d   : > { %4579 = vrot.lane.b32.xlu1 %v4569_v43, %s7348_s26  ;;  %v3663_v43 = vmul.f32 %v9988_v53, %v10354_v51  ;;  %v3711_v9 = vmul.f32 %v10002_v23, %v10386_v45  ;;  %v3677_v41 = vadd.f32 %v3667_v57, %v3629_v33  ;;  %v3714_v63 = vmul.f32 %v10002_v23, %v10392_v49 }
 0x95e   : > { %6942 = vset.pattern.permute.xlu1 %v13342_v39  ;;  %v3723_v39 = vadd.f32 %v3713_v46, %v3675_v54  ;;  %v3676_v51 = vadd.f32 %v3666_v38, %v3628_v40  ;;  %v3722_v5 = vadd.f32 %v3712_v24, %v3674_v55  ;;  %v10421_v53 = vrot.slane %v10199_v31, %v13343_v37 }
 0x95f   : > { %v3673_v18 = vadd.f32 %v3663_v43, %v3625_v2  ;;  %v3715_v2 = vmul.f32 %v10002_v23, %v10398_v29  ;;  %v13345_v43 = vld [vmem:[#allocation37_spill] sm:$0xff]  ;;  %v10431_v33 = vrot.slane %v10202_v10, %v13343_v37  ;;  %v3761_v54 = vmul.f32 %v10154_v32, %v10404_v26 }
 0x960   : > { %13344 = vst [vmem:[#allocation117_spill] sm:$0xff] %v10421_v53  ;;  %v10427_v21 = vrot.slane %v10190_v4, %v13345_v43  ;;  %v13346_v40 = vmov 26   ;;  %v10438_v55 = vrot.slane %v10193_v56, %v13345_v43  ;;  %v10442_v23 = vrot.slane %v10209_v1, %v13343_v37 }
 0x961   : > { %4604 = vperm.xlu1 %6942, %v9865_v20   ;;  %v3721_v57 = vadd.f32 %v3711_v9, %v3673_v18  ;;  %v3760_v4 = vmul.f32 %v10154_v32, %v10413_v52  ;;  %v3725_v46 = vadd.f32 %v3715_v2, %v3677_v41  ;;  %v3771_v38 = vadd.f32 %v3761_v54, %v3723_v39 }
 0x962   : > { %v10449_v24 = vrot.slane %v10199_v31, %v13345_v43  ;;  %v3759_v56 = vmul.f32 %v10154_v32, %v10421_v53  ;;  %v3477_v9 = vmul.f32 %v9960_v44, %v10213_v36  ;;  %v10457_v37 = vrot.slane %v10202_v10, %v13345_v43 }
 0x963   : > { %v3770_v18 = vadd.f32 %v3760_v4, %v3722_v5  ;;  %v3809_v41 = vmul.f32 %v10023_v16, %v10427_v21  ;;  %v3763_v39 = vmul.f32 %v10154_v32, %v10431_v33  ;;  %v10465_v31 = vrot.slane %v10209_v1, %v13345_v43 }
 0x964   : > { %v3808_v5 = vmul.f32 %v10023_v16, %v10438_v55  ;;  %v3762_v36 = vmul.f32 %v10154_v32, %v10442_v23  ;;  %v3478_v10 = vmul.f32 %v9960_v44, %v10206_v30  ;;  %v3479_v1 = vmul.f32 %v9960_v44, %v10231_v47 }
 0x965   : > { %6944 = vset.pattern.permute.xlu1 %v13346_v40  ;;  %v3724_v40 = vadd.f32 %v3714_v63, %v3676_v51  ;;  %v3769_v51 = vadd.f32 %v3759_v56, %v3721_v57  ;;  %v13347_v63 = vmov 9   ;;  %v3773_v2 = vadd.f32 %v3763_v39, %v3725_v46  ;;  %v13348_v57 = vld [vmem:[#allocation103_spill] sm:$0xff] }
 0x966   : > { %4699 = vperm.xlu1 %6944, %v9865_v20   ;;  %v10474_v54 = vadd.f32 %v3809_v41, %v3771_v38  ;;  %v3807_v4 = vmul.f32 %v10023_v16, %v10449_v24  ;;  %v10481_v53 = vadd.f32 %v3808_v5, %v3770_v18  ;;  %v3811_v32 = vmul.f32 %v10023_v16, %v10457_v37 }
 0x967   : > { %v3772_v43 = vadd.f32 %v3762_v36, %v3724_v40  ;;  %v3487_v56 = vadd.f32 %v3477_v9, %v13348_v57  ;;  %v3810_v30 = vmul.f32 %v10023_v16, %v10465_v31  ;;  %v3488_v47 = vadd.f32 %v3478_v10, %v13348_v57 }
 0x968   : > { %v3817_v46 = vadd.f32 %v3807_v4, %v3769_v51  ;;  %v10491_v38 = vadd.f32 %v3811_v32, %v3773_v2  ;;  %v3839_v40 = vmul.f32 0.70710677, %v10474_v54  ;;  %v13349_v18 = vmov 10  }
 0x969   : > { %v3489_v41 = vadd.f32 %v3479_v1, %v13348_v57  ;;  %v3525_v9 = vmul.f32 %v10146_v17, %v10245_v61  ;;  %v10498_v39 = vadd.f32 %v3810_v30, %v3772_v43  ;;  %v3838_v16 = vmul.f32 0.70710677, %v10481_v53 }
 0x96a   : > { %6945 = vset.pattern.permute.xlu1 %v13347_v63  ;;  %v3526_v5 = vmul.f32 %v10146_v17, %v10239_v8  ;;  %v3527_v36 = vmul.f32 %v10146_v17, %v10274_v35  ;;  %v3837_v63 = vmul.f32 0.70710677, %v3817_v46  ;;  %v3841_v61 = vmul.f32 0.70710677, %v10491_v38 }
 0x96b   : > { %4747 = vperm.xlu1 %6945, %v9865_v20   ;;  %v3480_v20 = vmul.f32 %v9960_v44, %v10225_v11  ;;  %v3476_v11 = vmul.f32 %v9960_v44, %v10220_v48  ;;  %v3535_v51 = vadd.f32 %v3525_v9, %v3487_v56  ;;  %7027 = verf.f32 %v3839_v40 }
 0x96c   : > { %v3536_v2 = vadd.f32 %v3526_v5, %v3488_v47  ;;  %v3573_v43 = vmul.f32 %v9980_v22, %v10280_v50  ;;  %v3537_v1 = vadd.f32 %v3527_v36, %v3489_v41  ;;  %v3840_v44 = vmul.f32 0.70710677, %v10498_v39 }
 0x96d   : > { %v3490_v10 = vadd.f32 %v3480_v20, %v13348_v57  ;;  %7029 = verf.f32 %v3838_v16  ;;  %v3486_v48 = vadd.f32 %v3476_v11, %v13348_v57  ;;  %v3574_v8 = vmul.f32 %v9980_v22, %v10269_v42 }
 0x96e   : > { %v3528_v35 = vmul.f32 %v10146_v17, %v10263_v7  ;;  %v3575_v4 = vmul.f32 %v9980_v22, %v10293_v15  ;;  %7031 = verf.f32 %v3837_v63  ;;  %v3583_v32 = vadd.f32 %v3573_v43, %v3535_v51 }
 0x96f   : > { %6947 = vset.pattern.permute.xlu1 %v13349_v18  ;;  %v3524_v50 = vmul.f32 %v10146_v17, %v10253_v34  ;;  %7033 = verf.f32 %v3841_v61  ;;  %v3584_v30 = vadd.f32 %v3574_v8, %v3536_v2  ;;  %v3621_v57 = vmul.f32 %v10049_v3, %v10314_v0 }
 0x970   : > { %v3538_v56 = vadd.f32 %v3528_v35, %v3490_v10  ;;  %7035 = verf.f32 %v3840_v44  ;;  %v3585_v20 = vadd.f32 %v3575_v4, %v3537_v1  ;;  %v3576_v42 = vmul.f32 %v9980_v22, %v10297_v59  ;;  %v13352_v1 = vld [vmem:[#allocation112_spill] sm:$0xff] }
 0x971   : > { %v3534_v7 = vadd.f32 %v3524_v50, %v3486_v48  ;;  %v3622_v15 = vmul.f32 %v10049_v3, %v10306_v19  ;;  %v3623_v47 = vmul.f32 %v10049_v3, %v10348_v14  ;;  %v3631_v40 = vadd.f32 %v3621_v57, %v3583_v32  ;;  %v13353_v50 = vld [vmem:[#allocation89_spill] sm:$0xff]  ;;  %v13354_v57 = vld [vmem:[#allocation99_spill] sm:$0xff] }
 0x972   : > { %v3572_v17 = vmul.f32 %v9980_v22, %v10287_v13  ;;  %v3586_v34 = vadd.f32 %v3576_v42, %v3538_v56  ;;  %v3669_v0 = vmul.f32 %v10158_v28, %v10344_v60  ;;  %v3624_v59 = vmul.f32 %v10049_v3, %v10335_v58  ;;  %v13350_v58 = vld [vmem:[#allocation114_spill] sm:$0xff] }
 0x973   : > { %v3632_v18 = vadd.f32 %v3622_v15, %v3584_v30  ;;  %v3633_v41 = vadd.f32 %v3623_v47, %v3585_v20  ;;  %v3670_v19 = vmul.f32 %v10158_v28, %v10331_v12  ;;  %v3671_v14 = vmul.f32 %v10158_v28, %v10358_v62  ;;  %v13351_v12 = vld [vmem:[#allocation115_spill] sm:$0xff] }
 0x974   : > { %v3582_v9 = vadd.f32 %v3572_v17, %v3534_v7  ;;  %v3679_v16 = vadd.f32 %v3669_v0, %v3631_v40  ;;  %v3620_v22 = vmul.f32 %v10049_v3, %v10322_v25  ;;  %v3634_v13 = vadd.f32 %v3624_v59, %v3586_v34  ;;  %v13355_v0 = vld [vmem:[#allocation117_spill] sm:$0xff] }
 0x975   : > { %v3680_v11 = vadd.f32 %v3670_v19, %v3632_v18  ;;  %v3681_v36 = vadd.f32 %v3671_v14, %v3633_v41  ;;  %v3717_v60 = vmul.f32 %v10080_v6, %v10379_v27  ;;  %v3672_v10 = vmul.f32 %v10158_v28, %v13350_v58  ;;  %v13357_v58 = vld [vmem:[#allocation63_spill] sm:$0xff] }
 0x976   : > { %v3630_v63 = vadd.f32 %v3620_v22, %v3582_v9  ;;  %v3718_v2 = vmul.f32 %v10080_v6, %v13351_v12  ;;  %v3827_v62 = vmul.f32 0.5, %v3817_v46  ;;  %v3719_v61 = vmul.f32 %v10080_v6, %v10392_v49 }
 0x977   : > { %v3727_v3 = vadd.f32 %v3717_v60, %v3679_v16  ;;  %v3668_v44 = vmul.f32 %v10158_v28, %v13352_v1  ;;  %v3682_v48 = vadd.f32 %v3672_v10, %v3634_v13  ;;  %v3828_v35 = vmul.f32 0.5, %v10481_v53  ;;  %v13356_v16 = vld [vmem:[#allocation17_spill] sm:$0xff] }
 0x978   : > { %v7028_v5 = vpop.eup %7027  ;;  %v3728_v27 = vadd.f32 %v3718_v2, %v3680_v11  ;;  %v3729_v32 = vadd.f32 %v3719_v61, %v3681_v36  ;;  %v3765_v56 = vmul.f32 %v13353_v50, %v10413_v52  ;;  %v3829_v30 = vmul.f32 0.5, %v10474_v54 }
 0x979   : > { %v3859_v43 = vadd.f32 1.0, %v7028_v5  ;;  %v3678_v49 = vadd.f32 %v3668_v44, %v3630_v63  ;;  %v3720_v20 = vmul.f32 %v10080_v6, %v10398_v29  ;;  %v3766_v28 = vmul.f32 %v13353_v50, %v10404_v26 }
 0x97a   : > { %v7030_v51 = vpop.eup %7029  ;;  %v3813_v42 = vmul.f32 %v13354_v57, %v10438_v55  ;;  %v3716_v53 = vmul.f32 %v10080_v6, %v10386_v45  ;;  %v3767_v7 = vmul.f32 %v13353_v50, %v10442_v23  ;;  %v3775_v52 = vadd.f32 %v3765_v56, %v3727_v3  ;;  %v13360_v56 = vld [vmem:[#allocation23_spill] sm:$0xff] }
 0x97b   : > { %v7032_v25 = vpop.eup %7031  ;;  %v3858_v4 = vadd.f32 1.0, %v7030_v51  ;;  %v10565_v47 = vmul.f32 %v3859_v43, %v3829_v30  ;;  %v3730_v54 = vadd.f32 %v3720_v20, %v3682_v48  ;;  %v3776_v40 = vadd.f32 %v3766_v28, %v3728_v27  ;;  %v13359_v27 = vld [vmem:[#allocation70_spill] sm:$0xff] }
 0x97c   : > { %v7034_v8 = vpop.eup %7033  ;;  %v3857_v17 = vadd.f32 1.0, %v7032_v25  ;;  %v3777_v26 = vadd.f32 %v3767_v7, %v3729_v32  ;;  %v3831_v18 = vmul.f32 0.5, %v10491_v38  ;;  %v3814_v55 = vmul.f32 %v13354_v57, %v10427_v21 }
 0x97d   : > { %v7036_v46 = vpop.eup %7035  ;;  %v3861_v15 = vadd.f32 1.0, %v7034_v8  ;;  %v10567_v34 = vmul.f32 %v3858_v4, %v3828_v35  ;;  %v3726_v6 = vadd.f32 %v3716_v53, %v3678_v49  ;;  %v3768_v45 = vmul.f32 %v13353_v50, %v10431_v33  ;;  %v13361_v49 = vld [vmem:[#allocation101_spill] sm:$0xff] }
 0x97e   : > { %v3860_v29 = vadd.f32 1.0, %v7036_v46  ;;  %v3830_v23 = vmul.f32 0.5, %v10498_v39  ;;  %v3815_v41 = vmul.f32 %v13354_v57, %v10465_v31  ;;  %v3764_v9 = vmul.f32 %v13353_v50, %v13355_v0 }
 0x97f   : > { %v3823_v59 = vadd.f32 %v3813_v42, %v3775_v52  ;;  %v10579_v19 = vmul.f32 %v3861_v15, %v3831_v18  ;;  %v3778_v14 = vadd.f32 %v3768_v45, %v3730_v54  ;;  %v3824_v38 = vadd.f32 %v3814_v55, %v3776_v40  ;;  %v13362_v18 = vld [vmem:[#allocation71_spill] sm:$0xff]  ;;  %v13363_v45 = vld [vmem:[#allocation36_spill] sm:$0xff] }
 0x980   : > { %v3893_v21 = vrot.slane %v10565_v47, %v13356_v16  ;;  %v10583_v22 = vmul.f32 %v3857_v17, %v3827_v62  ;;  %v10585_v13 = vmul.f32 %v3860_v29, %v3830_v23  ;;  %v3825_v33 = vadd.f32 %v3815_v41, %v3777_v26 }
 0x981   : > { %v3889_v39 = vrot.slane %v10567_v34, %v13356_v16  ;;  %v3816_v31 = vmul.f32 %v13354_v57, %v10457_v37  ;;  %v3774_v11 = vadd.f32 %v3764_v9, %v3726_v6  ;;  %v3812_v5 = vmul.f32 %v13354_v57, %v10449_v24  ;;  %v13358_v24 = vld [vmem:[#allocation52_spill] sm:$0xff] }
 0x982   : > { %v3843_v36 = vmul.f32 0.70710677, %v3823_v59  ;;  %v3844_v51 = vmul.f32 0.70710677, %v3824_v38  ;;  %v3901_v63 = vrot.slane %v10579_v19, %v13356_v16  ;;  %v3908_v10 = vmul.f32 %v13357_v58, %v3893_v21 }
 0x983   : > { %v3826_v60 = vadd.f32 %v3816_v31, %v3778_v14  ;;  %v3845_v12 = vmul.f32 0.70710677, %v3825_v33  ;;  %v3885_v2 = vrot.slane %v10583_v22, %v13356_v16  ;;  %v3897_v62 = vrot.slane %v10585_v13, %v13356_v16 }
 0x984   : > { %v3907_v37 = vmul.f32 %v13357_v58, %v3889_v39  ;;  %v10601_v61 = vadd.f32 %v3812_v5, %v3774_v11  ;;  %v3927_v3 = vrot.slane %v10565_v47, %v13358_v24  ;;  %v10605_v25 = vmul.f32 0.5, %v3823_v59 }
 0x985   : > { %v10607_v43 = vmul.f32 0.5, %v3824_v38  ;;  %7037 = verf.f32 %v3843_v36  ;;  %v3923_v1 = vrot.slane %v10567_v34, %v13358_v24  ;;  %v3846_v44 = vmul.f32 0.70710677, %v3826_v60 }
 0x986   : > { %7039 = verf.f32 %v3844_v51  ;;  %v3910_v48 = vmul.f32 %v13357_v58, %v3901_v63  ;;  %v3913_v8 = vadd.f32 %v3908_v10, %v13359_v27  ;;  %v3906_v35 = vmul.f32 %v13357_v58, %v3885_v2  ;;  %v13364_v63 = vld [vmem:[#allocation51_spill] sm:$0xff]  ;;  %v13365_v10 = vld [vmem:[#allocation18_spill] sm:$0xff] }
 0x987   : > { %7041 = verf.f32 %v3845_v12  ;;  %v3909_v4 = vmul.f32 %v13357_v58, %v3897_v62  ;;  %v3912_v32 = vadd.f32 %v3907_v37, %v13359_v27  ;;  %v10616_v50 = vmul.f32 0.5, %v3825_v33 }
 0x988   : > { %v3961_v46 = vrot.slane %v10565_v47, %v13360_v56  ;;  %v3935_v30 = vrot.slane %v10579_v19, %v13358_v24  ;;  %v3942_v20 = vmul.f32 %v13361_v49, %v3927_v3  ;;  %v3957_v28 = vrot.slane %v10567_v34, %v13360_v56 }
 0x989   : > { %v3919_v57 = vrot.slane %v10583_v22, %v13358_v24  ;;  %v3931_v42 = vrot.slane %v10585_v13, %v13358_v24  ;;  %v3941_v53 = vmul.f32 %v13361_v49, %v3923_v1  ;;  %7043 = verf.f32 %v3846_v44 }
 0x98a   : > { %v3915_v7 = vadd.f32 %v3910_v48, %v13359_v27  ;;  %v3953_v52 = vrot.slane %v10583_v22, %v13360_v56  ;;  %v3947_v15 = vadd.f32 %v3942_v20, %v3913_v8  ;;  %v3911_v54 = vadd.f32 %v3906_v35, %v13359_v27 }
 0x98b   : > { %v3914_v40 = vadd.f32 %v3909_v4, %v13359_v27  ;;  %v3965_v17 = vrot.slane %v10585_v13, %v13360_v56  ;;  %v3946_v29 = vadd.f32 %v3941_v53, %v3912_v32  ;;  %v3969_v26 = vrot.slane %v10579_v19, %v13360_v56 }
 0x98c   : > { %v3976_v55 = vmul.f32 %v13362_v18, %v3961_v46  ;;  %v3944_v6 = vmul.f32 %v13361_v49, %v3935_v30  ;;  %v3995_v23 = vrot.slane %v10565_v47, %v13363_v45  ;;  %v3975_v41 = vmul.f32 %v13362_v18, %v3957_v28  ;;  %v13366_v28 = vld [vmem:[#allocation102_spill] sm:$0xff] }
 0x98d   : > { %v3940_v0 = vmul.f32 %v13361_v49, %v3919_v57  ;;  %v3943_v9 = vmul.f32 %v13361_v49, %v3931_v42  ;;  %v3991_v59 = vrot.slane %v10567_v34, %v13363_v45  ;;  %v3842_v14 = vmul.f32 0.70710677, %v10601_v61  ;;  %v13367_v42 = vld [vmem:[#allocation54_spill] sm:$0xff] }
 0x98e   : > { %v3974_v38 = vmul.f32 %v13362_v18, %v3953_v52  ;;  %v3949_v21 = vadd.f32 %v3944_v6, %v3915_v7  ;;  %v3981_v33 = vadd.f32 %v3976_v55, %v3947_v15  ;;  %v3980_v11 = vadd.f32 %v3975_v41, %v3946_v29 }
 0x98f   : > { %v3945_v39 = vadd.f32 %v3940_v0, %v3911_v54  ;;  %v3948_v31 = vadd.f32 %v3943_v9, %v3914_v40  ;;  %v3987_v5 = vrot.slane %v10583_v22, %v13363_v45  ;;  %v3978_v36 = vmul.f32 %v13362_v18, %v3969_v26  ;;  %v13368_v9 = vld [vmem:[#allocation48_spill] sm:$0xff] }
 0x990   : > { %v4003_v51 = vrot.slane %v10579_v19, %v13363_v45  ;;  %v4010_v58 = vmul.f32 %v13364_v63, %v3995_v23  ;;  %v4029_v12 = vrot.slane %v10565_v47, %v13365_v10  ;;  %v3977_v2 = vmul.f32 %v13362_v18, %v3965_v17 }
 0x991   : > { %v3999_v62 = vrot.slane %v10585_v13, %v13363_v45  ;;  %v4009_v37 = vmul.f32 %v13364_v63, %v3991_v59  ;;  %v4025_v3 = vrot.slane %v10567_v34, %v13365_v10  ;;  %v3836_v44 = vmul.f32 0.5, %v3826_v60 }
 0x992   : > { %v7038_v1 = vpop.eup %7037  ;;  %7045 = verf.f32 %v3842_v14  ;;  %v3983_v48 = vadd.f32 %v3978_v36, %v3949_v21  ;;  %v4015_v27 = vadd.f32 %v4010_v58, %v3981_v33  ;;  %v3979_v35 = vadd.f32 %v3974_v38, %v3945_v39  ;;  %v13369_v14 = vld [vmem:[#allocation24_spill] sm:$0xff] }
 0x993   : > { %v7040_v8 = vpop.eup %7039  ;;  %v3982_v4 = vadd.f32 %v3977_v2, %v3948_v31  ;;  %v4008_v32 = vmul.f32 %v13364_v63, %v3987_v5  ;;  %v4014_v46 = vadd.f32 %v4009_v37, %v3980_v11  ;;  %v4012_v49 = vmul.f32 %v13364_v63, %v4003_v51  ;;  %v13370_v37 = vld [vmem:[#allocation37_spill] sm:$0xff] }
 0x994   : > { %v7042_v30 = vpop.eup %7041  ;;  %v4037_v20 = vrot.slane %v10579_v19, %v13365_v10  ;;  %v4044_v57 = vmul.f32 %v13366_v28, %v4029_v12  ;;  %v4063_v60 = vrot.slane %v10565_v47, %v13367_v42  ;;  %v4011_v53 = vmul.f32 %v13364_v63, %v3999_v62 }
 0x995   : > { %v4033_v7 = vrot.slane %v10585_v13, %v13365_v10  ;;  %v4043_v52 = vmul.f32 %v13366_v28, %v4025_v3  ;;  %v4059_v15 = vrot.slane %v10567_v34, %v13367_v42  ;;  %v3863_v54 = vadd.f32 1.0, %v7038_v1 }
 0x996   : > { %v3864_v40 = vadd.f32 1.0, %v7040_v8  ;;  %v4017_v17 = vadd.f32 %v4012_v49, %v3983_v48  ;;  %v4049_v29 = vadd.f32 %v4044_v57, %v4015_v27  ;;  %v7044_v26 = vpop.eup %7043  ;;  %v3865_v18 = vadd.f32 1.0, %v7042_v30 }
 0x997   : > { %v4013_v55 = vadd.f32 %v4008_v32, %v3979_v35  ;;  %v4016_v6 = vadd.f32 %v4011_v53, %v3982_v4  ;;  %v4048_v23 = vadd.f32 %v4043_v52, %v4014_v46  ;;  %v4046_v41 = vmul.f32 %v13366_v28, %v4037_v20  ;;  %v13372_v53 = vld [vmem:[#allocation106_spill] sm:$0xff] }
 0x998   : > { %v4071_v0 = vrot.slane %v10579_v19, %v13367_v42  ;;  %v4078_v59 = vmul.f32 %v13368_v9, %v4063_v60  ;;  %v4097_v38 = vrot.slane %v10565_v47, %v13369_v14  ;;  %v4045_v21 = vmul.f32 %v13366_v28, %v4033_v7 }
 0x999   : > { %v4067_v33 = vrot.slane %v10585_v13, %v13367_v42  ;;  %v4077_v39 = vmul.f32 %v13368_v9, %v4059_v15  ;;  %v4093_v31 = vrot.slane %v10567_v34, %v13369_v14  ;;  %v3866_v11 = vadd.f32 1.0, %v7044_v26 }
 0x99a   : > { %v10690_v5 = vmul.f32 %v3863_v54, %v10605_v25  ;;  %v4051_v36 = vadd.f32 %v4046_v41, %v4017_v17  ;;  %v4083_v51 = vadd.f32 %v4078_v59, %v4049_v29  ;;  %v10693_v63 = vmul.f32 %v3864_v40, %v10607_v43  ;;  %v13371_v25 = vld [vmem:[#allocation64_spill] sm:$0xff]  ;;  %v13373_v41 = vld [vmem:[#allocation21_spill] sm:$0xff] }
 0x99b   : > { %v4021_v58 = vrot.slane %v10583_v22, %v13365_v10  ;;  %v4050_v12 = vadd.f32 %v4045_v21, %v4016_v6  ;;  %v4082_v2 = vadd.f32 %v4077_v39, %v4048_v23  ;;  %v4080_v62 = vmul.f32 %v13368_v9, %v4071_v0 }
 0x99c   : > { %v4131_v3 = vrot.slane %v10565_v47, %v13370_v37  ;;  %v4105_v1 = vrot.slane %v10579_v19, %v13369_v14  ;;  %v4112_v48 = vmul.f32 %v13371_v25, %v4097_v38  ;;  %v4079_v27 = vmul.f32 %v13368_v9, %v4067_v33 }
 0x99d   : > { %v4127_v43 = vrot.slane %v10567_v34, %v13370_v37  ;;  %v4101_v8 = vrot.slane %v10585_v13, %v13369_v14  ;;  %v4111_v35 = vmul.f32 %v13371_v25, %v4093_v31  ;;  %v10710_v4 = vmul.f32 %v3865_v18, %v10616_v50 }
 0x99e   : > { %v10712_v32 = vmul.f32 %v3866_v11, %v3836_v44  ;;  %v4085_v47 = vadd.f32 %v4080_v62, %v4051_v36  ;;  %v4117_v46 = vadd.f32 %v4112_v48, %v4083_v51  ;;  %v4042_v49 = vmul.f32 %v13366_v28, %v4021_v58 }
 0x99f   : > { %v7046_v30 = vpop.eup %7045  ;;  %v4055_v20 = vrot.slane %v10583_v22, %v13367_v42  ;;  %v4084_v57 = vadd.f32 %v4079_v27, %v4050_v12  ;;  %v4116_v34 = vadd.f32 %v4111_v35, %v4082_v2  ;;  %v4139_v60 = vrot.slane %v10579_v19, %v13370_v37 }
 0x9a0   : > { %v4146_v7 = vmul.f32 %v13372_v53, %v4131_v3  ;;  %v4114_v50 = vmul.f32 %v13371_v25, %v4105_v1  ;;  %v4165_v44 = vrot.slane %v10693_v63, %v13356_v16  ;;  %v4135_v52 = vrot.slane %v10585_v13, %v13370_v37  ;;  %v13374_v3 = vld [vmem:[#allocation95_spill] sm:$0xff] }
 0x9a1   : > { %v4145_v28 = vmul.f32 %v13372_v53, %v4127_v43  ;;  %v4113_v15 = vmul.f32 %v13371_v25, %v4101_v8  ;;  %v4161_v54 = vrot.slane %v10690_v5, %v13356_v16  ;;  %v3862_v40 = vadd.f32 1.0, %v7046_v30 }
 0x9a2   : > { %v4119_v17 = vadd.f32 %v4114_v50, %v4085_v47  ;;  %v4151_v19 = vadd.f32 %v4146_v7, %v4117_v46  ;;  %v3832_v29 = vmul.f32 0.5, %v10601_v61  ;;  %v4047_v26 = vadd.f32 %v4042_v49, %v4013_v55  ;;  %v13375_v50 = vld [vmem:[#allocation104_spill] sm:$0xff] }
 0x9a3   : > { %v4118_v18 = vadd.f32 %v4113_v15, %v4084_v57  ;;  %v4150_v6 = vadd.f32 %v4145_v28, %v4116_v34  ;;  %v4148_v23 = vmul.f32 %v13372_v53, %v4139_v60  ;;  %v4173_v13 = vrot.slane %v10712_v32, %v13356_v16 }
 0x9a4   : > { %v4180_v0 = vmul.f32 %v13373_v41, %v4165_v44  ;;  %v4199_v59 = vrot.slane %v10693_v63, %v13358_v24  ;;  %v4076_v38 = vmul.f32 %v13368_v9, %v4055_v20  ;;  %v4147_v21 = vmul.f32 %v13372_v53, %v4135_v52 }
 0x9a5   : > { %v4169_v61 = vrot.slane %v10710_v4, %v13356_v16  ;;  %v4179_v55 = vmul.f32 %v13373_v41, %v4161_v54  ;;  %v10741_v33 = vmul.f32 %v3862_v40, %v3832_v29  ;;  %v4089_v39 = vrot.slane %v10583_v22, %v13369_v14 }
 0x9a6   : > { %v4153_v31 = vadd.f32 %v4148_v23, %v4119_v17  ;;  %v4185_v11 = vadd.f32 %v4180_v0, %v4151_v19  ;;  %v4081_v36 = vadd.f32 %v4076_v38, %v4047_v26  ;;  %v4152_v51 = vadd.f32 %v4147_v21, %v4118_v18 }
 0x9a7   : > { %v4184_v58 = vadd.f32 %v4179_v55, %v4150_v6  ;;  %v4195_v9 = vrot.slane %v10690_v5, %v13358_v24  ;;  %v4233_v12 = vrot.slane %v10693_v63, %v13360_v56  ;;  %v4182_v2 = vmul.f32 %v13373_v41, %v4173_v13  ;;  %v10781_v6 = vld [vmem:[#allocation2 + $0x20] sm:$0xff] }
 0x9a8   : > { %v4207_v62 = vrot.slane %v10712_v32, %v13358_v24  ;;  %v4214_v1 = vmul.f32 %v13374_v3, %v4199_v59  ;;  %v4229_v48 = vrot.slane %v10690_v5, %v13360_v56  ;;  %v4181_v27 = vmul.f32 %v13373_v41, %v4169_v61  ;;  %v13376_v59 = vld [vmem:[#allocation105_spill] sm:$0xff] }
 0x9a9   : > { %v4203_v43 = vrot.slane %v10710_v4, %v13358_v24  ;;  %v4213_v8 = vmul.f32 %v13374_v3, %v4195_v9  ;;  %v4123_v35 = vrot.slane %v10583_v22, %v13370_v37  ;;  %v4110_v47 = vmul.f32 %v13371_v25, %v4089_v39 }
 0x9aa   : > { %v4187_v46 = vadd.f32 %v4182_v2, %v4153_v31  ;;  %v4219_v30 = vadd.f32 %v4214_v1, %v4185_v11  ;;  %v4237_v20 = vrot.slane %v10710_v4, %v13360_v56  ;;  %v4186_v57 = vadd.f32 %v4181_v27, %v4152_v51 }
 0x9ab   : > { %v4218_v34 = vadd.f32 %v4213_v8, %v4184_v58  ;;  %v4115_v60 = vadd.f32 %v4110_v47, %v4081_v36  ;;  %v4241_v7 = vrot.slane %v10712_v32, %v13360_v56  ;;  %v4248_v44 = vmul.f32 %v13375_v50, %v4233_v12 }
 0x9ac   : > { %v4216_v52 = vmul.f32 %v13374_v3, %v4207_v62  ;;  %v4247_v22 = vmul.f32 %v13375_v50, %v4229_v48  ;;  %v4157_v25 = vrot.slane %v10741_v33, %v13356_v16  ;;  %v4215_v28 = vmul.f32 %v13374_v3, %v4203_v43  ;;  %v13377_v48 = vld [vmem:[#allocation98_spill] sm:$0xff] }
 0x9ad   : > { %v4144_v15 = vmul.f32 %v13372_v53, %v4123_v35  ;;  %v4253_v40 = vadd.f32 %v4248_v44, %v4219_v30  ;;  %v4267_v17 = vrot.slane %v10693_v63, %v13363_v45  ;;  %v4263_v18 = vrot.slane %v10690_v5, %v13363_v45  ;;  %v10815_v30 = vld [vmem:[#allocation11] sm:$0xff] }
 0x9ae   : > { %v10762_v49 = vpop.permute.xlu1 %4503  ;;  %v4221_v54 = vadd.f32 %v4216_v52, %v4187_v46  ;;  %v4220_v29 = vadd.f32 %v4215_v28, %v4186_v57  ;;  %v4252_v26 = vadd.f32 %v4247_v22, %v4218_v34  ;;  %v4249_v13 = vmul.f32 %v13375_v50, %v4237_v20  ;;  %v13378_v28 = vld [vmem:[#allocation111_spill] sm:$0xff] }
 0x9af   : > { %v4250_v53 = vmul.f32 %v13375_v50, %v4241_v7  ;;  %v4149_v0 = vadd.f32 %v4144_v15, %v4115_v60  ;;  %v4282_v38 = vmul.f32 %v13376_v59, %v4267_v17  ;;  %v4335_v21 = vrot.slane %v10693_v63, %v13367_v42 }
 0x9b0   : > { %v4178_v61 = vmul.f32 %v13373_v41, %v4157_v25  ;;  %v4191_v55 = vrot.slane %v10741_v33, %v13358_v24  ;;  %v4281_v39 = vmul.f32 %v13376_v59, %v4263_v18  ;;  %v4275_v11 = vrot.slane %v10712_v32, %v13363_v45 }
 0x9b1   : > { %v4255_v31 = vadd.f32 %v4250_v53, %v4221_v54  ;;  %v4287_v36 = vadd.f32 %v4282_v38, %v4253_v40  ;;  %v4301_v51 = vrot.slane %v10693_v63, %v13365_v10  ;;  %v4254_v58 = vadd.f32 %v4249_v13, %v4220_v29 }
 0x9b2   : > { %v4271_v9 = vrot.slane %v10710_v4, %v13363_v45  ;;  %v4286_v41 = vadd.f32 %v4281_v39, %v4252_v26  ;;  %v4297_v12 = vrot.slane %v10690_v5, %v13365_v10  ;;  %v4183_v62 = vadd.f32 %v4178_v61, %v4149_v0  ;;  %v13380_v39 = vld [vmem:[#allocation107_spill] sm:$0xff] }
 0x9b3   : > { %v4284_v1 = vmul.f32 %v13376_v59, %v4275_v11  ;;  %v4316_v27 = vmul.f32 %v13377_v48, %v4301_v51  ;;  %v4225_v8 = vrot.slane %v10741_v33, %v13360_v56  ;;  %v4331_v35 = vrot.slane %v10690_v5, %v13367_v42 }
 0x9b4   : > { %v4283_v47 = vmul.f32 %v13376_v59, %v4271_v9  ;;  %v4315_v46 = vmul.f32 %v13377_v48, %v4297_v12  ;;  %v4212_v20 = vmul.f32 %v13374_v3, %v4191_v55  ;;  %v4309_v34 = vrot.slane %v10712_v32, %v13365_v10 }
 0x9b5   : > { %v4289_v57 = vadd.f32 %v4284_v1, %v4255_v31  ;;  %v4321_v60 = vadd.f32 %v4316_v27, %v4287_v36  ;;  %v4339_v7 = vrot.slane %v10710_v4, %v13367_v42  ;;  %v4305_v52 = vrot.slane %v10710_v4, %v13365_v10 }
 0x9b6   : > { %v4288_v44 = vadd.f32 %v4283_v47, %v4254_v58  ;;  %v4320_v22 = vadd.f32 %v4315_v46, %v4286_v41  ;;  %v4343_v25 = vrot.slane %v10712_v32, %v13367_v42  ;;  %v4350_v3 = vmul.f32 %v13378_v28, %v4335_v21 }
 0x9b7   : > { %v4217_v15 = vadd.f32 %v4212_v20, %v4183_v62  ;;  %v4318_v54 = vmul.f32 %v13377_v48, %v4309_v34  ;;  %v4246_v40 = vmul.f32 %v13375_v50, %v4225_v8  ;;  %v4349_v17 = vmul.f32 %v13378_v28, %v4331_v35  ;;  %v13383_v35 = vld [vmem:[#allocation121_spill] sm:$0xff] }
 0x9b8   : > { %v4317_v29 = vmul.f32 %v13377_v48, %v4305_v52  ;;  %v13379_v26 = vmov 28   ;;  %v4355_v13 = vadd.f32 %v4350_v3, %v4321_v60  ;;  %v4259_v53 = vrot.slane %v10741_v33, %v13363_v45 }
 0x9b9   : > { %v4323_v18 = vadd.f32 %v4318_v54, %v4289_v57  ;;  %v4365_v50 = vrot.slane %v10690_v5, %v13369_v14  ;;  %v4354_v38 = vadd.f32 %v4349_v17, %v4320_v22  ;;  %v4351_v21 = vmul.f32 %v13378_v28, %v4339_v7  ;;  %v13386_v17 = vld [vmem:[#allocation108_spill] sm:$0xff] }
 0x9ba   : > { %v4322_v0 = vadd.f32 %v4317_v29, %v4288_v44  ;;  %v4352_v61 = vmul.f32 %v13378_v28, %v4343_v25  ;;  %v4251_v55 = vadd.f32 %v4246_v40, %v4217_v15  ;;  %v4280_v11 = vmul.f32 %v13376_v59, %v4259_v53 }
 0x9bb   : > { %v10777_v19 = vpop.permute.xlu1 %4661  ;;  %v4373_v36 = vrot.slane %v10710_v4, %v13369_v14  ;;  %v4377_v51 = vrot.slane %v10712_v32, %v13369_v14  ;;  %v4383_v58 = vmul.f32 %v13380_v39, %v4365_v50  ;;  %v4403_v9 = vrot.slane %v10693_v63, %v13370_v37 }
 0x9bc   : > { %v4664_v23 = vmul.f32 %v10781_v6, %v10777_v19  ;;  %v13381_v41 = vmov 13   ;;  %v13382_v12 = vmov 12   ;;  %v4357_v1 = vadd.f32 %v4352_v61, %v4323_v18 }
 0x9bd   : > { %v4399_v59 = vrot.slane %v10690_v5, %v13370_v37  ;;  %v4388_v27 = vadd.f32 %v4383_v58, %v4354_v38  ;;  %v4386_v8 = vmul.f32 %v13380_v39, %v4377_v51  ;;  %v4418_v47 = vmul.f32 %v13383_v35, %v4403_v9  ;;  %v10906_v58 = vpop.permute.xlu0 %4851  ;;  %v13393_v9 = vld [vmem:[#allocation22_spill] sm:$0xff] }
 0x9be   : > { %4674 = vrot.lane.b32.xlu1 %v4664_v23, %s7348_s26  ;;  %v4369_v23 = vrot.slane %v10693_v63, %v13369_v14  ;;  %v4285_v63 = vadd.f32 %v4280_v11, %v4251_v55  ;;  %v4385_v46 = vmul.f32 %v13380_v39, %v4373_v36  ;;  %v4293_v5 = vrot.slane %v10741_v33, %v13365_v10  ;;  %v13391_v55 = vld [vmem:[#allocation31_spill] sm:$0xff] }
 0x9bf   : > { %v4417_v20 = vmul.f32 %v13383_v35, %v4399_v59  ;;  %v4411_v34 = vrot.slane %v10712_v32, %v13370_v37  ;;  %v4391_v7 = vadd.f32 %v4386_v8, %v4357_v1  ;;  %v4407_v44 = vrot.slane %v10710_v4, %v13370_v37  ;;  %v13396_v1 = vld [vmem:[#allocation72_spill] sm:$0xff] }
 0x9c0   : > { %v10803_v2 = vpop.permute.xlu1 %4756  ;;  %v4384_v31 = vmul.f32 %v13380_v39, %v4369_v23  ;;  %v13384_v52 = vmov 31   ;;  %v13385_v22 = vmov 30   ;;  %v4327_v54 = vrot.slane %v10741_v33, %v13367_v42 }
 0x9c1   : > { %v4759_v43 = vmul.f32 %v10781_v6, %v10803_v2  ;;  %v4422_v25 = vadd.f32 %v4417_v20, %v4388_v27  ;;  %v4420_v15 = vmul.f32 %v13383_v35, %v4411_v34  ;;  %v4314_v4 = vmul.f32 %v13377_v48, %v4293_v5  ;;  %v13389_v48 = vld [vmem:[#allocation76_spill] sm:$0xff]  ;;  %v13399_v5 = vld [vmem:[#allocation82_spill] sm:$0xff] }
 0x9c2   : > { %4842 = vperm.xlu1 %6947, %v10815_v30   ;;  %v4389_v62 = vadd.f32 %v4384_v31, %v4355_v13  ;;  %v4419_v40 = vmul.f32 %v13383_v35, %v4407_v44  ;;  %v13387_v53 = vmov 14   ;;  %v13388_v50 = vmov 32  }
 0x9c3   : > { %4769 = vrot.lane.b32.xlu0 %v4759_v43, %s7348_s26  ;;  %v4356_v43 = vadd.f32 %v4351_v21, %v4322_v0  ;;  %v4319_v18 = vadd.f32 %v4314_v4, %v4285_v63  ;;  %v4431_v23 = vmul.f32 %v13386_v17, %v4422_v25  ;;  %v4348_v0 = vmul.f32 %v13378_v28, %v4327_v54  ;;  %v10926_v63 = vpop.permute.xlu0 %5126 }
 0x9c4   : > { %v4423_v60 = vadd.f32 %v4418_v47, %v4389_v62  ;;  %v4361_v61 = vrot.slane %v10741_v33, %v13369_v14  ;;  %v4395_v62 = vrot.slane %v10741_v33, %v13370_v37  ;;  %v5133_v33 = vmul.f32 %v10781_v6, %v10926_v63 }
 0x9c5   : > { %v10863_v57 = vpop.permute.xlu1 %4936  ;;  %v4390_v3 = vadd.f32 %v4385_v46, %v4356_v43  ;;  %v10896_v31 = vadd.f32 %v4431_v23, %v13391_v55  ;;  %v4353_v36 = vadd.f32 %v4348_v0, %v4319_v18  ;;  %v13398_v20 = vmov 2  }
 0x9c6   : > { %6949 = vset.pattern.permute.xlu1 %v13379_v26  ;;  %v4943_v32 = vmul.f32 %v10781_v6, %v10863_v57  ;;  %v4432_v29 = vmul.f32 %v13386_v17, %v4423_v60  ;;  %v4425_v26 = vadd.f32 %v4420_v15, %v4391_v7  ;;  %v4382_v51 = vmul.f32 %v13380_v39, %v4361_v61  ;;  %v13405_v61 = vld [vmem:[#allocation109_spill] sm:$0xff] }
 0x9c7   : > { %4974 = vperm.xlu0 %6950, %v10815_v30   ;;  %4884 = vperm.xlu1 %6949, %v10815_v30   ;;  %v4424_v13 = vadd.f32 %v4419_v40, %v4390_v3  ;;  %13392 = vst [vmem:[#allocation116_spill] sm:$0xff] %v10896_v31  ;;  %v4416_v39 = vmul.f32 %v13383_v35, %v4395_v62  ;;  %v10947_v7 = vpop.permute.xlu0 %4557 }
 0x9c8   : > { %v10890_v38 = vadd.f32 %v4432_v29, %v13389_v48  ;;  %v4434_v21 = vmul.f32 %v13386_v17, %v4425_v26  ;;  %v4387_v27 = vadd.f32 %v4382_v51, %v4353_v36 }
 0x9c9   : > { %v4433_v11 = vmul.f32 %v13386_v17, %v4424_v13 }
 0x9ca   : > { %13390 = vst [vmem:[#allocation20_spill] sm:$0xff] %v10890_v38  ;;  %v10901_v28 = vpop.permute.xlu1 %5031  ;;  %v4421_v47 = vadd.f32 %v4416_v39, %v4387_v27 }
 0x9cb   : > { %6953 = vset.pattern.permute.xlu0 %v13381_v41  ;;  %6951 = vset.pattern.permute.xlu1 %v13382_v12  ;;  %v10909_v41 = vadd.f32 %v4434_v21, %v13393_v9  ;;  %v13395_v12 = vmov 1   ;;  %v10915_v59 = vadd.f32 %v4433_v11, %v13396_v1  ;;  %v5038_v43 = vmul.f32 %v10781_v6, %v10901_v28 }
 0x9cc   : > { %5117 = vperm.xlu0 %6953, %v10815_v30   ;;  %5022 = vperm.xlu1 %6951, %v10815_v30   ;;  %v4430_v46 = vmul.f32 %v13386_v17, %v4421_v47  ;;  %v13407_v47 = vld [vmem:[#allocation113_spill] sm:$0xff] }
 0x9cd   : > { %13394 = vst [vmem:[#allocation118_spill] sm:$0xff] %v10909_v41  ;;  %13397 = vst [vmem:[#allocation120_spill] sm:$0xff] %v10915_v59 }
 0x9ce   : > { %v10939_v34 = vadd.f32 %v4430_v46, %v13399_v5 }
 0x9cf   : > { %v10924_v8 = vpop.permute.xlu1 %5221 }
 0x9d0   : > { %6954 = vset.pattern.permute.xlu0 %v13384_v52  ;;  %6952 = vset.pattern.permute.xlu1 %v13385_v22  ;;  %v5228_v35 = vmul.f32 %v10781_v6, %v10924_v8  ;;  %13400 = vst [vmem:[#allocation27_spill] sm:$0xff] %v10939_v34  ;;  %v10951_v52 = vpop.permute.xlu0 %4652 }
 0x9d1   : > { %5164 = vperm.xlu0 %6954, %v10815_v30   ;;  %5069 = vperm.xlu1 %6952, %v10815_v30  }
 0x9d4   : > { %v10955_v25 = vpop.permute.xlu0 %4794 }
 0x9d5   : > { %4957 = vrot.lane.b32.xlu0 %v4943_v32, %s7348_s26  ;;  %6955 = vset.pattern.permute.xlu1 %v13387_v53 }
 0x9d6   : > { %5212 = vperm.xlu1 %6955, %v10815_v30   ;;  %6956 = vset.pattern.permute.xlu0 %v13388_v50 }
 0x9d8   : > { %v10959_v15 = vpop.permute.xlu0 %4927 }
 0x9d9   : > { %4451 = vrot.lane.b32.xlu0 %v10890_v38, %s7367_s9 }
 0x9da   : > { %4449 = vrot.lane.b32.xlu1 %v10896_v31, %s7367_s9 }
 0x9db   : > { %6957 = vset.pattern.permute.xlu1 %v13395_v12 }
 0x9dd   : > { %4455 = vrot.lane.b32.xlu0 %v10909_v41, %s7367_s9 }
 0x9de   : > { %4453 = vrot.lane.b32.xlu1 %v10915_v59, %s7367_s9 }
 0x9e1   : > { %5259 = vperm.xlu0 %6956, %v10815_v30   ;;  %v10943_v30 = vpop.permute.xlu1 %4533 }
 0x9e2   : > { %5052 = vrot.lane.b32.xlu1 %v5038_v43, %s7348_s26  ;;  %13401 = vst [vmem:[#allocation28_spill] sm:$0xff] %v10943_v30 }
 0x9e5   : > { %5147 = vrot.lane.b32.xlu0 %v5133_v33, %s7348_s26  ;;  %v10945_v60 = vpop.permute.xlu1 %4579 }
 0x9e6   : > { %5242 = vrot.lane.b32.xlu1 %v5228_v35, %s7348_s26  ;;  %6958 = vset.pattern.permute.xlu0 %v13398_v20  ;;  %13402 = vst [vmem:[#allocation74_spill] sm:$0xff] %v10945_v60 }
 0x9e9   : > { %v10949_v44 = vpop.permute.xlu1 %4604 }
 0x9ea   : > { %4447 = vrot.lane.b32.xlu1 %v10939_v34, %s7367_s9 }
 0x9ed   : > { %v10953_v22 = vpop.permute.xlu1 %4699 }
 0x9f1   : > { %v10957_v3 = vpop.permute.xlu1 %4747 }
 0xa30   : > { %v10961_v32 = vpop.permute.xlu1 %4674 }
 0xa31   : > { %13403 = vst [vmem:[#allocation96_spill] sm:$0xff] %v10961_v32 }
 0xa35   : > { %v10965_v4 = vpop.permute.xlu0 %4769 }
 0xa36   : > { %13404 = vst [vmem:[#allocation87_spill] sm:$0xff] %v10965_v4 }
 0xa3d   : > { %v10963_v54 = vpop.permute.xlu1 %4842 }
 0xa42   : > { %v10967_v40 = vpop.permute.xlu1 %4884  ;;  %v10969_v17 = vpop.permute.xlu0 %4974 }
 0xa47   : > { %v10971_v29 = vpop.permute.xlu1 %5022  ;;  %v10973_v26 = vpop.permute.xlu0 %5117 }
 0xa4c   : > { %v10975_v18 = vpop.permute.xlu1 %5069  ;;  %v10977_v23 = vpop.permute.xlu0 %5164 }
 0xa50   : > { %v10979_v13 = vpop.permute.xlu0 %4957 }
 0xa51   : > { %v10981_v53 = vpop.permute.xlu1 %5212 }
 0xa54   : > { %v4452_v0 = vpop.permute.xlu0 %4451 }
 0xa55   : > { %v4450_v50 = vpop.permute.xlu1 %4449 }
 0xa56   : > { %v10984_v21 = vsel %vm1602_vm7, %v4450_v50, %v4452_v0 }
 0xa57   : > { %4466 = vst [vmem:[#allocation2] sm:$0xff] %v10984_v21  ;;  %v4495_v11 = vmul.f32 %v13405_v61, %v10984_v21  ;;  %v4571_v35 = vmul.f32 %v13407_v47, %v10984_v21  ;;  %v4752_v38 = vmul.f32 %v10957_v3, %v10984_v21 }
 0xa58   : > { %v4456_v36 = vpop.permute.xlu0 %4455 }
 0xa59   : > { %v4454_v51 = vpop.permute.xlu1 %4453  ;;  %4507 = vrot.lane.b32.xlu1 %v4495_v11, %s7348_s26 }
 0xa5a   : > { %v10991_v12 = vsel %vm1602_vm7, %v4452_v0, %v4454_v51  ;;  %v10994_v62 = vsel %vm1602_vm7, %v4454_v51, %v4456_v36 }
 0xa5b   : > { %4467 = vst [vmem:[#allocation2 + $0x10] sm:$0xff] %v10991_v12  ;;  %4468 = vst [vmem:[#allocation2 + $0x18] sm:$0xff] %v10994_v62  ;;  %v4496_v27 = vmul.f32 %v13405_v61, %v10991_v12  ;;  %v4497_v39 = vmul.f32 %v13405_v61, %v10994_v62  ;;  %v4572_v33 = vmul.f32 %v13407_v47, %v10991_v12 }
 0xa5c   : > { %v4667_v20 = vmul.f32 %v10777_v19, %v10991_v12  ;;  %v4573_v0 = vmul.f32 %v13407_v47, %v10994_v62  ;;  %v4668_v51 = vmul.f32 %v10777_v19, %v10994_v62  ;;  %v4658_v55 = vmul.f32 %v10951_v52, %v10991_v12 }
 0xa5d   : > { %v11002_v43 = vpop.permute.xlu1 %5052  ;;  %4509 = vrot.lane.b32.xlu1 %v4496_v27, %s7348_s26  ;;  %4511 = vrot.lane.b32.xlu0 %v4497_v39, %s7348_s26  ;;  %v4666_v27 = vmul.f32 %v10777_v19, %v10984_v21  ;;  %v4762_v39 = vmul.f32 %v10803_v2, %v10991_v12  ;;  %v4849_v37 = vmul.f32 %v10963_v54, %v10994_v62 }
 0xa5e   : > { %13406 = vst [vmem:[#allocation73_spill] sm:$0xff] %v11002_v43  ;;  %v4564_v45 = vmul.f32 %v10947_v7, %v10994_v62  ;;  %v4754_v24 = vmul.f32 %v10957_v3, %v10994_v62  ;;  %v4933_v32 = vmul.f32 %v10959_v15, %v10991_v12  ;;  %v4801_v43 = vmul.f32 %v10781_v6, %v10955_v25 }
 0xa61   : > { %v11010_v46 = vpop.permute.xlu1 %5242  ;;  %4585 = vrot.lane.b32.xlu1 %v4572_v33, %s7348_s26  ;;  %4583 = vrot.lane.b32.xlu0 %v4571_v35, %s7348_s26  ;;  %v4761_v33 = vmul.f32 %v10803_v2, %v10984_v21  ;;  %v4763_v35 = vmul.f32 %v10803_v2, %v10994_v62 }
 0xa62   : > { %13408 = vst [vmem:[#allocation77_spill] sm:$0xff] %v11010_v46 }
 0xa65   : > { %v4448_v11 = vpop.permute.xlu1 %4447  ;;  %4680 = vrot.lane.b32.xlu1 %v4667_v20, %s7348_s26  ;;  %4587 = vrot.lane.b32.xlu0 %v4573_v0, %s7348_s26  ;;  %v4940_v20 = vmul.f32 %v10863_v57, %v10984_v21  ;;  %v4857_v0 = vmul.f32 %v10906_v58, %v10994_v62 }
 0xa66   : > { %v11021_v36 = vsel %vm1602_vm7, %v4448_v11, %v4450_v50  ;;  %v4855_v50 = vmul.f32 %v10906_v58, %v10984_v21  ;;  %v4942_v11 = vmul.f32 %v10863_v57, %v10994_v62 }
 0xa67   : > { %4465 = vst [vmem:[#allocation2 + $0x28] sm:$0xff] %v11021_v36 }
 0xa69   : > { %4682 = vrot.lane.b32.xlu1 %v4668_v51, %s7348_s26  ;;  %4678 = vrot.lane.b32.xlu0 %v4666_v27, %s7348_s26  ;;  %v5036_v51 = vmul.f32 %v10901_v28, %v10991_v12  ;;  %v4856_v27 = vmul.f32 %v10906_v58, %v10991_v12 }
 0xa6d   : > { %4775 = vrot.lane.b32.xlu1 %v4762_v39, %s7348_s26  ;;  %4773 = vrot.lane.b32.xlu0 %v4761_v33, %s7348_s26  ;;  %v5130_v39 = vmul.f32 %v10926_v63, %v10984_v21  ;;  %v4941_v33 = vmul.f32 %v10863_v57, %v10991_v12 }
 0xa71   : > { %4864 = vrot.lane.b32.xlu1 %v4855_v50, %s7348_s26  ;;  %4777 = vrot.lane.b32.xlu0 %v4763_v35, %s7348_s26  ;;  %v5227_v50 = vmul.f32 %v10924_v8, %v10994_v62  ;;  %v5035_v35 = vmul.f32 %v10901_v28, %v10984_v21 }
 0xa75   : > { %4951 = vrot.lane.b32.xlu1 %v4940_v20, %s7348_s26  ;;  %4868 = vrot.lane.b32.xlu0 %v4857_v0, %s7348_s26  ;;  %v5226_v20 = vmul.f32 %v10924_v8, %v10991_v12  ;;  %v5037_v0 = vmul.f32 %v10901_v28, %v10994_v62 }
 0xa79   : > { %4955 = vrot.lane.b32.xlu1 %v4942_v11, %s7348_s26  ;;  %5048 = vrot.lane.b32.xlu0 %v5036_v51, %s7348_s26  ;;  %v4494_v11 = vmul.f32 %v13405_v61, %v11021_v36  ;;  %v5132_v51 = vmul.f32 %v10926_v63, %v10994_v62  ;;  %v5034_v61 = vmul.f32 %v10901_v28, %v11021_v36 }
 0xa7a   : > { %v4665_v28 = vmul.f32 %v10777_v19, %v11021_v36 }
 0xa7d   : > { %4866 = vrot.lane.b32.xlu1 %v4856_v27, %s7348_s26  ;;  %5141 = vrot.lane.b32.xlu0 %v5130_v39, %s7348_s26  ;;  %v4939_v27 = vmul.f32 %v10863_v57, %v11021_v36  ;;  %v5131_v39 = vmul.f32 %v10926_v63, %v10991_v12  ;;  %v5224_v57 = vmul.f32 %v10924_v8, %v11021_v36 }
 0xa81   : > { %4953 = vrot.lane.b32.xlu1 %v4941_v33, %s7348_s26  ;;  %5240 = vrot.lane.b32.xlu0 %v5227_v50, %s7348_s26  ;;  %v5225_v33 = vmul.f32 %v10924_v8, %v10984_v21  ;;  %v4570_v50 = vmul.f32 %v13407_v47, %v11021_v36  ;;  %v4854_v8 = vmul.f32 %v10906_v58, %v11021_v36 }
 0xa82   : > { %v5129_v47 = vmul.f32 %v10926_v63, %v11021_v36 }
 0xa85   : > { %5046 = vrot.lane.b32.xlu1 %v5035_v35, %s7348_s26  ;;  %5238 = vrot.lane.b32.xlu0 %v5226_v20, %s7348_s26  ;;  %v4760_v35 = vmul.f32 %v10803_v2, %v11021_v36  ;;  %v11111_v20 = vpop.permute.xlu0 %5259  ;;  %v13409_v2 = vld [vmem:[#allocation110_spill] sm:$0xff] }
 0xa86   : > { %v4487_v58 = vmul.f32 %v13409_v2, %v10991_v12 }
 0xa89   : > { %5050 = vrot.lane.b32.xlu1 %v5037_v0, %s7348_s26  ;;  %4505 = vrot.lane.b32.xlu0 %v4494_v11, %s7348_s26  ;;  %v11113_v19 = vpop.permute.xlu0 %5147 }
 0xa8d   : > { %5145 = vrot.lane.b32.xlu1 %v5132_v51, %s7348_s26  ;;  %4949 = vrot.lane.b32.xlu0 %v4939_v27, %s7348_s26  ;;  %v4486_v51 = vmul.f32 %v13409_v2, %v10984_v21 }
 0xa91   : > { %5143 = vrot.lane.b32.xlu1 %v5131_v39, %s7348_s26  ;;  %5044 = vrot.lane.b32.xlu0 %v5034_v61, %s7348_s26  ;;  %v4538_v61 = vmul.f32 %v10943_v30, %v10991_v12 }
 0xa95   : > { %5236 = vrot.lane.b32.xlu1 %v5225_v33, %s7348_s26  ;;  %5234 = vrot.lane.b32.xlu0 %v5224_v57, %s7348_s26  ;;  %v4539_v57 = vmul.f32 %v10943_v30, %v10994_v62 }
 0xa99   : > { %4581 = vrot.lane.b32.xlu1 %v4570_v50, %s7348_s26 }
 0xa9d   : > { %4676 = vrot.lane.b32.xlu1 %v4665_v28, %s7348_s26 }
 0xaa1   : > { %4771 = vrot.lane.b32.xlu1 %v4760_v35, %s7348_s26 }
 0xaa5   : > { %4862 = vrot.lane.b32.xlu1 %v4854_v8, %s7348_s26 }
 0xaa9   : > { %5139 = vrot.lane.b32.xlu1 %v5129_v47, %s7348_s26  ;;  %v4562_v47 = vmul.f32 %v10947_v7, %v10984_v21  ;;  %s6650_s26 = sshll.u32 %s7450_s24, 9  ;;  %s6494_s24 = scalar_lea.sflag [#allocation5], %s7581_s29 }
 0xacb   : > { %v11115_v0 = vpop.permute.xlu1 %4507 }
 0xacf   : > { %v4510_v11 = vpop.permute.xlu1 %4509  ;;  %v11121_v27 = vpop.permute.xlu0 %4511 }
 0xad0   : > { %13410 = vst [vmem:[#allocation41_spill] sm:$0xff] %v11121_v27  ;;  %v4515_v63 = vsel %vm382_vm0, %v11115_v0, %v4510_v11  ;;  %v4516_v39 = vsel %vm382_vm0, %v4510_v11, %v11121_v27  ;;  %v4932_v27 = vmul.f32 %v10959_v15, %v10984_v21 }
 0xad1   : > { %v4524_v33 = vadd.f32 %v4515_v63, %v4486_v51  ;;  %v4525_v50 = vadd.f32 %v4516_v39, %v4487_v58  ;;  %v4609_v51 = vmul.f32 %v10949_v44, %v10991_v12  ;;  %v4563_v39 = vmul.f32 %v10947_v7, %v10991_v12 }
 0xad3   : > { %v11131_v28 = vadd.f32 %v4538_v61, %v4524_v33  ;;  %v11133_v35 = vadd.f32 %v4539_v57, %v4525_v50  ;;  %v4586_v8 = vpop.permute.xlu1 %4585  ;;  %v11137_v1 = vpop.permute.xlu0 %4583  ;;  %v4610_v57 = vmul.f32 %v10949_v44, %v10994_v62 }
 0xad4   : > { %v4591_v11 = vsel %vm382_vm0, %v11137_v1, %v4586_v8 }
 0xad5   : > { %13411 = vst [vmem:[#allocation29_spill] sm:$0xff] %v11131_v28  ;;  %13412 = vst [vmem:[#allocation91_spill] sm:$0xff] %v11133_v35  ;;  %v4600_v63 = vadd.f32 %v4591_v11, %v4562_v47  ;;  %v4657_v47 = vmul.f32 %v10951_v52, %v10984_v21 }
 0xad7   : > { %v11143_v9 = vadd.f32 %v4609_v51, %v4600_v63  ;;  %v4681_v58 = vpop.permute.xlu1 %4680  ;;  %v4588_v61 = vpop.permute.xlu0 %4587  ;;  %v4705_v63 = vmul.f32 %v10953_v22, %v10994_v62 }
 0xad8   : > { %v4592_v33 = vsel %vm382_vm0, %v4586_v8, %v4588_v61 }
 0xad9   : > { %v4601_v50 = vadd.f32 %v4592_v33, %v4563_v39  ;;  %v4704_v33 = vmul.f32 %v10953_v22, %v10991_v12 }
 0xadb   : > { %v11150_v48 = vadd.f32 %v4610_v57, %v4601_v50  ;;  %v4683_v59 = vpop.permute.xlu1 %4682  ;;  %v11156_v11 = vpop.permute.xlu0 %4678 }
 0xadc   : > { %v4687_v51 = vsel %vm382_vm0, %v4681_v58, %v4683_v59  ;;  %v4686_v8 = vsel %vm382_vm0, %v11156_v11, %v4681_v58 }
 0xadd   : > { %v4696_v39 = vadd.f32 %v4687_v51, %v4658_v55  ;;  %v4695_v57 = vadd.f32 %v4686_v8, %v4657_v47  ;;  %v4799_v55 = vmul.f32 %v10955_v25, %v10991_v12  ;;  %v4753_v8 = vmul.f32 %v10957_v3, %v10991_v12 }
 0xadf   : > { %v11165_v50 = vadd.f32 %v4705_v63, %v4696_v39  ;;  %v11167_v41 = vadd.f32 %v4704_v33, %v4695_v57  ;;  %v4776_v5 = vpop.permute.xlu1 %4775  ;;  %v11171_v31 = vpop.permute.xlu0 %4773  ;;  %v4800_v33 = vmul.f32 %v10955_v25, %v10994_v62 }
 0xae0   : > { %v4781_v58 = vsel %vm382_vm0, %v11171_v31, %v4776_v5 }
 0xae1   : > { %v4790_v51 = vadd.f32 %v4781_v58, %v4752_v38 }
 0xae3   : > { %v11177_v34 = vadd.f32 %v4799_v55, %v4790_v51  ;;  %v11179_v47 = vpop.permute.xlu1 %4864  ;;  %v4778_v63 = vpop.permute.xlu0 %4777  ;;  %v4891_v55 = vmul.f32 %v10781_v6, %v10967_v40 }
 0xae4   : > { %v4782_v39 = vsel %vm382_vm0, %v4776_v5, %v4778_v63  ;;  %v4792_v4 = vadd.f32 %v4778_v63, %v4754_v24  ;;  %v4980_v24 = vmul.f32 %v10969_v17, %v10994_v62  ;;  %v13414_v63 = vld [vmem:[#allocation40_spill] sm:$0xff] }
 0xae5   : > { %13413 = vst [vmem:[#allocation25_spill] sm:$0xff] %v11177_v34  ;;  %v4791_v57 = vadd.f32 %v4782_v39, %v4753_v8  ;;  %v4659_v8 = vmul.f32 %v10951_v52, %v10994_v62  ;;  %v4602_v39 = vadd.f32 %v4588_v61, %v4564_v45  ;;  %v4889_v61 = vmul.f32 %v10967_v40, %v10991_v12 }
 0xae7   : > { %v11188_v14 = vadd.f32 %v4800_v33, %v4791_v57  ;;  %v11190_v38 = vpop.permute.xlu1 %4951  ;;  %v4869_v58 = vpop.permute.xlu0 %4868  ;;  %v4611_v33 = vmul.f32 %v10781_v6, %v10949_v44  ;;  %v4697_v57 = vadd.f32 %v4683_v59, %v4659_v8  ;;  %v4890_v8 = vmul.f32 %v10967_v40, %v10994_v62 }
 0xae8   : > { %v4882_v51 = vadd.f32 %v4869_v58, %v4849_v37  ;;  %v4847_v37 = vmul.f32 %v10963_v54, %v10984_v21 }
 0xae9   : > { %v4616_v35 = vadd.f32 %v4611_v33, %v4602_v39 }
 0xaea   : > { %v4896_v42 = vadd.f32 %v4891_v55, %v4882_v51  ;;  %v4848_v55 = vmul.f32 %v10963_v54, %v10991_v12 }
 0xaeb   : > { %v11194_v10 = vpop.permute.xlu1 %4955  ;;  %v5049_v5 = vpop.permute.xlu0 %5048 }
 0xaec   : > { %4910 = vrot.lane.b32.xlu0 %v4896_v42, %s7357_s15  ;;  %v4706_v42 = vmul.f32 %v10781_v6, %v10953_v22 }
 0xaee   : > { %v4711_v60 = vadd.f32 %v4706_v42, %v4697_v57  ;;  %v4621_v57 = vmul.f32 %v4616_v35, %v13414_v63  ;;  %v5218_v42 = vmul.f32 %v10981_v53, %v10991_v12 }
 0xaef   : > { %v4867_v51 = vpop.permute.xlu1 %4866  ;;  %v11207_v56 = vpop.permute.xlu0 %5141 }
 0xaf0   : > { %v4871_v45 = vsel %vm382_vm0, %v11179_v47, %v4867_v51  ;;  %v4872_v59 = vsel %vm382_vm0, %v4867_v51, %v4869_v58 }
 0xaf1   : > { %v4880_v16 = vadd.f32 %v4871_v45, %v4847_v37  ;;  %v4881_v28 = vadd.f32 %v4872_v59, %v4848_v55  ;;  %v4979_v37 = vmul.f32 %v10969_v17, %v10991_v12  ;;  %v5027_v55 = vmul.f32 %v10971_v29, %v10984_v21 }
 0xaf2   : > { %v4806_v45 = vadd.f32 %v4801_v43, %v4792_v4  ;;  %v5265_v4 = vmul.f32 %v11111_v20, %v10994_v62 }
 0xaf3   : > { %v4894_v46 = vadd.f32 %v4889_v61, %v4880_v16  ;;  %v4895_v34 = vadd.f32 %v4890_v8, %v4881_v28  ;;  %v4954_v58 = vpop.permute.xlu1 %4953  ;;  %v11224_v51 = vpop.permute.xlu0 %5240 }
 0xaf4   : > { %v4960_v39 = vsel %vm382_vm0, %v11190_v38, %v4954_v58  ;;  %v4961_v33 = vsel %vm382_vm0, %v4954_v58, %v11194_v10 }
 0xaf5   : > { %v4970_v16 = vadd.f32 %v4960_v39, %v4932_v27  ;;  %v4971_v28 = vadd.f32 %v4961_v33, %v4933_v32  ;;  %4906 = vrot.lane.b32.xlu1 %v4894_v46, %s7357_s15  ;;  %4908 = vrot.lane.b32.xlu0 %v4895_v34, %s7357_s15  ;;  %v13415_v32 = vld [vmem:[#allocation44_spill] sm:$0xff]  ;;  %v5074_v34 = vmul.f32 %v10975_v18, %v10991_v12 }
 0xaf6   : > { %v4716_v46 = vmul.f32 %v4711_v60, %v13415_v32  ;;  %v4484_v60 = vmul.f32 %v10781_v6, %v13409_v2 }
 0xaf7   : > { %v11243_v59 = vadd.f32 %v4979_v37, %v4970_v16  ;;  %v11245_v61 = vadd.f32 %v4980_v24, %v4971_v28  ;;  %v5047_v8 = vpop.permute.xlu1 %5046  ;;  %v11247_v27 = vpop.permute.xlu0 %5238  ;;  %v13416_v37 = vld [vmem:[#allocation47_spill] sm:$0xff]  ;;  %v5028_v28 = vmul.f32 %v10971_v29, %v10991_v12 }
 0xaf8   : > { %v5055_v35 = vsel %vm382_vm0, %v5047_v8, %v5049_v5  ;;  %v5246_v58 = vsel %vm382_vm0, %v11247_v27, %v11224_v51  ;;  %v4811_v33 = vmul.f32 %v4806_v45, %v13416_v37 }
 0xaf9   : > { %v5065_v39 = vadd.f32 %v5055_v35, %v5027_v55  ;;  %v5256_v43 = vadd.f32 %v5246_v58, %v5218_v42  ;;  %4635 = vrot.lane.b32.xlu1 %v4621_v57, %s7358_s8  ;;  %4730 = vrot.lane.b32.xlu0 %v4716_v46, %s7359_s10  ;;  %v4485_v42 = vmul.f32 %v13409_v2, %v11021_v36 }
 0xafa   : > { %v5075_v46 = vmul.f32 %v10975_v18, %v10994_v62  ;;  %v4536_v35 = vmul.f32 %v10943_v30, %v11021_v36 }
 0xafb   : > { %v11263_v24 = vadd.f32 %v5074_v34, %v5065_v39  ;;  %v11265_v16 = vadd.f32 %v5265_v4, %v5256_v43  ;;  %v11269_v63 = vpop.permute.xlu1 %5050  ;;  %v4506_v55 = vpop.permute.xlu0 %4505  ;;  %v13417_v4 = vld [vmem:[#allocation67_spill] sm:$0xff] }
 0xafc   : > { %v5056_v57 = vsel %vm382_vm0, %v5049_v5, %v11269_v63  ;;  %v4513_v32 = vsel %vm382_vm0, %v10762_v49, %v4506_v55  ;;  %v4514_v45 = vsel %vm382_vm0, %v4506_v55, %v11115_v0  ;;  %v4537_v5 = vmul.f32 %v10943_v30, %v10984_v21 }
 0xafd   : > { %v5066_v34 = vadd.f32 %v5056_v57, %v5028_v28  ;;  %v4522_v58 = vadd.f32 %v4513_v32, %v4484_v60  ;;  %4825 = vrot.lane.b32.xlu1 %v4811_v33, %s7360_s16  ;;  %v4523_v39 = vadd.f32 %v4514_v45, %v4485_v42  ;;  %v4620_v49 = vmul.f32 %v11150_v48, %v13417_v4  ;;  %v13420_v42 = vld [vmem:[#allocation56_spill] sm:$0xff] }
 0xafe   : > { %v4931_v28 = vmul.f32 %v10959_v15, %v11021_v36  ;;  %v4978_v48 = vmul.f32 %v10969_v17, %v10984_v21  ;;  %v4714_v32 = vmul.f32 %v11167_v41, %v13420_v42  ;;  %v5026_v41 = vmul.f32 %v10971_v29, %v11021_v36 }
 0xaff   : > { %v11288_v43 = vadd.f32 %v5075_v46, %v5066_v34  ;;  %v11290_v0 = vadd.f32 %v4536_v35, %v4522_v58  ;;  %v11292_v37 = vpop.permute.xlu1 %5145  ;;  %v11296_v55 = vpop.permute.xlu0 %4949  ;;  %v11298_v60 = vadd.f32 %v4537_v5, %v4523_v39  ;;  %v5122_v46 = vmul.f32 %v10973_v26, %v10984_v21 }
 0xb00   : > { %v4959_v33 = vsel %vm382_vm0, %v11296_v55, %v11190_v38  ;;  %v5123_v34 = vmul.f32 %v10973_v26, %v10991_v12  ;;  %v5169_v4 = vmul.f32 %v10977_v23, %v10991_v12  ;;  %v5217_v42 = vmul.f32 %v10981_v53, %v10984_v21 }
 0xb01   : > { %13418 = vst [vmem:[#allocation119_spill] sm:$0xff] %v11290_v0  ;;  %13419 = vst [vmem:[#allocation85_spill] sm:$0xff] %v11298_v60  ;;  %v4969_v57 = vadd.f32 %v4959_v33, %v4931_v28  ;;  %4633 = vrot.lane.b32.xlu1 %v4620_v49, %s7358_s8  ;;  %v5170_v49 = vmul.f32 %v10977_v23, %v10994_v62 }
 0xb03   : > { %v11308_v45 = vadd.f32 %v4978_v48, %v4969_v57  ;;  %v5144_v35 = vpop.permute.xlu1 %5143  ;;  %v11314_v58 = vpop.permute.xlu0 %5044  ;;  %v5073_v48 = vmul.f32 %v10975_v18, %v10984_v21 }
 0xb04   : > { %v5150_v38 = vsel %vm382_vm0, %v11207_v56, %v5144_v35  ;;  %v5151_v5 = vsel %vm382_vm0, %v5144_v35, %v11292_v37  ;;  %v5054_v39 = vsel %vm382_vm0, %v11314_v58, %v5047_v8  ;;  %v13421_v35 = vld [vmem:[#allocation45_spill] sm:$0xff] }
 0xb05   : > { %v5160_v28 = vadd.f32 %v5150_v38, %v5122_v46  ;;  %v5161_v33 = vadd.f32 %v5151_v5, %v5123_v34  ;;  %4726 = vrot.lane.b32.xlu1 %v4714_v32, %s7359_s10  ;;  %v5064_v57 = vadd.f32 %v5054_v39, %v5026_v41  ;;  %v4810_v8 = vmul.f32 %v11188_v14, %v13421_v35 }
 0xb06   : > { %v5216_v46 = vmul.f32 %v10981_v53, %v11021_v36  ;;  %v5264_v14 = vmul.f32 %v11111_v20, %v10991_v12  ;;  %v5263_v39 = vmul.f32 %v11111_v20, %v10984_v21  ;;  %v4608_v12 = vmul.f32 %v10949_v44, %v10984_v21 }
 0xb07   : > { %v11335_v0 = vadd.f32 %v5169_v4, %v5160_v28  ;;  %v11337_v60 = vadd.f32 %v5170_v49, %v5161_v33  ;;  %v5237_v30 = vpop.permute.xlu1 %5236  ;;  %v11341_v34 = vpop.permute.xlu0 %5234  ;;  %v11343_v32 = vadd.f32 %v5073_v48, %v5064_v57 }
 0xb08   : > { %v5245_v38 = vsel %vm382_vm0, %v5237_v30, %v11247_v27  ;;  %v5244_v5 = vsel %vm382_vm0, %v11341_v34, %v5237_v30  ;;  %v4561_v27 = vmul.f32 %v10947_v7, %v11021_v36 }
 0xb09   : > { %v5255_v41 = vadd.f32 %v5245_v38, %v5217_v42  ;;  %v5254_v4 = vadd.f32 %v5244_v5, %v5216_v46  ;;  %4823 = vrot.lane.b32.xlu1 %v4810_v8, %s7360_s16  ;;  %v4656_v42 = vmul.f32 %v10951_v52, %v11021_v36  ;;  %v4703_v46 = vmul.f32 %v10953_v22, %v10984_v21 }
 0xb0a   : > { %v4751_v5 = vmul.f32 %v10957_v3, %v11021_v36 }
 0xb0b   : > { %v11354_v49 = vadd.f32 %v5264_v14, %v5255_v41  ;;  %v11356_v28 = vadd.f32 %v5263_v39, %v5254_v4  ;;  %v11360_v33 = vpop.permute.xlu1 %4581  ;;  %v4962_v14 = vsel %vm382_vm0, %v11194_v10, %v10979_v13  ;;  %v4798_v4 = vmul.f32 %v10955_v25, %v10984_v21 }
 0xb0c   : > { %v4590_v30 = vsel %vm382_vm0, %v11360_v33, %v11137_v1  ;;  %v4846_v10 = vmul.f32 %v10963_v54, %v11021_v36 }
 0xb0d   : > { %v4599_v48 = vadd.f32 %v4590_v30, %v4561_v27  ;;  %v4845_v30 = vmul.f32 %v10781_v6, %v10963_v54  ;;  %v5121_v54 = vmul.f32 %v10973_v26, %v11021_v36 }
 0xb0f   : > { %v11367_v57 = vadd.f32 %v4608_v12, %v4599_v48  ;;  %v11371_v35 = vpop.permute.xlu1 %4676 }
 0xb10   : > { %v4685_v8 = vsel %vm382_vm0, %v11371_v35, %v11156_v11  ;;  %v4934_v11 = vmul.f32 %v10959_v15, %v10994_v62 }
 0xb11   : > { %v4694_v38 = vadd.f32 %v4685_v8, %v4656_v42 }
 0xb12   : > { %v4972_v12 = vadd.f32 %v4962_v14, %v4934_v11 }
 0xb13   : > { %v11378_v1 = vadd.f32 %v4703_v46, %v4694_v38  ;;  %v11382_v41 = vpop.permute.xlu1 %4771  ;;  %v4981_v46 = vmul.f32 %v10781_v6, %v10969_v17  ;;  %v4888_v38 = vmul.f32 %v10967_v40, %v10984_v21 }
 0xb14   : > { %v4780_v39 = vsel %vm382_vm0, %v11382_v41, %v11171_v31  ;;  %v4887_v31 = vmul.f32 %v10967_v40, %v11021_v36  ;;  %v13422_v40 = vld [vmem:[#allocation69_spill] sm:$0xff] }
 0xb15   : > { %v4789_v27 = vadd.f32 %v4780_v39, %v4751_v5  ;;  %v4986_v39 = vadd.f32 %v4981_v46, %v4972_v12  ;;  %v13425_v46 = vld [vmem:[#allocation73_spill] sm:$0xff] }
 0xb17   : > { %v11396_v48 = vadd.f32 %v4798_v4, %v4789_v27  ;;  %v4863_v13 = vpop.permute.xlu1 %4862 }
 0xb18   : > { %v4870_v42 = vsel %vm382_vm0, %v4863_v13, %v11179_v47  ;;  %v4878_v8 = vadd.f32 %v4863_v13, %v4845_v30  ;;  %v5168_v47 = vmul.f32 %v10977_v23, %v10984_v21  ;;  %v13423_v13 = vld [vmem:[#allocation61_spill] sm:$0xff] }
 0xb19   : > { %v4879_v5 = vadd.f32 %v4870_v42, %v4846_v10  ;;  %v4619_v10 = vmul.f32 %v11143_v9, %v13422_v40  ;;  %v5152_v42 = vsel %vm382_vm0, %v11292_v37, %v11113_v19  ;;  %v13424_v21 = vld [vmem:[#allocation57_spill] sm:$0xff]  ;;  %v5057_v9 = vsel %vm382_vm0, %v11269_v63, %v13425_v46  ;;  %v13429_v63 = vld [vmem:[#allocation62_spill] sm:$0xff] }
 0xb1a   : > { %v4892_v14 = vadd.f32 %v4887_v31, %v4878_v8  ;;  %v4991_v31 = vmul.f32 %v4986_v39, %v13423_v13  ;;  %v4715_v8 = vmul.f32 %v11165_v50, %v13424_v21  ;;  %v5029_v19 = vmul.f32 %v10971_v29, %v10994_v62  ;;  %v13427_v39 = vld [vmem:[#allocation35_spill] sm:$0xff]  ;;  %v13428_v50 = vld [vmem:[#allocation25_spill] sm:$0xff] }
 0xb1b   : > { %v4893_v11 = vadd.f32 %v4888_v38, %v4879_v5  ;;  %v5140_v4 = vpop.permute.xlu1 %5139  ;;  %v13426_v5 = vld [vmem:[#allocation59_spill] sm:$0xff]  ;;  %v5171_v37 = vmul.f32 %v10781_v6, %v10977_v23  ;;  %v5120_v21 = vmul.f32 %v10781_v6, %v10973_v26  ;;  %v13433_v46 = vld [vmem:[#allocation77_spill] sm:$0xff] }
 0xb1c   : > { %v5149_v27 = vsel %vm382_vm0, %v5140_v4, %v11207_v56  ;;  %4902 = vrot.lane.b32.xlu0 %v4892_v14, %s7357_s15  ;;  %v5124_v56 = vmul.f32 %v10973_v26, %v10994_v62  ;;  %v4990_v14 = vmul.f32 %v11245_v61, %v13426_v5  ;;  %v5076_v61 = vmul.f32 %v10781_v6, %v10975_v18 }
 0xb1d   : > { %v5159_v30 = vadd.f32 %v5149_v27, %v5121_v54  ;;  %4904 = vrot.lane.b32.xlu1 %v4893_v11, %s7357_s15  ;;  %v4809_v11 = vmul.f32 %v13428_v50, %v13427_v39  ;;  %v5067_v54 = vadd.f32 %v5057_v9, %v5029_v19  ;;  %v13435_v19 = vld [vmem:[#allocation26_spill] sm:$0xff]  ;;  %v5025_v50 = vmul.f32 %v10781_v6, %v10971_v29 }
 0xb1e   : > { %v5162_v38 = vadd.f32 %v5152_v42, %v5124_v56  ;;  %v13431_v42 = vld [vmem:[#allocation80_spill] sm:$0xff] }
 0xb1f   : > { %v11418_v12 = vadd.f32 %v5168_v47, %v5159_v30  ;;  %v5084_v47 = vmul.f32 %v11263_v24, %v13429_v63  ;;  %v4930_v30 = vmul.f32 %v10781_v6, %v10959_v15  ;;  %v5081_v40 = vadd.f32 %v5076_v61, %v5067_v54  ;;  %v13432_v15 = vld [vmem:[#allocation65_spill] sm:$0xff]  ;;  %v13437_v54 = vld [vmem:[#allocation79_spill] sm:$0xff]  ;;  %v7108_v61 = vld [vmem:[#allocation2 + $0x20] sm:$0xff] }
 0xb20   : > { %4631 = vrot.lane.b32.xlu0 %v4619_v10, %s7358_s8  ;;  %v5176_v27 = vadd.f32 %v5171_v37, %v5162_v38  ;;  %v13430_v10 = vld [vmem:[#allocation46_spill] sm:$0xff]  ;;  %v4977_v24 = vmul.f32 %v10969_v17, %v11021_v36  ;;  %v13434_v38 = vld [vmem:[#allocation81_spill] sm:$0xff]  ;;  %v5167_v17 = vmul.f32 %v10977_v23, %v11021_v36  ;;  %v5085_v37 = vmul.f32 %v11288_v43, %v13435_v19  ;;  %v13438_v43 = vld [vmem:[#allocation75_spill] sm:$0xff] }
 0xb21   : > { %5005 = vrot.lane.b32.xlu1 %v4991_v31, %s7361_s22  ;;  %v4989_v13 = vmul.f32 %v11243_v59, %v13430_v10  ;;  %v4968_v31 = vadd.f32 %v11296_v55, %v4930_v30  ;;  %v5247_v59 = vsel %vm382_vm0, %v11224_v51, %v13433_v46  ;;  %v5158_v55 = vadd.f32 %v5140_v4, %v5120_v21  ;;  %v13436_v51 = vld [vmem:[#allocation49_spill] sm:$0xff] }
 0xb22   : > { %v5181_v56 = vmul.f32 %v5176_v27, %v13431_v42  ;;  %v5180_v5 = vmul.f32 %v11337_v60, %v13434_v38  ;;  %v5266_v60 = vmul.f32 %v10781_v6, %v11111_v20  ;;  %v5179_v27 = vmul.f32 %v11335_v0, %v13437_v54  ;;  %v13439_v6 = vld [vmem:[#allocation87_spill] sm:$0xff]  ;;  %v13442_v42 = vld [vmem:[#allocation66_spill] sm:$0xff] }
 0xb23   : > { %v4982_v9 = vadd.f32 %v4977_v24, %v4968_v31  ;;  %v5172_v4 = vadd.f32 %v5167_v17, %v5158_v55  ;;  %v5215_v30 = vmul.f32 %v7108_v61, %v10981_v53  ;;  %v4779_v29 = vsel %vm382_vm0, %v13439_v6, %v11382_v41 }
 0xb24   : > { %4728 = vrot.lane.b32.xlu0 %v4715_v8, %s7359_s10  ;;  %v5086_v8 = vmul.f32 %v5081_v40, %v13432_v15  ;;  %v4750_v40 = vmul.f32 %v7108_v61, %v10957_v3  ;;  %v5262_v41 = vmul.f32 %v11111_v20, %v11021_v36  ;;  %v4560_v3 = vmul.f32 %v7108_v61, %v10947_v7 }
 0xb25   : > { %5003 = vrot.lane.b32.xlu1 %v4990_v14, %s7361_s22  ;;  %v5219_v14 = vmul.f32 %v10981_v53, %v10994_v62  ;;  %v4987_v39 = vmul.f32 %v4982_v9, %v13436_v51  ;;  %v5177_v63 = vmul.f32 %v5172_v4, %v13438_v43  ;;  %v4797_v24 = vmul.f32 %v10955_v25, %v11021_v36  ;;  %v13446_v25 = vld [vmem:[#allocation88_spill] sm:$0xff]  ;;  %v13458_v43 = vld [vmem:[#allocation41_spill] sm:$0xff] }
 0xb26   : > { %v4788_v53 = vadd.f32 %v4779_v29, %v4750_v40  ;;  %v4607_v7 = vmul.f32 %v10949_v44, %v11021_v36  ;;  %v4655_v9 = vmul.f32 %v7108_v61, %v10951_v52  ;;  %v13462_v40 = vmov 34  }
 0xb27   : > { %v5257_v26 = vadd.f32 %v5247_v59, %v5219_v14  ;;  %v13445_v59 = vld [vmem:[#allocation43_spill] sm:$0xff]  ;;  %v13447_v14 = vld [vmem:[#allocation34_spill] sm:$0xff] }
 0xb28   : > { %4821 = vrot.lane.b32.xlu0 %v4809_v11, %s7360_s16  ;;  %v5063_v11 = vadd.f32 %v11314_v58, %v5025_v50  ;;  %v13440_v58 = vld [vmem:[#allocation92_spill] sm:$0xff]  ;;  %v4802_v46 = vadd.f32 %v4797_v24, %v4788_v53  ;;  %v4713_v20 = vmul.f32 %v11378_v1, %v13445_v59  ;;  %v13448_v1 = vld [vmem:[#allocation39_spill] sm:$0xff]  ;;  %v13471_v59 = vmov 39  }
 0xb29   : > { %5096 = vrot.lane.b32.xlu1 %v5084_v47, %s7362_s30  ;;  %v5271_v23 = vadd.f32 %v5266_v60, %v5257_v26  ;;  %v5072_v47 = vmul.f32 %v10975_v18, %v11021_v36  ;;  %v13441_v18 = vld [vmem:[#allocation74_spill] sm:$0xff]  ;;  %v13449_v26 = vld [vmem:[#allocation60_spill] sm:$0xff]  ;;  %v13453_v60 = vld [vmem:[#allocation93_spill] sm:$0xff] }
 0xb2a   : > { %v4589_v31 = vsel %vm382_vm0, %v13441_v18, %v11360_v33  ;;  %v4807_v17 = vmul.f32 %v4802_v46, %v13447_v14  ;;  %v5083_v19 = vmul.f32 %v11343_v32, %v13449_v26  ;;  %v5274_v50 = vmul.f32 %v11354_v49, %v13453_v60  ;;  %v13454_v32 = vld [vmem:[#allocation58_spill] sm:$0xff]  ;;  %v4441_v46 = vld [vmem:[#allocation11 + $0x8] sm:$0xff]  ;;  %v13476_v26 = vld [vmem:[#allocation55_spill] sm:$0xff] }
 0xb2b   : > { %v5276_v0 = vmul.f32 %v5271_v23, %v13440_v58  ;;  %v5077_v10 = vadd.f32 %v5072_v47, %v5063_v11  ;;  %v4598_v33 = vadd.f32 %v4589_v31, %v4560_v3  ;;  %v4988_v23 = vmul.f32 %v11308_v45, %v13454_v32  ;;  %v13455_v11 = vld [vmem:[#allocation78_spill] sm:$0xff]  ;;  %v13466_v31 = vld [vmem:[#allocation19_spill] sm:$0xff] }
 0xb2c   : > { %5001 = vrot.lane.b32.xlu0 %v4989_v13, %s7361_s22  ;;  %v5253_v13 = vadd.f32 %v11341_v34, %v5215_v30  ;;  %v13443_v34 = vld [vmem:[#allocation68_spill] sm:$0xff]  ;;  %v5178_v54 = vmul.f32 %v11418_v12, %v13455_v11  ;;  %v13457_v49 = vld [vmem:[#allocation94_spill] sm:$0xff]  ;;  %v4488_v45 = vmul.f32 %v13409_v2, %v10994_v62  ;;  %v13459_v47 = vmov 3  }
 0xb2d   : > { %5195 = vrot.lane.b32.xlu1 %v5181_v56, %s7366_s14  ;;  %v4618_v56 = vmul.f32 %v11367_v57, %v13442_v42  ;;  %v5082_v21 = vmul.f32 %v5077_v10, %v13443_v34  ;;  %v4612_v38 = vadd.f32 %v4607_v7, %v4598_v33  ;;  %v13460_v12 = vld [vmem:[#allocation28_spill] sm:$0xff]  ;;  %v13463_v62 = vld [vmem:[#allocation38_spill] sm:$0xff]  ;;  %v13465_v18 = vmov 37   ;;  %v13470_v33 = vld [vmem:[#allocation91_spill] sm:$0xff] }
 0xb2e   : > { %v5267_v15 = vadd.f32 %v5262_v41, %v5253_v13  ;;  %v4540_v30 = vmul.f32 %v7108_v61, %v13460_v12  ;;  %v13464_v13 = vmov 36   ;;  %v13467_v3 = vmov 38  }
 0xb2f   : > { %v4617_v52 = vmul.f32 %v4612_v38, %v13448_v1  ;;  %v13468_v34 = vmov 40   ;;  %v13472_v38 = vmov 42   ;;  %v13473_v14 = vmov 45  }
 0xb30   : > { %5100 = vrot.lane.b32.xlu0 %v5086_v8, %s7362_s30  ;;  %v13444_v8 = vld [vmem:[#allocation96_spill] sm:$0xff]  ;;  %v5272_v55 = vmul.f32 %v5267_v15, %v13446_v25  ;;  %v13469_v15 = vld [vmem:[#allocation42_spill] sm:$0xff] }
 0xb31   : > { %5193 = vrot.lane.b32.xlu1 %v5180_v5, %s7366_s14  ;;  %v4684_v57 = vsel %vm382_vm0, %v13444_v8, %v11371_v35  ;;  %v4702_v35 = vmul.f32 %v10953_v22, %v11021_v36  ;;  %v13452_v22 = vld [vmem:[#allocation33_spill] sm:$0xff]  ;;  %v4549_v8 = vmul.f32 %v13470_v33, %v13469_v15 }
 0xb32   : > { %v4693_v5 = vadd.f32 %v4684_v57, %v4655_v9  ;;  %v4808_v36 = vmul.f32 %v11396_v48, %v13452_v22  ;;  %v13456_v48 = vmov 33   ;;  %v13478_v22 = vmov 41  }
 0xb33   : > { %v4554_v7 = vadd.f32 %v4549_v8, %v13466_v31 }
 0xb34   : > { %5098 = vrot.lane.b32.xlu0 %v5085_v37, %s7362_s30  ;;  %v4707_v44 = vadd.f32 %v4702_v35, %v4693_v5  ;;  %v13450_v37 = vld [vmem:[#allocation32_spill] sm:$0xff]  ;;  %v13474_v35 = vmov 48  }
 0xb35   : > { %4997 = vrot.lane.b32.xlu1 %v4987_v39, %s7361_s22  ;;  %v13451_v39 = vld [vmem:[#allocation90_spill] sm:$0xff] }
 0xb36   : > { %v4712_v51 = vmul.f32 %v4707_v44, %v13450_v37  ;;  %v5273_v4 = vmul.f32 %v11356_v28, %v13451_v39  ;;  %v11545_v28 = vld [vmem:[#allocation11] sm:$0xff] }
 0xb38   : > { %5191 = vrot.lane.b32.xlu0 %v5179_v27, %s7366_s14  ;;  %v5275_v27 = vmul.f32 %v11265_v16, %v13457_v49  ;;  %v13461_v16 = vmov 35  }
 0xb39   : > { %5187 = vrot.lane.b32.xlu1 %v5177_v63, %s7366_s14  ;;  %v4526_v63 = vadd.f32 %v13458_v43, %v4488_v45  ;;  %v13480_v43 = vmov 4  }
 0xb3b   : > { %v4545_v6 = vadd.f32 %v4540_v30, %v4526_v63  ;;  %v13481_v30 = vmov 5  }
 0xb3c   : > { %5290 = vrot.lane.b32.xlu0 %v5276_v0, %s7370_s17 }
 0xb3d   : > { %4629 = vrot.lane.b32.xlu1 %v4618_v56, %s7358_s8  ;;  %v4550_v2 = vmul.f32 %v4545_v6, %v13463_v62 }
 0xb3f   : > { %v4555_v53 = vadd.f32 %v4550_v2, %v13466_v31  ;;  %v13482_v2 = vmov 43  }
 0xb40   : > { %5092 = vrot.lane.b32.xlu0 %v5082_v21, %s7362_s30 }
 0xb41   : > { %4724 = vrot.lane.b32.xlu1 %v4713_v20, %s7359_s10 }
 0xb44   : > { %5282 = vrot.lane.b32.xlu0 %v5272_v55, %s7370_s17 }
 0xb45   : > { %4817 = vrot.lane.b32.xlu1 %v4807_v17, %s7360_s16 }
 0xb48   : > { %4627 = vrot.lane.b32.xlu0 %v4617_v52, %s7358_s8  ;;  %v13475_v52 = vmov 51   ;;  %s12468_s8 = scalar_lea.hbm %s12518_s5, %s6650_s26 }
 0xb49   : > { %5094 = vrot.lane.b32.xlu1 %v5083_v19, %s7362_s30  ;;  %v13477_v19 = vld [vmem:[#allocation29_spill] sm:$0xff] }
 0xb4a   : > { %v4548_v37 = vmul.f32 %v13477_v19, %v13476_v26  ;;  %v13490_v19 = vld [vmem:[#allocation30_spill] sm:$0xff] }
 0xb4c   : > { %4722 = vrot.lane.b32.xlu0 %v4712_v51, %s7359_s10  ;;  %s7242_s10 = scalar_lea.vmem %s12470_s27, 512 }
 0xb4d   : > { %5284 = vrot.lane.b32.xlu1 %v5273_v4, %s7370_s17  ;;  %p7243_p8 = scmp.ne.s32.totalorder %s12470_s27, %s7242_s10 }
 0xb4f   : > { %p7244_p10 = pnand %p7243_p8, %p13534_p7 }
 0xb50   : > { %4819 = vrot.lane.b32.xlu0 %v4808_v36, %s7360_s16  ;;  %v4553_v36 = vadd.f32 %v4548_v37, %v13466_v31  ;;  %v13491_v37 = vld [vmem:[#allocation119_spill] sm:$0xff]  ;;  %s7398_s16 = smov [#allocation12]  }
 0xb51   : > { %5286 = vrot.lane.b32.xlu1 %v5274_v50, %s7370_s17  ;;  %v13479_v50 = vmov 54   ;;  %p7245_p0 = pneg %p7244_p10 }
 0xb54   : > { %4999 = vrot.lane.b32.xlu0 %v4988_v23, %s7361_s22  ;;  %s7246_s22 = sshll.u32 %s7398_s16, 4  ;;  %s7247_s22 = int_to_ptr.vmem [resolvable:$false] %s7246_s22 }
 0xb55   : > { %5406 = vperm.xlu1 %6957, %v11545_v28   ;;  %s7248_s30 = scalar_lea.vmem %s7247_s22, 1024  ;;  %p7249_p12 = scmp.lt.s32.totalorder %s12470_s27, %s7247_s22 }
 0xb56   : > { %p7250_p2 = scmp.lt.s32.totalorder %s7248_s30, %s7242_s10 }
 0xb58   : > { %5189 = vrot.lane.b32.xlu0 %v5178_v54, %s7366_s14  ;;  %p7251_p9 = por %p7250_p2, %p7249_p12 }
 0xb59   : > { %6959 = vset.pattern.permute.xlu1 %v13456_v48 }
 0xb5a   : > { %5455 = vperm.xlu1 %6959, %v11545_v28   ;;  %p7252_p11 = pnand %p7251_p9, %p7245_p0 }
 0xb5c   : > { %5288 = vrot.lane.b32.xlu0 %v5275_v27, %s7370_s17 }
 0xb5e   : > { %6960 = vset.pattern.permute.xlu1 %v13459_v47  ;;  %v4911_v29 = vpop.permute.xlu0 %4910 }
 0xb5f   : > { %5424 = vperm.xlu1 %6960, %v11545_v28  }
 0xb60   : > { %5415 = vperm.xlu0 %6958, %v11545_v28  }
 0xb63   : > { %6962 = vset.pattern.permute.xlu1 %v13461_v16 }
 0xb64   : > { %6961 = vset.pattern.permute.xlu0 %v13462_v40  ;;  %5551 = vperm.xlu1 %6962, %v11545_v28  }
 0xb65   : > { %5503 = vperm.xlu0 %6961, %v11545_v28  }
 0xb67   : > { %v11568_v58 = vpop.permute.xlu1 %4906  ;;  %v4909_v0 = vpop.permute.xlu0 %4908 }
 0xb68   : > { %v11572_v61 = vsel %vm1017_vm12, %v11568_v58, %v4909_v0  ;;  %v11575_v10 = vsel %vm1017_vm12, %v4909_v0, %v4911_v29  ;;  %6963 = vset.pattern.permute.xlu1 %v13464_v13 }
 0xb69   : > { %6964 = vset.pattern.permute.xlu0 %v13465_v18  ;;  %5599 = vperm.xlu1 %6963, %v11545_v28  }
 0xb6a   : > { %5647 = vperm.xlu0 %6964, %v11545_v28  }
 0xb6b   : > { %v4636_v42 = vpop.permute.xlu1 %4635  ;;  %v4731_v41 = vpop.permute.xlu0 %4730 }
 0xb6c   : > { %v4650_v56 = vadd.f32 %v4636_v42, %v4555_v53 }
 0xb6d   : > { %6965 = vset.pattern.permute.xlu1 %v13467_v3 }
 0xb6e   : > { %v4745_v24 = vadd.f32 %v4731_v41, %v4650_v56  ;;  %6967 = vset.pattern.permute.xlu0 %v13468_v34  ;;  %5695 = vperm.xlu1 %6965, %v11545_v28   ;;  %v13484_v56 = vmov 46  }
 0xb6f   : > { %v4826_v21 = vpop.permute.xlu1 %4825  ;;  %5791 = vperm.xlu0 %6967, %v11545_v28  }
 0xb70   : > { %v4840_v57 = vadd.f32 %v4826_v21, %v4745_v24 }
 0xb72   : > { %6966 = vset.pattern.permute.xlu1 %v13471_v59  ;;  %v11589_v20 = vadd.f32 %v4911_v29, %v4840_v57 }
 0xb73   : > { %v4634_v9 = vpop.permute.xlu1 %4633  ;;  %6970 = vset.pattern.permute.xlu0 %v13462_v40  ;;  %5743 = vperm.xlu1 %6966, %v11545_v28  }
 0xb74   : > { %v4640_v25 = vsel %vm623_vm9, %v4634_v9, %v4636_v42  ;;  %5507 = vperm.xlu0 %6970, %v4441_v46  }
 0xb75   : > { %v4649_v55 = vadd.f32 %v4640_v25, %v4554_v7 }
 0xb77   : > { %6968 = vset.pattern.permute.xlu1 %v13456_v48  ;;  %v11602_v5 = vpop.permute.xlu1 %4726 }
 0xb78   : > { %6973 = vset.pattern.permute.xlu0 %v13465_v18  ;;  %5459 = vperm.xlu1 %6968, %v4441_v46  }
 0xb79   : > { %5651 = vperm.xlu0 %6973, %v4441_v46  }
 0xb7b   : > { %v4824_v17 = vpop.permute.xlu1 %4823 }
 0xb7c   : > { %6969 = vset.pattern.permute.xlu1 %v13459_v47  ;;  %v4830_v49 = vsel %vm931_vm11, %v4824_v17, %v4826_v21 }
 0xb7d   : > { %6976 = vset.pattern.permute.xlu0 %v13468_v34  ;;  %5429 = vperm.xlu1 %6969, %v4441_v46   ;;  %v13485_v34 = vmov 47  }
 0xb7e   : > { %5795 = vperm.xlu0 %6976, %v4441_v46  }
 0xb81   : > { %6971 = vset.pattern.permute.xlu1 %v13461_v16 }
 0xb82   : > { %5555 = vperm.xlu1 %6971, %v4441_v46   ;;  %6979 = vset.pattern.permute.xlu0 %v13472_v38 }
 0xb83   : > { %5928 = vperm.xlu0 %6979, %v11545_v28  }
 0xb86   : > { %6972 = vset.pattern.permute.xlu1 %v13464_v13 }
 0xb87   : > { %5603 = vperm.xlu1 %6972, %v4441_v46   ;;  %6982 = vset.pattern.permute.xlu0 %v13473_v14  ;;  %v13487_v14 = vmov 50  }
 0xb88   : > { %6030 = vperm.xlu0 %6982, %v11545_v28  }
 0xb8b   : > { %6974 = vset.pattern.permute.xlu1 %v13467_v3 }
 0xb8c   : > { %5699 = vperm.xlu1 %6974, %v4441_v46   ;;  %6985 = vset.pattern.permute.xlu0 %v13474_v35  ;;  %v13488_v35 = vld [vmem:[#allocation53_spill] sm:$0xff] }
 0xb8d   : > { %6132 = vperm.xlu0 %6985, %v11545_v28  }
 0xb8e   : > { %v11610_v44 = vpop.permute.xlu0 %4902 }
 0xb8f   : > { %v11612_v1 = vpop.permute.xlu1 %4904 }
 0xb90   : > { %6975 = vset.pattern.permute.xlu1 %v13471_v59 }
 0xb91   : > { %5747 = vperm.xlu1 %6975, %v4441_v46   ;;  %6988 = vset.pattern.permute.xlu0 %v13475_v52  ;;  %v13489_v52 = vld [vmem:[#allocation85_spill] sm:$0xff] }
 0xb92   : > { %v11618_v51 = vpop.permute.xlu0 %4631  ;;  %6234 = vperm.xlu0 %6988, %v11545_v28   ;;  %v4547_v26 = vmul.f32 %v13489_v52, %v13488_v35 }
 0xb93   : > { %v11621_v39 = vpop.permute.xlu1 %5005  ;;  %v4639_v4 = vsel %vm623_vm9, %v11618_v51, %v4634_v9 }
 0xb94   : > { %v4648_v54 = vadd.f32 %v4639_v4, %v4553_v36  ;;  %v4546_v4 = vmul.f32 %v13491_v37, %v13490_v19 }
 0xb95   : > { %6977 = vset.pattern.permute.xlu1 %v13478_v22 }
 0xb96   : > { %5894 = vperm.xlu1 %6977, %v11545_v28   ;;  %v4729_v60 = vpop.permute.xlu0 %4728  ;;  %6991 = vset.pattern.permute.xlu0 %v13479_v50 }
 0xb97   : > { %v4734_v32 = vsel %vm778_vm10, %v11602_v5, %v4729_v60  ;;  %v4735_v23 = vsel %vm778_vm10, %v4729_v60, %v4731_v41  ;;  %v11632_v11 = vpop.permute.xlu1 %5003  ;;  %6336 = vperm.xlu0 %6991, %v11545_v28  }
 0xb98   : > { %v4744_v48 = vadd.f32 %v4735_v23, %v4649_v55  ;;  %v4743_v27 = vadd.f32 %v4734_v32, %v4648_v54  ;;  %v13492_v32 = vmov 52   ;;  %v4552_v54 = vadd.f32 %v4547_v26, %v13466_v31 }
 0xb9a   : > { %v4839_v45 = vadd.f32 %v4830_v49, %v4744_v48  ;;  %6978 = vset.pattern.permute.xlu1 %v13480_v43  ;;  %v11637_v63 = vpop.permute.xlu0 %4821  ;;  %v4551_v48 = vadd.f32 %v4546_v4, %v13466_v31 }
 0xb9b   : > { %v4829_v47 = vsel %vm931_vm11, %v11637_v63, %v4824_v17  ;;  %v11641_v12 = vpop.permute.xlu1 %5096  ;;  %5869 = vperm.xlu1 %6978, %v11545_v28   ;;  %6994 = vset.pattern.permute.xlu0 %v13481_v30 }
 0xb9c   : > { %v11646_v6 = vadd.f32 %v11575_v10, %v4839_v45  ;;  %v4838_v29 = vadd.f32 %v4829_v47, %v4743_v27  ;;  %6418 = vperm.xlu0 %6994, %v11545_v28   ;;  %v13483_v10 = vmov 44  }
 0xb9e   : > { %v11650_v16 = vadd.f32 %v11572_v61, %v4838_v29  ;;  %v11652_v40 = vpop.permute.xlu0 %5001  ;;  %v5020_v61 = vadd.f32 %v11621_v39, %v11589_v20  ;;  %v13486_v20 = vmov 49  }
 0xb9f   : > { %v11654_v62 = vpop.permute.xlu1 %5195  ;;  %6980 = vset.pattern.permute.xlu1 %v13482_v2 }
 0xba0   : > { %5962 = vperm.xlu1 %6980, %v11545_v28  }
 0xba2   : > { %v11658_v0 = vpop.permute.xlu0 %5100 }
 0xba3   : > { %v11660_v13 = vpop.permute.xlu1 %5193  ;;  %v5115_v42 = vadd.f32 %v11658_v0, %v5020_v61  ;;  %v13493_v61 = vmov 53  }
 0xba4   : > { %6981 = vset.pattern.permute.xlu1 %v13483_v10 }
 0xba5   : > { %5996 = vperm.xlu1 %6981, %v11545_v28   ;;  %v5210_v24 = vadd.f32 %v11654_v62, %v5115_v42 }
 0xba6   : > { %v11664_v18 = vpop.permute.xlu0 %5098 }
 0xba7   : > { %v11668_v53 = vpop.permute.xlu1 %4997 }
 0xba9   : > { %6983 = vset.pattern.permute.xlu1 %v13484_v56 }
 0xbaa   : > { %6064 = vperm.xlu1 %6983, %v11545_v28   ;;  %v11673_v41 = vpop.permute.xlu0 %5191 }
 0xbab   : > { %v11675_v3 = vpop.permute.xlu1 %5187  ;;  %v5199_v4 = vsel %vm1478_vm15, %v11673_v41, %v11660_v13 }
 0xbae   : > { %6984 = vset.pattern.permute.xlu1 %v13485_v34  ;;  %v11679_v21 = vpop.permute.xlu0 %5290 }
 0xbaf   : > { %v5305_v15 = vadd.f32 %v11679_v21, %v5210_v24  ;;  %v4630_v33 = vpop.permute.xlu1 %4629  ;;  %6098 = vperm.xlu1 %6984, %v11545_v28  }
 0xbb0   : > { %v4638_v60 = vsel %vm623_vm9, %v4630_v33, %v11618_v51 }
 0xbb1   : > { %v5331_v8 = vsel %vm466_vm8, %v5305_v15, 0.0  ;;  %v4647_v51 = vadd.f32 %v4638_v60, %v4552_v54 }
 0xbb2   : > { %v5332_v57 = vrot.slane %v5331_v8, 4  ;;  %v5093_v46 = vpop.permute.xlu0 %5092 }
 0xbb3   : > { %v4725_v59 = vpop.permute.xlu1 %4724  ;;  %6986 = vset.pattern.permute.xlu1 %v13486_v20 }
 0xbb4   : > { %v5333_v7 = vadd.f32 %v5332_v57, %v5331_v8  ;;  %6166 = vperm.xlu1 %6986, %v11545_v28   ;;  %v4733_v45 = vsel %vm778_vm10, %v4725_v59, %v11602_v5  ;;  %v4913_v8 = vsel %vm1017_vm12, %v11612_v1, %v11568_v58 }
 0xbb5   : > { %v4742_v2 = vadd.f32 %v4733_v45, %v4647_v51 }
 0xbb6   : > { %v5334_v9 = vrot.slane %v5333_v7, 2  ;;  %v11686_v25 = vpop.permute.xlu0 %5282 }
 0xbb7   : > { %v4818_v38 = vpop.permute.xlu1 %4817 }
 0xbb8   : > { %v5335_v55 = vadd.f32 %v5334_v9, %v5333_v7  ;;  %6987 = vset.pattern.permute.xlu1 %v13487_v14 }
 0xbb9   : > { %6200 = vperm.xlu1 %6987, %v11545_v28  }
 0xbba   : > { %v5336_v17 = vrot.slane %v5335_v55, 1  ;;  %v4628_v22 = vpop.permute.xlu0 %4627 }
 0xbbb   : > { %v4637_v50 = vsel %vm623_vm9, %v4628_v22, %v4630_v33  ;;  %v5095_v49 = vpop.permute.xlu1 %5094  ;;  %v4912_v33 = vsel %vm1017_vm12, %v11610_v44, %v11612_v1  ;;  %v5105_v44 = vsel %vm1325_vm14, %v11664_v18, %v11658_v0 }
 0xbbc   : > { %v5337_v36 = vadd.f32 %v5336_v17, %v5335_v55  ;;  %v4646_v30 = vadd.f32 %v4637_v50, %v4551_v48  ;;  %v5104_v17 = vsel %vm1325_vm14, %v11641_v12, %v11664_v18  ;;  %v5102_v35 = vsel %vm1325_vm14, %v5093_v46, %v5095_v49 }
 0xbbd   : > { %6989 = vset.pattern.permute.xlu1 %v13492_v32  ;;  %v5200_v50 = vsel %vm1478_vm15, %v11660_v13, %v11654_v62 }
 0xbbe   : > { %v5342_v23 = vmul.f32 0.125, %v5337_v36  ;;  %6268 = vperm.xlu1 %6989, %v11545_v28   ;;  %v4723_v27 = vpop.permute.xlu0 %4722 }
 0xbbf   : > { %v4732_v43 = vsel %vm778_vm10, %v4723_v27, %v4725_v59  ;;  %v5285_v24 = vpop.permute.xlu1 %5284  ;;  %v5009_v59 = vsel %vm1170_vm13, %v11652_v40, %v11632_v11 }
 0xbc0   : > { %v11704_v47 = vsub.f32 %v5305_v15, %v5342_v23  ;;  %v4741_v10 = vadd.f32 %v4732_v43, %v4646_v30  ;;  %v5292_v23 = vsel %vm1631_vm1, %v11686_v25, %v5285_v24 }
 0xbc2   : > { %v5352_v29 = vmul.f32 %v11704_v47, %v11704_v47  ;;  %6990 = vset.pattern.permute.xlu1 %v13493_v61  ;;  %v4820_v31 = vpop.permute.xlu0 %4819 }
 0xbc3   : > { %v4827_v42 = vsel %vm931_vm11, %v4818_v38, %v4820_v31  ;;  %v4828_v56 = vsel %vm931_vm11, %v4820_v31, %v11637_v63  ;;  %6302 = vperm.xlu1 %6990, %v11545_v28   ;;  %v5010_v63 = vsel %vm1170_vm13, %v11632_v11, %v11621_v39  ;;  %v13494_v38 = vmov 55   ;;  %v5287_v26 = vpop.permute.xlu1 %5286 }
 0xbc4   : > { %v5378_v5 = vsel %vm466_vm8, %v5352_v29, 0.0  ;;  %v4836_v34 = vadd.f32 %v4827_v42, %v4741_v10  ;;  %v4837_v15 = vadd.f32 %v4828_v56, %v4742_v2  ;;  %v5019_v39 = vadd.f32 %v5010_v63, %v11646_v6 }
 0xbc5   : > { %v5379_v57 = vrot.slane %v5378_v5, 4  ;;  %v5293_v54 = vsel %vm1631_vm1, %v5285_v24, %v5287_v26 }
 0xbc6   : > { %v4921_v20 = vadd.f32 %v4912_v33, %v4836_v34  ;;  %v4922_v7 = vadd.f32 %v4913_v8, %v4837_v15  ;;  %v5000_v9 = vpop.permute.xlu0 %4999  ;;  %v5114_v52 = vadd.f32 %v5105_v44, %v5019_v39 }
 0xbc7   : > { %v5380_v55 = vadd.f32 %v5379_v57, %v5378_v5  ;;  %v5007_v58 = vsel %vm1170_vm13, %v11668_v53, %v5000_v9  ;;  %v5008_v1 = vsel %vm1170_vm13, %v5000_v9, %v11652_v40  ;;  %6992 = vset.pattern.permute.xlu1 %v13494_v38  ;;  %v5103_v53 = vsel %vm1325_vm14, %v5095_v49, %v11641_v12 }
 0xbc8   : > { %v5016_v14 = vadd.f32 %v5007_v58, %v4921_v20  ;;  %v5017_v11 = vadd.f32 %v5008_v1, %v4922_v7  ;;  %6370 = vperm.xlu1 %6992, %v11545_v28   ;;  %v5018_v40 = vadd.f32 %v5009_v59, %v11650_v16  ;;  %v13495_v16 = vmov 56  }
 0xbc9   : > { %v5381_v0 = vrot.slane %v5380_v55, 2  ;;  %v5209_v49 = vadd.f32 %v5200_v50, %v5114_v52 }
 0xbca   : > { %v5111_v19 = vadd.f32 %v5102_v35, %v5016_v14  ;;  %v5112_v6 = vadd.f32 %v5103_v53, %v5017_v11  ;;  %v5190_v37 = vpop.permute.xlu0 %5189  ;;  %v5113_v36 = vadd.f32 %v5104_v17, %v5018_v40 }
 0xbcb   : > { %v5382_v22 = vadd.f32 %v5381_v0, %v5380_v55  ;;  %v5197_v18 = vsel %vm1478_vm15, %v11675_v3, %v5190_v37  ;;  %v5198_v46 = vsel %vm1478_vm15, %v5190_v37, %v11673_v41 }
 0xbcc   : > { %v5206_v12 = vadd.f32 %v5197_v18, %v5111_v19  ;;  %v5207_v60 = vadd.f32 %v5198_v46, %v5112_v6  ;;  %6993 = vset.pattern.permute.xlu1 %v13495_v16  ;;  %v5208_v3 = vadd.f32 %v5199_v4, %v5113_v36 }
 0xbcd   : > { %v5383_v32 = vrot.slane %v5382_v22, 1  ;;  %6404 = vperm.xlu1 %6993, %v11545_v28  }
 0xbce   : > { %v5301_v48 = vadd.f32 %v5292_v23, %v5206_v12  ;;  %v5302_v41 = vadd.f32 %v5293_v54, %v5207_v60  ;;  %v5289_v27 = vpop.permute.xlu0 %5288 }
 0xbcf   : > { %v5384_v45 = vadd.f32 %v5383_v32, %v5382_v22  ;;  %v5294_v43 = vsel %vm1631_vm1, %v5287_v26, %v5289_v27  ;;  %v5295_v51 = vsel %vm1631_vm1, %v5289_v27, %v11679_v21 }
 0xbd0   : > { %v5306_v62 = vsel %vm3313_vm5, %v5301_v48, 0.0  ;;  %v5313_v13 = vrot.slane %v5302_v41, 4  ;;  %v5303_v30 = vadd.f32 %v5294_v43, %v5208_v3  ;;  %v5304_v25 = vadd.f32 %v5295_v51, %v5209_v49  ;;  %v11762_v29 = vpop.permute.xlu1 %5406 }
 0xbd1   : > { %v5389_v2 = vmul.f32 0.125, %v5384_v45  ;;  %v5307_v28 = vrot.slane %v5306_v62, 4 }
 0xbd2   : > { %v5314_v10 = vadd.f32 %v5313_v13, %v5302_v41  ;;  %v5319_v61 = vrot.slane %v5303_v30, 4  ;;  %v5325_v31 = vrot.slane %v5304_v25, 4 }
 0xbd3   : > { %v5394_v42 = vadd.f32 1e-06, %v5389_v2  ;;  %v5308_v56 = vadd.f32 %v5307_v28, %v5306_v62  ;;  %v13497_v28 = vld [vmem:[#allocation52_spill] sm:$0xff] }
 0xbd4   : > { %v5315_v5 = vrot.slane %v5314_v10, 2  ;;  %v5320_v24 = vadd.f32 %v5319_v61, %v5303_v30  ;;  %v5326_v34 = vadd.f32 %v5325_v31, %v5304_v25 }
 0xbd5   : > { %7047 = vrsqrt.f32 %v5394_v42  ;;  %v5309_v15 = vrot.slane %v5308_v56, 2  ;;  %v11764_v21 = vpop.permute.xlu1 %5455 }
 0xbd6   : > { %v5316_v33 = vadd.f32 %v5315_v5, %v5314_v10  ;;  %v5321_v8 = vrot.slane %v5320_v24, 2  ;;  %v5327_v57 = vrot.slane %v5326_v34, 2 }
 0xbd7   : > { %v5310_v63 = vadd.f32 %v5309_v15, %v5308_v56 }
 0xbd8   : > { %v5317_v59 = vrot.slane %v5316_v33, 1  ;;  %v5322_v20 = vadd.f32 %v5321_v8, %v5320_v24  ;;  %v5328_v7 = vadd.f32 %v5327_v57, %v5326_v34  ;;  %v13498_v24 = vld [vmem:[#allocation23_spill] sm:$0xff] }
 0xbd9   : > { %v5311_v9 = vrot.slane %v5310_v63, 1 }
 0xbda   : > { %v5318_v44 = vadd.f32 %v5317_v59, %v5316_v33  ;;  %v5323_v55 = vrot.slane %v5322_v20, 1  ;;  %v5329_v58 = vrot.slane %v5328_v7, 1  ;;  %v11766_v1 = vpop.permute.xlu1 %5424 }
 0xbdb   : > { %v5312_v38 = vadd.f32 %v5311_v9, %v5310_v63  ;;  %v11768_v17 = vpop.permute.xlu0 %5415 }
 0xbdc   : > { %v5339_v39 = vmul.f32 0.125, %v5318_v44  ;;  %v5324_v14 = vadd.f32 %v5323_v55, %v5322_v20  ;;  %v5330_v11 = vadd.f32 %v5329_v58, %v5328_v7  ;;  %v13499_v7 = vld [vmem:[#allocation36_spill] sm:$0xff] }
 0xbdd   : > { %v5338_v0 = vmul.f32 0.125, %v5312_v38 }
 0xbde   : > { %v11770_v35 = vsub.f32 %v5302_v41, %v5339_v39  ;;  %v5340_v53 = vmul.f32 0.125, %v5324_v14  ;;  %v5341_v40 = vmul.f32 0.125, %v5330_v11 }
 0xbdf   : > { %v11772_v52 = vsub.f32 %v5301_v48, %v5338_v0  ;;  %v11774_v26 = vpop.permute.xlu1 %5551 }
 0xbe0   : > { %v5349_v19 = vmul.f32 %v11770_v35, %v11770_v35  ;;  %v11778_v6 = vsub.f32 %v5303_v30, %v5340_v53  ;;  %v11780_v37 = vsub.f32 %v5304_v25, %v5341_v40  ;;  %v11788_v12 = vpop.permute.xlu0 %5503  ;;  %v13496_v25 = vld [vmem:[#allocation17_spill] sm:$0xff]  ;;  %v13500_v53 = vld [vmem:[#allocation18_spill] sm:$0xff] }
 0xbe1   : > { %v5348_v4 = vmul.f32 %v11772_v52, %v11772_v52 }
 0xbe2   : > { %v7048_v22 = vpop.eup %7047  ;;  %v5360_v18 = vrot.slane %v5349_v19, 4  ;;  %v5350_v46 = vmul.f32 %v11778_v6, %v11778_v6  ;;  %v5351_v36 = vmul.f32 %v11780_v37, %v11780_v37 }
 0xbe3   : > { %v5404_v60 = vmul.f32 %v7048_v22, %v11704_v47  ;;  %v5353_v16 = vsel %vm3313_vm5, %v5348_v4, 0.0 }
 0xbe4   : > { %v5354_v50 = vrot.slane %v5353_v16, 4  ;;  %v5361_v32 = vadd.f32 %v5360_v18, %v5349_v19  ;;  %v5366_v23 = vrot.slane %v5350_v46, 4  ;;  %v5372_v54 = vrot.slane %v5351_v36, 4  ;;  %v11792_v3 = vpop.permute.xlu1 %5599 }
 0xbe5   : > { %v5413_v48 = vmul.f32 %v11762_v29, %v5404_v60  ;;  %v11796_v30 = vpop.permute.xlu0 %5647  ;;  %v13501_v60 = vld [vmem:[#allocation54_spill] sm:$0xff] }
 0xbe6   : > { %v5355_v41 = vadd.f32 %v5354_v50, %v5353_v16  ;;  %v5362_v49 = vrot.slane %v5361_v32, 2  ;;  %v5367_v27 = vadd.f32 %v5366_v23, %v5350_v46  ;;  %v5373_v45 = vadd.f32 %v5372_v54, %v5351_v36 }
 0xbe7   : > { %v5422_v43 = vadd.f32 %v11768_v17, %v5413_v48 }
 0xbe8   : > { %v5356_v51 = vrot.slane %v5355_v41, 2  ;;  %v5363_v62 = vadd.f32 %v5362_v49, %v5361_v32  ;;  %v5368_v13 = vrot.slane %v5367_v27, 2  ;;  %v5374_v47 = vrot.slane %v5373_v45, 2 }
 0xbe9   : > { %v5453_v2 = vrot.slane %v5422_v43, %v13496_v25  ;;  %v5501_v10 = vrot.slane %v5422_v43, %v13497_v28  ;;  %v11800_v61 = vpop.permute.xlu1 %5695  ;;  %v5549_v34 = vrot.slane %v5422_v43, %v13498_v24  ;;  %v11807_v9 = vrot.slane %v5422_v43, %v13499_v7 }
 0xbea   : > { %v5357_v31 = vadd.f32 %v5356_v51, %v5355_v41  ;;  %v5364_v42 = vrot.slane %v5363_v62, 1  ;;  %v5369_v56 = vadd.f32 %v5368_v13, %v5367_v27  ;;  %v5375_v5 = vadd.f32 %v5374_v47, %v5373_v45  ;;  %v11809_v39 = vpop.permute.xlu0 %5791  ;;  %v13503_v51 = vld [vmem:[#allocation24_spill] sm:$0xff]  ;;  %v13505_v47 = vld [vmem:[#allocation37_spill] sm:$0xff] }
 0xbeb   : > { %v5466_v15 = vmul.f32 %v11764_v21, %v5453_v2  ;;  %v5514_v20 = vmul.f32 %v11788_v12, %v5501_v10  ;;  %v5562_v11 = vmul.f32 %v11774_v26, %v5549_v34  ;;  %v5645_v40 = vrot.slane %v5422_v43, %v13500_v53 }
 0xbec   : > { %v5358_v33 = vrot.slane %v5357_v31, 1  ;;  %v5365_v8 = vadd.f32 %v5364_v42, %v5363_v62  ;;  %v5370_v57 = vrot.slane %v5369_v56, 1  ;;  %v5376_v63 = vrot.slane %v5375_v5, 1 }
 0xbed   : > { %v5476_v59 = vadd.f32 %v5466_v15, %v11766_v1  ;;  %v5610_v36 = vmul.f32 %v11792_v3, %v11807_v9  ;;  %v11818_v16 = vrot.slane %v5422_v43, %v13501_v60  ;;  %v5658_v48 = vmul.f32 %v11796_v30, %v5645_v40 }
 0xbee   : > { %v5359_v44 = vadd.f32 %v5358_v33, %v5357_v31  ;;  %v5386_v55 = vmul.f32 0.125, %v5365_v8  ;;  %v5371_v58 = vadd.f32 %v5370_v57, %v5369_v56  ;;  %v5377_v38 = vadd.f32 %v5376_v63, %v5375_v5  ;;  %v11811_v14 = vpop.permute.xlu1 %5743 }
 0xbef   : > { %v5524_v0 = vadd.f32 %v5514_v20, %v5476_v59  ;;  %13502 = vst [vmem:[#allocation50_spill] sm:$0xff] %v11818_v16  ;;  %v11823_v49 = vpop.permute.xlu0 %5507  ;;  %v5706_v45 = vmul.f32 %v11800_v61, %v11818_v16  ;;  %v11828_v62 = vrot.slane %v5422_v43, %v13503_v51  ;;  %v5789_v31 = vrot.slane %v5422_v43, %v13505_v47 }
 0xbf0   : > { %v5385_v19 = vmul.f32 0.125, %v5359_v44  ;;  %v5391_v4 = vadd.f32 1e-06, %v5386_v55  ;;  %v5387_v22 = vmul.f32 0.125, %v5371_v58  ;;  %v5388_v18 = vmul.f32 0.125, %v5377_v38 }
 0xbf1   : > { %v5572_v46 = vadd.f32 %v5562_v11, %v5524_v0  ;;  %13504 = vst [vmem:[#allocation86_spill] sm:$0xff] %v11828_v62  ;;  %v5754_v42 = vmul.f32 %v11811_v14, %v11828_v62  ;;  %v5802_v33 = vmul.f32 %v11809_v39, %v5789_v31  ;;  %v5519_v38 = vmul.f32 %v11823_v49, %v5501_v10 }
 0xbf2   : > { %v5390_v50 = vadd.f32 1e-06, %v5385_v19  ;;  %7049 = vrsqrt.f32 %v5391_v4  ;;  %v5392_v32 = vadd.f32 1e-06, %v5387_v22  ;;  %v5393_v23 = vadd.f32 1e-06, %v5388_v18 }
 0xbf3   : > { %v5620_v54 = vadd.f32 %v5610_v36, %v5572_v46  ;;  %v11821_v41 = vpop.permute.xlu1 %5459 }
 0xbf4   : > { %7051 = vrsqrt.f32 %v5390_v50  ;;  %v11835_v15 = vpop.permute.xlu0 %5651  ;;  %v5471_v57 = vmul.f32 %v11821_v41, %v5453_v2 }
 0xbf5   : > { %7053 = vrsqrt.f32 %v5392_v32  ;;  %v5668_v27 = vadd.f32 %v5658_v48, %v5620_v54 }
 0xbf6   : > { %7055 = vrsqrt.f32 %v5393_v23 }
 0xbf7   : > { %v5716_v13 = vadd.f32 %v5706_v45, %v5668_v27 }
 0xbf8   : > { %v11833_v56 = vpop.permute.xlu1 %5429 }
 0xbf9   : > { %v5764_v5 = vadd.f32 %v5754_v42, %v5716_v13  ;;  %v5481_v20 = vadd.f32 %v5471_v57, %v11833_v56  ;;  %v11843_v44 = vpop.permute.xlu0 %5795 }
 0xbfa   : > { %v11856_v36 = vmul.f32 %v11843_v44, %v5789_v31 }
 0xbfb   : > { %v5812_v8 = vadd.f32 %v5802_v33, %v5764_v5  ;;  %v5529_v46 = vadd.f32 %v5519_v38, %v5481_v20 }
 0xbfc   : > { %13506 = vst [vmem:[#allocation100_spill] sm:$0xff] %v11856_v36 }
 0xbfd   : > { %v11839_v63 = vpop.permute.xlu1 %5555  ;;  %v5832_v58 = vmul.f32 0.70710677, %v5812_v8  ;;  %v11863_v50 = vmul.f32 0.5, %v5812_v8 }
 0xbfe   : > { %v5567_v11 = vmul.f32 %v11839_v63, %v5549_v34 }
 0xbff   : > { %v7050_v59 = vpop.eup %7049  ;;  %7057 = verf.f32 %v5832_v58 }
 0xc00   : > { %v5401_v43 = vmul.f32 %v7050_v59, %v11770_v35  ;;  %v11853_v35 = vmul.f32 %v11835_v15, %v5645_v40 }
 0xc01   : > { %v7052_v55 = vpop.eup %7051 }
 0xc02   : > { %v7054_v0 = vpop.eup %7053  ;;  %v5400_v19 = vmul.f32 %v7052_v55, %v11772_v52  ;;  %v5410_v2 = vmul.f32 %v11762_v29, %v5401_v43  ;;  %v11849_v4 = vpop.permute.xlu1 %5603 }
 0xc03   : > { %v7056_v22 = vpop.eup %7055  ;;  %v5402_v18 = vmul.f32 %v7054_v0, %v11778_v6  ;;  %v11866_v6 = vadd.f32 %v5567_v11, %v5529_v46  ;;  %v11870_v40 = vmul.f32 %v11849_v4, %v11807_v9 }
 0xc04   : > { %v5403_v10 = vmul.f32 %v7056_v22, %v11780_v37  ;;  %v5409_v34 = vmul.f32 %v11762_v29, %v5400_v19  ;;  %v11861_v52 = vadd.f32 %v11768_v17, %v5410_v2 }
 0xc05   : > { %v5411_v32 = vmul.f32 %v11762_v29, %v5402_v18 }
 0xc06   : > { %v5412_v23 = vmul.f32 %v11762_v29, %v5403_v10  ;;  %v11874_v37 = vadd.f32 %v11768_v17, %v5409_v34  ;;  %v11878_v54 = vrot.slane %v11861_v52, %v13498_v24  ;;  %v11882_v48 = vrot.slane %v11861_v52, %v13496_v25 }
 0xc07   : > { %v11885_v27 = vadd.f32 %v11768_v17, %v5411_v32  ;;  %v11889_v9 = vrot.slane %v11861_v52, %v13497_v28  ;;  %v11893_v29 = vrot.slane %v11861_v52, %v13499_v7  ;;  %v11897_v45 = vrot.slane %v11861_v52, %v13500_v53 }
 0xc08   : > { %v11900_v13 = vadd.f32 %v11768_v17, %v5412_v23  ;;  %v11904_v31 = vrot.slane %v11874_v37, %v13498_v24  ;;  %v5559_v42 = vmul.f32 %v11774_v26, %v11878_v54  ;;  %v11910_v5 = vrot.slane %v11874_v37, %v13496_v25 }
 0xc09   : > { %v11914_v33 = vrot.slane %v11885_v27, %v13498_v24  ;;  %v11918_v8 = vrot.slane %v11885_v27, %v13496_v25  ;;  %v5463_v17 = vmul.f32 %v11764_v21, %v11882_v48  ;;  %v11924_v57 = vrot.slane %v11874_v37, %v13497_v28 }
 0xc0a   : > { %v11928_v59 = vrot.slane %v11900_v13, %v13498_v24  ;;  %v5558_v20 = vmul.f32 %v11774_v26, %v11904_v31  ;;  %v11934_v43 = vrot.slane %v11900_v13, %v13496_v25  ;;  %v5462_v55 = vmul.f32 %v11764_v21, %v11910_v5 }
 0xc0b   : > { %v5560_v58 = vmul.f32 %v11774_v26, %v11914_v33  ;;  %v5464_v38 = vmul.f32 %v11764_v21, %v11918_v8  ;;  %v5473_v11 = vadd.f32 %v5463_v17, %v11766_v1  ;;  %v11945_v0 = vrot.slane %v11885_v27, %v13497_v28 }
 0xc0c   : > { %v5561_v19 = vmul.f32 %v11774_v26, %v11928_v59  ;;  %v5465_v2 = vmul.f32 %v11764_v21, %v11934_v43  ;;  %v5472_v22 = vadd.f32 %v5462_v55, %v11766_v1  ;;  %v11954_v18 = vrot.slane %v11900_v13, %v13497_v28 }
 0xc0d   : > { %v5474_v46 = vadd.f32 %v5464_v38, %v11766_v1  ;;  %v5510_v10 = vmul.f32 %v11788_v12, %v11924_v57  ;;  %v5511_v34 = vmul.f32 %v11788_v12, %v11889_v9  ;;  %v5512_v26 = vmul.f32 %v11788_v12, %v11945_v0 }
 0xc0e   : > { %v5475_v32 = vadd.f32 %v5465_v2, %v11766_v1  ;;  %v5513_v21 = vmul.f32 %v11788_v12, %v11954_v18  ;;  %v11968_v23 = vrot.slane %v11874_v37, %v13499_v7  ;;  %v11972_v17 = vrot.slane %v11885_v27, %v13499_v7 }
 0xc0f   : > { %v5520_v55 = vadd.f32 %v5510_v10, %v5472_v22  ;;  %v5521_v38 = vadd.f32 %v5511_v34, %v5473_v11  ;;  %v5522_v24 = vadd.f32 %v5512_v26, %v5474_v46  ;;  %v11976_v36 = vrot.slane %v11900_v13, %v13499_v7  ;;  %v7058_v22 = vpop.eup %7057 }
 0xc10   : > { %v5523_v25 = vadd.f32 %v5513_v21, %v5475_v32  ;;  %v5606_v1 = vmul.f32 %v11792_v3, %v11968_v23  ;;  %v5607_v12 = vmul.f32 %v11792_v3, %v11893_v29  ;;  %v5608_v2 = vmul.f32 %v11792_v3, %v11972_v17 }
 0xc11   : > { %v5568_v62 = vadd.f32 %v5558_v20, %v5520_v55  ;;  %v5569_v28 = vadd.f32 %v5559_v42, %v5521_v38  ;;  %v5570_v16 = vadd.f32 %v5560_v58, %v5522_v24  ;;  %v5609_v11 = vmul.f32 %v11792_v3, %v11976_v36 }
 0xc12   : > { %v5571_v46 = vadd.f32 %v5561_v19, %v5523_v25  ;;  %v5629_v10 = vrot.slane %v11874_v37, %v13500_v53  ;;  %v11990_v34 = vrot.slane %v11885_v27, %v13500_v53  ;;  %v11994_v26 = vrot.slane %v11900_v13, %v13500_v53 }
 0xc13   : > { %v5616_v32 = vadd.f32 %v5606_v1, %v5568_v62  ;;  %v5617_v20 = vadd.f32 %v5607_v12, %v5569_v28  ;;  %v5618_v42 = vadd.f32 %v5608_v2, %v5570_v16  ;;  %v5655_v24 = vmul.f32 %v11796_v30, %v11897_v45 }
 0xc14   : > { %v5619_v3 = vadd.f32 %v5609_v11, %v5571_v46  ;;  %v5654_v25 = vmul.f32 %v11796_v30, %v5629_v10  ;;  %v5656_v58 = vmul.f32 %v11796_v30, %v11990_v34  ;;  %v5657_v19 = vmul.f32 %v11796_v30, %v11994_v26 }
 0xc15   : > { %v5665_v21 = vadd.f32 %v5655_v24, %v5617_v20  ;;  %v12005_v55 = vrot.slane %v11874_v37, %v13501_v60  ;;  %v12009_v28 = vrot.slane %v11861_v52, %v13501_v60  ;;  %v12013_v16 = vrot.slane %v11885_v27, %v13501_v60 }
 0xc16   : > { %v5664_v62 = vadd.f32 %v5654_v25, %v5616_v32  ;;  %v5666_v38 = vadd.f32 %v5656_v58, %v5618_v42  ;;  %v5667_v1 = vadd.f32 %v5657_v19, %v5619_v3  ;;  %v12017_v12 = vrot.slane %v11900_v13, %v13501_v60 }
 0xc17   : > { %v5702_v30 = vmul.f32 %v11800_v61, %v12005_v55  ;;  %v5703_v2 = vmul.f32 %v11800_v61, %v12009_v28  ;;  %v5704_v11 = vmul.f32 %v11800_v61, %v12013_v16  ;;  %v5773_v46 = vrot.slane %v11874_v37, %v13505_v47 }
 0xc18   : > { %13507 = vst [vmem:[#allocation84_spill] sm:$0xff] %v12017_v12  ;;  %v5705_v32 = vmul.f32 %v11800_v61, %v12017_v12  ;;  %v5777_v20 = vrot.slane %v11861_v52, %v13505_v47  ;;  %v5781_v42 = vrot.slane %v11885_v27, %v13505_v47  ;;  %v12035_v24 = vrot.slane %v11900_v13, %v13505_v47 }
 0xc19   : > { %v5712_v3 = vadd.f32 %v5702_v30, %v5664_v62  ;;  %v5713_v25 = vadd.f32 %v5703_v2, %v5665_v21  ;;  %v5714_v58 = vadd.f32 %v5704_v11, %v5666_v38  ;;  %v12039_v19 = vadd.f32 %v11870_v40, %v11866_v6 }
 0xc1a   : > { %v5715_v60 = vadd.f32 %v5705_v32, %v5667_v1  ;;  %v5798_v61 = vmul.f32 %v11809_v39, %v5773_v46  ;;  %v5799_v7 = vmul.f32 %v11809_v39, %v5777_v20  ;;  %v5800_v53 = vmul.f32 %v11809_v39, %v5781_v42 }
 0xc1b   : > { %v12046_v12 = vrot.slane %v11874_v37, %v13503_v51  ;;  %v12050_v62 = vrot.slane %v11861_v52, %v13503_v51  ;;  %v12054_v21 = vrot.slane %v11885_v27, %v13503_v51  ;;  %v12058_v6 = vrot.slane %v11900_v13, %v13503_v51 }
 0xc1c   : > { %v5801_v40 = vmul.f32 %v11809_v39, %v12035_v24  ;;  %v5852_v38 = vadd.f32 1.0, %v7058_v22  ;;  %v5515_v37 = vmul.f32 %v11823_v49, %v11924_v57  ;;  %v5516_v1 = vmul.f32 %v11823_v49, %v11889_v9 }
 0xc1d   : > { %13508 = vst [vmem:[#allocation97_spill] sm:$0xff] %v12054_v21  ;;  %13509 = vst [vmem:[#allocation83_spill] sm:$0xff] %v12058_v6  ;;  %v5750_v52 = vmul.f32 %v11811_v14, %v12046_v12  ;;  %v5751_v27 = vmul.f32 %v11811_v14, %v12050_v62  ;;  %v5752_v13 = vmul.f32 %v11811_v14, %v12054_v21 }
 0xc1e   : > { %v5753_v30 = vmul.f32 %v11811_v14, %v12058_v6  ;;  %v12075_v39 = vmul.f32 %v5852_v38, %v11863_v50  ;;  %v5517_v57 = vmul.f32 %v11823_v49, %v11945_v0  ;;  %v5467_v9 = vmul.f32 %v11821_v41, %v11910_v5 }
 0xc1f   : > { %v5468_v22 = vmul.f32 %v11821_v41, %v11882_v48  ;;  %v5760_v2 = vadd.f32 %v5750_v52, %v5712_v3  ;;  %v5761_v11 = vadd.f32 %v5751_v27, %v5713_v25  ;;  %v5762_v32 = vadd.f32 %v5752_v13, %v5714_v58  ;;  %v5700_v27 = vpop.permute.xlu1 %5699 }
 0xc20   : > { %v5763_v51 = vadd.f32 %v5753_v30, %v5715_v60  ;;  %v5518_v47 = vmul.f32 %v11823_v49, %v11954_v18  ;;  %v5469_v14 = vmul.f32 %v11821_v41, %v11918_v8  ;;  %v5470_v50 = vmul.f32 %v11821_v41, %v11934_v43 }
 0xc21   : > { %v5659_v0 = vmul.f32 %v11835_v15, %v5629_v10  ;;  %v5808_v38 = vadd.f32 %v5798_v61, %v5760_v2  ;;  %v5809_v5 = vadd.f32 %v5799_v7, %v5761_v11  ;;  %v5810_v6 = vadd.f32 %v5800_v53, %v5762_v32  ;;  %v13510_v11 = vld [vmem:[#allocation50_spill] sm:$0xff] }
 0xc22   : > { %v5811_v21 = vadd.f32 %v5801_v40, %v5763_v51  ;;  %v5660_v48 = vmul.f32 %v11835_v15, %v11897_v45  ;;  %v5661_v60 = vmul.f32 %v11835_v15, %v11990_v34  ;;  %v5477_v49 = vadd.f32 %v5467_v9, %v11833_v56 }
 0xc23   : > { %v5478_v18 = vadd.f32 %v5468_v22, %v11833_v56  ;;  %v12096_v8 = vmul.f32 0.5, %v5808_v38  ;;  %v12098_v3 = vmul.f32 0.5, %v5809_v5  ;;  %v12100_v41 = vmul.f32 0.5, %v5810_v6  ;;  %v5748_v9 = vpop.permute.xlu1 %5747 }
 0xc24   : > { %v5662_v7 = vmul.f32 %v11835_v15, %v11994_v26  ;;  %v5828_v53 = vmul.f32 0.70710677, %v5808_v38  ;;  %v5829_v51 = vmul.f32 0.70710677, %v5809_v5  ;;  %v5830_v43 = vmul.f32 0.70710677, %v5810_v6 }
 0xc25   : > { %v5479_v45 = vadd.f32 %v5469_v14, %v11833_v56  ;;  %v12105_v10 = vmul.f32 0.5, %v5811_v21  ;;  %v5831_v34 = vmul.f32 0.70710677, %v5811_v21  ;;  %v5480_v25 = vadd.f32 %v5470_v50, %v11833_v56  ;;  %v13512_v50 = vld [vmem:[#allocation84_spill] sm:$0xff] }
 0xc26   : > { %v5525_v58 = vadd.f32 %v5515_v37, %v5477_v49  ;;  %7059 = verf.f32 %v5828_v53  ;;  %v5526_v61 = vadd.f32 %v5516_v1, %v5478_v18  ;;  %v5803_v52 = vmul.f32 %v11843_v44, %v5773_v46 }
 0xc27   : > { %v5527_v40 = vadd.f32 %v5517_v57, %v5479_v45  ;;  %7061 = verf.f32 %v5829_v51  ;;  %v5528_v13 = vadd.f32 %v5518_v47, %v5480_v25  ;;  %v5804_v15 = vmul.f32 %v11843_v44, %v5777_v20  ;;  %v12142_v53 = vpop.permute.xlu1 %5894  ;;  %v13514_v51 = vld [vmem:[#allocation83_spill] sm:$0xff]  ;;  %v13515_v45 = vld [vmem:[#allocation86_spill] sm:$0xff] }
 0xc28   : > { %v5805_v26 = vmul.f32 %v11843_v44, %v5781_v42  ;;  %7063 = verf.f32 %v5830_v43  ;;  %v5563_v6 = vmul.f32 %v11839_v63, %v11904_v31  ;;  %v5564_v56 = vmul.f32 %v11839_v63, %v11878_v54 }
 0xc29   : > { %v5565_v21 = vmul.f32 %v11839_v63, %v11914_v33  ;;  %7065 = verf.f32 %v5831_v34  ;;  %v5566_v46 = vmul.f32 %v11839_v63, %v11928_v59  ;;  %v5611_v47 = vmul.f32 %v11849_v4, %v11968_v23 }
 0xc2a   : > { %v5612_v20 = vmul.f32 %v11849_v4, %v11893_v29  ;;  %v5573_v42 = vadd.f32 %v5563_v6, %v5525_v58  ;;  %v5574_v37 = vadd.f32 %v5564_v56, %v5526_v61  ;;  %v5613_v31 = vmul.f32 %v11849_v4, %v11972_v17  ;;  %v13517_v6 = vld [vmem:[#allocation17_spill] sm:$0xff] }
 0xc2b   : > { %v5575_v1 = vadd.f32 %v5565_v21, %v5527_v40  ;;  %v5806_v54 = vmul.f32 %v11843_v44, %v12035_v24  ;;  %v5576_v33 = vadd.f32 %v5566_v46, %v5528_v13  ;;  %v5614_v30 = vmul.f32 %v11849_v4, %v11976_v36  ;;  %v13511_v4 = vld [vmem:[#allocation52_spill] sm:$0xff] }
 0xc2c   : > { %v5673_v63 = vadd.f32 %v11853_v35, %v12039_v19  ;;  %v5621_v59 = vadd.f32 %v5611_v47, %v5573_v42  ;;  %v5622_v23 = vadd.f32 %v5612_v20, %v5574_v37  ;;  %v5707_v29 = vmul.f32 %v5700_v27, %v12005_v55  ;;  %v12137_v35 = vpop.permute.xlu0 %5928  ;;  %v13518_v37 = vld [vmem:[#allocation37_spill] sm:$0xff] }
 0xc2d   : > { %v5623_v57 = vadd.f32 %v5613_v31, %v5575_v1  ;;  %v5624_v22 = vadd.f32 %v5614_v30, %v5576_v33  ;;  %v5708_v2 = vmul.f32 %v5700_v27, %v12009_v28  ;;  %v5709_v17 = vmul.f32 %v5700_v27, %v12013_v16 }
 0xc2e   : > { %v5711_v44 = vmul.f32 %v5700_v27, %v13510_v11  ;;  %v5669_v24 = vadd.f32 %v5659_v0, %v5621_v59  ;;  %v5670_v32 = vadd.f32 %v5660_v48, %v5622_v23  ;;  %v5926_v36 = vrot.slane %v12075_v39, %v13511_v4  ;;  %v13513_v48 = vld [vmem:[#allocation97_spill] sm:$0xff] }
 0xc2f   : > { %v5671_v14 = vadd.f32 %v5661_v60, %v5623_v57  ;;  %v5672_v19 = vadd.f32 %v5662_v7, %v5624_v22  ;;  %v5710_v38 = vmul.f32 %v5700_v27, %v13512_v50  ;;  %v5755_v5 = vmul.f32 %v5748_v9, %v12046_v12  ;;  %v13516_v12 = vld [vmem:[#allocation18_spill] sm:$0xff] }
 0xc30   : > { %v5721_v55 = vadd.f32 %v5711_v44, %v5673_v63  ;;  %v5717_v49 = vadd.f32 %v5707_v29, %v5669_v24  ;;  %v5718_v28 = vadd.f32 %v5708_v2, %v5670_v32  ;;  %v5756_v16 = vmul.f32 %v5748_v9, %v12050_v62  ;;  %v6031_v42 = vpop.permute.xlu0 %6030 }
 0xc31   : > { %v5719_v18 = vadd.f32 %v5709_v17, %v5671_v14  ;;  %v5720_v0 = vadd.f32 %v5710_v38, %v5672_v19  ;;  %v5757_v60 = vmul.f32 %v5748_v9, %v13513_v48  ;;  %v5758_v43 = vmul.f32 %v5748_v9, %v13514_v51 }
 0xc32   : > { %v5759_v34 = vmul.f32 %v5748_v9, %v13515_v45  ;;  %v12148_v7 = vmul.f32 %v12137_v35, %v5926_v36  ;;  %v5765_v25 = vadd.f32 %v5755_v5, %v5717_v49  ;;  %v5766_v58 = vadd.f32 %v5756_v16, %v5718_v28  ;;  %v13519_v9 = vld [vmem:[#allocation100_spill] sm:$0xff] }
 0xc33   : > { %v6028_v61 = vrot.slane %v12075_v39, %v13516_v12  ;;  %v7060_v40 = vpop.eup %7059  ;;  %v5767_v27 = vadd.f32 %v5757_v60, %v5719_v18  ;;  %v5768_v62 = vadd.f32 %v5758_v43, %v5720_v0  ;;  %v5892_v56 = vrot.slane %v12075_v39, %v13517_v6 }
 0xc34   : > { %v5769_v13 = vadd.f32 %v5759_v34, %v5721_v55  ;;  %v7062_v21 = vpop.eup %7061  ;;  %v5848_v46 = vadd.f32 1.0, %v7060_v40  ;;  %v5813_v47 = vadd.f32 %v5803_v52, %v5765_v25  ;;  %v5814_v20 = vadd.f32 %v5804_v15, %v5766_v58  ;;  %v5870_v52 = vpop.permute.xlu1 %5869 }
 0xc35   : > { %v6130_v1 = vrot.slane %v12075_v39, %v13518_v37  ;;  %v7064_v31 = vpop.eup %7063  ;;  %v5849_v33 = vadd.f32 1.0, %v7062_v21  ;;  %v5815_v30 = vadd.f32 %v5805_v26, %v5767_v27  ;;  %v5816_v63 = vadd.f32 %v5806_v54, %v5768_v62  ;;  %v12220_v62 = vpop.permute.xlu0 %6132 }
 0xc36   : > { %v12156_v59 = vmul.f32 %v6031_v42, %v6028_v61  ;;  %v7066_v23 = vpop.eup %7065  ;;  %v5850_v57 = vadd.f32 1.0, %v7064_v31  ;;  %v12159_v29 = vmul.f32 %v5848_v46, %v12096_v8  ;;  %v5817_v22 = vadd.f32 %v13519_v9, %v5769_v13 }
 0xc37   : > { %v12162_v2 = vmul.f32 0.5, %v5813_v47  ;;  %v5851_v15 = vadd.f32 1.0, %v7066_v23  ;;  %v12165_v17 = vmul.f32 %v5849_v33, %v12098_v3  ;;  %v12167_v11 = vmul.f32 0.5, %v5814_v20 }
 0xc38   : > { %v12169_v26 = vmul.f32 0.5, %v5815_v30  ;;  %v12172_v54 = vmul.f32 %v5850_v57, %v12100_v41  ;;  %v5910_v8 = vrot.slane %v12159_v29, %v13511_v4  ;;  %v12176_v44 = vmul.f32 0.5, %v5816_v63  ;;  %v5963_v16 = vpop.permute.xlu1 %5962 }
 0xc39   : > { %v5833_v24 = vmul.f32 0.70710677, %v5813_v47  ;;  %v12179_v32 = vmul.f32 %v5851_v15, %v12105_v10  ;;  %v5914_v3 = vrot.slane %v12165_v17, %v13511_v4  ;;  %v5834_v14 = vmul.f32 0.70710677, %v5814_v20 }
 0xc3a   : > { %v5835_v36 = vmul.f32 0.70710677, %v5815_v30  ;;  %v5918_v19 = vrot.slane %v12172_v54, %v13511_v4  ;;  %v5931_v41 = vmul.f32 %v12137_v35, %v5910_v8  ;;  %v12186_v50 = vmul.f32 0.5, %v5817_v22 }
 0xc3b   : > { %v5836_v38 = vmul.f32 0.70710677, %v5816_v63  ;;  %v5922_v55 = vrot.slane %v12179_v32, %v13511_v4  ;;  %v5837_v5 = vmul.f32 0.70710677, %v5817_v22  ;;  %7067 = verf.f32 %v5833_v24 }
 0xc3c   : > { %v6012_v10 = vrot.slane %v12159_v29, %v13516_v12  ;;  %v5932_v49 = vmul.f32 %v12137_v35, %v5914_v3  ;;  %7069 = verf.f32 %v5834_v14  ;;  %v6016_v28 = vrot.slane %v12165_v17, %v13516_v12  ;;  %v5997_v30 = vpop.permute.xlu1 %5996  ;;  %v13520_v3 = vld [vmem:[#allocation23_spill] sm:$0xff] }
 0xc3d   : > { %v6020_v18 = vrot.slane %v12172_v54, %v13516_v12  ;;  %v5933_v0 = vmul.f32 %v12137_v35, %v5918_v19  ;;  %v5934_v48 = vmul.f32 %v12137_v35, %v5922_v55  ;;  %7071 = verf.f32 %v5835_v36 }
 0xc3e   : > { %v6024_v60 = vrot.slane %v12179_v32, %v13516_v12  ;;  %7073 = verf.f32 %v5836_v38  ;;  %v12201_v51 = vmul.f32 %v6031_v42, %v6012_v10  ;;  %v12203_v43 = vmul.f32 %v6031_v42, %v6016_v28 }
 0xc3f   : > { %v5876_v45 = vrot.slane %v12159_v29, %v13517_v6  ;;  %7075 = verf.f32 %v5837_v5  ;;  %v12207_v34 = vmul.f32 %v6031_v42, %v6020_v18  ;;  %v5880_v25 = vrot.slane %v12165_v17, %v13517_v6  ;;  %v13521_v18 = vld [vmem:[#allocation36_spill] sm:$0xff] }
 0xc40   : > { %v5884_v35 = vrot.slane %v12172_v54, %v13517_v6  ;;  %v12213_v58 = vmul.f32 %v6031_v42, %v6024_v60  ;;  %v5888_v61 = vrot.slane %v12179_v32, %v13517_v6  ;;  %v6114_v27 = vrot.slane %v12159_v29, %v13518_v37 }
 0xc41   : > { %v5897_v40 = vmul.f32 %v12142_v53, %v5876_v45  ;;  %v5898_v13 = vmul.f32 %v12142_v53, %v5880_v25  ;;  %v6118_v46 = vrot.slane %v12165_v17, %v13518_v37  ;;  %v6122_v47 = vrot.slane %v12172_v54, %v13518_v37 }
 0xc42   : > { %v5899_v21 = vmul.f32 %v12142_v53, %v5884_v35  ;;  %v5900_v20 = vmul.f32 %v12142_v53, %v5888_v61  ;;  %v5901_v42 = vmul.f32 %v12142_v53, %v5892_v56  ;;  %v6126_v31 = vrot.slane %v12179_v32, %v13518_v37 }
 0xc43   : > { %v12236_v33 = vmul.f32 %v12220_v62, %v6114_v27  ;;  %v12239_v63 = vmul.f32 %v12220_v62, %v6118_v46  ;;  %v12245_v23 = vmul.f32 %v12220_v62, %v6130_v1  ;;  %v5902_v57 = vadd.f32 %v5897_v40, %v5870_v52 }
 0xc44   : > { %v5903_v9 = vadd.f32 %v5898_v13, %v5870_v52  ;;  %v12248_v53 = vmul.f32 %v12220_v62, %v6122_v47  ;;  %v5904_v56 = vadd.f32 %v5899_v21, %v5870_v52  ;;  %v5905_v22 = vadd.f32 %v5900_v20, %v5870_v52 }
 0xc45   : > { %v5906_v15 = vadd.f32 %v5901_v42, %v5870_v52  ;;  %v5936_v8 = vadd.f32 %v5931_v41, %v5902_v57  ;;  %v5944_v14 = vrot.slane %v12159_v29, %v13520_v3  ;;  %v5948_v36 = vrot.slane %v12165_v17, %v13520_v3 }
 0xc46   : > { %v5937_v24 = vadd.f32 %v5932_v49, %v5903_v9  ;;  %v5938_v19 = vadd.f32 %v5933_v0, %v5904_v56  ;;  %v5939_v38 = vadd.f32 %v5934_v48, %v5905_v22  ;;  %v5952_v55 = vrot.slane %v12172_v54, %v13520_v3  ;;  %v12267_v48 = vpop.permute.xlu1 %6064 }
 0xc47   : > { %v5940_v1 = vadd.f32 %v12148_v7, %v5906_v15  ;;  %v5956_v5 = vrot.slane %v12179_v32, %v13520_v3  ;;  %v5960_v52 = vrot.slane %v12075_v39, %v13520_v3  ;;  %v5965_v41 = vmul.f32 %v5963_v16, %v5944_v14 }
 0xc48   : > { %v5966_v10 = vmul.f32 %v5963_v16, %v5948_v36  ;;  %v7068_v49 = vpop.eup %7067  ;;  %v5967_v28 = vmul.f32 %v5963_v16, %v5952_v55  ;;  %v5978_v60 = vrot.slane %v12159_v29, %v13521_v18  ;;  %v5982_v0 = vrot.slane %v12165_v17, %v13521_v18 }
 0xc49   : > { %v5986_v7 = vrot.slane %v12172_v54, %v13521_v18  ;;  %v7070_v45 = vpop.eup %7069  ;;  %v5853_v25 = vadd.f32 1.0, %v7068_v49  ;;  %v5968_v35 = vmul.f32 %v5963_v16, %v5956_v5  ;;  %v5969_v61 = vmul.f32 %v5963_v16, %v5960_v52 }
 0xc4a   : > { %v5970_v40 = vadd.f32 %v5965_v41, %v5936_v8  ;;  %v7072_v27 = vpop.eup %7071  ;;  %v5854_v13 = vadd.f32 1.0, %v7070_v45  ;;  %v5971_v21 = vadd.f32 %v5966_v10, %v5937_v24  ;;  %v5972_v46 = vadd.f32 %v5967_v28, %v5938_v19  ;;  %v12285_v52 = vpop.permute.xlu1 %6098 }
 0xc4b   : > { %v5990_v47 = vrot.slane %v12179_v32, %v13521_v18  ;;  %v7074_v20 = vpop.eup %7073  ;;  %v5855_v42 = vadd.f32 1.0, %v7072_v27  ;;  %v12272_v57 = vmul.f32 %v5853_v25, %v12162_v2  ;;  %v5973_v9 = vadd.f32 %v5968_v35, %v5939_v38 }
 0xc4c   : > { %v5974_v56 = vadd.f32 %v5969_v61, %v5940_v1  ;;  %v7076_v22 = vpop.eup %7075  ;;  %v5856_v15 = vadd.f32 1.0, %v7074_v20  ;;  %v12275_v14 = vmul.f32 %v5854_v13, %v12167_v11  ;;  %v5994_v16 = vrot.slane %v12075_v39, %v13521_v18 }
 0xc4d   : > { %v5999_v8 = vmul.f32 %v5997_v30, %v5978_v60  ;;  %v5857_v24 = vadd.f32 1.0, %v7076_v22  ;;  %v12280_v36 = vmul.f32 %v5855_v42, %v12169_v26  ;;  %v6000_v19 = vmul.f32 %v5997_v30, %v5982_v0 }
 0xc4e   : > { %v6001_v55 = vmul.f32 %v5997_v30, %v5986_v7  ;;  %v12283_v2 = vmul.f32 %v5856_v15, %v12176_v44  ;;  %v6002_v38 = vmul.f32 %v5997_v30, %v5990_v47  ;;  %v6003_v1 = vmul.f32 %v5997_v30, %v5994_v16  ;;  %v6235_v30 = vpop.permute.xlu0 %6234 }
 0xc4f   : > { %v6004_v5 = vadd.f32 %v5999_v8, %v5970_v40  ;;  %v12288_v11 = vmul.f32 %v5857_v24, %v12186_v50  ;;  %v6005_v41 = vadd.f32 %v6000_v19, %v5971_v21  ;;  %v6216_v49 = vrot.slane %v12272_v57, %v13520_v3  ;;  %v13522_v21 = vld [vmem:[#allocation54_spill] sm:$0xff] }
 0xc50   : > { %v6006_v10 = vadd.f32 %v6001_v55, %v5972_v46  ;;  %v6007_v26 = vadd.f32 %v6002_v38, %v5973_v9  ;;  %v6008_v28 = vadd.f32 %v6003_v1, %v5974_v56  ;;  %v6220_v60 = vrot.slane %v12275_v14, %v13520_v3 }
 0xc51   : > { %v6224_v44 = vrot.slane %v12280_v36, %v13520_v3  ;;  %v12300_v50 = vmul.f32 %v12220_v62, %v6126_v31  ;;  %v6228_v0 = vrot.slane %v12283_v2, %v13520_v3  ;;  %v6232_v7 = vrot.slane %v12288_v11, %v13520_v3 }
 0xc52   : > { %v12306_v45 = vmul.f32 %v6235_v30, %v6216_v49  ;;  %v12308_v25 = vmul.f32 %v6235_v30, %v6220_v60  ;;  %v6038_v61 = vadd.f32 %v12201_v51, %v6004_v5  ;;  %v6039_v40 = vadd.f32 %v12203_v43, %v6005_v41  ;;  %v6167_v43 = vpop.permute.xlu1 %6166  ;;  %v6337_v19 = vpop.permute.xlu0 %6336 }
 0xc53   : > { %v12310_v35 = vmul.f32 %v6235_v30, %v6224_v44  ;;  %v12314_v27 = vmul.f32 %v6235_v30, %v6228_v0  ;;  %v6040_v62 = vadd.f32 %v12207_v34, %v6006_v10  ;;  %v6041_v31 = vadd.f32 %v12213_v58, %v6007_v26 }
 0xc54   : > { %v6042_v13 = vadd.f32 %v12156_v59, %v6008_v28  ;;  %v6046_v3 = vrot.slane %v12159_v29, %v13522_v21  ;;  %v6050_v46 = vrot.slane %v12165_v17, %v13522_v21  ;;  %v6054_v47 = vrot.slane %v12172_v54, %v13522_v21 }
 0xc55   : > { %v6058_v51 = vrot.slane %v12179_v32, %v13522_v21  ;;  %v6062_v34 = vrot.slane %v12075_v39, %v13522_v21  ;;  %v6318_v58 = vrot.slane %v12272_v57, %v13522_v21  ;;  %v6322_v59 = vrot.slane %v12275_v14, %v13522_v21 }
 0xc56   : > { %v6326_v20 = vrot.slane %v12280_v36, %v13522_v21  ;;  %v12335_v42 = vmul.f32 %v6235_v30, %v6232_v7  ;;  %v6067_v9 = vmul.f32 %v12267_v48, %v6046_v3  ;;  %v6068_v56 = vmul.f32 %v12267_v48, %v6050_v46  ;;  %v6201_v0 = vpop.permute.xlu1 %6200 }
 0xc57   : > { %v6069_v22 = vmul.f32 %v12267_v48, %v6054_v47  ;;  %v6070_v15 = vmul.f32 %v12267_v48, %v6058_v51  ;;  %v6071_v16 = vmul.f32 %v12267_v48, %v6062_v34  ;;  %v6330_v8 = vrot.slane %v12283_v2, %v13522_v21  ;;  %v13523_v48 = vld [vmem:[#allocation24_spill] sm:$0xff] }
 0xc58   : > { %v6334_v24 = vrot.slane %v12288_v11, %v13522_v21  ;;  %v6072_v55 = vadd.f32 %v6067_v9, %v6038_v61  ;;  %v6073_v38 = vadd.f32 %v6068_v56, %v6039_v40  ;;  %v12346_v5 = vmul.f32 %v6337_v19, %v6318_v58 }
 0xc59   : > { %v6074_v1 = vadd.f32 %v6069_v22, %v6040_v62  ;;  %v6075_v41 = vadd.f32 %v6070_v15, %v6041_v31  ;;  %v6076_v10 = vadd.f32 %v6071_v16, %v6042_v13  ;;  %v12348_v49 = vmul.f32 %v6337_v19, %v6322_v59 }
 0xc5a   : > { %v12350_v26 = vmul.f32 %v6337_v19, %v6326_v20  ;;  %v12352_v28 = vmul.f32 %v6337_v19, %v6330_v8  ;;  %v6080_v60 = vrot.slane %v12159_v29, %v13523_v48  ;;  %v6084_v44 = vrot.slane %v12165_v17, %v13523_v48  ;;  %v6269_v15 = vpop.permute.xlu1 %6268 }
 0xc5b   : > { %v6088_v30 = vrot.slane %v12172_v54, %v13523_v48  ;;  %v6092_v7 = vrot.slane %v12179_v32, %v13523_v48  ;;  %v6096_v61 = vrot.slane %v12075_v39, %v13523_v48  ;;  %v6148_v40 = vrot.slane %v12272_v57, %v13517_v6 }
 0xc5c   : > { %v6152_v62 = vrot.slane %v12275_v14, %v13517_v6  ;;  %v6101_v29 = vmul.f32 %v12285_v52, %v6080_v60  ;;  %v6102_v17 = vmul.f32 %v12285_v52, %v6084_v44  ;;  %v6156_v54 = vrot.slane %v12280_v36, %v13517_v6 }
 0xc5d   : > { %v6103_v31 = vmul.f32 %v12285_v52, %v6088_v30  ;;  %v12373_v13 = vmul.f32 %v6337_v19, %v6334_v24  ;;  %v6104_v32 = vmul.f32 %v12285_v52, %v6092_v7  ;;  %v6105_v39 = vmul.f32 %v12285_v52, %v6096_v61 }
 0xc5e   : > { %v6160_v21 = vrot.slane %v12283_v2, %v13517_v6  ;;  %v6106_v3 = vadd.f32 %v6101_v29, %v6072_v55  ;;  %v6107_v46 = vadd.f32 %v6102_v17, %v6073_v38  ;;  %v6164_v51 = vrot.slane %v12288_v11, %v13517_v6  ;;  %v6303_v17 = vpop.permute.xlu1 %6302 }
 0xc5f   : > { %v6108_v47 = vadd.f32 %v6103_v31, %v6074_v1  ;;  %v6109_v34 = vadd.f32 %v6104_v32, %v6075_v41  ;;  %v6110_v58 = vadd.f32 %v6105_v39, %v6076_v10  ;;  %v6169_v59 = vmul.f32 %v6167_v43, %v6148_v40 }
 0xc60   : > { %v6170_v20 = vmul.f32 %v6167_v43, %v6152_v62  ;;  %v6140_v9 = vadd.f32 %v12236_v33, %v6106_v3  ;;  %v6141_v56 = vadd.f32 %v12239_v63, %v6107_v46  ;;  %v6171_v52 = vmul.f32 %v6167_v43, %v6156_v54 }
 0xc61   : > { %v6142_v22 = vadd.f32 %v12248_v53, %v6108_v47  ;;  %v6143_v16 = vadd.f32 %v12300_v50, %v6109_v34  ;;  %v6144_v8 = vadd.f32 %v12245_v23, %v6110_v58  ;;  %v6172_v24 = vmul.f32 %v6167_v43, %v6160_v21 }
 0xc62   : > { %v6173_v19 = vmul.f32 %v6167_v43, %v6164_v51  ;;  %v6174_v55 = vadd.f32 %v6169_v59, %v6140_v9  ;;  %v6175_v6 = vadd.f32 %v6170_v20, %v6141_v56  ;;  %v6182_v38 = vrot.slane %v12272_v57, %v13511_v4 }
 0xc63   : > { %v6186_v33 = vrot.slane %v12275_v14, %v13511_v4  ;;  %v6176_v1 = vadd.f32 %v6171_v52, %v6142_v22  ;;  %v6177_v63 = vadd.f32 %v6172_v24, %v6143_v16  ;;  %v6190_v53 = vrot.slane %v12280_v36, %v13511_v4  ;;  %v6371_v52 = vpop.permute.xlu1 %6370 }
 0xc64   : > { %v6194_v50 = vrot.slane %v12283_v2, %v13511_v4  ;;  %v6178_v41 = vadd.f32 %v6173_v19, %v6144_v8  ;;  %v6198_v23 = vrot.slane %v12288_v11, %v13511_v4  ;;  %v6203_v43 = vmul.f32 %v6201_v0, %v6182_v38 }
 0xc65   : > { %v6204_v10 = vmul.f32 %v6201_v0, %v6186_v33  ;;  %v6205_v60 = vmul.f32 %v6201_v0, %v6190_v53  ;;  %v6250_v30 = vrot.slane %v12272_v57, %v13521_v18  ;;  %v6254_v7 = vrot.slane %v12275_v14, %v13521_v18 }
 0xc66   : > { %v6206_v44 = vmul.f32 %v6201_v0, %v6194_v50  ;;  %v6207_v61 = vmul.f32 %v6201_v0, %v6198_v23  ;;  %v6208_v40 = vadd.f32 %v6203_v43, %v6174_v55  ;;  %v6258_v29 = vrot.slane %v12280_v36, %v13521_v18 }
 0xc67   : > { %v6209_v62 = vadd.f32 %v6204_v10, %v6175_v6  ;;  %v6210_v31 = vadd.f32 %v6205_v60, %v6176_v1  ;;  %v6262_v4 = vrot.slane %v12283_v2, %v13521_v18  ;;  %v6266_v32 = vrot.slane %v12288_v11, %v13521_v18 }
 0xc68   : > { %v6211_v54 = vadd.f32 %v6206_v44, %v6177_v63  ;;  %v6212_v39 = vadd.f32 %v6207_v61, %v6178_v41  ;;  %v6242_v21 = vadd.f32 %v12306_v45, %v6208_v40  ;;  %v6271_v0 = vmul.f32 %v6269_v15, %v6250_v30 }
 0xc69   : > { %v6243_v3 = vadd.f32 %v12308_v25, %v6209_v62  ;;  %v6244_v46 = vadd.f32 %v12310_v35, %v6210_v31  ;;  %v6272_v51 = vmul.f32 %v6269_v15, %v6254_v7  ;;  %v6273_v34 = vmul.f32 %v6269_v15, %v6258_v29  ;;  %v6405_v62 = vpop.permute.xlu1 %6404 }
 0xc6a   : > { %v6245_v47 = vadd.f32 %v12314_v27, %v6211_v54  ;;  %v6246_v58 = vadd.f32 %v12335_v42, %v6212_v39  ;;  %v6274_v59 = vmul.f32 %v6269_v15, %v6262_v4  ;;  %v6275_v20 = vmul.f32 %v6269_v15, %v6266_v32 }
 0xc6b   : > { %v6276_v9 = vadd.f32 %v6271_v0, %v6242_v21  ;;  %v6277_v56 = vadd.f32 %v6272_v51, %v6243_v3  ;;  %v6278_v22 = vadd.f32 %v6273_v34, %v6244_v46  ;;  %v6284_v18 = vrot.slane %v12272_v57, %v13516_v12 }
 0xc6c   : > { %v6288_v45 = vrot.slane %v12275_v14, %v13516_v12  ;;  %v6279_v25 = vadd.f32 %v6274_v59, %v6245_v47  ;;  %v6292_v35 = vrot.slane %v12280_v36, %v13516_v12  ;;  %v6296_v27 = vrot.slane %v12283_v2, %v13516_v12 }
 0xc6d   : > { %v6300_v42 = vrot.slane %v12288_v11, %v13516_v12  ;;  %v6280_v15 = vadd.f32 %v6275_v20, %v6246_v58  ;;  %v6305_v16 = vmul.f32 %v6303_v17, %v6284_v18  ;;  %v6352_v24 = vrot.slane %v12272_v57, %v13523_v48  ;;  %v13526_v18 = vld [vmem:[#allocation20_spill] sm:$0xff] }
 0xc6e   : > { %v6306_v8 = vmul.f32 %v6303_v17, %v6288_v45  ;;  %v6307_v19 = vmul.f32 %v6303_v17, %v6292_v35  ;;  %v6308_v55 = vmul.f32 %v6303_v17, %v6296_v27  ;;  %v6356_v38 = vrot.slane %v12275_v14, %v13523_v48  ;;  %v13528_v27 = vld [vmem:[#allocation118_spill] sm:$0xff] }
 0xc6f   : > { %v6309_v6 = vmul.f32 %v6303_v17, %v6300_v42  ;;  %v6310_v33 = vadd.f32 %v6305_v16, %v6276_v9  ;;  %v6360_v63 = vrot.slane %v12280_v36, %v13523_v48  ;;  %v6364_v12 = vrot.slane %v12283_v2, %v13523_v48  ;;  %v13530_v16 = vld [vmem:[#allocation31_spill] sm:$0xff] }
 0xc70   : > { %v6311_v1 = vadd.f32 %v6306_v8, %v6277_v56  ;;  %v6312_v53 = vadd.f32 %v6307_v19, %v6278_v22  ;;  %v6313_v50 = vadd.f32 %v6308_v55, %v6279_v25  ;;  %v6368_v23 = vrot.slane %v12288_v11, %v13523_v48  ;;  %v13524_v56 = vld [vmem:[#allocation27_spill] sm:$0xff]  ;;  %v13527_v25 = vld [vmem:[#allocation82_spill] sm:$0xff] }
 0xc71   : > { %v6314_v41 = vadd.f32 %v6309_v6, %v6280_v15  ;;  %v6344_v43 = vadd.f32 %v12346_v5, %v6310_v33  ;;  %v6373_v60 = vmul.f32 %v6371_v52, %v6352_v24  ;;  %v6374_v44 = vmul.f32 %v6371_v52, %v6356_v38  ;;  %v13531_v24 = vld [vmem:[#allocation76_spill] sm:$0xff]  ;;  %v13532_v6 = vld [vmem:[#allocation22_spill] sm:$0xff] }
 0xc72   : > { %v6345_v10 = vadd.f32 %v12348_v49, %v6311_v1  ;;  %v6346_v30 = vadd.f32 %v12350_v26, %v6312_v53  ;;  %v6347_v7 = vadd.f32 %v12352_v28, %v6313_v50  ;;  %v6375_v40 = vmul.f32 %v6371_v52, %v6360_v63  ;;  %v13533_v33 = vld [vmem:[#allocation72_spill] sm:$0xff] }
 0xc73   : > { %v6348_v61 = vadd.f32 %v12373_v13, %v6314_v41  ;;  %v6376_v29 = vmul.f32 %v6371_v52, %v6364_v12  ;;  %v6377_v17 = vmul.f32 %v6371_v52, %v6368_v23  ;;  %v6378_v31 = vadd.f32 %v6373_v60, %v6344_v43  ;;  %v13529_v52 = vld [vmem:[#allocation120_spill] sm:$0xff] }
 0xc74   : > { %v6386_v48 = vrot.slane %v12272_v57, %v13518_v37  ;;  %v6379_v54 = vadd.f32 %v6374_v44, %v6345_v10  ;;  %v6380_v5 = vadd.f32 %v6375_v40, %v6346_v30  ;;  %v6390_v49 = vrot.slane %v12275_v14, %v13518_v37  ;;  %v6419_v14 = vpop.permute.xlu0 %6418 }
 0xc75   : > { %v6394_v26 = vrot.slane %v12280_v36, %v13518_v37  ;;  %v6381_v4 = vadd.f32 %v6376_v29, %v6347_v7  ;;  %v6398_v28 = vrot.slane %v12283_v2, %v13518_v37  ;;  %v6402_v13 = vrot.slane %v12288_v11, %v13518_v37  ;;  %v13525_v37 = vld [vmem:[#allocation116_spill] sm:$0xff] }
 0xc76   : > { %v6407_v32 = vmul.f32 %v6405_v62, %v6386_v48  ;;  %v6408_v39 = vmul.f32 %v6405_v62, %v6390_v49  ;;  %v6382_v3 = vadd.f32 %v6377_v17, %v6348_v61 }
 0xc77   : > { %v6409_v21 = vmul.f32 %v6405_v62, %v6394_v26  ;;  %v6410_v57 = vmul.f32 %v6405_v62, %v6398_v28  ;;  %v6411_v0 = vmul.f32 %v6405_v62, %v6402_v13 }
 0xc78   : > { %v6412_v46 = vadd.f32 %v6407_v32, %v6378_v31  ;;  %v6413_v47 = vadd.f32 %v6408_v39, %v6379_v54 }
 0xc79   : > { %v6414_v51 = vadd.f32 %v6409_v21, %v6380_v5  ;;  %v6415_v34 = vadd.f32 %v6410_v57, %v6381_v4  ;;  %v6416_v58 = vadd.f32 %v6411_v0, %v6382_v3 }
 0xc7a   : > { %v6421_v36 = vmul.f32 %v6419_v14, %v6412_v46  ;;  %v6422_v59 = vmul.f32 %v6419_v14, %v6413_v47 }
 0xc7b   : > { %v6423_v20 = vmul.f32 %v6419_v14, %v6414_v51  ;;  %v6424_v9 = vmul.f32 %v6419_v14, %v6415_v34  ;;  %v6425_v2 = vmul.f32 %v6419_v14, %v6416_v58 }
 0xc7c   : > { %v6426_v22 = vadd.f32 %v6421_v36, %v13524_v56  ;;  %v6427_v11 = vadd.f32 %v6422_v59, %v13525_v37 }
 0xc7d   : > { %v6428_v45 = vadd.f32 %v6423_v20, %v13526_v18  ;;  %v6430_v42 = vadd.f32 %v6425_v2, %v13528_v27  ;;  %v6429_v15 = vadd.f32 %v6424_v9, %v13529_v52 }
 0xc7e   : > { %v6431_v35 = vadd.f32 %v6426_v22, %v13527_v25  ;;  %v6432_v8 = vadd.f32 %v6427_v11, %v13530_v16 }
 0xc7f   : > { %v6433_v19 = vadd.f32 %v6428_v45, %v13531_v24  ;;  %v6435_v38 = vadd.f32 %v6430_v42, %v13532_v6  ;;  %v6434_v1 = vadd.f32 %v6429_v15, %v13533_v33 }
 0xc80   : > { %v6441_v55 = vmin.f32 %v6431_v35, 0.0  ;;  %v6442_v63 = vmin.f32 %v6432_v8, 0.0  ;;  %vm6437_vm0 = vcmp.gt.f32.partialorder %v6432_v8, 0.0  ;;  %vm6436_vm8 = vcmp.gt.f32.partialorder %v6431_v35, 0.0 }
 0xc81   : > { %v6443_v12 = vmin.f32 %v6433_v19, 0.0  ;;  %v6445_v50 = vmin.f32 %v6435_v38, 0.0  ;;  %v6444_v43 = vmin.f32 %v6434_v1, 0.0  ;;  %vm6438_vm6 = vcmp.gt.f32.partialorder %v6433_v19, 0.0 }
 0xc82   : > { %v6446_v53 = vmul.f32 1.442695, %v6441_v55  ;;  %v6448_v41 = vmul.f32 1.442695, %v6442_v63  ;;  %vm6440_vm9 = vcmp.gt.f32.partialorder %v6435_v38, 0.0  ;;  %vm6439_vm10 = vcmp.gt.f32.partialorder %v6434_v1, 0.0 }
 0xc83   : > { %v6450_v23 = vmul.f32 1.442695, %v6443_v12  ;;  %v6454_v10 = vmul.f32 1.442695, %v6445_v50  ;;  %v6452_v60 = vmul.f32 1.442695, %v6444_v43 }
 0xc84   : > { %7077 = vpow2.f32 %v6446_v53 }
 0xc85   : > { %7079 = vpow2.f32 %v6448_v41 }
 0xc86   : > { %7081 = vpow2.f32 %v6450_v23 }
 0xc87   : > { %7083 = vpow2.f32 %v6454_v10 }
 0xc88   : > { %7085 = vpow2.f32 %v6452_v60 }
 0xc91   : > { %v7078_v44 = vpop.eup %7077 }
 0xc92   : > { %v7080_v30 = vpop.eup %7079  ;;  %v6639_v17 = vadd.f32 -1.0, %v7078_v44 }
 0xc93   : > { %v7082_v7 = vpop.eup %7081  ;;  %v6640_v61 = vadd.f32 -1.0, %v7080_v30 }
 0xc94   : > { %v7084_v40 = vpop.eup %7083  ;;  %v6641_v62 = vadd.f32 -1.0, %v7082_v7  ;;  %v6461_v5 = vsel %vm6436_vm8, %v6431_v35, %v6639_v17 }
 0xc95   : > { %v6462_v29 = vsel %vm6437_vm0, %v6432_v8, %v6640_v61  ;;  %v7086_v31 = vpop.eup %7085  ;;  %v6643_v54 = vadd.f32 -1.0, %v7084_v40 }
 0xc96   : > { %6473 = vrot.lane.b32.xlu1 %v6462_v29, %s7367_s9  ;;  %v6463_v48 = vsel %vm6438_vm6, %v6433_v19, %v6641_v62  ;;  %v6642_v49 = vadd.f32 -1.0, %v7086_v31 }
 0xc97   : > { %6475 = vrot.lane.b32.xlu0 %v6463_v48, %s7367_s9  ;;  %v6465_v26 = vsel %vm6440_vm9, %v6435_v38, %v6643_v54 }
 0xc98   : > { %v6464_v4 = vsel %vm6439_vm10, %v6434_v1, %v6642_v49 }
 0xc9a   : > { %6471 = vrot.lane.b32.xlu1 %v6461_v5, %s7367_s9 }
 0xc9b   : > { %6479 = vrot.lane.b32.xlu0 %v6465_v26, %s7367_s9 }
 0xc9e   : > { %6477 = vrot.lane.b32.xlu1 %v6464_v4, %s7367_s9 }
 0xd08   : > { %v6474_v28 = vpop.permute.xlu1 %6473 }
 0xd09   : > { %v6476_v13 = vpop.permute.xlu0 %6475 }
 0xd0a   : > { %v6482_v32 = vsel %vm1602_vm7, %v6474_v28, %v6476_v13 }
 0xd0b   : > { %6490 = vst [vmem:[%s294_s23 + $0x8] sm:$0xff] %v6482_v32 }
 0xd0c   : > { %v6472_v39 = vpop.permute.xlu1 %6471 }
 0xd0d   : > { %v6481_v21 = vsel %vm1602_vm7, %v6472_v39, %v6474_v28  ;;  %v6480_v3 = vpop.permute.xlu0 %6479 }
 0xd0e   : > { %6489 = vst [vmem:[%s294_s23] sm:$0xff] %v6481_v21 }
 0xd10   : > { %v6478_v57 = vpop.permute.xlu1 %6477 }
 0xd11   : > { %v6483_v0 = vsel %vm1602_vm7, %v6476_v13, %v6478_v57  ;;  %v6484_v46 = vsel %vm1602_vm7, %v6478_v57, %v6480_v3 }
 0xd12   : > { %6491 = vst [vmem:[%s294_s23 + $0x10] sm:$0xff] %v6483_v0  ;;  %6492 = vst [vmem:[%s294_s23 + $0x18] sm:$0xff] %v6484_v46 }
 0xd13   : > { %7255 = shalt.err (!%p7252_p11)
}
 0xd14   : > { %s7256_s6 = scalar_lea.hbm %s12468_s8, 512  ;;  %s7260_s9 = scalar_lea.hbm %s12518_s5, 1024 }
 0xd15   : > { %p7257_p13 = scmp.ne.s32.totalorder %s12468_s8, %s7256_s6  ;;  %p7261_p4 = scmp.lt.s32.totalorder %s12468_s8, %s12518_s5 }
 0xd16   : > { %p7262_p6 = scmp.lt.s32.totalorder %s7260_s9, %s7256_s6 }
 0xd17   : > { %p7258_p1 = pnand %p7257_p13, %p13534_p7 }
 0xd18   : > { %p7263_p5 = por %p7262_p6, %p7261_p4 }
 0xd19   : > { %p7259_p3 = pneg %p7258_p1 }
 0xd1b   : > { %p7264_p8 = pnand %p7263_p5, %p7259_p3 }
 0xd1d   : > { %7267 = shalt.err (!%p7264_p8)
}
 0xd1e   : > { %6669 = dma.vmem_to_hbm [thread:$0]  (%p13534_p7), %s12470_s27, 512, %s12468_s8, %s6494_s24  }
 0xd1f PF: > { %s6520_s23 = sand.u32 1, %s7302_s18   ;;  %p13535_p10 = scmp.ne.s32.totalorder %s12922_s12, 0 }
 0xd20   : > { %p13536_p0 = scmp.ge.s32.totalorder %s7314_s21, 2  ;;  %s6521_s26 = scalar_lea.sflag [#allocation5], %s6520_s23 }
 0xd22   : > { %p6689_p12 = pnand %p13536_p0, %p13535_p10 }
 0xd24   : > { %p6690_p2 = pneg %p6689_p12 }
 0xd26   : > { %7297 = dma.done.wait (%p6690_p2), %s6521_s26, 512  }
 0xd27   : > { %7299 = vsyncadd (%p6690_p2), %s6521_s26, 4294966784  ;;  %p20_p9 = scmp.ge.s32.totalorder %s7518_s28, 4   ;;  %s13537_s18 = smov %s7306_s19 }
 0xd28   : > { %s13538_s19 = smov %s7310_s20  ;;  %s13539_s20 = smov %s7529_s7 }
 0xd29   : > { %s13540_s21 = smov %s7518_s28  ;;  %22 = sbr.rel (!%p20_p9) target bundleno = 7 (0x7), region = 101 }
 0xd2e   :  { %6526 = vsyncpa [#allocation4], 1 }
 0xd2f   :  { %6528 = vsyncpa [#allocation4 + $0x1], 1 }
 0xd30   :  { %6529 = vsyncpa [#allocation7], 1 }
 0xd31   :  { %6530 = vsyncpa [#allocation10], 1 }
 0xd32   :  { %6531 = vsyncpa [#allocation5], 1 }
 0xd33   :  { %6533 = vsyncpa [#allocation5 + $0x1], 1 }

</bundles_post_ra>
